<compile_context>
chip_gen: v6e
topology: v6e:2x2x1
jax: 0.10.0
libtpu: 0.0.40
codegen_flags: <defaults>
</compile_context>

<pallas_src>
import jax
import jax.numpy as jnp
from jax.experimental import pallas as pl
from jax.experimental.pallas import tpu as pltpu


# --------------------------------------------------------------------------
# Pallas kernels
# --------------------------------------------------------------------------
def _conv_mm_kernel(x_ref, w_ref, scale_ref, shift_ref, o_ref):
    """im2col matmul (bf16 in, f32 acc) + per-channel affine + LeakyReLU(0.2)."""
    acc = jnp.dot(x_ref[...], w_ref[...], preferred_element_type=jnp.float32)
    y = acc * scale_ref[...] + shift_ref[...]          # f32 epilogue
    o_ref[...] = jnp.where(y >= 0.0, y, 0.2 * y).astype(o_ref.dtype)


def _head_kernel(x_ref, w_ref, b_ref, rf_ref, c_ref):
    """Single lane-dense matmul for both FC heads, then sigmoid / softmax.

    w_ref columns: [0:10] = fc_class, [10:11] = fc_source, rest zero padding.
    """
    y = jnp.dot(x_ref[...], w_ref[...], preferred_element_type=jnp.float32)
    y = y + b_ref[...]
    logits = y[:, 0:10]
    s = y[:, 10:11]
    # numerically-stable sigmoid
    rf_ref[...] = jnp.where(
        s >= 0.0,
        1.0 / (1.0 + jnp.exp(-s)),
        jnp.exp(s) / (1.0 + jnp.exp(s)),
    )
    m = jnp.max(logits, axis=-1, keepdims=True)
    e = jnp.exp(logits - m)
    c_ref[...] = e / jnp.sum(e, axis=-1, keepdims=True)


# --------------------------------------------------------------------------
# Glue: im2col (pad + STATIC strided slicing + reshape) in plain JAX, bf16
# --------------------------------------------------------------------------
def _im2col(x_nhwc, stride):
    """3x3 conv, padding=1.  Returns (N*Ho*Wo, 9*C) patches + output geometry."""
    n, h, w, c = x_nhwc.shape
    xp = jnp.pad(x_nhwc, ((0, 0), (1, 1), (1, 1), (0, 0)))
    ho = (h + 2 - 3) // stride + 1
    wo = (w + 2 - 3) // stride + 1
    cols = []
    for kh in range(3):
        for kw in range(3):
            cols.append(xp[:, kh:kh + stride * ho:stride,
                           kw:kw + stride * wo:stride, :])
    patches = jnp.concatenate(cols, axis=-1)           # (N, Ho, Wo, 9*C), bf16
    return patches.reshape(n * ho * wo, 9 * c), (n, ho, wo)


def _conv_block(x_nhwc, w, scale, shift, stride, tm_max=256):
    """Conv2d(3x3, pad=1) + folded-BN affine + LeakyReLU, one tiled Pallas call."""
    x2d, (n, ho, wo) = _im2col(x_nhwc, stride)
    m, k = x2d.shape
    cout = w.shape[-1]
    tm = min(tm_max, m)
    grid = (pl.cdiv(m, tm),)
    y2d = pl.pallas_call(
        _conv_mm_kernel,
        out_shape=jax.ShapeDtypeStruct((m, cout), jnp.bfloat16),
        grid=grid,
        in_specs=[
            pl.BlockSpec((tm, k), lambda i: (i, 0)),       # patches: tiled over M
            pl.BlockSpec((k, cout), lambda i: (0, 0)),     # weight: resident
            pl.BlockSpec((1, cout), lambda i: (0, 0)),     # scale
            pl.BlockSpec((1, cout), lambda i: (0, 0)),     # shift
        ],
        out_specs=pl.BlockSpec((tm, cout), lambda i: (i, 0)),
        compiler_params=pltpu.CompilerParams(
            dimension_semantics=("parallel",)),
    )(x2d, w, scale, shift)
    return y2d.reshape(n, ho, wo, cout)


def _heads(feat, w, b, tn_max=256):
    """Fused fc_source + fc_class heads (single matmul), tiled over batch."""
    n, k = feat.shape
    tn = min(tn_max, n)
    grid = (pl.cdiv(n, tn),)
    rf, c = pl.pallas_call(
        _head_kernel,
        out_shape=(jax.ShapeDtypeStruct((n, 1), jnp.float32),
                   jax.ShapeDtypeStruct((n, 10), jnp.float32)),
        grid=grid,
        in_specs=[
            pl.BlockSpec((tn, k), lambda i: (i, 0)),
            pl.BlockSpec(w.shape, lambda i: (0, 0)),
            pl.BlockSpec((1, w.shape[1]), lambda i: (0, 0)),
        ],
        out_specs=(pl.BlockSpec((tn, 1), lambda i: (i, 0)),
                   pl.BlockSpec((tn, 10), lambda i: (i, 0))),
        compiler_params=pltpu.CompilerParams(
            dimension_semantics=("parallel",)),
    )(feat, w, b)
    return rf, c


# --------------------------------------------------------------------------
# Parameter init (deterministic, synthetic).  Strides are STATIC (not params).
# --------------------------------------------------------------------------
_LAYER_CFG = [
    # (cin, cout, stride, has_bn)
    (3,   16,  2, False),
    (16,  32,  1, True),
    (32,  64,  2, True),
    (64,  128, 1, True),
    (128, 256, 2, True),
    (256, 512, 1, True),
]
_STRIDES = tuple(cfg[2] for cfg in _LAYER_CFG)


def init_params(key):
    conv_params = []
    for cin, cout, stride, has_bn in _LAYER_CFG:
        key, kw_, kb_ = jax.random.split(key, 3)
        # weight layout: (kh*kw*cin, cout) with (kh, kw, cin) flattening order,
        # matching the im2col patch ordering above.
        w = jax.random.normal(kw_, (9 * cin, cout), jnp.float32) * 0.02
        b = jax.random.normal(kb_, (cout,), jnp.float32) * 0.02
        if has_bn:
            gamma = jnp.ones((cout,), jnp.float32)
            beta = jnp.zeros((cout,), jnp.float32)
            rmean = jnp.zeros((cout,), jnp.float32)
            rvar = jnp.ones((cout,), jnp.float32)
            eps = 1e-5
            scale = gamma / jnp.sqrt(rvar + eps)
            shift = beta + (b - rmean) * scale
        else:
            scale = jnp.ones((cout,), jnp.float32)
            shift = b
        conv_params.append(dict(
            w=w.astype(jnp.bfloat16),
            scale=scale.reshape(1, cout),               # f32 epilogue params
            shift=shift.reshape(1, cout),
        ))

    key, k1, k2, k3, k4 = jax.random.split(key, 5)
    feat_dim = 4 * 4 * 512
    # "PyTorch layout" head weights: rows indexed by (c, h, w) flatten order.
    ws = jax.random.normal(k1, (feat_dim, 1), jnp.float32) * 0.01
    bs = jax.random.normal(k2, (1,), jnp.float32) * 0.01
    wc = jax.random.normal(k3, (feat_dim, 10), jnp.float32) * 0.01
    bc = jax.random.normal(k4, (10,), jnp.float32) * 0.01
    # Fold the NCHW flatten permutation into the weights so the kernel can
    # consume the NHWC flatten directly (no transpose of the feature map).
    h_i, w_i, c_i = jnp.meshgrid(jnp.arange(4), jnp.arange(4), jnp.arange(512),
                                 indexing="ij")
    perm = (c_i * 16 + h_i * 4 + w_i).reshape(-1)       # NHWC row -> torch row
    w_head = jnp.zeros((feat_dim, 128), jnp.float32)
    w_head = w_head.at[:, 0:10].set(wc[perm])           # fc_class
    w_head = w_head.at[:, 10:11].set(ws[perm])          # fc_source
    b_head = jnp.zeros((1, 128), jnp.float32)
    b_head = b_head.at[0, 0:10].set(bc)
    b_head = b_head.at[0, 10].set(bs[0])
    fc_params = dict(w=w_head.astype(jnp.bfloat16), b=b_head)
    return conv_params, fc_params


# --------------------------------------------------------------------------
# Forward pass
# --------------------------------------------------------------------------
def discriminator_forward(x_nchw, conv_params, fc_params):
    """x_nchw: (N, 3, 32, 32) float32.  Returns (rf (N,), c (N, 10))."""
    x = jnp.transpose(x_nchw, (0, 2, 3, 1)).astype(jnp.bfloat16)   # NCHW->NHWC
    for p, stride in zip(conv_params, _STRIDES):        # stride is static
        x = _conv_block(x, p["w"], p["scale"], p["shift"], stride)
    # x: (N, 4, 4, 512) bf16.  Flatten in NHWC order; head weights were
    # permuted at init to match PyTorch's NCHW x.view(-1, 4*4*512).
    n = x.shape[0]
    feat = x.reshape(n, 4 * 4 * 512)
    rf, c = _heads(feat, fc_params["w"], fc_params["b"])
    return rf.reshape(-1), c


# --------------------------------------------------------------------------
if __name__ == "__main__":
    key = jax.random.PRNGKey(0)
    kparam, kx = jax.random.split(key)
    conv_params, fc_params = init_params(kparam)

    # 32x32 input is required so the feature map reaches 4x4x512 before the FCs.
    x = jax.random.normal(kx, (2, 3, 32, 32), jnp.float32)

    fwd = jax.jit(discriminator_forward)
    rf, c = fwd(x, conv_params, fc_params)
    rf, c = jax.block_until_ready((rf, c))

    assert rf.shape == (2,), rf.shape
    assert c.shape == (2, 10), c.shape
    assert bool(jnp.all((rf > 0.0) & (rf < 1.0)))
    assert bool(jnp.allclose(jnp.sum(c, axis=-1), 1.0, atol=1e-5))

    print("KERNEL_OK")
</pallas_src>

<mosaic_0001>
module attributes {stable_mosaic.version = 11 : i64} {
  func.func @_conv_mm_kernel(%arg0: i32, %arg1: memref<256x27xbf16, #tpu.memory_space<vmem>>, %arg2: memref<27x16xbf16, #tpu.memory_space<vmem>>, %arg3: memref<1x16xf32, #tpu.memory_space<vmem>>, %arg4: memref<1x16xf32, #tpu.memory_space<vmem>>, %arg5: memref<256x16xbf16, #tpu.memory_space<vmem>>) attributes {dimension_semantics = [#tpu.dimension_semantics<parallel>], iteration_bounds = array<i64: 2>, scalar_prefetch = 0 : i64, scratch_operands = 0 : i64, tpu.core_type = #tpu.core_type<tc>, window_params = [{transform_indices = @transform_0, window_bounds = array<i64: 256, 27>}, {pipeline_mode = #tpu.pipeline_mode<synchronous>, transform_indices = @transform_1, window_bounds = array<i64: 27, 16>}, {pipeline_mode = #tpu.pipeline_mode<synchronous>, transform_indices = @transform_2, window_bounds = array<i64: 1, 16>}, {pipeline_mode = #tpu.pipeline_mode<synchronous>, transform_indices = @transform_3, window_bounds = array<i64: 1, 16>}, {transform_indices = @transform_4, window_bounds = array<i64: 256, 16>}]} {
    %c0 = arith.constant 0 : index
    %c0_0 = arith.constant 0 : index
    %0 = vector.load %arg1[%c0, %c0_0] : memref<256x27xbf16, #tpu.memory_space<vmem>>, vector<256x27xbf16>
    %c0_1 = arith.constant 0 : index
    %c0_2 = arith.constant 0 : index
    %1 = vector.load %arg2[%c0_1, %c0_2] : memref<27x16xbf16, #tpu.memory_space<vmem>>, vector<27x16xbf16>
    %cst = arith.constant dense<0.000000e+00> : vector<256x16xf32>
    %2 = tpu.matmul %0, %1, %cst {dimension_numbers = #tpu.dot_dimension_numbers<[1], [0], [0], [1], [0, 0, 1, 1], [], []>} : vector<256x27xbf16>, vector<27x16xbf16>, vector<256x16xf32> -> vector<256x16xf32>
    %c0_3 = arith.constant 0 : index
    %c0_4 = arith.constant 0 : index
    %3 = vector.load %arg3[%c0_3, %c0_4] : memref<1x16xf32, #tpu.memory_space<vmem>>, vector<1x16xf32>
    %4 = vector.broadcast %3 : vector<1x16xf32> to vector<256x16xf32>
    %5 = arith.mulf %2, %4 : vector<256x16xf32>
    %c0_5 = arith.constant 0 : index
    %c0_6 = arith.constant 0 : index
    %6 = vector.load %arg4[%c0_5, %c0_6] : memref<1x16xf32, #tpu.memory_space<vmem>>, vector<1x16xf32>
    %7 = vector.broadcast %6 : vector<1x16xf32> to vector<256x16xf32>
    %8 = arith.addf %5, %7 : vector<256x16xf32>
    %cst_7 = arith.constant 0.000000e+00 : f32
    %9 = vector.broadcast %cst_7 : f32 to vector<256x16xf32>
    %10 = arith.cmpf oge, %8, %9 : vector<256x16xf32>
    %cst_8 = arith.constant 2.000000e-01 : f32
    %11 = vector.broadcast %cst_8 : f32 to vector<256x16xf32>
    %12 = arith.mulf %11, %8 : vector<256x16xf32>
    %13 = arith.select %10, %8, %12 : vector<256x16xi1>, vector<256x16xf32>
    %14 = arith.truncf %13 : vector<256x16xf32> to vector<256x16xbf16>
    %c0_9 = arith.constant 0 : index
    %c0_10 = arith.constant 0 : index
    %15 = vector.load %arg5[%c0_9, %c0_10] : memref<256x16xbf16, #tpu.memory_space<vmem>>, vector<256x16xbf16>
    tpu.vector_store %arg5[%c0_9, %c0_10], %14 {strides = array<i32>} : memref<256x16xbf16, #tpu.memory_space<vmem>>, vector<256x16xbf16>,
    return
  }
  func.func @transform_0(%arg0: i32) -> (i32, i32) {
    %c0_i32 = arith.constant 0 : i32
    %c0_i32_0 = arith.constant 0 : i32
    return %arg0, %c0_i32 : i32, i32
  }
  func.func @transform_1(%arg0: i32) -> (i32, i32) {
    %c0_i32 = arith.constant 0 : i32
    %c0_i32_0 = arith.constant 0 : i32
    %c0_i32_1 = arith.constant 0 : i32
    return %c0_i32, %c0_i32_0 : i32, i32
  }
  func.func @transform_2(%arg0: i32) -> (i32, i32) {
    %c0_i32 = arith.constant 0 : i32
    %c0_i32_0 = arith.constant 0 : i32
    %c0_i32_1 = arith.constant 0 : i32
    return %c0_i32, %c0_i32_0 : i32, i32
  }
  func.func @transform_3(%arg0: i32) -> (i32, i32) {
    %c0_i32 = arith.constant 0 : i32
    %c0_i32_0 = arith.constant 0 : i32
    %c0_i32_1 = arith.constant 0 : i32
    return %c0_i32, %c0_i32_0 : i32, i32
  }
  func.func @transform_4(%arg0: i32) -> (i32, i32) {
    %c0_i32 = arith.constant 0 : i32
    %c0_i32_0 = arith.constant 0 : i32
    return %arg0, %c0_i32 : i32, i32
  }
}

module attributes {stable_mosaic.version = 11 : i64} {
  func.func @_conv_mm_kernel(%arg0: i32, %arg1: memref<256x144xbf16, #tpu.memory_space<vmem>>, %arg2: memref<144x32xbf16, #tpu.memory_space<vmem>>, %arg3: memref<1x32xf32, #tpu.memory_space<vmem>>, %arg4: memref<1x32xf32, #tpu.memory_space<vmem>>, %arg5: memref<256x32xbf16, #tpu.memory_space<vmem>>) attributes {dimension_semantics = [#tpu.dimension_semantics<parallel>], iteration_bounds = array<i64: 2>, scalar_prefetch = 0 : i64, scratch_operands = 0 : i64, tpu.core_type = #tpu.core_type<tc>, window_params = [{transform_indices = @transform_0, window_bounds = array<i64: 256, 144>}, {pipeline_mode = #tpu.pipeline_mode<synchronous>, transform_indices = @transform_1, window_bounds = array<i64: 144, 32>}, {pipeline_mode = #tpu.pipeline_mode<synchronous>, transform_indices = @transform_2, window_bounds = array<i64: 1, 32>}, {pipeline_mode = #tpu.pipeline_mode<synchronous>, transform_indices = @transform_3, window_bounds = array<i64: 1, 32>}, {transform_indices = @transform_4, window_bounds = array<i64: 256, 32>}]} {
    %c0 = arith.constant 0 : index
    %c0_0 = arith.constant 0 : index
    %0 = vector.load %arg1[%c0, %c0_0] : memref<256x144xbf16, #tpu.memory_space<vmem>>, vector<256x144xbf16>
    %c0_1 = arith.constant 0 : index
    %c0_2 = arith.constant 0 : index
    %1 = vector.load %arg2[%c0_1, %c0_2] : memref<144x32xbf16, #tpu.memory_space<vmem>>, vector<144x32xbf16>
    %cst = arith.constant dense<0.000000e+00> : vector<256x32xf32>
    %2 = tpu.matmul %0, %1, %cst {dimension_numbers = #tpu.dot_dimension_numbers<[1], [0], [0], [1], [0, 0, 1, 1], [], []>} : vector<256x144xbf16>, vector<144x32xbf16>, vector<256x32xf32> -> vector<256x32xf32>
    %c0_3 = arith.constant 0 : index
    %c0_4 = arith.constant 0 : index
    %3 = vector.load %arg3[%c0_3, %c0_4] : memref<1x32xf32, #tpu.memory_space<vmem>>, vector<1x32xf32>
    %4 = vector.broadcast %3 : vector<1x32xf32> to vector<256x32xf32>
    %5 = arith.mulf %2, %4 : vector<256x32xf32>
    %c0_5 = arith.constant 0 : index
    %c0_6 = arith.constant 0 : index
    %6 = vector.load %arg4[%c0_5, %c0_6] : memref<1x32xf32, #tpu.memory_space<vmem>>, vector<1x32xf32>
    %7 = vector.broadcast %6 : vector<1x32xf32> to vector<256x32xf32>
    %8 = arith.addf %5, %7 : vector<256x32xf32>
    %cst_7 = arith.constant 0.000000e+00 : f32
    %9 = vector.broadcast %cst_7 : f32 to vector<256x32xf32>
    %10 = arith.cmpf oge, %8, %9 : vector<256x32xf32>
    %cst_8 = arith.constant 2.000000e-01 : f32
    %11 = vector.broadcast %cst_8 : f32 to vector<256x32xf32>
    %12 = arith.mulf %11, %8 : vector<256x32xf32>
    %13 = arith.select %10, %8, %12 : vector<256x32xi1>, vector<256x32xf32>
    %14 = arith.truncf %13 : vector<256x32xf32> to vector<256x32xbf16>
    %c0_9 = arith.constant 0 : index
    %c0_10 = arith.constant 0 : index
    %15 = vector.load %arg5[%c0_9, %c0_10] : memref<256x32xbf16, #tpu.memory_space<vmem>>, vector<256x32xbf16>
    tpu.vector_store %arg5[%c0_9, %c0_10], %14 {strides = array<i32>} : memref<256x32xbf16, #tpu.memory_space<vmem>>, vector<256x32xbf16>,
    return
  }
  func.func @transform_0(%arg0: i32) -> (i32, i32) {
    %c0_i32 = arith.constant 0 : i32
    %c0_i32_0 = arith.constant 0 : i32
    return %arg0, %c0_i32 : i32, i32
  }
  func.func @transform_1(%arg0: i32) -> (i32, i32) {
    %c0_i32 = arith.constant 0 : i32
    %c0_i32_0 = arith.constant 0 : i32
    %c0_i32_1 = arith.constant 0 : i32
    return %c0_i32, %c0_i32_0 : i32, i32
  }
  func.func @transform_2(%arg0: i32) -> (i32, i32) {
    %c0_i32 = arith.constant 0 : i32
    %c0_i32_0 = arith.constant 0 : i32
    %c0_i32_1 = arith.constant 0 : i32
    return %c0_i32, %c0_i32_0 : i32, i32
  }
  func.func @transform_3(%arg0: i32) -> (i32, i32) {
    %c0_i32 = arith.constant 0 : i32
    %c0_i32_0 = arith.constant 0 : i32
    %c0_i32_1 = arith.constant 0 : i32
    return %c0_i32, %c0_i32_0 : i32, i32
  }
  func.func @transform_4(%arg0: i32) -> (i32, i32) {
    %c0_i32 = arith.constant 0 : i32
    %c0_i32_0 = arith.constant 0 : i32
    return %arg0, %c0_i32 : i32, i32
  }
}

module attributes {stable_mosaic.version = 11 : i64} {
  func.func @_conv_mm_kernel(%arg0: i32, %arg1: memref<128x288xbf16, #tpu.memory_space<vmem>>, %arg2: memref<288x64xbf16, #tpu.memory_space<vmem>>, %arg3: memref<1x64xf32, #tpu.memory_space<vmem>>, %arg4: memref<1x64xf32, #tpu.memory_space<vmem>>, %arg5: memref<128x64xbf16, #tpu.memory_space<vmem>>) attributes {dimension_semantics = [#tpu.dimension_semantics<parallel>], iteration_bounds = array<i64: 1>, scalar_prefetch = 0 : i64, scratch_operands = 0 : i64, tpu.core_type = #tpu.core_type<tc>, window_params = [{transform_indices = @transform_0, window_bounds = array<i64: 128, 288>}, {pipeline_mode = #tpu.pipeline_mode<synchronous>, transform_indices = @transform_1, window_bounds = array<i64: 288, 64>}, {pipeline_mode = #tpu.pipeline_mode<synchronous>, transform_indices = @transform_2, window_bounds = array<i64: 1, 64>}, {pipeline_mode = #tpu.pipeline_mode<synchronous>, transform_indices = @transform_3, window_bounds = array<i64: 1, 64>}, {transform_indices = @transform_4, window_bounds = array<i64: 128, 64>}]} {
    %c0 = arith.constant 0 : index
    %c0_0 = arith.constant 0 : index
    %0 = vector.load %arg1[%c0, %c0_0] : memref<128x288xbf16, #tpu.memory_space<vmem>>, vector<128x288xbf16>
    %c0_1 = arith.constant 0 : index
    %c0_2 = arith.constant 0 : index
    %1 = vector.load %arg2[%c0_1, %c0_2] : memref<288x64xbf16, #tpu.memory_space<vmem>>, vector<288x64xbf16>
    %cst = arith.constant dense<0.000000e+00> : vector<128x64xf32>
    %2 = tpu.matmul %0, %1, %cst {dimension_numbers = #tpu.dot_dimension_numbers<[1], [0], [0], [1], [0, 0, 1, 1], [], []>} : vector<128x288xbf16>, vector<288x64xbf16>, vector<128x64xf32> -> vector<128x64xf32>
    %c0_3 = arith.constant 0 : index
    %c0_4 = arith.constant 0 : index
    %3 = vector.load %arg3[%c0_3, %c0_4] : memref<1x64xf32, #tpu.memory_space<vmem>>, vector<1x64xf32>
    %4 = vector.broadcast %3 : vector<1x64xf32> to vector<128x64xf32>
    %5 = arith.mulf %2, %4 : vector<128x64xf32>
    %c0_5 = arith.constant 0 : index
    %c0_6 = arith.constant 0 : index
    %6 = vector.load %arg4[%c0_5, %c0_6] : memref<1x64xf32, #tpu.memory_space<vmem>>, vector<1x64xf32>
    %7 = vector.broadcast %6 : vector<1x64xf32> to vector<128x64xf32>
    %8 = arith.addf %5, %7 : vector<128x64xf32>
    %cst_7 = arith.constant 0.000000e+00 : f32
    %9 = vector.broadcast %cst_7 : f32 to vector<128x64xf32>
    %10 = arith.cmpf oge, %8, %9 : vector<128x64xf32>
    %cst_8 = arith.constant 2.000000e-01 : f32
    %11 = vector.broadcast %cst_8 : f32 to vector<128x64xf32>
    %12 = arith.mulf %11, %8 : vector<128x64xf32>
    %13 = arith.select %10, %8, %12 : vector<128x64xi1>, vector<128x64xf32>
    %14 = arith.truncf %13 : vector<128x64xf32> to vector<128x64xbf16>
    %c0_9 = arith.constant 0 : index
    %c0_10 = arith.constant 0 : index
    %15 = vector.load %arg5[%c0_9, %c0_10] : memref<128x64xbf16, #tpu.memory_space<vmem>>, vector<128x64xbf16>
    tpu.vector_store %arg5[%c0_9, %c0_10], %14 {strides = array<i32>} : memref<128x64xbf16, #tpu.memory_space<vmem>>, vector<128x64xbf16>,
    return
  }
  func.func @transform_0(%arg0: i32) -> (i32, i32) {
    %c0_i32 = arith.constant 0 : i32
    %c0_i32_0 = arith.constant 0 : i32
    return %arg0, %c0_i32 : i32, i32
  }
  func.func @transform_1(%arg0: i32) -> (i32, i32) {
    %c0_i32 = arith.constant 0 : i32
    %c0_i32_0 = arith.constant 0 : i32
    %c0_i32_1 = arith.constant 0 : i32
    return %c0_i32, %c0_i32_0 : i32, i32
  }
  func.func @transform_2(%arg0: i32) -> (i32, i32) {
    %c0_i32 = arith.constant 0 : i32
    %c0_i32_0 = arith.constant 0 : i32
    %c0_i32_1 = arith.constant 0 : i32
    return %c0_i32, %c0_i32_0 : i32, i32
  }
  func.func @transform_3(%arg0: i32) -> (i32, i32) {
    %c0_i32 = arith.constant 0 : i32
    %c0_i32_0 = arith.constant 0 : i32
    %c0_i32_1 = arith.constant 0 : i32
    return %c0_i32, %c0_i32_0 : i32, i32
  }
  func.func @transform_4(%arg0: i32) -> (i32, i32) {
    %c0_i32 = arith.constant 0 : i32
    %c0_i32_0 = arith.constant 0 : i32
    return %arg0, %c0_i32 : i32, i32
  }
}

module attributes {stable_mosaic.version = 11 : i64} {
  func.func @_conv_mm_kernel(%arg0: i32, %arg1: memref<128x576xbf16, #tpu.memory_space<vmem>>, %arg2: memref<576x128xbf16, #tpu.memory_space<vmem>>, %arg3: memref<1x128xf32, #tpu.memory_space<vmem>>, %arg4: memref<1x128xf32, #tpu.memory_space<vmem>>, %arg5: memref<128x128xbf16, #tpu.memory_space<vmem>>) attributes {dimension_semantics = [#tpu.dimension_semantics<parallel>], iteration_bounds = array<i64: 1>, scalar_prefetch = 0 : i64, scratch_operands = 0 : i64, tpu.core_type = #tpu.core_type<tc>, window_params = [{transform_indices = @transform_0, window_bounds = array<i64: 128, 576>}, {pipeline_mode = #tpu.pipeline_mode<synchronous>, transform_indices = @transform_1, window_bounds = array<i64: 576, 128>}, {pipeline_mode = #tpu.pipeline_mode<synchronous>, transform_indices = @transform_2, window_bounds = array<i64: 1, 128>}, {pipeline_mode = #tpu.pipeline_mode<synchronous>, transform_indices = @transform_3, window_bounds = array<i64: 1, 128>}, {transform_indices = @transform_4, window_bounds = array<i64: 128, 128>}]} {
    %c0 = arith.constant 0 : index
    %c0_0 = arith.constant 0 : index
    %0 = vector.load %arg1[%c0, %c0_0] : memref<128x576xbf16, #tpu.memory_space<vmem>>, vector<128x576xbf16>
    %c0_1 = arith.constant 0 : index
    %c0_2 = arith.constant 0 : index
    %1 = vector.load %arg2[%c0_1, %c0_2] : memref<576x128xbf16, #tpu.memory_space<vmem>>, vector<576x128xbf16>
    %cst = arith.constant dense<0.000000e+00> : vector<128x128xf32>
    %2 = tpu.matmul %0, %1, %cst {dimension_numbers = #tpu.dot_dimension_numbers<[1], [0], [0], [1], [0, 0, 1, 1], [], []>} : vector<128x576xbf16>, vector<576x128xbf16>, vector<128x128xf32> -> vector<128x128xf32>
    %c0_3 = arith.constant 0 : index
    %c0_4 = arith.constant 0 : index
    %3 = vector.load %arg3[%c0_3, %c0_4] : memref<1x128xf32, #tpu.memory_space<vmem>>, vector<1x128xf32>
    %4 = vector.broadcast %3 : vector<1x128xf32> to vector<128x128xf32>
    %5 = arith.mulf %2, %4 : vector<128x128xf32>
    %c0_5 = arith.constant 0 : index
    %c0_6 = arith.constant 0 : index
    %6 = vector.load %arg4[%c0_5, %c0_6] : memref<1x128xf32, #tpu.memory_space<vmem>>, vector<1x128xf32>
    %7 = vector.broadcast %6 : vector<1x128xf32> to vector<128x128xf32>
    %8 = arith.addf %5, %7 : vector<128x128xf32>
    %cst_7 = arith.constant 0.000000e+00 : f32
    %9 = vector.broadcast %cst_7 : f32 to vector<128x128xf32>
    %10 = arith.cmpf oge, %8, %9 : vector<128x128xf32>
    %cst_8 = arith.constant 2.000000e-01 : f32
    %11 = vector.broadcast %cst_8 : f32 to vector<128x128xf32>
    %12 = arith.mulf %11, %8 : vector<128x128xf32>
    %13 = arith.select %10, %8, %12 : vector<128x128xi1>, vector<128x128xf32>
    %14 = arith.truncf %13 : vector<128x128xf32> to vector<128x128xbf16>
    %c0_9 = arith.constant 0 : index
    %c0_10 = arith.constant 0 : index
    %15 = vector.load %arg5[%c0_9, %c0_10] : memref<128x128xbf16, #tpu.memory_space<vmem>>, vector<128x128xbf16>
    tpu.vector_store %arg5[%c0_9, %c0_10], %14 {strides = array<i32>} : memref<128x128xbf16, #tpu.memory_space<vmem>>, vector<128x128xbf16>,
    return
  }
  func.func @transform_0(%arg0: i32) -> (i32, i32) {
    %c0_i32 = arith.constant 0 : i32
    %c0_i32_0 = arith.constant 0 : i32
    return %arg0, %c0_i32 : i32, i32
  }
  func.func @transform_1(%arg0: i32) -> (i32, i32) {
    %c0_i32 = arith.constant 0 : i32
    %c0_i32_0 = arith.constant 0 : i32
    %c0_i32_1 = arith.constant 0 : i32
    return %c0_i32, %c0_i32_0 : i32, i32
  }
  func.func @transform_2(%arg0: i32) -> (i32, i32) {
    %c0_i32 = arith.constant 0 : i32
    %c0_i32_0 = arith.constant 0 : i32
    %c0_i32_1 = arith.constant 0 : i32
    return %c0_i32, %c0_i32_0 : i32, i32
  }
  func.func @transform_3(%arg0: i32) -> (i32, i32) {
    %c0_i32 = arith.constant 0 : i32
    %c0_i32_0 = arith.constant 0 : i32
    %c0_i32_1 = arith.constant 0 : i32
    return %c0_i32, %c0_i32_0 : i32, i32
  }
  func.func @transform_4(%arg0: i32) -> (i32, i32) {
    %c0_i32 = arith.constant 0 : i32
    %c0_i32_0 = arith.constant 0 : i32
    return %arg0, %c0_i32 : i32, i32
  }
}

module attributes {stable_mosaic.version = 11 : i64} {
  func.func @_conv_mm_kernel(%arg0: i32, %arg1: memref<32x1152xbf16, #tpu.memory_space<vmem>>, %arg2: memref<1152x256xbf16, #tpu.memory_space<vmem>>, %arg3: memref<1x256xf32, #tpu.memory_space<vmem>>, %arg4: memref<1x256xf32, #tpu.memory_space<vmem>>, %arg5: memref<32x256xbf16, #tpu.memory_space<vmem>>) attributes {dimension_semantics = [#tpu.dimension_semantics<parallel>], iteration_bounds = array<i64: 1>, scalar_prefetch = 0 : i64, scratch_operands = 0 : i64, tpu.core_type = #tpu.core_type<tc>, window_params = [{transform_indices = @transform_0, window_bounds = array<i64: 32, 1152>}, {pipeline_mode = #tpu.pipeline_mode<synchronous>, transform_indices = @transform_1, window_bounds = array<i64: 1152, 256>}, {pipeline_mode = #tpu.pipeline_mode<synchronous>, transform_indices = @transform_2, window_bounds = array<i64: 1, 256>}, {pipeline_mode = #tpu.pipeline_mode<synchronous>, transform_indices = @transform_3, window_bounds = array<i64: 1, 256>}, {transform_indices = @transform_4, window_bounds = array<i64: 32, 256>}]} {
    %c0 = arith.constant 0 : index
    %c0_0 = arith.constant 0 : index
    %0 = vector.load %arg1[%c0, %c0_0] : memref<32x1152xbf16, #tpu.memory_space<vmem>>, vector<32x1152xbf16>
    %c0_1 = arith.constant 0 : index
    %c0_2 = arith.constant 0 : index
    %1 = vector.load %arg2[%c0_1, %c0_2] : memref<1152x256xbf16, #tpu.memory_space<vmem>>, vector<1152x256xbf16>
    %cst = arith.constant dense<0.000000e+00> : vector<32x256xf32>
    %2 = tpu.matmul %0, %1, %cst {dimension_numbers = #tpu.dot_dimension_numbers<[1], [0], [0], [1], [0, 0, 1, 1], [], []>} : vector<32x1152xbf16>, vector<1152x256xbf16>, vector<32x256xf32> -> vector<32x256xf32>
    %c0_3 = arith.constant 0 : index
    %c0_4 = arith.constant 0 : index
    %3 = vector.load %arg3[%c0_3, %c0_4] : memref<1x256xf32, #tpu.memory_space<vmem>>, vector<1x256xf32>
    %4 = vector.broadcast %3 : vector<1x256xf32> to vector<32x256xf32>
    %5 = arith.mulf %2, %4 : vector<32x256xf32>
    %c0_5 = arith.constant 0 : index
    %c0_6 = arith.constant 0 : index
    %6 = vector.load %arg4[%c0_5, %c0_6] : memref<1x256xf32, #tpu.memory_space<vmem>>, vector<1x256xf32>
    %7 = vector.broadcast %6 : vector<1x256xf32> to vector<32x256xf32>
    %8 = arith.addf %5, %7 : vector<32x256xf32>
    %cst_7 = arith.constant 0.000000e+00 : f32
    %9 = vector.broadcast %cst_7 : f32 to vector<32x256xf32>
    %10 = arith.cmpf oge, %8, %9 : vector<32x256xf32>
    %cst_8 = arith.constant 2.000000e-01 : f32
    %11 = vector.broadcast %cst_8 : f32 to vector<32x256xf32>
    %12 = arith.mulf %11, %8 : vector<32x256xf32>
    %13 = arith.select %10, %8, %12 : vector<32x256xi1>, vector<32x256xf32>
    %14 = arith.truncf %13 : vector<32x256xf32> to vector<32x256xbf16>
    %c0_9 = arith.constant 0 : index
    %c0_10 = arith.constant 0 : index
    %15 = vector.load %arg5[%c0_9, %c0_10] : memref<32x256xbf16, #tpu.memory_space<vmem>>, vector<32x256xbf16>
    tpu.vector_store %arg5[%c0_9, %c0_10], %14 {strides = array<i32>} : memref<32x256xbf16, #tpu.memory_space<vmem>>, vector<32x256xbf16>,
    return
  }
  func.func @transform_0(%arg0: i32) -> (i32, i32) {
    %c0_i32 = arith.constant 0 : i32
    %c0_i32_0 = arith.constant 0 : i32
    return %arg0, %c0_i32 : i32, i32
  }
  func.func @transform_1(%arg0: i32) -> (i32, i32) {
    %c0_i32 = arith.constant 0 : i32
    %c0_i32_0 = arith.constant 0 : i32
    %c0_i32_1 = arith.constant 0 : i32
    return %c0_i32, %c0_i32_0 : i32, i32
  }
  func.func @transform_2(%arg0: i32) -> (i32, i32) {
    %c0_i32 = arith.constant 0 : i32
    %c0_i32_0 = arith.constant 0 : i32
    %c0_i32_1 = arith.constant 0 : i32
    return %c0_i32, %c0_i32_0 : i32, i32
  }
  func.func @transform_3(%arg0: i32) -> (i32, i32) {
    %c0_i32 = arith.constant 0 : i32
    %c0_i32_0 = arith.constant 0 : i32
    %c0_i32_1 = arith.constant 0 : i32
    return %c0_i32, %c0_i32_0 : i32, i32
  }
  func.func @transform_4(%arg0: i32) -> (i32, i32) {
    %c0_i32 = arith.constant 0 : i32
    %c0_i32_0 = arith.constant 0 : i32
    return %arg0, %c0_i32 : i32, i32
  }
}

module attributes {stable_mosaic.version = 11 : i64} {
  func.func @_conv_mm_kernel(%arg0: i32, %arg1: memref<32x2304xbf16, #tpu.memory_space<vmem>>, %arg2: memref<2304x512xbf16, #tpu.memory_space<vmem>>, %arg3: memref<1x512xf32, #tpu.memory_space<vmem>>, %arg4: memref<1x512xf32, #tpu.memory_space<vmem>>, %arg5: memref<32x512xbf16, #tpu.memory_space<vmem>>) attributes {dimension_semantics = [#tpu.dimension_semantics<parallel>], iteration_bounds = array<i64: 1>, scalar_prefetch = 0 : i64, scratch_operands = 0 : i64, tpu.core_type = #tpu.core_type<tc>, window_params = [{transform_indices = @transform_0, window_bounds = array<i64: 32, 2304>}, {pipeline_mode = #tpu.pipeline_mode<synchronous>, transform_indices = @transform_1, window_bounds = array<i64: 2304, 512>}, {pipeline_mode = #tpu.pipeline_mode<synchronous>, transform_indices = @transform_2, window_bounds = array<i64: 1, 512>}, {pipeline_mode = #tpu.pipeline_mode<synchronous>, transform_indices = @transform_3, window_bounds = array<i64: 1, 512>}, {transform_indices = @transform_4, window_bounds = array<i64: 32, 512>}]} {
    %c0 = arith.constant 0 : index
    %c0_0 = arith.constant 0 : index
    %0 = vector.load %arg1[%c0, %c0_0] : memref<32x2304xbf16, #tpu.memory_space<vmem>>, vector<32x2304xbf16>
    %c0_1 = arith.constant 0 : index
    %c0_2 = arith.constant 0 : index
    %1 = vector.load %arg2[%c0_1, %c0_2] : memref<2304x512xbf16, #tpu.memory_space<vmem>>, vector<2304x512xbf16>
    %cst = arith.constant dense<0.000000e+00> : vector<32x512xf32>
    %2 = tpu.matmul %0, %1, %cst {dimension_numbers = #tpu.dot_dimension_numbers<[1], [0], [0], [1], [0, 0, 1, 1], [], []>} : vector<32x2304xbf16>, vector<2304x512xbf16>, vector<32x512xf32> -> vector<32x512xf32>
    %c0_3 = arith.constant 0 : index
    %c0_4 = arith.constant 0 : index
    %3 = vector.load %arg3[%c0_3, %c0_4] : memref<1x512xf32, #tpu.memory_space<vmem>>, vector<1x512xf32>
    %4 = vector.broadcast %3 : vector<1x512xf32> to vector<32x512xf32>
    %5 = arith.mulf %2, %4 : vector<32x512xf32>
    %c0_5 = arith.constant 0 : index
    %c0_6 = arith.constant 0 : index
    %6 = vector.load %arg4[%c0_5, %c0_6] : memref<1x512xf32, #tpu.memory_space<vmem>>, vector<1x512xf32>
    %7 = vector.broadcast %6 : vector<1x512xf32> to vector<32x512xf32>
    %8 = arith.addf %5, %7 : vector<32x512xf32>
    %cst_7 = arith.constant 0.000000e+00 : f32
    %9 = vector.broadcast %cst_7 : f32 to vector<32x512xf32>
    %10 = arith.cmpf oge, %8, %9 : vector<32x512xf32>
    %cst_8 = arith.constant 2.000000e-01 : f32
    %11 = vector.broadcast %cst_8 : f32 to vector<32x512xf32>
    %12 = arith.mulf %11, %8 : vector<32x512xf32>
    %13 = arith.select %10, %8, %12 : vector<32x512xi1>, vector<32x512xf32>
    %14 = arith.truncf %13 : vector<32x512xf32> to vector<32x512xbf16>
    %c0_9 = arith.constant 0 : index
    %c0_10 = arith.constant 0 : index
    %15 = vector.load %arg5[%c0_9, %c0_10] : memref<32x512xbf16, #tpu.memory_space<vmem>>, vector<32x512xbf16>
    tpu.vector_store %arg5[%c0_9, %c0_10], %14 {strides = array<i32>} : memref<32x512xbf16, #tpu.memory_space<vmem>>, vector<32x512xbf16>,
    return
  }
  func.func @transform_0(%arg0: i32) -> (i32, i32) {
    %c0_i32 = arith.constant 0 : i32
    %c0_i32_0 = arith.constant 0 : i32
    return %arg0, %c0_i32 : i32, i32
  }
  func.func @transform_1(%arg0: i32) -> (i32, i32) {
    %c0_i32 = arith.constant 0 : i32
    %c0_i32_0 = arith.constant 0 : i32
    %c0_i32_1 = arith.constant 0 : i32
    return %c0_i32, %c0_i32_0 : i32, i32
  }
  func.func @transform_2(%arg0: i32) -> (i32, i32) {
    %c0_i32 = arith.constant 0 : i32
    %c0_i32_0 = arith.constant 0 : i32
    %c0_i32_1 = arith.constant 0 : i32
    return %c0_i32, %c0_i32_0 : i32, i32
  }
  func.func @transform_3(%arg0: i32) -> (i32, i32) {
    %c0_i32 = arith.constant 0 : i32
    %c0_i32_0 = arith.constant 0 : i32
    %c0_i32_1 = arith.constant 0 : i32
    return %c0_i32, %c0_i32_0 : i32, i32
  }
  func.func @transform_4(%arg0: i32) -> (i32, i32) {
    %c0_i32 = arith.constant 0 : i32
    %c0_i32_0 = arith.constant 0 : i32
    return %arg0, %c0_i32 : i32, i32
  }
}

module attributes {stable_mosaic.version = 11 : i64} {
  func.func @_head_kernel(%arg0: i32, %arg1: memref<2x8192xbf16, #tpu.memory_space<vmem>>, %arg2: memref<8192x128xbf16, #tpu.memory_space<vmem>>, %arg3: memref<1x128xf32, #tpu.memory_space<vmem>>, %arg4: memref<2x1xf32, #tpu.memory_space<vmem>>, %arg5: memref<2x10xf32, #tpu.memory_space<vmem>>) attributes {dimension_semantics = [#tpu.dimension_semantics<parallel>], iteration_bounds = array<i64: 1>, scalar_prefetch = 0 : i64, scratch_operands = 0 : i64, tpu.core_type = #tpu.core_type<tc>, window_params = [{transform_indices = @transform_0, window_bounds = array<i64: 2, 8192>}, {pipeline_mode = #tpu.pipeline_mode<synchronous>, transform_indices = @transform_1, window_bounds = array<i64: 8192, 128>}, {pipeline_mode = #tpu.pipeline_mode<synchronous>, transform_indices = @transform_2, window_bounds = array<i64: 1, 128>}, {transform_indices = @transform_3, window_bounds = array<i64: 2, 1>}, {transform_indices = @transform_4, window_bounds = array<i64: 2, 10>}]} {
    %c0 = arith.constant 0 : index
    %c0_0 = arith.constant 0 : index
    %0 = vector.load %arg1[%c0, %c0_0] : memref<2x8192xbf16, #tpu.memory_space<vmem>>, vector<2x8192xbf16>
    %c0_1 = arith.constant 0 : index
    %c0_2 = arith.constant 0 : index
    %1 = vector.load %arg2[%c0_1, %c0_2] : memref<8192x128xbf16, #tpu.memory_space<vmem>>, vector<8192x128xbf16>
    %cst = arith.constant dense<0.000000e+00> : vector<2x128xf32>
    %2 = tpu.matmul %0, %1, %cst {dimension_numbers = #tpu.dot_dimension_numbers<[1], [0], [0], [1], [0, 0, 1, 1], [], []>} : vector<2x8192xbf16>, vector<8192x128xbf16>, vector<2x128xf32> -> vector<2x128xf32>
    %c0_3 = arith.constant 0 : index
    %c0_4 = arith.constant 0 : index
    %3 = vector.load %arg3[%c0_3, %c0_4] : memref<1x128xf32, #tpu.memory_space<vmem>>, vector<1x128xf32>
    %4 = vector.broadcast %3 : vector<1x128xf32> to vector<2x128xf32>
    %5 = arith.addf %2, %4 : vector<2x128xf32>
    %6 = vector.extract_strided_slice %5 {offsets = [0, 0], sizes = [2, 10], strides = [1, 1]} : vector<2x128xf32> to vector<2x10xf32>
    %7 = vector.extract_strided_slice %5 {offsets = [0, 10], sizes = [2, 1], strides = [1, 1]} : vector<2x128xf32> to vector<2x1xf32>
    %cst_5 = arith.constant 0.000000e+00 : f32
    %8 = vector.broadcast %cst_5 : f32 to vector<2x1xf32>
    %9 = arith.cmpf oge, %7, %8 : vector<2x1xf32>
    %cst_6 = arith.constant 0.000000e+00 : f32
    %10 = vector.broadcast %cst_6 : f32 to vector<2x1xf32>
    %11 = arith.subf %10, %7 : vector<2x1xf32>
    %12 = math.exp %11 : vector<2x1xf32>
    %cst_7 = arith.constant 1.000000e+00 : f32
    %13 = vector.broadcast %cst_7 : f32 to vector<2x1xf32>
    %14 = arith.addf %13, %12 : vector<2x1xf32>
    %cst_8 = arith.constant 1.000000e+00 : f32
    %15 = vector.broadcast %cst_8 : f32 to vector<2x1xf32>
    %16 = arith.divf %15, %14 : vector<2x1xf32>
    %17 = math.exp %7 : vector<2x1xf32>
    %18 = math.exp %7 : vector<2x1xf32>
    %cst_9 = arith.constant 1.000000e+00 : f32
    %19 = vector.broadcast %cst_9 : f32 to vector<2x1xf32>
    %20 = arith.addf %19, %18 : vector<2x1xf32>
    %21 = arith.divf %17, %20 : vector<2x1xf32>
    %22 = arith.select %9, %16, %21 : vector<2x1xi1>, vector<2x1xf32>
    %c0_10 = arith.constant 0 : index
    %c0_11 = arith.constant 0 : index
    %23 = vector.load %arg4[%c0_10, %c0_11] : memref<2x1xf32, #tpu.memory_space<vmem>>, vector<2x1xf32>
    tpu.vector_store %arg4[%c0_10, %c0_11], %22 {strides = array<i32>} : memref<2x1xf32, #tpu.memory_space<vmem>>, vector<2x1xf32>,
    %cst_12 = arith.constant dense<0xFF800000> : vector<2xf32>
    %24 = vector.multi_reduction <maximumf>, %6, %cst_12 [1] : vector<2x10xf32> to vector<2xf32>
    %25 = vector.shape_cast %24 : vector<2xf32> to vector<2x1xf32>
    %26 = vector.broadcast %25 : vector<2x1xf32> to vector<2x10xf32>
    %27 = arith.subf %6, %26 : vector<2x10xf32>
    %28 = math.exp %27 : vector<2x10xf32>
    %cst_13 = arith.constant dense<0.000000e+00> : vector<2xf32>
    %29 = vector.multi_reduction <add>, %28, %cst_13 [1] : vector<2x10xf32> to vector<2xf32>
    %30 = vector.shape_cast %29 : vector<2xf32> to vector<2x1xf32>
    %31 = vector.broadcast %30 : vector<2x1xf32> to vector<2x10xf32>
    %32 = arith.divf %28, %31 : vector<2x10xf32>
    %c0_14 = arith.constant 0 : index
    %c0_15 = arith.constant 0 : index
    %33 = vector.load %arg5[%c0_14, %c0_15] : memref<2x10xf32, #tpu.memory_space<vmem>>, vector<2x10xf32>
    tpu.vector_store %arg5[%c0_14, %c0_15], %32 {strides = array<i32>} : memref<2x10xf32, #tpu.memory_space<vmem>>, vector<2x10xf32>,
    return
  }
  func.func @transform_0(%arg0: i32) -> (i32, i32) {
    %c0_i32 = arith.constant 0 : i32
    %c0_i32_0 = arith.constant 0 : i32
    return %arg0, %c0_i32 : i32, i32
  }
  func.func @transform_1(%arg0: i32) -> (i32, i32) {
    %c0_i32 = arith.constant 0 : i32
    %c0_i32_0 = arith.constant 0 : i32
    %c0_i32_1 = arith.constant 0 : i32
    return %c0_i32, %c0_i32_0 : i32, i32
  }
  func.func @transform_2(%arg0: i32) -> (i32, i32) {
    %c0_i32 = arith.constant 0 : i32
    %c0_i32_0 = arith.constant 0 : i32
    %c0_i32_1 = arith.constant 0 : i32
    return %c0_i32, %c0_i32_0 : i32, i32
  }
  func.func @transform_3(%arg0: i32) -> (i32, i32) {
    %c0_i32 = arith.constant 0 : i32
    %c0_i32_0 = arith.constant 0 : i32
    return %arg0, %c0_i32 : i32, i32
  }
  func.func @transform_4(%arg0: i32) -> (i32, i32) {
    %c0_i32 = arith.constant 0 : i32
    %c0_i32_0 = arith.constant 0 : i32
    return %arg0, %c0_i32 : i32, i32
  }
}

</mosaic_0001>

<bundles_post_ra>
// kernel: discriminator_forward.7
= control target key start
LH: loop header
LB: loop body
LE: loop exit
PB: predicated region body
PF: predicated region fallthrough
CT: control target
= control target key end

     0   :  { %9 = vsyncpa [#allocation3], 0  ;;  %s1549_s0 = inlined_call_operand.vmem [shape: bf16[512,27], index: 0, kind: input, shape index: {}]   ;;  %s1550_s1 = inlined_call_operand.vmem [shape: bf16[27,16], index: 1, kind: input, shape index: {}]   ;;  %s1551_s2 = inlined_call_operand.hbm [shape: f32[1,16], index: 2, kind: input, shape index: {}]   ;;  %s1552_s3 = inlined_call_operand.hbm [shape: f32[1,16], index: 3, kind: input, shape index: {}]   ;;  %s1553_s4 = inlined_call_operand.vmem [shape: bf16[512,16], index: 4, kind: output, shape index: {}]  }
   0x1   :  { %10 = vsyncpa [#allocation5], 0  ;;  %s1302_s15 = smov 0  }
   0x2 LB: > { %s985_s16 = sadd.s32 4294967295, %s1272_s15   ;;  %p987_p0 = scmp.ge.s32.totalorder %s1272_s15, 1  ;;  %s1272_s15 = sphi %s1302_s15, %s16_s15  }
   0x3   : > { %p136_p1 = scmp.lt.s32.totalorder %s1272_s15, 3  ;;  %p1312_p2 = scmp.eq.s32.totalorder %s985_s16, 0 }
   0x4   : > { %s1274_s19 = smov [#allocation2]   ;;  %s1275_s21 = smov [#allocation4]  }
   0x5   : > { %s1556_s17 = scalar_select %p1312_p2, 1, 0 }
   0x6   : > { %p1316_p3 = pnand %p987_p0, %p136_p1  ;;  %s152_s20 = sshll.u32 %s1274_s19, 4  ;;  %s153_s20 = int_to_ptr.vmem [resolvable:$true] %s152_s20 }
   0x7   : > { %s163_s22 = sshll.u32 %s1275_s21, 4  ;;  %s1217_s24 = scalar_lea.vmem %s153_s20, 16  ;;  %s164_s22 = int_to_ptr.vmem [resolvable:$true] %s163_s22 }
   0x8   : > { %p1166_p4 = pneg %p1316_p3  ;;  %p1218_p7 = scmp.ne.s32.totalorder %s153_s20, %s1217_s24 }
   0x9   : > { %s1224_s25 = scalar_lea.vmem %s153_s20, 32  ;;  %p1225_p10 = scmp.lt.s32.totalorder %s153_s20, %s153_s20 }
   0xa   : > { %p1324_p5 = pnand %p1312_p2, %p1166_p4  ;;  %p1226_p11 = scmp.lt.s32.totalorder %s1224_s25, %s1217_s24 }
   0xc   : > { %p1208_p6 = pneg %p1324_p5  ;;  %p1227_p12 = por %p1226_p11, %p1225_p10 }
   0xe   : > { %p1220_p8 = pnand %p1218_p7, %p1208_p6 }
  0x10   : > { %p1221_p9 = pneg %p1220_p8 }
  0x12   : > { %p1228_p13 = pnand %p1227_p12, %p1221_p9 }
  0x14   : > { %1231 = shalt.err (!%p1228_p13)
}
  0x15   : > { %1169 = dma.hbm_to_vmem [thread:$0]  (!%p1324_p5), %s1551_s2, 16, %s153_s20, [#allocation3]  }
  0x16   : > { %s1243_s28 = scalar_lea.vmem %s164_s22, 16  ;;  %s1250_s29 = scalar_lea.vmem %s164_s22, 32 }
  0x17   : > { %p1244_p0 = scmp.ne.s32.totalorder %s164_s22, %s1243_s28  ;;  %p1251_p7 = scmp.lt.s32.totalorder %s164_s22, %s164_s22 }
  0x18   : > { %p1252_p8 = scmp.lt.s32.totalorder %s1250_s29, %s1243_s28 }
  0x19   : > { %p1246_p1 = pnand %p1244_p0, %p1208_p6 }
  0x1a   : > { %p1253_p2 = por %p1252_p8, %p1251_p7 }
  0x1b   : > { %p1247_p4 = pneg %p1246_p1 }
  0x1d   : > { %p1254_p10 = pnand %p1253_p2, %p1247_p4 }
  0x1f   : > { %1257 = shalt.err (!%p1254_p10)
}
  0x20   : > { %1172 = dma.hbm_to_vmem [thread:$0]  (!%p1324_p5), %s1552_s3, 16, %s164_s22, [#allocation5]  }
  0x21   : > { %185 = sbr.rel (%p1316_p3) target bundleno = 304 (0x130), region = 36  ;;  %p1559_p9 = scmp.ne.s32.totalorder (!%p1316_p3), %s1556_s17, 0 }
  0x26   : > { %1263 = dma.done.wait (%p1559_p9), [#allocation3], 16  }
  0x27   : > { %1265 = vsyncadd (%p1559_p9), [#allocation3], 4294967280 }
  0x28   : > { %1267 = dma.done.wait (%p1559_p9), [#allocation5], 16  }
  0x29   : > { %1269 = vsyncadd (%p1559_p9), [#allocation5], 4294967280  ;;  %vm404_vm0 = vcmask 1044480   ;;  %s994_s6 = sshll.u32 %s985_s16, 5  ;;  %vm405_vm1 = vcmask 1045504   ;;  %v1276_v0 = vmov 65535  }
  0x2a   : > { %p216_p2 = scmp.lt.s32.totalorder %s994_s6, 63  ;;  %v406_v1 = vsel %vm404_vm0, 4294967295, %v1276_v0  ;;  %v1188_v3 = vld [vmem:[%s1550_s1 + $0x8] sm:$0x3f]   ;;  %v1189_v4 = vld [vmem:[%s1550_s1] sm:$0xff]   ;;  %vm355_vm2 = vcmask 220160  }
  0x2b   : > { %v407_v2 = vsel %vm405_vm1, %v406_v1, 0  ;;  %v1406_v22 = vld [vmem:[#allocation2] ss:$0 sm:$0xff]  ;;  %v1408_v24 = vld [vmem:[#allocation4] ss:$0 sm:$0xff]  ;;  %vm874_vm3 = vcmask 125952  }
  0x2c   : > { %s1561_s6 = smov (!%p216_p2, %s994_s6), 63  ;;  %v409_v5 = vand.u32 %v1188_v3, %v407_v2 }
  0x2d   : > { %s995_s7 = sshll.u32 %s1561_s6, 2 }
  0x2e   : > { %s1366_s10 = scalar_lea.vmem %s1549_s0, %s995_s7  ;;  %1118 = vmatprep.subr.bf16.mxu0 %v409_v5  ;;  %1154 = vmatprep.subr.bf16.mxu1 %v409_v5  ;;  %s1425_s18 = scalar_lea.vmem %s1553_s4, %s995_s7 }
  0x2f   : > { %v1190_v6 = vld [vmem:[%s1366_s10] sm:$0xff]   ;;  %1119 = vmatpush3.bf16.msra.mxu0 %v409_v5  ;;  %1156 = vmatpush3.bf16.msra.mxu1 %v409_v5  ;;  %v1192_v8 = vld [vmem:[%s1366_s10 + $0x8] sm:$0xff]   ;;  %v1194_v10 = vld [vmem:[%s1366_s10 + $0x10] sm:$0xff]  }
  0x30   : > { %v1191_v7 = vld [vmem:[%s1366_s10 + $0x40] sm:$0xff]   ;;  %1120 = vmatprep.subr.bf16.mxu0 %v1189_v4  ;;  %1155 = vmatprep.subr.bf16.mxu1 %v1189_v4  ;;  %v1193_v9 = vld [vmem:[%s1366_s10 + $0x48] sm:$0xff]   ;;  %v1195_v11 = vld [vmem:[%s1366_s10 + $0x50] sm:$0xff]  }
  0x31   : > { %1122 = vmatprep.mubr.msk.bf16.mxu0 %vm355_vm2, %v1190_v6  ;;  %1138 = vmatprep.mubr.msk.bf16.mxu1 %vm355_vm2, %v1191_v7  ;;  %v1196_v12 = vld [vmem:[%s1366_s10 + $0x18] sm:$0xff]   ;;  %v1198_v14 = vld [vmem:[%s1366_s10 + $0x20] sm:$0xff]   ;;  %v1200_v16 = vld [vmem:[%s1366_s10 + $0x28] sm:$0xff]  }
  0x32   : > { %v1197_v13 = vld [vmem:[%s1366_s10 + $0x58] sm:$0xff]   ;;  %v1199_v15 = vld [vmem:[%s1366_s10 + $0x60] sm:$0xff]   ;;  %v1201_v17 = vld [vmem:[%s1366_s10 + $0x68] sm:$0xff]  }
  0x33   : > { %1121 = vmatpush3.bf16.msra.mxu0 %v1189_v4  ;;  %1157 = vmatpush3.bf16.msra.mxu1 %v1189_v4  ;;  %v1202_v18 = vld [vmem:[%s1366_s10 + $0x30] sm:$0xff]   ;;  %v1204_v20 = vld [vmem:[%s1366_s10 + $0x38] sm:$0xff]  }
  0x34   : > { %v1203_v19 = vld [vmem:[%s1366_s10 + $0x70] sm:$0xff]   ;;  %v1205_v21 = vld [vmem:[%s1366_s10 + $0x78] sm:$0xff]  }
  0x36   : > { %1123 = vmatmul.mubr.msk.bf16.vlgmr.msra.gmra.mxu0 %vm355_vm2, %v1192_v8  ;;  %1139 = vmatmul.mubr.msk.bf16.vlgmr.msra.gmra.mxu1 %vm355_vm2, %v1193_v9 }
  0x37   : > { %1126 = vmatprep.mubr.msk.bf16.mxu0 %vm355_vm2, %v1194_v10  ;;  %1142 = vmatprep.mubr.msk.bf16.mxu1 %vm355_vm2, %v1195_v11 }
  0x3e   : > { %1127 = vmatmul.mubr.msk.bf16.gmra.mxu0 %vm355_vm2, %v1196_v12  ;;  %1143 = vmatmul.mubr.msk.bf16.gmra.mxu1 %vm355_vm2, %v1197_v13 }
  0x3f   : > { %1130 = vmatprep.mubr.msk.bf16.mxu0 %vm355_vm2, %v1198_v14  ;;  %1146 = vmatprep.mubr.msk.bf16.mxu1 %vm355_vm2, %v1199_v15 }
  0x46   : > { %1131 = vmatmul.mubr.msk.bf16.gmra.mxu0 %vm355_vm2, %v1200_v16  ;;  %1147 = vmatmul.mubr.msk.bf16.gmra.mxu1 %vm355_vm2, %v1201_v17 }
  0x47   : > { %1134 = vmatprep.mubr.msk.bf16.mxu0 %vm355_vm2, %v1202_v18  ;;  %1150 = vmatprep.mubr.msk.bf16.mxu1 %vm355_vm2, %v1203_v19 }
  0x4e   : > { %1135 = vmatmul.mubr.msk.bf16.gmra.mxu0 %vm355_vm2, %v1204_v20  ;;  %1151 = vmatmul.mubr.msk.bf16.gmra.mxu1 %vm355_vm2, %v1205_v21 }
  0xf6   : > { %v1124_v23 = vpop.f32.mrf.mxu0  ;;  %v1140_v25 = vpop.f32.mrf.mxu1 }
  0xf7   : > { %v581_v26 = vmul.f32 %v1124_v23, %v1406_v22  ;;  %v597_v27 = vmul.f32 %v1140_v25, %v1406_v22 }
  0xf8   : > { %v445_v28 = vpop.f32.mrf.mxu0  ;;  %v509_v29 = vpop.f32.mrf.mxu1 }
  0xf9   : > { %v620_v30 = vadd.f32 %v1408_v24, %v581_v26  ;;  %v636_v31 = vadd.f32 %v1408_v24, %v597_v27  ;;  %v579_v32 = vmul.f32 %v1406_v22, %v445_v28  ;;  %v595_v33 = vmul.f32 %v1406_v22, %v509_v29 }
  0xfa   : > { %v1125_v34 = vpop.f32.mrf.mxu0  ;;  %v1141_v35 = vpop.f32.mrf.mxu1 }
  0xfb   : > { %vm652_vm4 = vcmp.ge.f32.partialorder %v620_v30, 0.0  ;;  %v684_v36 = vmul.f32 0.2, %v620_v30  ;;  %vm668_vm5 = vcmp.ge.f32.partialorder %v636_v31, 0.0  ;;  %v700_v37 = vmul.f32 0.2, %v636_v31 }
  0xfc   : > { %v618_v38 = vadd.f32 %v1408_v24, %v579_v32  ;;  %v634_v39 = vadd.f32 %v1408_v24, %v595_v33  ;;  %v582_v40 = vmul.f32 %v1125_v34, %v1406_v22  ;;  %v598_v41 = vmul.f32 %v1141_v35, %v1406_v22  ;;  %v448_v42 = vpop.f32.mrf.mxu0  ;;  %v512_v43 = vpop.f32.mrf.mxu1 }
  0xfd   : > { %v716_v44 = vsel %vm652_vm4, %v620_v30, %v684_v36  ;;  %v732_v45 = vsel %vm668_vm5, %v636_v31, %v700_v37  ;;  %v580_v46 = vmul.f32 %v1406_v22, %v448_v42  ;;  %v596_v47 = vmul.f32 %v1406_v22, %v512_v43 }
  0xfe   : > { %v1070_v48 = vpack.c.bf16 %v716_v44, %v716_v44  ;;  %v1086_v49 = vpack.c.bf16 %v732_v45, %v732_v45  ;;  %vm650_vm6 = vcmp.ge.f32.partialorder %v618_v38, 0.0  ;;  %v682_v50 = vmul.f32 0.2, %v618_v38  ;;  %v1128_v51 = vpop.f32.mrf.mxu0  ;;  %v1144_v52 = vpop.f32.mrf.mxu1 }
  0xff   : > { %vm666_vm7 = vcmp.ge.f32.partialorder %v634_v39, 0.0  ;;  %v698_v53 = vmul.f32 0.2, %v634_v39  ;;  %v621_v54 = vadd.f32 %v1408_v24, %v582_v40  ;;  %v637_v55 = vadd.f32 %v1408_v24, %v598_v41 }
 0x100   : > { %877 = vst.msk [vmem:[%s1425_s18 + $0x8] sm:$0xf] %vm874_vm3, %v1070_v48  ;;  %893 = vst.msk [vmem:[%s1425_s18 + $0x48] sm:$0xf] %vm874_vm3, %v1086_v49  ;;  %v714_v56 = vsel %vm650_vm6, %v618_v38, %v682_v50  ;;  %v619_v57 = vadd.f32 %v1408_v24, %v580_v46  ;;  %v635_v58 = vadd.f32 %v1408_v24, %v596_v47  ;;  %v461_v60 = vpop.f32.mrf.mxu0  ;;  %v525_v61 = vpop.f32.mrf.mxu1 }
 0x101   : > { %v585_v59 = vmul.f32 %v1128_v51, %v1406_v22  ;;  %v1068_v62 = vpack.c.bf16 %v714_v56, %v714_v56  ;;  %v730_v63 = vsel %vm666_vm7, %v634_v39, %v698_v53  ;;  %vm653_vm8 = vcmp.ge.f32.partialorder %v621_v54, 0.0 }
 0x102   : > { %v685_v0 = vmul.f32 0.2, %v621_v54  ;;  %v1084_v1 = vpack.c.bf16 %v730_v63, %v730_v63  ;;  %vm669_vm9 = vcmp.ge.f32.partialorder %v637_v55, 0.0  ;;  %v701_v2 = vmul.f32 0.2, %v637_v55  ;;  %v1129_v3 = vpop.f32.mrf.mxu0  ;;  %v1145_v4 = vpop.f32.mrf.mxu1 }
 0x103   : > { %vm651_vm10 = vcmp.ge.f32.partialorder %v619_v57, 0.0  ;;  %875 = vst.msk [vmem:[%s1425_s18] sm:$0xf] %vm874_vm3, %v1068_v62  ;;  %v683_v6 = vmul.f32 0.2, %v619_v57  ;;  %vm667_vm11 = vcmp.ge.f32.partialorder %v635_v58, 0.0  ;;  %v624_v10 = vadd.f32 %v1408_v24, %v585_v59 }
 0x104   : > { %v717_v5 = vsel %vm653_vm8, %v621_v54, %v685_v0  ;;  %v699_v7 = vmul.f32 0.2, %v635_v58  ;;  %891 = vst.msk [vmem:[%s1425_s18 + $0x40] sm:$0xf] %vm874_vm3, %v1084_v1  ;;  %v733_v9 = vsel %vm669_vm9, %v637_v55, %v701_v2  ;;  %v601_v11 = vmul.f32 %v1144_v52, %v1406_v22  ;;  %v464_v12 = vpop.f32.mrf.mxu0  ;;  %v528_v13 = vpop.f32.mrf.mxu1 }
 0x105   : > { %v1071_v8 = vpack.c.bf16 %v717_v5, %v717_v5  ;;  %v1087_v14 = vpack.c.bf16 %v733_v9, %v733_v9  ;;  %v715_v15 = vsel %vm651_vm10, %v619_v57, %v683_v6  ;;  %v583_v17 = vmul.f32 %v1406_v22, %v461_v60 }
 0x106   : > { %v731_v16 = vsel %vm667_vm11, %v635_v58, %v699_v7  ;;  %v1069_v18 = vpack.c.bf16 %v715_v15, %v715_v15  ;;  %vm656_vm12 = vcmp.ge.f32.partialorder %v624_v10, 0.0  ;;  %v688_v20 = vmul.f32 0.2, %v624_v10  ;;  %v1132_v21 = vpop.f32.mrf.mxu0  ;;  %v1148_v23 = vpop.f32.mrf.mxu1 }
 0x107   : > { %878 = vst.msk [vmem:[%s1425_s18 + $0xc] sm:$0xf] %vm874_vm3, %v1071_v8  ;;  %v1085_v19 = vpack.c.bf16 %v731_v16, %v731_v16  ;;  %894 = vst.msk [vmem:[%s1425_s18 + $0x4c] sm:$0xf] %vm874_vm3, %v1087_v14  ;;  %v640_v25 = vadd.f32 %v1408_v24, %v601_v11  ;;  %v622_v26 = vadd.f32 %v1408_v24, %v583_v17 }
 0x108   : > { %v599_v27 = vmul.f32 %v1406_v22, %v525_v61  ;;  %v586_v28 = vmul.f32 %v1129_v3, %v1406_v22  ;;  %876 = vst.msk [vmem:[%s1425_s18 + $0x4] sm:$0xf] %vm874_vm3, %v1069_v18  ;;  %v720_v29 = vsel %vm656_vm12, %v624_v10, %v688_v20  ;;  %v602_v30 = vmul.f32 %v1145_v4, %v1406_v22  ;;  %v477_v33 = vpop.f32.mrf.mxu0  ;;  %v541_v34 = vpop.f32.mrf.mxu1 }
 0x109   : > { %892 = vst.msk [vmem:[%s1425_s18 + $0x44] sm:$0xf] %vm874_vm3, %v1085_v19  ;;  %v584_v31 = vmul.f32 %v1406_v22, %v464_v12  ;;  %v600_v32 = vmul.f32 %v1406_v22, %v528_v13  ;;  %v1074_v35 = vpack.c.bf16 %v720_v29, %v720_v29  ;;  %vm672_vm13 = vcmp.ge.f32.partialorder %v640_v25, 0.0 }
 0x10a   : > { %v704_v36 = vmul.f32 0.2, %v640_v25  ;;  %vm654_vm14 = vcmp.ge.f32.partialorder %v622_v26, 0.0  ;;  %v686_v37 = vmul.f32 0.2, %v622_v26  ;;  %v638_v38 = vadd.f32 %v1408_v24, %v599_v27  ;;  %v1133_v45 = vpop.f32.mrf.mxu0  ;;  %v1149_v49 = vpop.f32.mrf.mxu1 }
 0x10b   : > { %v625_v39 = vadd.f32 %v1408_v24, %v586_v28  ;;  %v641_v40 = vadd.f32 %v1408_v24, %v602_v30  ;;  %881 = vst.msk [vmem:[%s1425_s18 + $0x18] sm:$0xf] %vm874_vm3, %v1074_v35  ;;  %v623_v42 = vadd.f32 %v1408_v24, %v584_v31  ;;  %v639_v43 = vadd.f32 %v1408_v24, %v600_v32 }
 0x10c   : > { %v736_v41 = vsel %vm672_vm13, %v640_v25, %v704_v36  ;;  %v589_v44 = vmul.f32 %v1132_v21, %v1406_v22  ;;  %v718_v47 = vsel %vm654_vm14, %v622_v26, %v686_v37  ;;  %vm670_vm15 = vcmp.ge.f32.partialorder %v638_v38, 0.0  ;;  %v480_v58 = vpop.f32.mrf.mxu0  ;;  %v544_v63 = vpop.f32.mrf.mxu1 }
 0x10d   : > { %v1090_v46 = vpack.c.bf16 %v736_v41, %v736_v41  ;;  %v702_v48 = vmul.f32 0.2, %v638_v38  ;;  %v1072_v50 = vpack.c.bf16 %v718_v47, %v718_v47  ;;  %vm657_vm0 = vcmp.ge.f32.partialorder %v625_v39, 0.0 }
 0x10e   : > { %v689_v51 = vmul.f32 0.2, %v625_v39  ;;  %vm673_vm1 = vcmp.ge.f32.partialorder %v641_v40, 0.0  ;;  %v705_v53 = vmul.f32 0.2, %v641_v40  ;;  %vm655_vm2 = vcmp.ge.f32.partialorder %v623_v42, 0.0  ;;  %v1136_v11 = vpop.f32.mrf.mxu0  ;;  %v1152_v16 = vpop.f32.mrf.mxu1 }
 0x10f   : > { %897 = vst.msk [vmem:[%s1425_s18 + $0x58] sm:$0xf] %vm874_vm3, %v1090_v46  ;;  %v734_v52 = vsel %vm670_vm15, %v638_v38, %v702_v48  ;;  %v687_v54 = vmul.f32 0.2, %v623_v42  ;;  %879 = vst.msk [vmem:[%s1425_s18 + $0x10] sm:$0xf] %vm874_vm3, %v1072_v50  ;;  %v628_v62 = vadd.f32 %v1408_v24, %v589_v44  ;;  %v605_v3 = vmul.f32 %v1148_v23, %v1406_v22 }
 0x110   : > { %v1088_v55 = vpack.c.bf16 %v734_v52, %v734_v52  ;;  %v721_v56 = vsel %vm657_vm0, %v625_v39, %v689_v51  ;;  %vm671_vm4 = vcmp.ge.f32.partialorder %v639_v43, 0.0  ;;  %v703_v57 = vmul.f32 0.2, %v639_v43  ;;  %v493_v28 = vpop.f32.mrf.mxu0  ;;  %v557_v32 = vpop.f32.mrf.mxu1 }
 0x111   : > { %v1075_v59 = vpack.c.bf16 %v721_v56, %v721_v56  ;;  %v737_v60 = vsel %vm673_vm1, %v641_v40, %v705_v53  ;;  %v719_v61 = vsel %vm655_vm2, %v623_v42, %v687_v54  ;;  %vm660_vm5 = vcmp.ge.f32.partialorder %v628_v62, 0.0 }
 0x112   : > { %895 = vst.msk [vmem:[%s1425_s18 + $0x50] sm:$0xf] %vm874_vm3, %v1088_v55  ;;  %v1091_v0 = vpack.c.bf16 %v737_v60, %v737_v60  ;;  %v1073_v1 = vpack.c.bf16 %v719_v61, %v719_v61  ;;  %v735_v2 = vsel %vm671_vm4, %v639_v43, %v703_v57  ;;  %v692_v5 = vmul.f32 0.2, %v628_v62  ;;  %v1137_v43 = vpop.f32.mrf.mxu0  ;;  %v1153_v48 = vpop.f32.mrf.mxu1 }
 0x113   : > { %882 = vst.msk [vmem:[%s1425_s18 + $0x1c] sm:$0xf] %vm874_vm3, %v1075_v59  ;;  %v1089_v4 = vpack.c.bf16 %v735_v2, %v735_v2  ;;  %v587_v6 = vmul.f32 %v1406_v22, %v477_v33  ;;  %v644_v7 = vadd.f32 %v1408_v24, %v605_v3  ;;  %v603_v8 = vmul.f32 %v1406_v22, %v541_v34 }
 0x114   : > { %898 = vst.msk [vmem:[%s1425_s18 + $0x5c] sm:$0xf] %vm874_vm3, %v1091_v0  ;;  %880 = vst.msk [vmem:[%s1425_s18 + $0x14] sm:$0xf] %vm874_vm3, %v1073_v1  ;;  %v590_v9 = vmul.f32 %v1133_v45, %v1406_v22  ;;  %v606_v10 = vmul.f32 %v1149_v49, %v1406_v22  ;;  %v724_v12 = vsel %vm660_vm5, %v628_v62, %v692_v5  ;;  %v496_v59 = vpop.f32.mrf.mxu0 }
 0x115   : > { %896 = vst.msk [vmem:[%s1425_s18 + $0x54] sm:$0xf] %vm874_vm3, %v1089_v4  ;;  %v626_v13 = vadd.f32 %v1408_v24, %v587_v6  ;;  %v588_v14 = vmul.f32 %v1406_v22, %v480_v58  ;;  %v604_v15 = vmul.f32 %v1406_v22, %v544_v63  ;;  %v1078_v17 = vpack.c.bf16 %v724_v12, %v724_v12  ;;  %v560_v6 = vpop.f32.mrf.mxu1 }
 0x116   : > { %vm676_vm6 = vcmp.ge.f32.partialorder %v644_v7, 0.0  ;;  %v708_v18 = vmul.f32 0.2, %v644_v7  ;;  %v642_v19 = vadd.f32 %v1408_v24, %v603_v8  ;;  %v629_v21 = vadd.f32 %v1408_v24, %v590_v9 }
 0x117   : > { %vm658_vm7 = vcmp.ge.f32.partialorder %v626_v13, 0.0  ;;  %v690_v20 = vmul.f32 0.2, %v626_v13  ;;  %v645_v23 = vadd.f32 %v1408_v24, %v606_v10  ;;  %885 = vst.msk [vmem:[%s1425_s18 + $0x28] sm:$0xf] %vm874_vm3, %v1078_v17  ;;  %v627_v27 = vadd.f32 %v1408_v24, %v588_v14 }
 0x118   : > { %v740_v25 = vsel %vm676_vm6, %v644_v7, %v708_v18  ;;  %vm674_vm8 = vcmp.ge.f32.partialorder %v642_v19, 0.0  ;;  %v706_v26 = vmul.f32 0.2, %v642_v19  ;;  %vm661_vm9 = vcmp.ge.f32.partialorder %v629_v21, 0.0 }
 0x119   : > { %v1094_v29 = vpack.c.bf16 %v740_v25, %v740_v25  ;;  %v722_v30 = vsel %vm658_vm7, %v626_v13, %v690_v20  ;;  %v693_v31 = vmul.f32 0.2, %v629_v21  ;;  %vm677_vm10 = vcmp.ge.f32.partialorder %v645_v23, 0.0 }
 0x11a   : > { %v1076_v33 = vpack.c.bf16 %v722_v30, %v722_v30  ;;  %v738_v34 = vsel %vm674_vm8, %v642_v19, %v706_v26  ;;  %v709_v35 = vmul.f32 0.2, %v645_v23  ;;  %vm659_vm11 = vcmp.ge.f32.partialorder %v627_v27, 0.0 }
 0x11b   : > { %901 = vst.msk [vmem:[%s1425_s18 + $0x68] sm:$0xf] %vm874_vm3, %v1094_v29  ;;  %v1092_v36 = vpack.c.bf16 %v738_v34, %v738_v34  ;;  %v725_v37 = vsel %vm661_vm9, %v629_v21, %v693_v31  ;;  %v691_v38 = vmul.f32 0.2, %v627_v27  ;;  %v643_v41 = vadd.f32 %v1408_v24, %v604_v15 }
 0x11c   : > { %883 = vst.msk [vmem:[%s1425_s18 + $0x20] sm:$0xf] %vm874_vm3, %v1076_v33  ;;  %v1079_v39 = vpack.c.bf16 %v725_v37, %v725_v37  ;;  %v741_v40 = vsel %vm677_vm10, %v645_v23, %v709_v35  ;;  %v593_v42 = vmul.f32 %v1136_v11, %v1406_v22  ;;  %v609_v46 = vmul.f32 %v1152_v16, %v1406_v22 }
 0x11d   : > { %899 = vst.msk [vmem:[%s1425_s18 + $0x60] sm:$0xf] %vm874_vm3, %v1092_v36  ;;  %v1095_v44 = vpack.c.bf16 %v741_v40, %v741_v40  ;;  %v723_v45 = vsel %vm659_vm11, %v627_v27, %v691_v38  ;;  %v591_v47 = vmul.f32 %v1406_v22, %v493_v28  ;;  %vm675_vm12 = vcmp.ge.f32.partialorder %v643_v41, 0.0 }
 0x11e   : > { %886 = vst.msk [vmem:[%s1425_s18 + $0x2c] sm:$0xf] %vm874_vm3, %v1079_v39  ;;  %v1077_v49 = vpack.c.bf16 %v723_v45, %v723_v45  ;;  %v707_v50 = vmul.f32 0.2, %v643_v41  ;;  %v632_v51 = vadd.f32 %v1408_v24, %v593_v42  ;;  %v648_v52 = vadd.f32 %v1408_v24, %v609_v46 }
 0x11f   : > { %902 = vst.msk [vmem:[%s1425_s18 + $0x6c] sm:$0xf] %vm874_vm3, %v1095_v44  ;;  %v630_v53 = vadd.f32 %v1408_v24, %v591_v47  ;;  %v607_v54 = vmul.f32 %v1406_v22, %v557_v32  ;;  %v594_v55 = vmul.f32 %v1137_v43, %v1406_v22  ;;  %v610_v58 = vmul.f32 %v1153_v48, %v1406_v22 }
 0x120   : > { %884 = vst.msk [vmem:[%s1425_s18 + $0x24] sm:$0xf] %vm874_vm3, %v1077_v49  ;;  %v739_v56 = vsel %vm675_vm12, %v643_v41, %v707_v50  ;;  %vm664_vm13 = vcmp.ge.f32.partialorder %v632_v51, 0.0  ;;  %v696_v57 = vmul.f32 0.2, %v632_v51  ;;  %vm680_vm14 = vcmp.ge.f32.partialorder %v648_v52, 0.0 }
 0x121   : > { %v1093_v60 = vpack.c.bf16 %v739_v56, %v739_v56  ;;  %v712_v61 = vmul.f32 0.2, %v648_v52  ;;  %vm662_vm15 = vcmp.ge.f32.partialorder %v630_v53, 0.0  ;;  %v694_v63 = vmul.f32 0.2, %v630_v53 }
 0x122   : > { %v728_v62 = vsel %vm664_vm13, %v632_v51, %v696_v57  ;;  %v646_v0 = vadd.f32 %v1408_v24, %v607_v54  ;;  %v633_v1 = vadd.f32 %v1408_v24, %v594_v55  ;;  %v649_v4 = vadd.f32 %v1408_v24, %v610_v58 }
 0x123   : > { %900 = vst.msk [vmem:[%s1425_s18 + $0x64] sm:$0xf] %vm874_vm3, %v1093_v60  ;;  %v1082_v2 = vpack.c.bf16 %v728_v62, %v728_v62  ;;  %v744_v3 = vsel %vm680_vm14, %v648_v52, %v712_v61  ;;  %v592_v5 = vmul.f32 %v1406_v22, %v496_v59  ;;  %v726_v8 = vsel %vm662_vm15, %v630_v53, %v694_v63 }
 0x124   : > { %v1098_v7 = vpack.c.bf16 %v744_v3, %v744_v3  ;;  %vm678_vm0 = vcmp.ge.f32.partialorder %v646_v0, 0.0  ;;  %v710_v9 = vmul.f32 0.2, %v646_v0  ;;  %v1080_v10 = vpack.c.bf16 %v726_v8, %v726_v8 }
 0x125   : > { %889 = vst.msk [vmem:[%s1425_s18 + $0x38] sm:$0xf] %vm874_vm3, %v1082_v2  ;;  %vm665_vm1 = vcmp.ge.f32.partialorder %v633_v1, 0.0  ;;  %v697_v11 = vmul.f32 0.2, %v633_v1  ;;  %vm681_vm2 = vcmp.ge.f32.partialorder %v649_v4, 0.0  ;;  %v631_v14 = vadd.f32 %v1408_v24, %v592_v5 }
 0x126   : > { %905 = vst.msk [vmem:[%s1425_s18 + $0x78] sm:$0xf] %vm874_vm3, %v1098_v7  ;;  %v742_v12 = vsel %vm678_vm0, %v646_v0, %v710_v9  ;;  %v713_v13 = vmul.f32 0.2, %v649_v4  ;;  %v608_v15 = vmul.f32 %v1406_v22, %v560_v6  ;;  %887 = vst.msk [vmem:[%s1425_s18 + $0x30] sm:$0xf] %vm874_vm3, %v1080_v10 }
 0x127   : > { %v1096_v16 = vpack.c.bf16 %v742_v12, %v742_v12  ;;  %v729_v17 = vsel %vm665_vm1, %v633_v1, %v697_v11  ;;  %vm663_vm4 = vcmp.ge.f32.partialorder %v631_v14, 0.0  ;;  %v695_v20 = vmul.f32 0.2, %v631_v14 }
 0x128   : > { %v1083_v18 = vpack.c.bf16 %v729_v17, %v729_v17  ;;  %v745_v19 = vsel %vm681_vm2, %v649_v4, %v713_v13  ;;  %v647_v23 = vadd.f32 %v1408_v24, %v608_v15 }
 0x129   : > { %903 = vst.msk [vmem:[%s1425_s18 + $0x70] sm:$0xf] %vm874_vm3, %v1096_v16  ;;  %v1099_v21 = vpack.c.bf16 %v745_v19, %v745_v19  ;;  %v727_v25 = vsel %vm663_vm4, %v631_v14, %v695_v20 }
 0x12a   : > { %890 = vst.msk [vmem:[%s1425_s18 + $0x3c] sm:$0xf] %vm874_vm3, %v1083_v18  ;;  %v1081_v22 = vpack.c.bf16 %v727_v25, %v727_v25  ;;  %vm679_vm5 = vcmp.ge.f32.partialorder %v647_v23, 0.0  ;;  %v711_v26 = vmul.f32 0.2, %v647_v23 }
 0x12b   : > { %906 = vst.msk [vmem:[%s1425_s18 + $0x7c] sm:$0xf] %vm874_vm3, %v1099_v21 }
 0x12c   : > { %888 = vst.msk [vmem:[%s1425_s18 + $0x34] sm:$0xf] %vm874_vm3, %v1081_v22  ;;  %v743_v27 = vsel %vm679_vm5, %v647_v23, %v711_v26 }
 0x12d   : > { %v1097_v28 = vpack.c.bf16 %v743_v27, %v743_v27 }
 0x12f   : > { %904 = vst.msk [vmem:[%s1425_s18 + $0x74] sm:$0xf] %vm874_vm3, %v1097_v28 }
 0x130 PF: > { %s16_s15 = sadd.s32 1, %s1272_s15  }
 0x131   : > { %p13_p3 = scmp.ge.s32.totalorder %s16_s15, 4  }
 0x133   :  { %15 = sbr.rel (!%p13_p3) target bundleno = 2 (0x2), region = 75 }
 0x138   :  { %929 = vsyncpa [#allocation3], 1 }
 0x139   :  { %931 = vsyncpa [#allocation3 + $0x1], 1 }
 0x13a   :  { %932 = vsyncpa [#allocation5], 1 }

// kernel: discriminator_forward.8
= control target key start
LH: loop header
LB: loop body
LE: loop exit
PB: predicated region body
PF: predicated region fallthrough
CT: control target
= control target key end

     0   :  { %s1308_s15 = smov 0   ;;  %s1546_s0 = inlined_call_operand.vmem [shape: bf16[512,144], index: 0, kind: input, shape index: {}]   ;;  %s1547_s1 = inlined_call_operand.vmem [shape: bf16[144,32], index: 1, kind: input, shape index: {}]   ;;  %s1548_s2 = inlined_call_operand.vmem [shape: f32[1,32], index: 2, kind: input, shape index: {}]   ;;  %s1549_s3 = inlined_call_operand.vmem [shape: f32[1,32], index: 3, kind: input, shape index: {}]   ;;  %s1550_s4 = inlined_call_operand.vmem [shape: bf16[512,32], index: 4, kind: output, shape index: {}]  }
   0x1 LB: > { %s1054_s16 = sadd.s32 4294967295, %s1280_s15   ;;  %p1058_p0 = scmp.ge.s32.totalorder %s1280_s15, 1  ;;  %s1280_s15 = sphi %s1308_s15, %s14_s15  }
   0x2   : > { %p164_p1 = scmp.lt.s32.totalorder %s1280_s15, 3 }
   0x4   : > { %p165_p2 = pnand %p1058_p0, %p164_p1 }
   0x5   : > { %s1059_s19 = sshll.u32 (!%p165_p2), %s1054_s16, 5 }
   0x6   : > { %168 = sbr.rel (%p165_p2) target bundleno = 313 (0x139), region = 36  ;;  %p192_p3 = scmp.lt.s32.totalorder (!%p165_p2), %s1059_s19, 63 }
   0xb   : > { %v1217_v0 = vld [vmem:[%s1547_s1 + $0x38] sm:$0xff]   ;;  %v1282_v1 = vmov 0   ;;  %v1218_v2 = vld [vmem:[%s1547_s1 + $0x30] sm:$0xff]   ;;  %s1552_s19 = smov (!%p192_p3, %s1059_s19), 63  ;;  %v1219_v3 = vld [vmem:[%s1547_s1 + $0x28] sm:$0xff]   ;;  %vm453_vm0 = vcmask 130048  }
   0xc   : > { %502 = vmatprep.subr.bf16.mxu0 %v1282_v1  ;;  %1190 = vmatprep.subr.bf16.mxu1 %v1282_v1  ;;  %s1157_s24 = sshll.u32 %s1552_s19, 3  ;;  %v1220_v4 = vld [vmem:[%s1547_s1 + $0x20] sm:$0xff]   ;;  %v1221_v7 = vld [vmem:[%s1547_s1 + $0x18] sm:$0xff]   ;;  %v1222_v8 = vld [vmem:[%s1547_s1 + $0x10] sm:$0xff]   ;;  %s1063_s20 = sshll.u32 %s1552_s19, 2  ;;  %vm965_vm3 = vcmask 257024  }
   0xd   : > { %503 = vmatpush1.bf16.msra.mxu0 %v1217_v0  ;;  %1199 = vmatpush1.bf16.msra.mxu1 %v1217_v0  ;;  %s1331_s27 = scalar_lea.vmem %s1546_s0, %s1157_s24  ;;  %v1223_v9 = vld [vmem:[%s1547_s1 + $0x8] sm:$0xff]   ;;  %v1224_v10 = vld [vmem:[%s1547_s1] sm:$0xff]   ;;  %s1419_s23 = scalar_lea.vmem %s1550_s4, %s1063_s20 }
   0xe   : > { %504 = vmatprep.subr.bf16.mxu0 %v1282_v1  ;;  %1191 = vmatprep.subr.bf16.mxu1 %v1282_v1  ;;  %v1228_v5 = vld [vmem:[%s1331_s27 + $0x4] ss:$8 sps:$4 sm:$0xff]   ;;  %v1226_v12 = vld [vmem:[%s1331_s27] ss:$8 sps:$4 sm:$0xff]   ;;  %v1232_v14 = vld [vmem:[%s1331_s27 + $0x14] ss:$8 sps:$4 sm:$0xff]  }
   0xf   : > { %v1231_v6 = vld [vmem:[%s1331_s27 + $0x84] ss:$8 sps:$4 sm:$0xff]   ;;  %1105 = vmatprep.mubr.msk.bf16.mxu0 %vm453_vm0, %v1228_v5  ;;  %v1229_v13 = vld [vmem:[%s1331_s27 + $0x80] ss:$8 sps:$4 sm:$0xff]   ;;  %v1234_v15 = vld [vmem:[%s1331_s27 + $0x94] ss:$8 sps:$4 sm:$0xff]  }
  0x10   : > { %1113 = vmatprep.mubr.msk.bf16.mxu1 %vm453_vm0, %v1231_v6  ;;  %v1225_v11 = vld [vmem:[%s1547_s1 + $0x40] sm:$0xff]   ;;  %v1236_v16 = vld [vmem:[%s1331_s27 + $0x10] ss:$8 sps:$4 sm:$0xff]   ;;  %v1244_v22 = vld [vmem:[%s1331_s27 + $0x34] ss:$8 sps:$4 sm:$0xff]  }
  0x11   : > { %505 = vmatpush1.bf16.msra.mxu0 %v1218_v2  ;;  %1200 = vmatpush1.bf16.msra.mxu1 %v1218_v2  ;;  %v1237_v17 = vld [vmem:[%s1331_s27 + $0x90] ss:$8 sps:$4 sm:$0xff]   ;;  %v1238_v18 = vld [vmem:[%s1331_s27 + $0x24] ss:$8 sps:$4 sm:$0xff]   ;;  %v1242_v20 = vld [vmem:[%s1331_s27 + $0x20] ss:$8 sps:$4 sm:$0xff]  }
  0x12   : > { %506 = vmatprep.subr.bf16.mxu0 %v1282_v1  ;;  %1192 = vmatprep.subr.bf16.mxu1 %v1282_v1  ;;  %v1240_v19 = vld [vmem:[%s1331_s27 + $0xa4] ss:$8 sps:$4 sm:$0xff]   ;;  %v1243_v21 = vld [vmem:[%s1331_s27 + $0xa0] ss:$8 sps:$4 sm:$0xff]   ;;  %v1246_v23 = vld [vmem:[%s1331_s27 + $0xb4] ss:$8 sps:$4 sm:$0xff]  }
  0x13   : > { %v1248_v24 = vld [vmem:[%s1331_s27 + $0x30] ss:$8 sps:$4 sm:$0xff]   ;;  %v1250_v26 = vld [vmem:[%s1331_s27 + $0x44] ss:$8 sps:$4 sm:$0xff]   ;;  %v1254_v28 = vld [vmem:[%s1331_s27 + $0x40] ss:$8 sps:$4 sm:$0xff]  }
  0x14   : > { %v1249_v25 = vld [vmem:[%s1331_s27 + $0xb0] ss:$8 sps:$4 sm:$0xff]   ;;  %v1252_v27 = vld [vmem:[%s1331_s27 + $0xc4] ss:$8 sps:$4 sm:$0xff]   ;;  %v1255_v29 = vld [vmem:[%s1331_s27 + $0xc0] ss:$8 sps:$4 sm:$0xff]  }
  0x15   : > { %507 = vmatpush1.bf16.msra.mxu0 %v1219_v3  ;;  %1201 = vmatpush1.bf16.msra.mxu1 %v1219_v3  ;;  %v1256_v30 = vld [vmem:[%s1331_s27 + $0x54] ss:$8 sps:$4 sm:$0xff]   ;;  %v1260_v32 = vld [vmem:[%s1331_s27 + $0x50] ss:$8 sps:$4 sm:$0xff]   ;;  %v1262_v34 = vld [vmem:[%s1331_s27 + $0x64] ss:$8 sps:$4 sm:$0xff]  }
  0x16   : > { %508 = vmatprep.subr.bf16.mxu0 %v1282_v1  ;;  %1193 = vmatprep.subr.bf16.mxu1 %v1282_v1  ;;  %v1258_v31 = vld [vmem:[%s1331_s27 + $0xd4] ss:$8 sps:$4 sm:$0xff]   ;;  %v1261_v33 = vld [vmem:[%s1331_s27 + $0xd0] ss:$8 sps:$4 sm:$0xff]   ;;  %v1264_v35 = vld [vmem:[%s1331_s27 + $0xe4] ss:$8 sps:$4 sm:$0xff]  }
  0x17   : > { %v1266_v36 = vld [vmem:[%s1331_s27 + $0x60] ss:$8 sps:$4 sm:$0xff]   ;;  %v1268_v38 = vld [vmem:[%s1331_s27 + $0x74] ss:$8 sps:$4 sm:$0xff]   ;;  %v1272_v40 = vld [vmem:[%s1331_s27 + $0x70] ss:$8 sps:$4 sm:$0xff]  }
  0x18   : > { %v1267_v37 = vld [vmem:[%s1331_s27 + $0xe0] ss:$8 sps:$4 sm:$0xff]   ;;  %v1270_v39 = vld [vmem:[%s1331_s27 + $0xf4] ss:$8 sps:$4 sm:$0xff]   ;;  %v1273_v41 = vld [vmem:[%s1331_s27 + $0xf0] ss:$8 sps:$4 sm:$0xff]  }
  0x19   : > { %509 = vmatpush1.bf16.msra.mxu0 %v1220_v4  ;;  %1202 = vmatpush1.bf16.msra.mxu1 %v1220_v4  ;;  %v1402_v42 = vld [vmem:[%s1548_s2] ss:$0 sm:$0xff] }
  0x1a   : > { %510 = vmatprep.subr.bf16.mxu0 %v1282_v1  ;;  %1194 = vmatprep.subr.bf16.mxu1 %v1282_v1  ;;  %v1407_v44 = vld [vmem:[%s1549_s3] ss:$0 sm:$0xff] }
  0x1d   : > { %511 = vmatpush1.bf16.msra.mxu0 %v1221_v7  ;;  %1203 = vmatpush1.bf16.msra.mxu1 %v1221_v7 }
  0x1e   : > { %512 = vmatprep.subr.bf16.mxu0 %v1282_v1  ;;  %1195 = vmatprep.subr.bf16.mxu1 %v1282_v1 }
  0x21   : > { %513 = vmatpush1.bf16.msra.mxu0 %v1222_v8  ;;  %1204 = vmatpush1.bf16.msra.mxu1 %v1222_v8 }
  0x22   : > { %514 = vmatprep.subr.bf16.mxu0 %v1282_v1  ;;  %1196 = vmatprep.subr.bf16.mxu1 %v1282_v1 }
  0x25   : > { %515 = vmatpush1.bf16.msra.mxu0 %v1223_v9  ;;  %1205 = vmatpush1.bf16.msra.mxu1 %v1223_v9 }
  0x26   : > { %516 = vmatprep.subr.bf16.mxu0 %v1282_v1  ;;  %1197 = vmatprep.subr.bf16.mxu1 %v1282_v1 }
  0x29   : > { %517 = vmatpush1.bf16.msra.mxu0 %v1224_v10  ;;  %1206 = vmatpush1.bf16.msra.mxu1 %v1224_v10 }
  0x2a   : > { %532 = vmatprep.subr.bf16.mxu0 %v1282_v1  ;;  %1198 = vmatprep.subr.bf16.mxu1 %v1282_v1 }
  0x2d   : > { %533 = vmatpush2.bf16.msra.mxu0 %v1225_v11  ;;  %1207 = vmatpush2.bf16.msra.mxu1 %v1225_v11 }
  0x30   : > { %535 = vmatmul.mubr.bf16.vlgmr.msra.gmra.mxu0 %v1226_v12  ;;  %599 = vmatmul.mubr.bf16.vlgmr.msra.gmra.mxu1 %v1229_v13 }
  0x31   : > { %1106 = vmatprep.mubr.msk.bf16.mxu0 %vm453_vm0, %v1232_v14  ;;  %1114 = vmatprep.mubr.msk.bf16.mxu1 %vm453_vm0, %v1234_v15 }
  0x38   : > { %543 = vmatmul.mubr.bf16.gmra.mxu0 %v1236_v16  ;;  %607 = vmatmul.mubr.bf16.gmra.mxu1 %v1237_v17 }
  0x39   : > { %1107 = vmatprep.mubr.msk.bf16.mxu0 %vm453_vm0, %v1238_v18  ;;  %1115 = vmatprep.mubr.msk.bf16.mxu1 %vm453_vm0, %v1240_v19 }
  0x40   : > { %551 = vmatmul.mubr.bf16.gmra.mxu0 %v1242_v20  ;;  %615 = vmatmul.mubr.bf16.gmra.mxu1 %v1243_v21 }
  0x41   : > { %1108 = vmatprep.mubr.msk.bf16.mxu0 %vm453_vm0, %v1244_v22  ;;  %1116 = vmatprep.mubr.msk.bf16.mxu1 %vm453_vm0, %v1246_v23 }
  0x48   : > { %559 = vmatmul.mubr.bf16.gmra.mxu0 %v1248_v24  ;;  %623 = vmatmul.mubr.bf16.gmra.mxu1 %v1249_v25 }
  0x49   : > { %1109 = vmatprep.mubr.msk.bf16.mxu0 %vm453_vm0, %v1250_v26  ;;  %1117 = vmatprep.mubr.msk.bf16.mxu1 %vm453_vm0, %v1252_v27 }
  0x50   : > { %567 = vmatmul.mubr.bf16.gmra.mxu0 %v1254_v28  ;;  %631 = vmatmul.mubr.bf16.gmra.mxu1 %v1255_v29 }
  0x51   : > { %1110 = vmatprep.mubr.msk.bf16.mxu0 %vm453_vm0, %v1256_v30  ;;  %1118 = vmatprep.mubr.msk.bf16.mxu1 %vm453_vm0, %v1258_v31 }
  0x58   : > { %575 = vmatmul.mubr.bf16.gmra.mxu0 %v1260_v32  ;;  %639 = vmatmul.mubr.bf16.gmra.mxu1 %v1261_v33 }
  0x59   : > { %1111 = vmatprep.mubr.msk.bf16.mxu0 %vm453_vm0, %v1262_v34  ;;  %1119 = vmatprep.mubr.msk.bf16.mxu1 %vm453_vm0, %v1264_v35 }
  0x60   : > { %583 = vmatmul.mubr.bf16.gmra.mxu0 %v1266_v36  ;;  %647 = vmatmul.mubr.bf16.gmra.mxu1 %v1267_v37 }
  0x61   : > { %1112 = vmatprep.mubr.msk.bf16.mxu0 %vm453_vm0, %v1268_v38  ;;  %1120 = vmatprep.mubr.msk.bf16.mxu1 %vm453_vm0, %v1270_v39 }
  0x68   : > { %591 = vmatmul.mubr.bf16.gmra.mxu0 %v1272_v40  ;;  %655 = vmatmul.mubr.bf16.gmra.mxu1 %v1273_v41 }
  0xf0   : > { %v536_v43 = vpop.f32.mrf.mxu0  ;;  %v600_v45 = vpop.f32.mrf.mxu1 }
  0xf1   : > { %v670_v46 = vmul.f32 %v1402_v42, %v536_v43  ;;  %v686_v47 = vmul.f32 %v1402_v42, %v600_v45 }
  0xf2   : > { %v538_v48 = vpop.f32.mrf.mxu0  ;;  %v602_v49 = vpop.f32.mrf.mxu1 }
  0xf3   : > { %v709_v50 = vadd.f32 %v1407_v44, %v670_v46  ;;  %v725_v51 = vadd.f32 %v1407_v44, %v686_v47 }
  0xf4   : > { %v539_v52 = vpop.f32.mrf.mxu0  ;;  %v603_v53 = vpop.f32.mrf.mxu1 }
  0xf5   : > { %vm741_vm1 = vcmp.ge.f32.partialorder %v709_v50, 0.0  ;;  %v773_v54 = vmul.f32 0.2, %v709_v50  ;;  %vm757_vm2 = vcmp.ge.f32.partialorder %v725_v51, 0.0  ;;  %v789_v55 = vmul.f32 0.2, %v725_v51 }
  0xf6   : > { %v671_v56 = vmul.f32 %v1402_v42, %v539_v52  ;;  %v687_v57 = vmul.f32 %v1402_v42, %v603_v53  ;;  %v541_v58 = vpop.f32.mrf.mxu0  ;;  %v605_v59 = vpop.f32.mrf.mxu1 }
  0xf7   : > { %v805_v60 = vsel %vm741_vm1, %v709_v50, %v773_v54  ;;  %v821_v61 = vsel %vm757_vm2, %v725_v51, %v789_v55 }
  0xf8   : > { %v1158_v62 = vpack.c.bf16 %v805_v60, %v805_v60  ;;  %v1174_v63 = vpack.c.bf16 %v821_v61, %v821_v61  ;;  %v710_v0 = vadd.f32 %v1407_v44, %v671_v56  ;;  %v726_v1 = vadd.f32 %v1407_v44, %v687_v57  ;;  %v544_v2 = vpop.f32.mrf.mxu0  ;;  %v608_v3 = vpop.f32.mrf.mxu1 }
  0xf9   : > { %v672_v4 = vmul.f32 %v1402_v42, %v544_v2  ;;  %v688_v5 = vmul.f32 %v1402_v42, %v608_v3 }
  0xfa   : > { %966 = vst.msk [vmem:[%s1419_s23] sm:$0xf] %vm965_vm3, %v1158_v62  ;;  %982 = vst.msk [vmem:[%s1419_s23 + $0x40] sm:$0xf] %vm965_vm3, %v1174_v63  ;;  %vm742_vm4 = vcmp.ge.f32.partialorder %v710_v0, 0.0  ;;  %vm758_vm5 = vcmp.ge.f32.partialorder %v726_v1, 0.0  ;;  %v546_v8 = vpop.f32.mrf.mxu0  ;;  %v610_v9 = vpop.f32.mrf.mxu1 }
  0xfb   : > { %v774_v6 = vmul.f32 0.2, %v710_v0  ;;  %v790_v7 = vmul.f32 0.2, %v726_v1  ;;  %v711_v10 = vadd.f32 %v1407_v44, %v672_v4  ;;  %v727_v11 = vadd.f32 %v1407_v44, %v688_v5 }
  0xfc   : > { %v547_v14 = vpop.f32.mrf.mxu0  ;;  %v611_v15 = vpop.f32.mrf.mxu1 }
  0xfd   : > { %v806_v12 = vsel %vm742_vm4, %v710_v0, %v774_v6  ;;  %v822_v13 = vsel %vm758_vm5, %v726_v1, %v790_v7  ;;  %vm743_vm6 = vcmp.ge.f32.partialorder %v711_v10, 0.0  ;;  %v775_v18 = vmul.f32 0.2, %v711_v10 }
  0xfe   : > { %v1159_v16 = vpack.c.bf16 %v806_v12, %v806_v12  ;;  %v1175_v17 = vpack.c.bf16 %v822_v13, %v822_v13  ;;  %vm759_vm7 = vcmp.ge.f32.partialorder %v727_v11, 0.0  ;;  %v791_v19 = vmul.f32 0.2, %v727_v11  ;;  %v549_v22 = vpop.f32.mrf.mxu0  ;;  %v613_v23 = vpop.f32.mrf.mxu1 }
  0xff   : > { %v673_v20 = vmul.f32 %v1402_v42, %v547_v14  ;;  %v689_v21 = vmul.f32 %v1402_v42, %v611_v15  ;;  %v807_v24 = vsel %vm743_vm6, %v711_v10, %v775_v18 }
 0x100   : > { %967 = vst.msk [vmem:[%s1419_s23 + $0x4] sm:$0xf] %vm965_vm3, %v1159_v16  ;;  %983 = vst.msk [vmem:[%s1419_s23 + $0x44] sm:$0xf] %vm965_vm3, %v1175_v17  ;;  %v1160_v25 = vpack.c.bf16 %v807_v24, %v807_v24  ;;  %v823_v26 = vsel %vm759_vm7, %v727_v11, %v791_v19  ;;  %v552_v29 = vpop.f32.mrf.mxu0  ;;  %v616_v30 = vpop.f32.mrf.mxu1 }
 0x101   : > { %v712_v27 = vadd.f32 %v1407_v44, %v673_v20  ;;  %v728_v28 = vadd.f32 %v1407_v44, %v689_v21  ;;  %v1176_v31 = vpack.c.bf16 %v823_v26, %v823_v26  ;;  %v674_v32 = vmul.f32 %v1402_v42, %v552_v29 }
 0x102   : > { %v690_v33 = vmul.f32 %v1402_v42, %v616_v30  ;;  %968 = vst.msk [vmem:[%s1419_s23 + $0x8] sm:$0xf] %vm965_vm3, %v1160_v25  ;;  %v554_v36 = vpop.f32.mrf.mxu0  ;;  %v618_v37 = vpop.f32.mrf.mxu1 }
 0x103   : > { %vm744_vm8 = vcmp.ge.f32.partialorder %v712_v27, 0.0  ;;  %v776_v34 = vmul.f32 0.2, %v712_v27  ;;  %vm760_vm9 = vcmp.ge.f32.partialorder %v728_v28, 0.0  ;;  %v792_v35 = vmul.f32 0.2, %v728_v28 }
 0x104   : > { %984 = vst.msk [vmem:[%s1419_s23 + $0x48] sm:$0xf] %vm965_vm3, %v1176_v31  ;;  %v713_v38 = vadd.f32 %v1407_v44, %v674_v32  ;;  %v729_v39 = vadd.f32 %v1407_v44, %v690_v33  ;;  %v555_v43 = vpop.f32.mrf.mxu0  ;;  %v619_v45 = vpop.f32.mrf.mxu1 }
 0x105   : > { %v808_v40 = vsel %vm744_vm8, %v712_v27, %v776_v34  ;;  %v824_v41 = vsel %vm760_vm9, %v728_v28, %v792_v35  ;;  %v675_v50 = vmul.f32 %v1402_v42, %v555_v43  ;;  %v691_v51 = vmul.f32 %v1402_v42, %v619_v45 }
 0x106   : > { %v1161_v46 = vpack.c.bf16 %v808_v40, %v808_v40  ;;  %v1177_v47 = vpack.c.bf16 %v824_v41, %v824_v41  ;;  %vm745_vm10 = vcmp.ge.f32.partialorder %v713_v38, 0.0  ;;  %v777_v48 = vmul.f32 0.2, %v713_v38  ;;  %v557_v52 = vpop.f32.mrf.mxu0  ;;  %v621_v53 = vpop.f32.mrf.mxu1 }
 0x107   : > { %vm761_vm11 = vcmp.ge.f32.partialorder %v729_v39, 0.0  ;;  %v793_v49 = vmul.f32 0.2, %v729_v39  ;;  %v714_v57 = vadd.f32 %v1407_v44, %v675_v50  ;;  %v730_v58 = vadd.f32 %v1407_v44, %v691_v51 }
 0x108   : > { %969 = vst.msk [vmem:[%s1419_s23 + $0xc] sm:$0xf] %vm965_vm3, %v1161_v46  ;;  %985 = vst.msk [vmem:[%s1419_s23 + $0x4c] sm:$0xf] %vm965_vm3, %v1177_v47  ;;  %v809_v54 = vsel %vm745_vm10, %v713_v38, %v777_v48  ;;  %v560_v59 = vpop.f32.mrf.mxu0  ;;  %v624_v60 = vpop.f32.mrf.mxu1 }
 0x109   : > { %v1162_v55 = vpack.c.bf16 %v809_v54, %v809_v54  ;;  %v825_v56 = vsel %vm761_vm11, %v729_v39, %v793_v49  ;;  %v676_v62 = vmul.f32 %v1402_v42, %v560_v59  ;;  %v692_v63 = vmul.f32 %v1402_v42, %v624_v60 }
 0x10a   : > { %v1178_v61 = vpack.c.bf16 %v825_v56, %v825_v56  ;;  %vm746_vm12 = vcmp.ge.f32.partialorder %v714_v57, 0.0  ;;  %v778_v0 = vmul.f32 0.2, %v714_v57  ;;  %vm762_vm13 = vcmp.ge.f32.partialorder %v730_v58, 0.0  ;;  %v562_v2 = vpop.f32.mrf.mxu0  ;;  %v626_v3 = vpop.f32.mrf.mxu1 }
 0x10b   : > { %970 = vst.msk [vmem:[%s1419_s23 + $0x10] sm:$0xf] %vm965_vm3, %v1162_v55  ;;  %v794_v1 = vmul.f32 0.2, %v730_v58  ;;  %v715_v4 = vadd.f32 %v1407_v44, %v676_v62  ;;  %v731_v5 = vadd.f32 %v1407_v44, %v692_v63 }
 0x10c   : > { %986 = vst.msk [vmem:[%s1419_s23 + $0x50] sm:$0xf] %vm965_vm3, %v1178_v61  ;;  %v810_v6 = vsel %vm746_vm12, %v714_v57, %v778_v0  ;;  %v563_v8 = vpop.f32.mrf.mxu0  ;;  %v627_v9 = vpop.f32.mrf.mxu1 }
 0x10d   : > { %v826_v7 = vsel %vm762_vm13, %v730_v58, %v794_v1  ;;  %v1163_v10 = vpack.c.bf16 %v810_v6, %v810_v6  ;;  %vm747_vm14 = vcmp.ge.f32.partialorder %v715_v4, 0.0  ;;  %v779_v12 = vmul.f32 0.2, %v715_v4 }
 0x10e   : > { %v1179_v11 = vpack.c.bf16 %v826_v7, %v826_v7  ;;  %vm763_vm15 = vcmp.ge.f32.partialorder %v731_v5, 0.0  ;;  %v795_v13 = vmul.f32 0.2, %v731_v5  ;;  %v677_v14 = vmul.f32 %v1402_v42, %v563_v8  ;;  %v565_v16 = vpop.f32.mrf.mxu0  ;;  %v629_v17 = vpop.f32.mrf.mxu1 }
 0x10f   : > { %v693_v15 = vmul.f32 %v1402_v42, %v627_v9  ;;  %971 = vst.msk [vmem:[%s1419_s23 + $0x14] sm:$0xf] %vm965_vm3, %v1163_v10  ;;  %v811_v18 = vsel %vm747_vm14, %v715_v4, %v779_v12 }
 0x110   : > { %987 = vst.msk [vmem:[%s1419_s23 + $0x54] sm:$0xf] %vm965_vm3, %v1179_v11  ;;  %v1164_v19 = vpack.c.bf16 %v811_v18, %v811_v18  ;;  %v827_v20 = vsel %vm763_vm15, %v731_v5, %v795_v13  ;;  %v716_v21 = vadd.f32 %v1407_v44, %v677_v14  ;;  %v568_v23 = vpop.f32.mrf.mxu0  ;;  %v632_v24 = vpop.f32.mrf.mxu1 }
 0x111   : > { %v732_v22 = vadd.f32 %v1407_v44, %v693_v15  ;;  %v1180_v25 = vpack.c.bf16 %v827_v20, %v827_v20  ;;  %v678_v26 = vmul.f32 %v1402_v42, %v568_v23  ;;  %v694_v27 = vmul.f32 %v1402_v42, %v632_v24 }
 0x112   : > { %972 = vst.msk [vmem:[%s1419_s23 + $0x18] sm:$0xf] %vm965_vm3, %v1164_v19  ;;  %vm748_vm0 = vcmp.ge.f32.partialorder %v716_v21, 0.0  ;;  %v780_v28 = vmul.f32 0.2, %v716_v21  ;;  %v570_v30 = vpop.f32.mrf.mxu0  ;;  %v634_v31 = vpop.f32.mrf.mxu1 }
 0x113   : > { %vm764_vm1 = vcmp.ge.f32.partialorder %v732_v22, 0.0  ;;  %v796_v29 = vmul.f32 0.2, %v732_v22  ;;  %988 = vst.msk [vmem:[%s1419_s23 + $0x58] sm:$0xf] %vm965_vm3, %v1180_v25  ;;  %v717_v32 = vadd.f32 %v1407_v44, %v678_v26  ;;  %v733_v33 = vadd.f32 %v1407_v44, %v694_v27 }
 0x114   : > { %v812_v34 = vsel %vm748_vm0, %v716_v21, %v780_v28  ;;  %v571_v36 = vpop.f32.mrf.mxu0  ;;  %v635_v37 = vpop.f32.mrf.mxu1 }
 0x115   : > { %v828_v35 = vsel %vm764_vm1, %v732_v22, %v796_v29  ;;  %v1165_v38 = vpack.c.bf16 %v812_v34, %v812_v34  ;;  %vm749_vm2 = vcmp.ge.f32.partialorder %v717_v32, 0.0  ;;  %v781_v40 = vmul.f32 0.2, %v717_v32 }
 0x116   : > { %v1181_v39 = vpack.c.bf16 %v828_v35, %v828_v35  ;;  %vm765_vm4 = vcmp.ge.f32.partialorder %v733_v33, 0.0  ;;  %v797_v41 = vmul.f32 0.2, %v733_v33  ;;  %v679_v43 = vmul.f32 %v1402_v42, %v571_v36  ;;  %v573_v46 = vpop.f32.mrf.mxu0  ;;  %v637_v47 = vpop.f32.mrf.mxu1 }
 0x117   : > { %v695_v45 = vmul.f32 %v1402_v42, %v635_v37  ;;  %973 = vst.msk [vmem:[%s1419_s23 + $0x1c] sm:$0xf] %vm965_vm3, %v1165_v38  ;;  %v813_v48 = vsel %vm749_vm2, %v717_v32, %v781_v40 }
 0x118   : > { %989 = vst.msk [vmem:[%s1419_s23 + $0x5c] sm:$0xf] %vm965_vm3, %v1181_v39  ;;  %v1166_v49 = vpack.c.bf16 %v813_v48, %v813_v48  ;;  %v829_v50 = vsel %vm765_vm4, %v733_v33, %v797_v41  ;;  %v718_v51 = vadd.f32 %v1407_v44, %v679_v43  ;;  %v576_v53 = vpop.f32.mrf.mxu0  ;;  %v640_v54 = vpop.f32.mrf.mxu1 }
 0x119   : > { %v734_v52 = vadd.f32 %v1407_v44, %v695_v45  ;;  %v1182_v55 = vpack.c.bf16 %v829_v50, %v829_v50  ;;  %v680_v56 = vmul.f32 %v1402_v42, %v576_v53  ;;  %v696_v57 = vmul.f32 %v1402_v42, %v640_v54 }
 0x11a   : > { %974 = vst.msk [vmem:[%s1419_s23 + $0x20] sm:$0xf] %vm965_vm3, %v1166_v49  ;;  %vm750_vm5 = vcmp.ge.f32.partialorder %v718_v51, 0.0  ;;  %v782_v58 = vmul.f32 0.2, %v718_v51  ;;  %v578_v60 = vpop.f32.mrf.mxu0  ;;  %v642_v61 = vpop.f32.mrf.mxu1 }
 0x11b   : > { %vm766_vm6 = vcmp.ge.f32.partialorder %v734_v52, 0.0  ;;  %v798_v59 = vmul.f32 0.2, %v734_v52  ;;  %990 = vst.msk [vmem:[%s1419_s23 + $0x60] sm:$0xf] %vm965_vm3, %v1182_v55  ;;  %v719_v62 = vadd.f32 %v1407_v44, %v680_v56  ;;  %v735_v63 = vadd.f32 %v1407_v44, %v696_v57 }
 0x11c   : > { %v814_v0 = vsel %vm750_vm5, %v718_v51, %v782_v58  ;;  %v579_v2 = vpop.f32.mrf.mxu0  ;;  %v643_v3 = vpop.f32.mrf.mxu1 }
 0x11d   : > { %v830_v1 = vsel %vm766_vm6, %v734_v52, %v798_v59  ;;  %v1167_v4 = vpack.c.bf16 %v814_v0, %v814_v0  ;;  %vm751_vm7 = vcmp.ge.f32.partialorder %v719_v62, 0.0  ;;  %v783_v6 = vmul.f32 0.2, %v719_v62 }
 0x11e   : > { %v1183_v5 = vpack.c.bf16 %v830_v1, %v830_v1  ;;  %vm767_vm8 = vcmp.ge.f32.partialorder %v735_v63, 0.0  ;;  %v799_v7 = vmul.f32 0.2, %v735_v63  ;;  %v681_v8 = vmul.f32 %v1402_v42, %v579_v2  ;;  %v581_v10 = vpop.f32.mrf.mxu0  ;;  %v645_v11 = vpop.f32.mrf.mxu1 }
 0x11f   : > { %v697_v9 = vmul.f32 %v1402_v42, %v643_v3  ;;  %975 = vst.msk [vmem:[%s1419_s23 + $0x24] sm:$0xf] %vm965_vm3, %v1167_v4  ;;  %v815_v12 = vsel %vm751_vm7, %v719_v62, %v783_v6 }
 0x120   : > { %991 = vst.msk [vmem:[%s1419_s23 + $0x64] sm:$0xf] %vm965_vm3, %v1183_v5  ;;  %v1168_v13 = vpack.c.bf16 %v815_v12, %v815_v12  ;;  %v831_v14 = vsel %vm767_vm8, %v735_v63, %v799_v7  ;;  %v720_v15 = vadd.f32 %v1407_v44, %v681_v8  ;;  %v584_v17 = vpop.f32.mrf.mxu0  ;;  %v648_v18 = vpop.f32.mrf.mxu1 }
 0x121   : > { %v736_v16 = vadd.f32 %v1407_v44, %v697_v9  ;;  %v1184_v19 = vpack.c.bf16 %v831_v14, %v831_v14  ;;  %v682_v20 = vmul.f32 %v1402_v42, %v584_v17  ;;  %v698_v21 = vmul.f32 %v1402_v42, %v648_v18 }
 0x122   : > { %976 = vst.msk [vmem:[%s1419_s23 + $0x28] sm:$0xf] %vm965_vm3, %v1168_v13  ;;  %vm752_vm9 = vcmp.ge.f32.partialorder %v720_v15, 0.0  ;;  %v784_v22 = vmul.f32 0.2, %v720_v15  ;;  %v586_v24 = vpop.f32.mrf.mxu0  ;;  %v650_v25 = vpop.f32.mrf.mxu1 }
 0x123   : > { %vm768_vm10 = vcmp.ge.f32.partialorder %v736_v16, 0.0  ;;  %v800_v23 = vmul.f32 0.2, %v736_v16  ;;  %992 = vst.msk [vmem:[%s1419_s23 + $0x68] sm:$0xf] %vm965_vm3, %v1184_v19  ;;  %v721_v26 = vadd.f32 %v1407_v44, %v682_v20  ;;  %v737_v27 = vadd.f32 %v1407_v44, %v698_v21 }
 0x124   : > { %v816_v28 = vsel %vm752_vm9, %v720_v15, %v784_v22  ;;  %v587_v30 = vpop.f32.mrf.mxu0  ;;  %v651_v31 = vpop.f32.mrf.mxu1 }
 0x125   : > { %v832_v29 = vsel %vm768_vm10, %v736_v16, %v800_v23  ;;  %v1169_v32 = vpack.c.bf16 %v816_v28, %v816_v28  ;;  %vm753_vm11 = vcmp.ge.f32.partialorder %v721_v26, 0.0  ;;  %v785_v34 = vmul.f32 0.2, %v721_v26 }
 0x126   : > { %v1185_v33 = vpack.c.bf16 %v832_v29, %v832_v29  ;;  %vm769_vm12 = vcmp.ge.f32.partialorder %v737_v27, 0.0  ;;  %v801_v35 = vmul.f32 0.2, %v737_v27  ;;  %v683_v36 = vmul.f32 %v1402_v42, %v587_v30  ;;  %v589_v38 = vpop.f32.mrf.mxu0  ;;  %v653_v39 = vpop.f32.mrf.mxu1 }
 0x127   : > { %v699_v37 = vmul.f32 %v1402_v42, %v651_v31  ;;  %977 = vst.msk [vmem:[%s1419_s23 + $0x2c] sm:$0xf] %vm965_vm3, %v1169_v32  ;;  %v817_v40 = vsel %vm753_vm11, %v721_v26, %v785_v34 }
 0x128   : > { %993 = vst.msk [vmem:[%s1419_s23 + $0x6c] sm:$0xf] %vm965_vm3, %v1185_v33  ;;  %v1170_v41 = vpack.c.bf16 %v817_v40, %v817_v40  ;;  %v833_v43 = vsel %vm769_vm12, %v737_v27, %v801_v35  ;;  %v722_v45 = vadd.f32 %v1407_v44, %v683_v36  ;;  %v592_v47 = vpop.f32.mrf.mxu0  ;;  %v656_v48 = vpop.f32.mrf.mxu1 }
 0x129   : > { %v738_v46 = vadd.f32 %v1407_v44, %v699_v37  ;;  %v1186_v49 = vpack.c.bf16 %v833_v43, %v833_v43  ;;  %v684_v50 = vmul.f32 %v1402_v42, %v592_v47  ;;  %v700_v51 = vmul.f32 %v1402_v42, %v656_v48 }
 0x12a   : > { %978 = vst.msk [vmem:[%s1419_s23 + $0x30] sm:$0xf] %vm965_vm3, %v1170_v41  ;;  %vm754_vm13 = vcmp.ge.f32.partialorder %v722_v45, 0.0  ;;  %v786_v52 = vmul.f32 0.2, %v722_v45  ;;  %v594_v54 = vpop.f32.mrf.mxu0  ;;  %v658_v55 = vpop.f32.mrf.mxu1 }
 0x12b   : > { %vm770_vm14 = vcmp.ge.f32.partialorder %v738_v46, 0.0  ;;  %v802_v53 = vmul.f32 0.2, %v738_v46  ;;  %994 = vst.msk [vmem:[%s1419_s23 + $0x70] sm:$0xf] %vm965_vm3, %v1186_v49  ;;  %v723_v56 = vadd.f32 %v1407_v44, %v684_v50  ;;  %v739_v57 = vadd.f32 %v1407_v44, %v700_v51 }
 0x12c   : > { %v818_v58 = vsel %vm754_vm13, %v722_v45, %v786_v52  ;;  %v595_v60 = vpop.f32.mrf.mxu0  ;;  %v659_v61 = vpop.f32.mrf.mxu1 }
 0x12d   : > { %v834_v59 = vsel %vm770_vm14, %v738_v46, %v802_v53  ;;  %v1171_v62 = vpack.c.bf16 %v818_v58, %v818_v58  ;;  %vm755_vm15 = vcmp.ge.f32.partialorder %v723_v56, 0.0  ;;  %v787_v0 = vmul.f32 0.2, %v723_v56 }
 0x12e   : > { %v1187_v63 = vpack.c.bf16 %v834_v59, %v834_v59  ;;  %vm771_vm0 = vcmp.ge.f32.partialorder %v739_v57, 0.0  ;;  %v803_v1 = vmul.f32 0.2, %v739_v57  ;;  %v685_v2 = vmul.f32 %v1402_v42, %v595_v60  ;;  %v597_v4 = vpop.f32.mrf.mxu0  ;;  %v661_v5 = vpop.f32.mrf.mxu1 }
 0x12f   : > { %v701_v3 = vmul.f32 %v1402_v42, %v659_v61  ;;  %979 = vst.msk [vmem:[%s1419_s23 + $0x34] sm:$0xf] %vm965_vm3, %v1171_v62  ;;  %v819_v6 = vsel %vm755_vm15, %v723_v56, %v787_v0 }
 0x130   : > { %995 = vst.msk [vmem:[%s1419_s23 + $0x74] sm:$0xf] %vm965_vm3, %v1187_v63  ;;  %v1172_v7 = vpack.c.bf16 %v819_v6, %v819_v6  ;;  %v835_v8 = vsel %vm771_vm0, %v739_v57, %v803_v1  ;;  %v724_v9 = vadd.f32 %v1407_v44, %v685_v2 }
 0x131   : > { %v740_v10 = vadd.f32 %v1407_v44, %v701_v3  ;;  %v1188_v11 = vpack.c.bf16 %v835_v8, %v835_v8 }
 0x132   : > { %980 = vst.msk [vmem:[%s1419_s23 + $0x38] sm:$0xf] %vm965_vm3, %v1172_v7  ;;  %vm756_vm1 = vcmp.ge.f32.partialorder %v724_v9, 0.0  ;;  %v788_v42 = vmul.f32 0.2, %v724_v9 }
 0x133   : > { %vm772_vm2 = vcmp.ge.f32.partialorder %v740_v10, 0.0  ;;  %v804_v12 = vmul.f32 0.2, %v740_v10  ;;  %996 = vst.msk [vmem:[%s1419_s23 + $0x78] sm:$0xf] %vm965_vm3, %v1188_v11 }
 0x134   : > { %v820_v13 = vsel %vm756_vm1, %v724_v9, %v788_v42 }
 0x135   : > { %v836_v14 = vsel %vm772_vm2, %v740_v10, %v804_v12  ;;  %v1173_v15 = vpack.c.bf16 %v820_v13, %v820_v13 }
 0x136   : > { %v1189_v16 = vpack.c.bf16 %v836_v14, %v836_v14 }
 0x137   : > { %981 = vst.msk [vmem:[%s1419_s23 + $0x3c] sm:$0xf] %vm965_vm3, %v1173_v15 }
 0x138   : > { %997 = vst.msk [vmem:[%s1419_s23 + $0x7c] sm:$0xf] %vm965_vm3, %v1189_v16 }
 0x139 PF: > { %s14_s15 = sadd.s32 1, %s1280_s15  }
 0x13a   : > { %p11_p4 = scmp.ge.s32.totalorder %s14_s15, 4  }
 0x13c   :  { %13 = sbr.rel (!%p11_p4) target bundleno = 1 (0x1), region = 66 }

// kernel: discriminator_forward.9
= control target key start
LH: loop header
LB: loop body
LE: loop exit
PB: predicated region body
PF: predicated region fallthrough
CT: control target
= control target key end

     0   :  { %vm314_vm0 = vcmask 261120   ;;  %vm691_vm2 = vcmask 519168   ;;  %s1248_s1 = inlined_call_operand.vmem [shape: bf16[288,64], index: 1, kind: input, shape index: {}]   ;;  %s1249_s0 = inlined_call_operand.vmem [shape: bf16[128,288], index: 0, kind: input, shape index: {}]   ;;  %s1250_s2 = inlined_call_operand.vmem [shape: f32[1,64], index: 2, kind: input, shape index: {}]   ;;  %s1251_s3 = inlined_call_operand.vmem [shape: f32[1,64], index: 3, kind: input, shape index: {}]   ;;  %s1252_s4 = inlined_call_operand.vmem [shape: bf16[128,64], index: 4, kind: output, shape index: {}]  }
   0x1   :  { %v906_v0 = vld [vmem:[%s1248_s1 + $0x78] sm:$0xff]   ;;  %v908_v2 = vld [vmem:[%s1248_s1 + $0x70] sm:$0xff]   ;;  %v910_v4 = vld [vmem:[%s1248_s1 + $0x68] sm:$0xff]  }
   0x2   :  { %v907_v1 = vld [vmem:[%s1248_s1 + $0x38] sm:$0xff]   ;;  %796 = vmatprep.subr.bf16.mxu0 %v906_v0  ;;  %890 = vmatprep.subr.bf16.mxu1 %v906_v0  ;;  %v909_v3 = vld [vmem:[%s1248_s1 + $0x30] sm:$0xff]   ;;  %v911_v5 = vld [vmem:[%s1248_s1 + $0x28] sm:$0xff]  }
   0x3   :  { %797 = vmatpush3.bf16.msra.mxu0 %v907_v1  ;;  %898 = vmatpush3.bf16.msra.mxu1 %v907_v1  ;;  %v912_v6 = vld [vmem:[%s1248_s1 + $0x60] sm:$0xff]   ;;  %v914_v8 = vld [vmem:[%s1248_s1 + $0x58] sm:$0xff]   ;;  %v916_v10 = vld [vmem:[%s1248_s1 + $0x50] sm:$0xff]  }
   0x4   :  { %798 = vmatprep.subr.bf16.mxu0 %v908_v2  ;;  %891 = vmatprep.subr.bf16.mxu1 %v908_v2  ;;  %v913_v7 = vld [vmem:[%s1248_s1 + $0x20] sm:$0xff]   ;;  %v915_v9 = vld [vmem:[%s1248_s1 + $0x18] sm:$0xff]   ;;  %v917_v13 = vld [vmem:[%s1248_s1 + $0x10] sm:$0xff]  }
   0x5   :  { %v924_v11 = vld [vmem:[%s1249_s0 + $0x4] ss:$12 sps:$4 sm:$0xff]   ;;  %v927_v12 = vld [vmem:[%s1249_s0 + $0x94] ss:$12 sps:$4 sm:$0xff]   ;;  %v918_v14 = vld [vmem:[%s1248_s1 + $0x48] sm:$0xff]  }
   0x6   :  { %371 = vmatprep.mubr.bf16.mxu0 %v924_v11  ;;  %419 = vmatprep.mubr.bf16.mxu1 %v927_v12  ;;  %v919_v15 = vld [vmem:[%s1248_s1 + $0x8] sm:$0xff]   ;;  %v920_v16 = vld [vmem:[%s1248_s1 + $0x40] sm:$0xff]   ;;  %v925_v20 = vld [vmem:[%s1249_s0 + $0x90] ss:$12 sps:$4 sm:$0xff]  }
   0x7   :  { %799 = vmatpush3.bf16.msra.mxu0 %v909_v3  ;;  %899 = vmatpush3.bf16.msra.mxu1 %v909_v3  ;;  %v921_v17 = vld [vmem:[%s1248_s1] sm:$0xff]   ;;  %v928_v19 = vld [vmem:[%s1248_s1 + $0x88] sm:$0xff]   ;;  %v939_v28 = vld [vmem:[%s1249_s0 + $0x30] ss:$12 sps:$4 sm:$0xff]  }
   0x8   :  { %800 = vmatprep.subr.bf16.mxu0 %v910_v4  ;;  %892 = vmatprep.subr.bf16.mxu1 %v910_v4  ;;  %v922_v18 = vld [vmem:[%s1249_s0] ss:$12 sps:$4 sm:$0xff]   ;;  %v929_v21 = vld [vmem:[%s1249_s0 + $0x1c] ss:$12 sps:$4 sm:$0xff]   ;;  %v933_v24 = vld [vmem:[%s1249_s0 + $0x18] ss:$12 sps:$4 sm:$0xff]  }
   0x9   :  { %v931_v22 = vld [vmem:[%s1249_s0 + $0xac] ss:$12 sps:$4 sm:$0xff]   ;;  %v935_v23 = vld [vmem:[%s1248_s1 + $0x80] sm:$0xff]   ;;  %v934_v25 = vld [vmem:[%s1249_s0 + $0xa8] ss:$12 sps:$4 sm:$0xff]  }
   0xa   :  { %v936_v26 = vld [vmem:[%s1249_s0 + $0x34] ss:$12 sps:$4 sm:$0xff]   ;;  %v941_v30 = vld [vmem:[%s1249_s0 + $0x4c] ss:$12 sps:$4 sm:$0xff]   ;;  %v945_v33 = vld [vmem:[%s1249_s0 + $0x50] ss:$12 sps:$4 sm:$0xff]  }
   0xb   :  { %801 = vmatpush3.bf16.msra.mxu0 %v911_v5  ;;  %900 = vmatpush3.bf16.msra.mxu1 %v911_v5  ;;  %v938_v27 = vld [vmem:[%s1249_s0 + $0x8] ss:$12 sps:$4 sm:$0xff]   ;;  %v940_v29 = vld [vmem:[%s1249_s0 + $0x20] ss:$12 sps:$4 sm:$0xff]   ;;  %v943_v31 = vld [vmem:[%s1249_s0 + $0x38] ss:$12 sps:$4 sm:$0xff]  }
   0xc   :  { %802 = vmatprep.subr.bf16.mxu0 %v912_v6  ;;  %893 = vmatprep.subr.bf16.mxu1 %v912_v6  ;;  %v944_v32 = vld [vmem:[%s1249_s0 + $0x48] ss:$12 sps:$4 sm:$0xff]   ;;  %v946_v34 = vld [vmem:[%s1249_s0 + $0x64] ss:$12 sps:$4 sm:$0xff]   ;;  %v949_v36 = vld [vmem:[%s1249_s0 + $0x60] ss:$12 sps:$4 sm:$0xff]  }
   0xd   :  { %v948_v35 = vld [vmem:[%s1249_s0 + $0x68] ss:$12 sps:$4 sm:$0xff]   ;;  %v950_v37 = vld [vmem:[%s1249_s0 + $0x80] ss:$12 sps:$4 sm:$0xff]   ;;  %v953_v39 = vld [vmem:[%s1249_s0 + $0x98] ss:$12 sps:$4 sm:$0xff]  }
   0xe   :  { %v951_v38 = vld [vmem:[%s1249_s0 + $0x7c] ss:$12 sps:$4 sm:$0xff]   ;;  %v954_v40 = vld [vmem:[%s1249_s0 + $0x78] ss:$12 sps:$4 sm:$0xff]   ;;  %v1134_v61 = vld [vmem:[%s1250_s2] ss:$0 sm:$0xff] }
   0xf   :  { %803 = vmatpush3.bf16.msra.mxu0 %v913_v7  ;;  %901 = vmatpush3.bf16.msra.mxu1 %v913_v7  ;;  %v955_v41 = vld [vmem:[%s1249_s0 + $0xb0] ss:$12 sps:$4 sm:$0xff]   ;;  %v1139_v0 = vld [vmem:[%s1251_s3] ss:$0 sm:$0xff] }
  0x10   :  { %804 = vmatprep.subr.bf16.mxu0 %v914_v8  ;;  %894 = vmatprep.subr.bf16.mxu1 %v914_v8 }
  0x13   :  { %805 = vmatpush3.bf16.msra.mxu0 %v915_v9  ;;  %902 = vmatpush3.bf16.msra.mxu1 %v915_v9 }
  0x14   :  { %806 = vmatprep.subr.bf16.mxu0 %v916_v10  ;;  %895 = vmatprep.subr.bf16.mxu1 %v916_v10 }
  0x17   :  { %807 = vmatpush3.bf16.msra.mxu0 %v917_v13  ;;  %903 = vmatpush3.bf16.msra.mxu1 %v917_v13 }
  0x18   :  { %808 = vmatprep.subr.bf16.mxu0 %v918_v14  ;;  %896 = vmatprep.subr.bf16.mxu1 %v918_v14 }
  0x1b   :  { %809 = vmatpush3.bf16.msra.mxu0 %v919_v15  ;;  %904 = vmatpush3.bf16.msra.mxu1 %v919_v15 }
  0x1c   :  { %810 = vmatprep.subr.bf16.mxu0 %v920_v16  ;;  %897 = vmatprep.subr.bf16.mxu1 %v920_v16 }
  0x1f   :  { %811 = vmatpush3.bf16.msra.mxu0 %v921_v17  ;;  %905 = vmatpush3.bf16.msra.mxu1 %v921_v17 }
  0x20   :  { %870 = vmatprep.subr.bf16.mxu1 %v928_v19 }
  0x22   :  { %372 = vmatmul.mubr.bf16.vlgmr.msra.gmra.mxu0 %v922_v18  ;;  %420 = vmatmul.mubr.bf16.vlgmr.msra.gmra.mxu1 %v925_v20 }
  0x23   :  { %871 = vmatpush3.bf16.msra.mxu1 %v928_v19  ;;  %379 = vmatprep.mubr.bf16.mxu0 %v929_v21 }
  0x24   :  { %427 = vmatprep.mubr.bf16.mxu1 %v931_v22  ;;  %872 = vmatprep.subr.bf16.mxu1 %v935_v23 }
  0x27   :  { %873 = vmatpush3.bf16.msra.mxu1 %v935_v23 }
  0x2a   :  { %380 = vmatmul.mubr.bf16.gmra.mxu0 %v933_v24  ;;  %428 = vmatmul.mubr.bf16.gmra.mxu1 %v934_v25 }
  0x2b   :  { %387 = vmatprep.mubr.bf16.mxu0 %v936_v26  ;;  %874 = vmatprep.mubr.msk.bf16.mxu1 %vm314_vm0, %v938_v27 }
  0x32   :  { %388 = vmatmul.mubr.bf16.gmra.mxu0 %v939_v28  ;;  %875 = vmatmul.mubr.msk.bf16.vlgmr.msra.gmra.mxu1 %vm314_vm0, %v940_v29 }
  0x33   :  { %395 = vmatprep.mubr.bf16.mxu0 %v941_v30  ;;  %878 = vmatprep.mubr.msk.bf16.mxu1 %vm314_vm0, %v943_v31 }
  0x3a   :  { %396 = vmatmul.mubr.bf16.gmra.mxu0 %v944_v32  ;;  %879 = vmatmul.mubr.msk.bf16.gmra.mxu1 %vm314_vm0, %v945_v33 }
  0x3b   :  { %403 = vmatprep.mubr.bf16.mxu0 %v946_v34  ;;  %882 = vmatprep.mubr.msk.bf16.mxu1 %vm314_vm0, %v948_v35 }
  0x42   :  { %404 = vmatmul.mubr.bf16.gmra.mxu0 %v949_v36  ;;  %883 = vmatmul.mubr.msk.bf16.gmra.mxu1 %vm314_vm0, %v950_v37 }
  0x43   :  { %411 = vmatprep.mubr.bf16.mxu0 %v951_v38  ;;  %886 = vmatprep.mubr.msk.bf16.mxu1 %vm314_vm0, %v953_v39 }
  0x4a   :  { %412 = vmatmul.mubr.bf16.gmra.mxu0 %v954_v40  ;;  %887 = vmatmul.mubr.msk.bf16.gmra.mxu1 %vm314_vm0, %v955_v41 }
  0xe2   :  { %v812_v42 = vpop.f32.mrf.mxu0  ;;  %v1115_v43 = vpop.f32.mrf.mxu1 }
  0xe4   :  { %v813_v44 = vpop.f32.mrf.mxu0  ;;  %v1117_v45 = vpop.f32.mrf.mxu1 }
  0xe5   :  { %v814_v62 = vadd.f32 %v813_v44, %v812_v42 }
  0xe6   :  { %v815_v46 = vpop.f32.mrf.mxu0  ;;  %v1119_v47 = vpop.f32.mrf.mxu1 }
  0xe8   :  { %v816_v48 = vpop.f32.mrf.mxu0  ;;  %v1121_v49 = vpop.f32.mrf.mxu1 }
  0xe9   :  { %v817_v11 = vadd.f32 %v816_v48, %v815_v46 }
  0xea   :  { %v818_v50 = vpop.f32.mrf.mxu0  ;;  %v1123_v51 = vpop.f32.mrf.mxu1 }
  0xec   :  { %v819_v52 = vpop.f32.mrf.mxu0  ;;  %v1125_v53 = vpop.f32.mrf.mxu1 }
  0xed   :  { %v820_v58 = vadd.f32 %v819_v52, %v818_v50 }
  0xee   :  { %v821_v54 = vpop.f32.mrf.mxu0  ;;  %v1127_v55 = vpop.f32.mrf.mxu1 }
  0xf0   :  { %v822_v56 = vpop.f32.mrf.mxu0  ;;  %v1129_v57 = vpop.f32.mrf.mxu1 }
  0xf1   :  { %v823_v3 = vadd.f32 %v822_v56, %v821_v54 }
  0xf2   :  { %v824_v59 = vpop.f32.mrf.mxu0  ;;  %v876_v60 = vpop.f32.mrf.mxu1 }
  0xf3   :  { %v479_v63 = vadd.f32 %v876_v60, %v820_v58 }
  0xf4   :  { %v825_v1 = vpop.f32.mrf.mxu0  ;;  %v470_v2 = vpop.f32.mrf.mxu1 }
  0xf5   :  { %v542_v4 = vmul.f32 %v1134_v61, %v479_v63  ;;  %v471_v5 = vadd.f32 %v814_v62, %v470_v2  ;;  %v826_v24 = vadd.f32 %v825_v1, %v824_v59 }
  0xf6   :  { %v827_v6 = vpop.f32.mrf.mxu0  ;;  %v877_v7 = vpop.f32.mrf.mxu1 }
  0xf7   :  { %v565_v8 = vadd.f32 %v1139_v0, %v542_v4  ;;  %v540_v9 = vmul.f32 %v1134_v61, %v471_v5  ;;  %v482_v10 = vadd.f32 %v877_v7, %v823_v3 }
  0xf8   :  { %v828_v12 = vpop.f32.mrf.mxu0  ;;  %v473_v13 = vpop.f32.mrf.mxu1 }
  0xf9   :  { %vm581_vm1 = vcmp.ge.f32.partialorder %v565_v8, 0.0  ;;  %v597_v14 = vmul.f32 0.2, %v565_v8  ;;  %v563_v15 = vadd.f32 %v1139_v0, %v540_v9  ;;  %v543_v16 = vmul.f32 %v1134_v61, %v482_v10 }
  0xfa   :  { %v474_v17 = vadd.f32 %v817_v11, %v473_v13  ;;  %v830_v18 = vpop.f32.mrf.mxu0  ;;  %v880_v19 = vpop.f32.mrf.mxu1  ;;  %v829_v37 = vadd.f32 %v828_v12, %v827_v6 }
  0xfb   :  { %v613_v20 = vsel %vm581_vm1, %v565_v8, %v597_v14  ;;  %vm579_vm3 = vcmp.ge.f32.partialorder %v563_v15, 0.0  ;;  %v595_v21 = vmul.f32 0.2, %v563_v15  ;;  %v566_v22 = vadd.f32 %v1139_v0, %v543_v16 }
  0xfc   :  { %v782_v23 = vpack.c.bf16 %v613_v20, %v613_v20  ;;  %v541_v25 = vmul.f32 %v1134_v61, %v474_v17  ;;  %v831_v26 = vpop.f32.mrf.mxu0  ;;  %v486_v27 = vpop.f32.mrf.mxu1 }
  0xfd   :  { %v611_v28 = vsel %vm579_vm3, %v563_v15, %v595_v21  ;;  %vm582_vm4 = vcmp.ge.f32.partialorder %v566_v22, 0.0  ;;  %v598_v29 = vmul.f32 0.2, %v566_v22  ;;  %v832_v30 = vadd.f32 %v831_v26, %v830_v18 }
  0xfe   :  { %694 = vst.msk [vmem:[%s1252_s4 + $0x8] sm:$0xf] %vm691_vm2, %v782_v23  ;;  %v780_v31 = vpack.c.bf16 %v611_v28, %v611_v28  ;;  %v564_v32 = vadd.f32 %v1139_v0, %v541_v25  ;;  %v487_v33 = vadd.f32 %v826_v24, %v486_v27  ;;  %v833_v34 = vpop.f32.mrf.mxu0  ;;  %v881_v35 = vpop.f32.mrf.mxu1 }
  0xff   :  { %v614_v36 = vsel %vm582_vm4, %v566_v22, %v598_v29  ;;  %v495_v38 = vadd.f32 %v880_v19, %v832_v30  ;;  %v856_v19 = vadd.f32 %v1125_v53, %v1123_v51  ;;  %v850_v22 = vadd.f32 %v1117_v45, %v1115_v43 }
 0x100   :  { %692 = vst.msk [vmem:[%s1252_s4] sm:$0xf] %vm691_vm2, %v780_v31  ;;  %v783_v39 = vpack.c.bf16 %v614_v36, %v614_v36  ;;  %vm580_vm5 = vcmp.ge.f32.partialorder %v564_v32, 0.0  ;;  %v596_v40 = vmul.f32 0.2, %v564_v32  ;;  %v544_v41 = vmul.f32 %v1134_v61, %v487_v33  ;;  %v834_v42 = vpop.f32.mrf.mxu0  ;;  %v489_v44 = vpop.f32.mrf.mxu1 }
 0x101   :  { %v546_v46 = vmul.f32 %v1134_v61, %v495_v38  ;;  %v835_v48 = vadd.f32 %v834_v42, %v833_v34  ;;  %v490_v50 = vadd.f32 %v829_v37, %v489_v44  ;;  %v853_v44 = vadd.f32 %v1121_v49, %v1119_v47 }
 0x102   :  { %695 = vst.msk [vmem:[%s1252_s4 + $0xc] sm:$0xf] %vm691_vm2, %v783_v39  ;;  %v612_v52 = vsel %vm580_vm5, %v564_v32, %v596_v40  ;;  %v567_v54 = vadd.f32 %v1139_v0, %v544_v41  ;;  %v836_v56 = vpop.f32.mrf.mxu0  ;;  %v884_v58 = vpop.f32.mrf.mxu1 }
 0x103   :  { %v781_v59 = vpack.c.bf16 %v612_v52, %v612_v52  ;;  %v569_v60 = vadd.f32 %v1139_v0, %v546_v46  ;;  %v498_v62 = vadd.f32 %v881_v35, %v835_v48  ;;  %v545_v63 = vmul.f32 %v1134_v61, %v490_v50 }
 0x104   :  { %vm583_vm6 = vcmp.ge.f32.partialorder %v567_v54, 0.0  ;;  %v599_v1 = vmul.f32 0.2, %v567_v54  ;;  %v837_v2 = vpop.f32.mrf.mxu0  ;;  %v502_v3 = vpop.f32.mrf.mxu1  ;;  %v859_v35 = vadd.f32 %v1129_v57, %v1127_v55 }
 0x105   :  { %693 = vst.msk [vmem:[%s1252_s4 + $0x4] sm:$0xf] %vm691_vm2, %v781_v59  ;;  %vm585_vm7 = vcmp.ge.f32.partialorder %v569_v60, 0.0  ;;  %v601_v4 = vmul.f32 0.2, %v569_v60  ;;  %v547_v5 = vmul.f32 %v1134_v61, %v498_v62  ;;  %v568_v6 = vadd.f32 %v1139_v0, %v545_v63 }
 0x106   :  { %v615_v7 = vsel %vm583_vm6, %v567_v54, %v599_v1  ;;  %v838_v8 = vadd.f32 %v837_v2, %v836_v56  ;;  %v839_v9 = vpop.f32.mrf.mxu0  ;;  %v1172_v10 = vpop.f32.mrf.mxu1 }
 0x107   :  { %v617_v11 = vsel %vm585_vm7, %v569_v60, %v601_v4  ;;  %v784_v12 = vpack.c.bf16 %v615_v7, %v615_v7  ;;  %v570_v13 = vadd.f32 %v1139_v0, %v547_v5  ;;  %vm584_vm8 = vcmp.ge.f32.partialorder %v568_v6, 0.0 }
 0x108   :  { %v786_v14 = vpack.c.bf16 %v617_v11, %v617_v11  ;;  %v600_v15 = vmul.f32 0.2, %v568_v6  ;;  %v503_v16 = vadd.f32 %v838_v8, %v502_v3  ;;  %v840_v17 = vpop.f32.mrf.mxu0  ;;  %v505_v18 = vpop.f32.mrf.mxu1 }
 0x109   :  { %696 = vst.msk [vmem:[%s1252_s4 + $0x10] sm:$0xf] %vm691_vm2, %v784_v12  ;;  %vm586_vm9 = vcmp.ge.f32.partialorder %v570_v13, 0.0  ;;  %v602_v20 = vmul.f32 0.2, %v570_v13  ;;  %v841_v21 = vadd.f32 %v840_v17, %v839_v9 }
 0x10a   :  { %698 = vst.msk [vmem:[%s1252_s4 + $0x18] sm:$0xf] %vm691_vm2, %v786_v14  ;;  %v616_v23 = vsel %vm584_vm8, %v568_v6, %v600_v15  ;;  %v548_v24 = vmul.f32 %v1134_v61, %v503_v16  ;;  %v842_v51 = vpop.f32.mrf.mxu0  ;;  %v888_v53 = vpop.f32.mrf.mxu1 }
 0x10b   :  { %v618_v25 = vsel %vm586_vm9, %v570_v13, %v602_v20  ;;  %v785_v26 = vpack.c.bf16 %v616_v23, %v616_v23  ;;  %v506_v27 = vadd.f32 %v841_v21, %v505_v18  ;;  %v527_v28 = vadd.f32 %v888_v53, %v856_v19 }
 0x10c   :  { %v787_v29 = vpack.c.bf16 %v618_v25, %v618_v25  ;;  %v571_v30 = vadd.f32 %v1139_v0, %v548_v24  ;;  %v843_v31 = vpop.f32.mrf.mxu0  ;;  %v518_v32 = vpop.f32.mrf.mxu1 }
 0x10d   :  { %697 = vst.msk [vmem:[%s1252_s4 + $0x14] sm:$0xf] %vm691_vm2, %v785_v26  ;;  %v549_v43 = vmul.f32 %v1134_v61, %v506_v27  ;;  %v554_v45 = vmul.f32 %v1134_v61, %v527_v28  ;;  %v844_v33 = vadd.f32 %v843_v31, %v842_v51  ;;  %v519_v34 = vadd.f32 %v850_v22, %v518_v32 }
 0x10e   :  { %699 = vst.msk [vmem:[%s1252_s4 + $0x1c] sm:$0xf] %vm691_vm2, %v787_v29  ;;  %vm587_vm10 = vcmp.ge.f32.partialorder %v571_v30, 0.0  ;;  %v603_v36 = vmul.f32 0.2, %v571_v30  ;;  %v845_v37 = vpop.f32.mrf.mxu0  ;;  %v889_v38 = vpop.f32.mrf.mxu1 }
 0x10f   :  { %v572_v39 = vadd.f32 %v1139_v0, %v549_v43  ;;  %v577_v40 = vadd.f32 %v1139_v0, %v554_v45  ;;  %v511_v41 = vadd.f32 %v884_v58, %v844_v33  ;;  %v552_v42 = vmul.f32 %v1134_v61, %v519_v34 }
 0x110   :  { %v619_v55 = vsel %vm587_vm10, %v571_v30, %v603_v36  ;;  %v530_v57 = vadd.f32 %v889_v38, %v859_v35  ;;  %v846_v46 = vpop.f32.mrf.mxu0  ;;  %v521_v48 = vpop.f32.mrf.mxu1 }
 0x111   :  { %v788_v50 = vpack.c.bf16 %v619_v55, %v619_v55  ;;  %vm588_vm11 = vcmp.ge.f32.partialorder %v572_v39, 0.0  ;;  %v604_v52 = vmul.f32 0.2, %v572_v39  ;;  %vm593_vm12 = vcmp.ge.f32.partialorder %v577_v40, 0.0 }
 0x112   :  { %v609_v54 = vmul.f32 0.2, %v577_v40  ;;  %v550_v56 = vmul.f32 %v1134_v61, %v511_v41  ;;  %v575_v59 = vadd.f32 %v1139_v0, %v552_v42  ;;  %v555_v58 = vmul.f32 %v1134_v61, %v530_v57 }
 0x113   :  { %700 = vst.msk [vmem:[%s1252_s4 + $0x20] sm:$0xf] %vm691_vm2, %v788_v50  ;;  %v620_v47 = vsel %vm588_vm11, %v572_v39, %v604_v52  ;;  %v847_v49 = vadd.f32 %v846_v46, %v845_v37  ;;  %v522_v60 = vadd.f32 %v853_v44, %v521_v48 }
 0x114   :  { %v789_v62 = vpack.c.bf16 %v620_v47, %v620_v47  ;;  %v625_v63 = vsel %vm593_vm12, %v577_v40, %v609_v54  ;;  %v573_v1 = vadd.f32 %v1139_v0, %v550_v56  ;;  %vm591_vm13 = vcmp.ge.f32.partialorder %v575_v59, 0.0 }
 0x115   :  { %v794_v2 = vpack.c.bf16 %v625_v63, %v625_v63  ;;  %v607_v3 = vmul.f32 0.2, %v575_v59  ;;  %v578_v4 = vadd.f32 %v1139_v0, %v555_v58  ;;  %v514_v5 = vadd.f32 %v1172_v10, %v847_v49 }
 0x116   :  { %701 = vst.msk [vmem:[%s1252_s4 + $0x24] sm:$0xf] %vm691_vm2, %v789_v62  ;;  %vm589_vm14 = vcmp.ge.f32.partialorder %v573_v1, 0.0  ;;  %v605_v6 = vmul.f32 0.2, %v573_v1  ;;  %v553_v7 = vmul.f32 %v1134_v61, %v522_v60 }
 0x117   :  { %706 = vst.msk [vmem:[%s1252_s4 + $0x38] sm:$0xf] %vm691_vm2, %v794_v2  ;;  %v623_v8 = vsel %vm591_vm13, %v575_v59, %v607_v3  ;;  %vm594_vm15 = vcmp.ge.f32.partialorder %v578_v4, 0.0  ;;  %v610_v9 = vmul.f32 0.2, %v578_v4  ;;  %v551_v11 = vmul.f32 %v1134_v61, %v514_v5 }
 0x118   :  { %v621_v10 = vsel %vm589_vm14, %v573_v1, %v605_v6  ;;  %v792_v12 = vpack.c.bf16 %v623_v8, %v623_v8  ;;  %v576_v13 = vadd.f32 %v1139_v0, %v553_v7 }
 0x119   :  { %v790_v14 = vpack.c.bf16 %v621_v10, %v621_v10  ;;  %v626_v15 = vsel %vm594_vm15, %v578_v4, %v610_v9  ;;  %v574_v16 = vadd.f32 %v1139_v0, %v551_v11 }
 0x11a   :  { %704 = vst.msk [vmem:[%s1252_s4 + $0x30] sm:$0xf] %vm691_vm2, %v792_v12  ;;  %v795_v17 = vpack.c.bf16 %v626_v15, %v626_v15  ;;  %vm592_vm0 = vcmp.ge.f32.partialorder %v576_v13, 0.0  ;;  %v608_v18 = vmul.f32 0.2, %v576_v13 }
 0x11b   :  { %702 = vst.msk [vmem:[%s1252_s4 + $0x28] sm:$0xf] %vm691_vm2, %v790_v14  ;;  %vm590_vm1 = vcmp.ge.f32.partialorder %v574_v16, 0.0  ;;  %v606_v61 = vmul.f32 0.2, %v574_v16 }
 0x11c   :  { %707 = vst.msk [vmem:[%s1252_s4 + $0x3c] sm:$0xf] %vm691_vm2, %v795_v17  ;;  %v624_v0 = vsel %vm592_vm0, %v576_v13, %v608_v18 }
 0x11d   :  { %v622_v19 = vsel %vm590_vm1, %v574_v16, %v606_v61  ;;  %v793_v20 = vpack.c.bf16 %v624_v0, %v624_v0 }
 0x11e   :  { %v791_v21 = vpack.c.bf16 %v622_v19, %v622_v19 }
 0x11f   :  { %705 = vst.msk [vmem:[%s1252_s4 + $0x34] sm:$0xf] %vm691_vm2, %v793_v20 }
 0x120   :  { %703 = vst.msk [vmem:[%s1252_s4 + $0x2c] sm:$0xf] %vm691_vm2, %v791_v21 }

// kernel: discriminator_forward.10
= control target key start
LH: loop header
LB: loop body
LE: loop exit
PB: predicated region body
PF: predicated region fallthrough
CT: control target
= control target key end

     0   :  { %vm554_vm0 = vcmask 523264   ;;  %s1848_s1 = inlined_call_operand.vmem [shape: bf16[576,128], index: 1, kind: input, shape index: {}]   ;;  %s1849_s0 = inlined_call_operand.vmem [shape: bf16[128,576], index: 0, kind: input, shape index: {}]   ;;  %s1850_s2 = inlined_call_operand.vmem [shape: f32[1,128], index: 2, kind: input, shape index: {}]   ;;  %s1851_s3 = inlined_call_operand.vmem [shape: f32[1,128], index: 3, kind: input, shape index: {}]   ;;  %s1852_s4 = inlined_call_operand.vmem [shape: bf16[128,128], index: 4, kind: output, shape index: {}]  }
   0x1   :  { %v1385_v0 = vld [vmem:[%s1848_s1 + $0x78] sm:$0xff]   ;;  %v1389_v4 = vld [vmem:[%s1848_s1 + $0x70] sm:$0xff]   ;;  %v1393_v8 = vld [vmem:[%s1848_s1 + $0x68] sm:$0xff]  }
   0x2   :  { %v1386_v1 = vld [vmem:[%s1848_s1 + $0xf8] sm:$0xff]   ;;  %1213 = vmatprep.subr.bf16.mxu0 %v1385_v0  ;;  %v1390_v5 = vld [vmem:[%s1848_s1 + $0xf0] sm:$0xff]   ;;  %v1394_v9 = vld [vmem:[%s1848_s1 + $0xe8] sm:$0xff]  }
   0x3   :  { %v1387_v2 = vld [vmem:[%s1848_s1 + $0x38] sm:$0xff]   ;;  %1277 = vmatprep.subr.bf16.mxu1 %v1386_v1  ;;  %v1391_v6 = vld [vmem:[%s1848_s1 + $0x30] sm:$0xff]   ;;  %v1395_v10 = vld [vmem:[%s1848_s1 + $0x28] sm:$0xff]  }
   0x4   :  { %v1388_v3 = vld [vmem:[%s1848_s1 + $0xb8] sm:$0xff]   ;;  %1214 = vmatpush3.bf16.msra.mxu0 %v1387_v2  ;;  %v1392_v7 = vld [vmem:[%s1848_s1 + $0xb0] sm:$0xff]   ;;  %v1396_v11 = vld [vmem:[%s1848_s1 + $0xa8] sm:$0xff]  }
   0x5   :  { %1278 = vmatpush3.bf16.msra.mxu1 %v1388_v3  ;;  %1215 = vmatprep.subr.bf16.mxu0 %v1389_v4  ;;  %v1397_v12 = vld [vmem:[%s1848_s1 + $0x60] sm:$0xff]   ;;  %v1401_v16 = vld [vmem:[%s1848_s1 + $0x58] sm:$0xff]   ;;  %v1405_v20 = vld [vmem:[%s1848_s1 + $0x50] sm:$0xff]  }
   0x6   :  { %1279 = vmatprep.subr.bf16.mxu1 %v1390_v5  ;;  %v1398_v13 = vld [vmem:[%s1848_s1 + $0xe0] sm:$0xff]   ;;  %v1402_v17 = vld [vmem:[%s1848_s1 + $0xd8] sm:$0xff]   ;;  %v1406_v21 = vld [vmem:[%s1848_s1 + $0xd0] sm:$0xff]  }
   0x7   :  { %v1399_v14 = vld [vmem:[%s1848_s1 + $0x20] sm:$0xff]   ;;  %v1403_v18 = vld [vmem:[%s1848_s1 + $0x18] sm:$0xff]   ;;  %v1407_v22 = vld [vmem:[%s1848_s1 + $0x10] sm:$0xff]  }
   0x8   :  { %1216 = vmatpush3.bf16.msra.mxu0 %v1391_v6  ;;  %v1400_v15 = vld [vmem:[%s1848_s1 + $0xa0] sm:$0xff]   ;;  %v1404_v19 = vld [vmem:[%s1848_s1 + $0x98] sm:$0xff]   ;;  %v1408_v23 = vld [vmem:[%s1848_s1 + $0x90] sm:$0xff]  }
   0x9   :  { %1280 = vmatpush3.bf16.msra.mxu1 %v1392_v7  ;;  %1217 = vmatprep.subr.bf16.mxu0 %v1393_v8  ;;  %v1409_v24 = vld [vmem:[%s1848_s1 + $0x48] sm:$0xff]   ;;  %v1413_v28 = vld [vmem:[%s1848_s1 + $0x40] sm:$0xff]   ;;  %v1423_v36 = vld [vmem:[%s1848_s1 + $0x118] sm:$0xff]  }
   0xa   :  { %1281 = vmatprep.subr.bf16.mxu1 %v1394_v9  ;;  %v1410_v25 = vld [vmem:[%s1848_s1 + $0xc8] sm:$0xff]   ;;  %v1414_v29 = vld [vmem:[%s1848_s1 + $0xc0] sm:$0xff]   ;;  %v1436_v42 = vld [vmem:[%s1848_s1 + $0x110] sm:$0xff]  }
   0xb   :  { %v1411_v26 = vld [vmem:[%s1848_s1 + $0x8] sm:$0xff]   ;;  %v1415_v30 = vld [vmem:[%s1848_s1] sm:$0xff]   ;;  %v1432_v43 = vld [vmem:[%s1849_s0 + $0x5c] ss:$20 sps:$4 sm:$0xff]  }
   0xc   :  { %1218 = vmatpush3.bf16.msra.mxu0 %v1395_v10  ;;  %v1412_v27 = vld [vmem:[%s1848_s1 + $0x88] sm:$0xff]   ;;  %v1416_v31 = vld [vmem:[%s1848_s1 + $0x80] sm:$0xff]   ;;  %v1437_v47 = vld [vmem:[%s1849_s0 + $0x7c] ss:$20 sps:$4 sm:$0xff]  }
   0xd   :  { %1282 = vmatpush3.bf16.msra.mxu1 %v1396_v11  ;;  %1219 = vmatprep.subr.bf16.mxu0 %v1397_v12  ;;  %v1417_v32 = vld [vmem:[%s1849_s0] ss:$20 sps:$4 sm:$0xff]   ;;  %v1419_v33 = vld [vmem:[%s1849_s0 + $0x4] ss:$20 sps:$4 sm:$0xff]   ;;  %v1420_v34 = vld [vmem:[%s1849_s0 + $0x8] ss:$20 sps:$4 sm:$0xff]  }
   0xe   :  { %1283 = vmatprep.subr.bf16.mxu1 %v1398_v13  ;;  %v1422_v35 = vld [vmem:[%s1849_s0 + $0xc] ss:$20 sps:$4 sm:$0xff]   ;;  %611 = vmatprep.mubr.bf16.mxu0 %v1419_v33  ;;  %v1426_v38 = vld [vmem:[%s1849_s0 + $0x34] ss:$20 sps:$4 sm:$0xff]   ;;  %v1429_v40 = vld [vmem:[%s1849_s0 + $0x30] ss:$20 sps:$4 sm:$0xff]  }
   0xf   :  { %708 = vmatprep.mubr.bf16.mxu1 %v1422_v35  ;;  %v1424_v37 = vld [vmem:[%s1849_s0 + $0x2c] ss:$20 sps:$4 sm:$0xff]   ;;  %v1428_v39 = vld [vmem:[%s1849_s0 + $0x28] ss:$20 sps:$4 sm:$0xff]   ;;  %v1434_v44 = vld [vmem:[%s1849_s0 + $0x50] ss:$20 sps:$4 sm:$0xff]  }
  0x10   :  { %1220 = vmatpush3.bf16.msra.mxu0 %v1399_v14  ;;  %v1430_v41 = vld [vmem:[%s1849_s0 + $0x54] ss:$20 sps:$4 sm:$0xff]   ;;  %v1435_v45 = vld [vmem:[%s1849_s0 + $0x58] ss:$20 sps:$4 sm:$0xff]   ;;  %v1462_v49 = vld [vmem:[%s1848_s1 + $0x100] sm:$0xff]  }
  0x11   :  { %1284 = vmatpush3.bf16.msra.mxu1 %v1400_v15  ;;  %1221 = vmatprep.subr.bf16.mxu0 %v1401_v16  ;;  %v1449_v46 = vld [vmem:[%s1848_s1 + $0x108] sm:$0xff]   ;;  %v1439_v48 = vld [vmem:[%s1849_s0 + $0x84] ss:$20 sps:$4 sm:$0xff]   ;;  %v1442_v51 = vld [vmem:[%s1849_s0 + $0x80] ss:$20 sps:$4 sm:$0xff]  }
  0x12   :  { %1285 = vmatprep.subr.bf16.mxu1 %v1402_v17  ;;  %v1441_v50 = vld [vmem:[%s1849_s0 + $0x78] ss:$20 sps:$4 sm:$0xff]   ;;  %v1447_v54 = vld [vmem:[%s1849_s0 + $0xa0] ss:$20 sps:$4 sm:$0xff]   ;;  %v1448_v55 = vld [vmem:[%s1849_s0 + $0xa8] ss:$20 sps:$4 sm:$0xff]  }
  0x13   :  { %v1443_v52 = vld [vmem:[%s1849_s0 + $0xa4] ss:$20 sps:$4 sm:$0xff]   ;;  %v1445_v53 = vld [vmem:[%s1849_s0 + $0xac] ss:$20 sps:$4 sm:$0xff]   ;;  %v1452_v57 = vld [vmem:[%s1849_s0 + $0xd4] ss:$20 sps:$4 sm:$0xff]  }
  0x14   :  { %1222 = vmatpush3.bf16.msra.mxu0 %v1403_v18  ;;  %v1450_v56 = vld [vmem:[%s1849_s0 + $0xcc] ss:$20 sps:$4 sm:$0xff]   ;;  %v1454_v58 = vld [vmem:[%s1849_s0 + $0xc8] ss:$20 sps:$4 sm:$0xff]   ;;  %v1455_v59 = vld [vmem:[%s1849_s0 + $0xd0] ss:$20 sps:$4 sm:$0xff]  }
  0x15   :  { %1286 = vmatpush3.bf16.msra.mxu1 %v1404_v19  ;;  %1223 = vmatprep.subr.bf16.mxu0 %v1405_v20  ;;  %v1456_v60 = vld [vmem:[%s1849_s0 + $0xf4] ss:$20 sps:$4 sm:$0xff]   ;;  %v1458_v61 = vld [vmem:[%s1849_s0 + $0xfc] ss:$20 sps:$4 sm:$0xff]   ;;  %v1461_v63 = vld [vmem:[%s1849_s0 + $0xf8] ss:$20 sps:$4 sm:$0xff]  }
  0x16   :  { %1287 = vmatprep.subr.bf16.mxu1 %v1406_v21  ;;  %v1460_v62 = vld [vmem:[%s1849_s0 + $0xf0] ss:$20 sps:$4 sm:$0xff]   ;;  %v1467_v2 = vld [vmem:[%s1849_s0 + $0x118] ss:$20 sps:$4 sm:$0xff]   ;;  %v1468_v3 = vld [vmem:[%s1849_s0 + $0x120] ss:$20 sps:$4 sm:$0xff]  }
  0x17   :  { %v1463_v0 = vld [vmem:[%s1849_s0 + $0x11c] ss:$20 sps:$4 sm:$0xff]   ;;  %v1465_v1 = vld [vmem:[%s1849_s0 + $0x124] ss:$20 sps:$4 sm:$0xff]   ;;  %v1473_v8 = vld [vmem:[%s1849_s0 + $0x60] ss:$20 sps:$4 sm:$0xff]  }
  0x18   :  { %1224 = vmatpush3.bf16.msra.mxu0 %v1407_v22  ;;  %v1469_v4 = vld [vmem:[%s1849_s0 + $0x10] ss:$20 sps:$4 sm:$0xff]   ;;  %v1471_v6 = vld [vmem:[%s1849_s0 + $0x38] ss:$20 sps:$4 sm:$0xff]   ;;  %v1474_v9 = vld [vmem:[%s1849_s0 + $0x100] ss:$20 sps:$4 sm:$0xff]  }
  0x19   :  { %1288 = vmatpush3.bf16.msra.mxu1 %v1408_v23  ;;  %1225 = vmatprep.subr.bf16.mxu0 %v1409_v24  ;;  %v1470_v5 = vld [vmem:[%s1849_s0 + $0xb0] ss:$20 sps:$4 sm:$0xff]   ;;  %v1472_v7 = vld [vmem:[%s1849_s0 + $0xd8] ss:$20 sps:$4 sm:$0xff]   ;;  %v1475_v10 = vld [vmem:[%s1849_s0 + $0x88] ss:$20 sps:$4 sm:$0xff]  }
  0x1a   :  { %1289 = vmatprep.subr.bf16.mxu1 %v1410_v25  ;;  %v1476_v11 = vld [vmem:[%s1849_s0 + $0x128] ss:$20 sps:$4 sm:$0xff]  }
  0x1c   :  { %1226 = vmatpush3.bf16.msra.mxu0 %v1411_v26 }
  0x1d   :  { %1290 = vmatpush3.bf16.msra.mxu1 %v1412_v27  ;;  %1227 = vmatprep.subr.bf16.mxu0 %v1413_v28 }
  0x1e   :  { %1291 = vmatprep.subr.bf16.mxu1 %v1414_v29 }
  0x20   :  { %1228 = vmatpush3.bf16.msra.mxu0 %v1415_v30 }
  0x21   :  { %1292 = vmatpush3.bf16.msra.mxu1 %v1416_v31  ;;  %1353 = vmatprep.subr.bf16.mxu0 %v1423_v36 }
  0x22   :  { %1377 = vmatprep.subr.bf16.mxu1 %v1423_v36 }
  0x23   :  { %612 = vmatmul.mubr.bf16.vlgmr.msra.gmra.mxu0 %v1417_v32 }
  0x24   :  { %709 = vmatmul.mubr.bf16.vlgmr.msra.gmra.mxu1 %v1420_v34  ;;  %1354 = vmatpush3.bf16.msra.mxu0 %v1423_v36 }
  0x25   :  { %1381 = vmatpush3.bf16.msra.mxu1 %v1423_v36  ;;  %619 = vmatprep.mubr.bf16.mxu0 %v1424_v37 }
  0x26   :  { %716 = vmatprep.mubr.bf16.mxu1 %v1426_v38  ;;  %1355 = vmatprep.subr.bf16.mxu0 %v1436_v42 }
  0x27   :  { %1378 = vmatprep.subr.bf16.mxu1 %v1436_v42 }
  0x28   :  { %1356 = vmatpush3.bf16.msra.mxu0 %v1436_v42 }
  0x29   :  { %1382 = vmatpush3.bf16.msra.mxu1 %v1436_v42  ;;  %1357 = vmatprep.subr.bf16.mxu0 %v1449_v46 }
  0x2a   :  { %1379 = vmatprep.subr.bf16.mxu1 %v1449_v46 }
  0x2b   :  { %620 = vmatmul.mubr.bf16.gmra.mxu0 %v1428_v39 }
  0x2c   :  { %717 = vmatmul.mubr.bf16.gmra.mxu1 %v1429_v40  ;;  %627 = vmatprep.mubr.bf16.mxu0 %v1430_v41 }
  0x2d   :  { %724 = vmatprep.mubr.bf16.mxu1 %v1432_v43  ;;  %1358 = vmatpush3.bf16.msra.mxu0 %v1449_v46 }
  0x2e   :  { %1383 = vmatpush3.bf16.msra.mxu1 %v1449_v46  ;;  %1359 = vmatprep.subr.bf16.mxu0 %v1462_v49 }
  0x2f   :  { %1380 = vmatprep.subr.bf16.mxu1 %v1462_v49 }
  0x31   :  { %1360 = vmatpush3.bf16.msra.mxu0 %v1462_v49 }
  0x32   :  { %1384 = vmatpush3.bf16.msra.mxu1 %v1462_v49 }
  0x33   :  { %628 = vmatmul.mubr.bf16.gmra.mxu0 %v1434_v44 }
  0x34   :  { %725 = vmatmul.mubr.bf16.gmra.mxu1 %v1435_v45  ;;  %635 = vmatprep.mubr.bf16.mxu0 %v1437_v47 }
  0x35   :  { %732 = vmatprep.mubr.bf16.mxu1 %v1439_v48 }
  0x3b   :  { %636 = vmatmul.mubr.bf16.gmra.mxu0 %v1441_v50 }
  0x3c   :  { %733 = vmatmul.mubr.bf16.gmra.mxu1 %v1442_v51  ;;  %643 = vmatprep.mubr.bf16.mxu0 %v1443_v52 }
  0x3d   :  { %740 = vmatprep.mubr.bf16.mxu1 %v1445_v53 }
  0x43   :  { %644 = vmatmul.mubr.bf16.gmra.mxu0 %v1447_v54 }
  0x44   :  { %741 = vmatmul.mubr.bf16.gmra.mxu1 %v1448_v55  ;;  %651 = vmatprep.mubr.bf16.mxu0 %v1450_v56 }
  0x45   :  { %748 = vmatprep.mubr.bf16.mxu1 %v1452_v57 }
  0x4b   :  { %652 = vmatmul.mubr.bf16.gmra.mxu0 %v1454_v58 }
  0x4c   :  { %749 = vmatmul.mubr.bf16.gmra.mxu1 %v1455_v59  ;;  %659 = vmatprep.mubr.bf16.mxu0 %v1456_v60 }
  0x4d   :  { %756 = vmatprep.mubr.bf16.mxu1 %v1458_v61 }
  0x53   :  { %660 = vmatmul.mubr.bf16.gmra.mxu0 %v1460_v62 }
  0x54   :  { %757 = vmatmul.mubr.bf16.gmra.mxu1 %v1461_v63  ;;  %667 = vmatprep.mubr.bf16.mxu0 %v1463_v0 }
  0x55   :  { %764 = vmatprep.mubr.bf16.mxu1 %v1465_v1 }
  0x5b   :  { %668 = vmatmul.mubr.bf16.gmra.mxu0 %v1467_v2 }
  0x5c   :  { %765 = vmatmul.mubr.bf16.gmra.mxu1 %v1468_v3  ;;  %1361 = vmatprep.mubr.msk.bf16.mxu0 %vm554_vm0, %v1469_v4 }
  0x5d   :  { %1369 = vmatprep.mubr.msk.bf16.mxu1 %vm554_vm0, %v1470_v5 }
  0x63   :  { %1362 = vmatmul.mubr.msk.bf16.vlgmr.msra.gmra.mxu0 %vm554_vm0, %v1471_v6 }
  0x64   :  { %1370 = vmatmul.mubr.msk.bf16.vlgmr.msra.gmra.mxu1 %vm554_vm0, %v1472_v7  ;;  %1365 = vmatprep.mubr.msk.bf16.mxu0 %vm554_vm0, %v1473_v8 }
  0x65   :  { %1373 = vmatprep.mubr.msk.bf16.mxu1 %vm554_vm0, %v1474_v9 }
  0x6b   :  { %1366 = vmatmul.mubr.msk.bf16.gmra.mxu0 %vm554_vm0, %v1475_v10 }
  0x6c   :  { %1374 = vmatmul.mubr.msk.bf16.gmra.mxu1 %vm554_vm0, %v1476_v11 }
  0xe3   :  { %v1229_v12 = vpop.f32.mrf.mxu0 }
  0xe4   :  { %v1293_v13 = vpop.f32.mrf.mxu1 }
  0xe5   :  { %v1230_v14 = vpop.f32.mrf.mxu0 }
  0xe6   :  { %v1231_v15 = vadd.f32 %v1230_v14, %v1229_v12  ;;  %v1294_v16 = vpop.f32.mrf.mxu1 }
  0xe7   :  { %v1295_v17 = vadd.f32 %v1294_v16, %v1293_v13  ;;  %v1232_v18 = vpop.f32.mrf.mxu0 }
  0xe8   :  { %v1296_v19 = vpop.f32.mrf.mxu1 }
  0xe9   :  { %v1233_v20 = vpop.f32.mrf.mxu0  ;;  %v1738_v21 = vadd.f32 %v1295_v17, %v1231_v15 }
  0xea   :  { %v1234_v22 = vadd.f32 %v1233_v20, %v1232_v18  ;;  %v1297_v23 = vpop.f32.mrf.mxu1 }
  0xeb   :  { %v1298_v24 = vadd.f32 %v1297_v23, %v1296_v19  ;;  %v1235_v25 = vpop.f32.mrf.mxu0 }
  0xec   :  { %v1299_v26 = vpop.f32.mrf.mxu1 }
  0xed   :  { %v1236_v27 = vpop.f32.mrf.mxu0  ;;  %v1740_v28 = vadd.f32 %v1298_v24, %v1234_v22 }
  0xee   :  { %v1300_v29 = vpop.f32.mrf.mxu1  ;;  %v1237_v15 = vadd.f32 %v1236_v27, %v1235_v25 }
  0xef   :  { %1853 = vst [vmem:[#allocation2_spill] sm:$0xff] %v1740_v28  ;;  %v1238_v30 = vpop.f32.mrf.mxu0  ;;  %v1301_v16 = vadd.f32 %v1300_v29, %v1299_v26 }
  0xf0   :  { %v1302_v31 = vpop.f32.mrf.mxu1 }
  0xf1   :  { %v1239_v32 = vpop.f32.mrf.mxu0 }
  0xf2   :  { %v1303_v33 = vpop.f32.mrf.mxu1  ;;  %v1240_v19 = vadd.f32 %v1239_v32, %v1238_v30 }
  0xf3   :  { %v1241_v34 = vpop.f32.mrf.mxu0  ;;  %v1304_v20 = vadd.f32 %v1303_v33, %v1302_v31 }
  0xf4   :  { %v1305_v35 = vpop.f32.mrf.mxu1 }
  0xf5   :  { %v1242_v36 = vpop.f32.mrf.mxu0 }
  0xf6   :  { %v1243_v37 = vadd.f32 %v1242_v36, %v1241_v34  ;;  %v1306_v38 = vpop.f32.mrf.mxu1 }
  0xf7   :  { %v1307_v39 = vadd.f32 %v1306_v38, %v1305_v35  ;;  %v1244_v40 = vpop.f32.mrf.mxu0 }
  0xf8   :  { %v1308_v41 = vpop.f32.mrf.mxu1 }
  0xf9   :  { %v1245_v42 = vpop.f32.mrf.mxu0  ;;  %v1742_v43 = vadd.f32 %v1307_v39, %v1243_v37 }
  0xfa   :  { %v1309_v44 = vpop.f32.mrf.mxu1  ;;  %v1246_v34 = vadd.f32 %v1245_v42, %v1244_v40  ;;  %v1759_v40 = vld [vmem:[%s1850_s2] ss:$0 sm:$0xff] }
  0xfb   :  { %1854 = vst [vmem:[#allocation3_spill] sm:$0xff] %v1742_v43  ;;  %v1247_v45 = vpop.f32.mrf.mxu0  ;;  %v1310_v35 = vadd.f32 %v1309_v44, %v1308_v41 }
  0xfc   :  { %v1311_v46 = vpop.f32.mrf.mxu1 }
  0xfd   :  { %v1248_v47 = vpop.f32.mrf.mxu0 }
  0xfe   :  { %v1312_v48 = vpop.f32.mrf.mxu1  ;;  %v1249_v36 = vadd.f32 %v1248_v47, %v1247_v45  ;;  %v722_v45 = vadd.f32 %v1304_v20, %v1240_v19  ;;  %v1761_v47 = vadd.f32 %v1310_v35, %v1246_v34 }
  0xff   :  { %v1250_v49 = vpop.f32.mrf.mxu0  ;;  %v1313_v37 = vadd.f32 %v1312_v48, %v1311_v46 }
 0x100   :  { %v1314_v50 = vpop.f32.mrf.mxu1 }
 0x101   :  { %v1251_v51 = vpop.f32.mrf.mxu0  ;;  %v735_v46 = vadd.f32 %v1313_v37, %v1249_v36 }
 0x102   :  { %v1315_v52 = vpop.f32.mrf.mxu1  ;;  %v1252_v25 = vadd.f32 %v1251_v51, %v1250_v49 }
 0x103   :  { %v1253_v53 = vpop.f32.mrf.mxu0  ;;  %v1316_v26 = vadd.f32 %v1315_v52, %v1314_v50  ;;  %v1766_v50 = vld [vmem:[%s1851_s3] ss:$0 sm:$0xff] }
 0x104   :  { %v1317_v54 = vpop.f32.mrf.mxu1 }
 0x105   :  { %v1254_v55 = vpop.f32.mrf.mxu0 }
 0x106   :  { %v1318_v56 = vpop.f32.mrf.mxu1  ;;  %v1255_v39 = vadd.f32 %v1254_v55, %v1253_v53 }
 0x107   :  { %v1256_v57 = vpop.f32.mrf.mxu0  ;;  %v1319_v43 = vadd.f32 %v1318_v56, %v1317_v54 }
 0x108   :  { %v1320_v58 = vpop.f32.mrf.mxu1 }
 0x109   :  { %v1257_v59 = vpop.f32.mrf.mxu0  ;;  %v743_v53 = vadd.f32 %v1319_v43, %v1255_v39  ;;  %v1857_v39 = vld [vmem:[#allocation2_spill] sm:$0xff] }
 0x10a   :  { %v1321_v60 = vpop.f32.mrf.mxu1  ;;  %v1258_v27 = vadd.f32 %v1257_v59, %v1256_v57 }
 0x10b   :  { %v1259_v61 = vpop.f32.mrf.mxu0  ;;  %v1322_v29 = vadd.f32 %v1321_v60, %v1320_v58  ;;  %v1770_v58 = vadd.f32 %v1316_v26, %v1252_v25 }
 0x10c   :  { %v1323_v62 = vpop.f32.mrf.mxu1 }
 0x10d   :  { %v1260_v63 = vpop.f32.mrf.mxu0  ;;  %v746_v57 = vadd.f32 %v1322_v29, %v1258_v27 }
 0x10e   :  { %v1324_v0 = vpop.f32.mrf.mxu1  ;;  %v1261_v22 = vadd.f32 %v1260_v63, %v1259_v61 }
 0x10f   :  { %v1262_v1 = vpop.f32.mrf.mxu0  ;;  %v1325_v23 = vadd.f32 %v1324_v0, %v1323_v62 }
 0x110   :  { %v1326_v2 = vpop.f32.mrf.mxu1 }
 0x111   :  { %v1263_v3 = vpop.f32.mrf.mxu0  ;;  %v751_v41 = vadd.f32 %v1325_v23, %v1261_v22 }
 0x112   :  { %v1327_v4 = vpop.f32.mrf.mxu1  ;;  %v1264_v31 = vadd.f32 %v1263_v3, %v1262_v1 }
 0x113   :  { %v1265_v5 = vpop.f32.mrf.mxu0  ;;  %v1328_v32 = vadd.f32 %v1327_v4, %v1326_v2 }
 0x114   :  { %v1329_v6 = vpop.f32.mrf.mxu1 }
 0x115   :  { %v1266_v7 = vpop.f32.mrf.mxu0  ;;  %v754_v63 = vadd.f32 %v1328_v32, %v1264_v31 }
 0x116   :  { %v1330_v8 = vpop.f32.mrf.mxu1  ;;  %v1267_v48 = vadd.f32 %v1266_v7, %v1265_v5 }
 0x117   :  { %v1744_v9 = vpop.f32.mrf.mxu0  ;;  %v1331_v49 = vadd.f32 %v1330_v8, %v1329_v6 }
 0x118   :  { %v1746_v10 = vpop.f32.mrf.mxu1 }
 0x119   :  { %v1748_v11 = vpop.f32.mrf.mxu0  ;;  %v759_v7 = vadd.f32 %v1331_v49, %v1267_v48 }
 0x11a   :  { %v1750_v12 = vpop.f32.mrf.mxu1 }
 0x11b   :  { %1855 = vst [vmem:[#allocation4_spill] sm:$0xff] %v1750_v12  ;;  %v1271_v13 = vpop.f32.mrf.mxu0  ;;  %v719_v12 = vadd.f32 %v1301_v16, %v1237_v15  ;;  %v1781_v15 = vadd.f32 %v1748_v11, %v1744_v9 }
 0x11c   :  { %v1335_v14 = vpop.f32.mrf.mxu1 }
 0x11d   :  { %v1272_v17 = vpop.f32.mrf.mxu0 }
 0x11e   :  { %v1336_v18 = vpop.f32.mrf.mxu1  ;;  %v1273_v59 = vadd.f32 %v1272_v17, %v1271_v13 }
 0x11f   :  { %v1752_v24 = vpop.f32.mrf.mxu0  ;;  %v1337_v0 = vadd.f32 %v1336_v18, %v1335_v14 }
 0x120   :  { %v1754_v38 = vpop.f32.mrf.mxu1 }
 0x121   :  { %v1275_v28 = vpop.f32.mrf.mxu0  ;;  %v767_v34 = vadd.f32 %v1337_v0, %v1273_v59 }
 0x122   :  { %v1339_v30 = vpop.f32.mrf.mxu1  ;;  %v1856_v16 = vld [vmem:[#allocation4_spill] sm:$0xff]  ;;  %v1276_v22 = vadd.f32 %v1275_v28, %v1752_v24 }
 0x123   :  { %v1363_v33 = vpop.f32.mrf.mxu0  ;;  %v1785_v17 = vadd.f32 %v1856_v16, %v1746_v10  ;;  %v1340_v36 = vadd.f32 %v1339_v30, %v1754_v38 }
 0x124   :  { %v816_v42 = vadd.f32 %v1363_v33, %v719_v12  ;;  %v1371_v44 = vpop.f32.mrf.mxu1 }
 0x125   :  { %v848_v51 = vadd.f32 %v1371_v44, %v751_v41  ;;  %v807_v52 = vpop.f32.mrf.mxu0  ;;  %v1858_v44 = vld [vmem:[#allocation3_spill] sm:$0xff] }
 0x126   :  { %v879_v54 = vmul.f32 %v1759_v40, %v816_v42  ;;  %v808_v55 = vadd.f32 %v807_v52, %v1738_v21  ;;  %v839_v56 = vpop.f32.mrf.mxu1 }
 0x127   :  { %v887_v60 = vmul.f32 %v1759_v40, %v848_v51  ;;  %v840_v61 = vadd.f32 %v839_v56, %v743_v53  ;;  %v1364_v62 = vpop.f32.mrf.mxu0 }
 0x128   :  { %v902_v1 = vadd.f32 %v1766_v50, %v879_v54  ;;  %v877_v2 = vmul.f32 %v1759_v40, %v808_v55  ;;  %v819_v43 = vadd.f32 %v1364_v62, %v722_v45  ;;  %v1372_v3 = vpop.f32.mrf.mxu1 }
 0x129   :  { %v910_v4 = vadd.f32 %v1766_v50, %v887_v60  ;;  %v885_v21 = vmul.f32 %v1759_v40, %v840_v61  ;;  %v851_v5 = vadd.f32 %v1372_v3, %v754_v63  ;;  %v810_v6 = vpop.f32.mrf.mxu0  ;;  %v770_v63 = vadd.f32 %v1340_v36, %v1276_v22 }
 0x12a   :  { %vm918_vm1 = vcmp.ge.f32.partialorder %v902_v1, 0.0  ;;  %v934_v8 = vmul.f32 0.2, %v902_v1  ;;  %v900_v12 = vadd.f32 %v1766_v50, %v877_v2  ;;  %v880_v13 = vmul.f32 %v1759_v40, %v819_v43  ;;  %v842_v14 = vpop.f32.mrf.mxu1 }
 0x12b   :  { %v942_v18 = vmul.f32 0.2, %v910_v4  ;;  %v888_v19 = vmul.f32 %v1759_v40, %v851_v5  ;;  %v1367_v20 = vpop.f32.mrf.mxu0  ;;  %vm926_vm2 = vcmp.ge.f32.partialorder %v910_v4, 0.0  ;;  %v908_v11 = vadd.f32 %v1766_v50, %v885_v21 }
 0x12c   :  { %v903_v23 = vadd.f32 %v1766_v50, %v880_v13  ;;  %v1375_v35 = vpop.f32.mrf.mxu1  ;;  %v950_v9 = vsel %vm918_vm1, %v902_v1, %v934_v8  ;;  %vm916_vm3 = vcmp.ge.f32.partialorder %v900_v12, 0.0  ;;  %v811_v25 = vadd.f32 %v810_v6, %v1857_v39 }
 0x12d   :  { %v911_v10 = vadd.f32 %v1766_v50, %v888_v19  ;;  %v823_v26 = vpop.f32.mrf.mxu0  ;;  %v958_v28 = vsel %vm926_vm2, %v910_v4, %v942_v18  ;;  %v843_v27 = vadd.f32 %v842_v14, %v746_v57  ;;  %v832_v30 = vadd.f32 %v1367_v20, %v735_v46 }
 0x12e   :  { %vm919_vm4 = vcmp.ge.f32.partialorder %v903_v23, 0.0  ;;  %v935_v37 = vmul.f32 0.2, %v903_v23  ;;  %v855_v29 = vpop.f32.mrf.mxu1  ;;  %v878_v38 = vmul.f32 %v1759_v40, %v811_v25  ;;  %v864_v32 = vadd.f32 %v1375_v35, %v767_v34 }
 0x12f   :  { %vm927_vm5 = vcmp.ge.f32.partialorder %v911_v10, 0.0  ;;  %v943_v24 = vmul.f32 0.2, %v911_v10  ;;  %v886_v42 = vmul.f32 %v1759_v40, %v843_v27  ;;  %v824_v45 = vadd.f32 %v823_v26, %v1858_v44  ;;  %v1368_v53 = vpop.f32.mrf.mxu0 }
 0x130   :  { %v951_v31 = vsel %vm919_vm4, %v903_v23, %v935_v37  ;;  %v932_v48 = vmul.f32 0.2, %v900_v12  ;;  %v901_v51 = vadd.f32 %v1766_v50, %v878_v38  ;;  %v883_v52 = vmul.f32 %v1759_v40, %v832_v30  ;;  %v1376_v57 = vpop.f32.mrf.mxu1 }
 0x131   :  { %v1174_v33 = vpack.c.bf16 %v951_v31, %v950_v9  ;;  %v959_v41 = vsel %vm927_vm5, %v911_v10, %v943_v24  ;;  %v940_v54 = vmul.f32 0.2, %v908_v11  ;;  %v909_v46 = vadd.f32 %v1766_v50, %v886_v42  ;;  %v826_v3 = vpop.f32.mrf.mxu0 }
 0x132   :  { %v1194_v49 = vpack.c.bf16 %v959_v41, %v958_v28  ;;  %v891_v55 = vmul.f32 %v1759_v40, %v864_v32  ;;  %v856_v56 = vadd.f32 %v855_v29, %v759_v7  ;;  %vm924_vm6 = vcmp.ge.f32.partialorder %v908_v11, 0.0  ;;  %v858_v7 = vpop.f32.mrf.mxu1 }
 0x133   :  { %1206 = vst [vmem:[%s1852_s4 + $0x8] sm:$0xff] %v1174_v33   ;;  %vm917_vm7 = vcmp.ge.f32.partialorder %v901_v51, 0.0  ;;  %v933_v59 = vmul.f32 0.2, %v901_v51  ;;  %v881_v60 = vmul.f32 %v1759_v40, %v824_v45  ;;  %vm925_vm8 = vcmp.ge.f32.partialorder %v909_v46, 0.0 }
 0x134   :  { %1210 = vst [vmem:[%s1852_s4 + $0x28] sm:$0xff] %v1194_v49   ;;  %v941_v61 = vmul.f32 0.2, %v909_v46  ;;  %v835_v62 = vadd.f32 %v1368_v53, %v1770_v58  ;;  %v948_v0 = vsel %vm916_vm3, %v900_v12, %v932_v48  ;;  %v906_v2 = vadd.f32 %v1766_v50, %v883_v52 }
 0x135   :  { %v949_v1 = vsel %vm917_vm7, %v901_v51, %v933_v59  ;;  %v889_v43 = vmul.f32 %v1759_v40, %v856_v56  ;;  %v956_v4 = vsel %vm924_vm6, %v908_v11, %v940_v54  ;;  %v914_v6 = vadd.f32 %v1766_v50, %v891_v55 }
 0x136   :  { %v1169_v21 = vpack.c.bf16 %v949_v1, %v948_v0  ;;  %v957_v5 = vsel %vm925_vm8, %v909_v46, %v941_v61  ;;  %v904_v13 = vadd.f32 %v1766_v50, %v881_v60  ;;  %v762_v58 = vadd.f32 %v1785_v17, %v1781_v15 }
 0x137   :  { %v1189_v8 = vpack.c.bf16 %v957_v5, %v956_v4  ;;  %v884_v12 = vmul.f32 %v1759_v40, %v835_v62  ;;  %v867_v14 = vadd.f32 %v1376_v57, %v770_v63  ;;  %v827_v16 = vadd.f32 %v826_v3, %v1761_v47 }
 0x138   :  { %1170 = vst [vmem:[%s1852_s4] sm:$0xff] %v1169_v21   ;;  %vm922_vm9 = vcmp.ge.f32.partialorder %v906_v2, 0.0  ;;  %v938_v18 = vmul.f32 0.2, %v906_v2  ;;  %v912_v19 = vadd.f32 %v1766_v50, %v889_v43  ;;  %v859_v20 = vadd.f32 %v858_v7, %v762_v58 }
 0x139   :  { %1209 = vst [vmem:[%s1852_s4 + $0x20] sm:$0xff] %v1189_v8   ;;  %vm930_vm10 = vcmp.ge.f32.partialorder %v914_v6, 0.0  ;;  %v907_v15 = vadd.f32 %v1766_v50, %v884_v12  ;;  %v892_v17 = vmul.f32 %v1759_v40, %v867_v14  ;;  %v882_v22 = vmul.f32 %v1759_v40, %v827_v16 }
 0x13a   :  { %v946_v23 = vmul.f32 0.2, %v914_v6  ;;  %vm920_vm11 = vcmp.ge.f32.partialorder %v904_v13, 0.0  ;;  %v936_v34 = vmul.f32 0.2, %v904_v13  ;;  %v890_v47 = vmul.f32 %v1759_v40, %v859_v20 }
 0x13b   :  { %vm923_vm12 = vcmp.ge.f32.partialorder %v907_v15, 0.0  ;;  %v939_v35 = vmul.f32 0.2, %v907_v15  ;;  %v915_v36 = vadd.f32 %v1766_v50, %v892_v17  ;;  %v905_v9 = vadd.f32 %v1766_v50, %v882_v22 }
 0x13c   :  { %v954_v11 = vsel %vm922_vm9, %v906_v2, %v938_v18  ;;  %vm928_vm13 = vcmp.ge.f32.partialorder %v912_v19, 0.0  ;;  %v944_v10 = vmul.f32 0.2, %v912_v19  ;;  %v913_v37 = vadd.f32 %v1766_v50, %v890_v47 }
 0x13d   :  { %v955_v39 = vsel %vm923_vm12, %v907_v15, %v939_v35  ;;  %vm931_vm14 = vcmp.ge.f32.partialorder %v915_v36, 0.0  ;;  %v947_v25 = vmul.f32 0.2, %v915_v36  ;;  %vm921_vm15 = vcmp.ge.f32.partialorder %v905_v9, 0.0 }
 0x13e   :  { %v1184_v26 = vpack.c.bf16 %v955_v39, %v954_v11  ;;  %v937_v28 = vmul.f32 0.2, %v905_v9  ;;  %vm929_vm0 = vcmp.ge.f32.partialorder %v913_v37, 0.0  ;;  %v945_v40 = vmul.f32 0.2, %v913_v37 }
 0x13f   :  { %v962_v24 = vsel %vm930_vm10, %v914_v6, %v946_v23  ;;  %v952_v27 = vsel %vm920_vm11, %v904_v13, %v936_v34  ;;  %v963_v29 = vsel %vm931_vm14, %v915_v36, %v947_v25  ;;  %v960_v31 = vsel %vm928_vm13, %v912_v19, %v944_v10 }
 0x140   :  { %1208 = vst [vmem:[%s1852_s4 + $0x18] sm:$0xff] %v1184_v26   ;;  %v1204_v38 = vpack.c.bf16 %v963_v29, %v962_v24  ;;  %v953_v50 = vsel %vm921_vm15, %v905_v9, %v937_v28  ;;  %v961_v30 = vsel %vm929_vm0, %v913_v37, %v945_v40 }
 0x141   :  { %v1179_v32 = vpack.c.bf16 %v953_v50, %v952_v27  ;;  %v1199_v33 = vpack.c.bf16 %v961_v30, %v960_v31 }
 0x142   :  { %1212 = vst [vmem:[%s1852_s4 + $0x38] sm:$0xff] %v1204_v38  }
 0x143   :  { %1207 = vst [vmem:[%s1852_s4 + $0x10] sm:$0xff] %v1179_v32   ;;  %1211 = vst [vmem:[%s1852_s4 + $0x30] sm:$0xff] %v1199_v33  }

// kernel: discriminator_forward.11
= control target key start
LH: loop header
LB: loop body
LE: loop exit
PB: predicated region body
PF: predicated region fallthrough
CT: control target
= control target key end

     0   :  { %s2317_s1 = inlined_call_operand.vmem [shape: bf16[1152,256], index: 1, kind: input, shape index: {}]   ;;  %s2318_s0 = inlined_call_operand.vmem [shape: bf16[32,1152], index: 0, kind: input, shape index: {}]   ;;  %s2319_s2 = inlined_call_operand.vmem [shape: f32[1,256], index: 2, kind: input, shape index: {}]   ;;  %s2320_s3 = inlined_call_operand.vmem [shape: f32[1,256], index: 3, kind: input, shape index: {}]   ;;  %s2321_s4 = inlined_call_operand.vmem [shape: bf16[32,256], index: 4, kind: output, shape index: {}]  }
   0x1   :  { %v1542_v0 = vld [vmem:[%s2317_s1 + $0x74] ss:$8 sps:$4 sm:$0xff]   ;;  %v1546_v2 = vld [vmem:[%s2317_s1 + $0x70] ss:$8 sps:$4 sm:$0xff]   ;;  %v1548_v4 = vld [vmem:[%s2317_s1 + $0x64] ss:$8 sps:$4 sm:$0xff]  }
   0x2   :  { %v1544_v1 = vld [vmem:[%s2317_s1 + $0x174] ss:$8 sps:$4 sm:$0xff]   ;;  %994 = vmatprep.subr.bf16.mxu0 %v1542_v0  ;;  %v1547_v3 = vld [vmem:[%s2317_s1 + $0x170] ss:$8 sps:$4 sm:$0xff]   ;;  %v1550_v5 = vld [vmem:[%s2317_s1 + $0x164] ss:$8 sps:$4 sm:$0xff]  }
   0x3   :  { %1047 = vmatprep.subr.bf16.mxu1 %v1544_v1  ;;  %995 = vmatpush1.bf16.msra.mxu0 %v1546_v2  ;;  %v1552_v6 = vld [vmem:[%s2317_s1 + $0x60] ss:$8 sps:$4 sm:$0xff]   ;;  %v1554_v8 = vld [vmem:[%s2317_s1 + $0x54] ss:$8 sps:$4 sm:$0xff]   ;;  %v1558_v10 = vld [vmem:[%s2317_s1 + $0x50] ss:$8 sps:$4 sm:$0xff]  }
   0x4   :  { %1048 = vmatpush1.bf16.msra.mxu1 %v1547_v3  ;;  %996 = vmatprep.subr.bf16.mxu0 %v1548_v4  ;;  %v1553_v7 = vld [vmem:[%s2317_s1 + $0x160] ss:$8 sps:$4 sm:$0xff]   ;;  %v1556_v9 = vld [vmem:[%s2317_s1 + $0x154] ss:$8 sps:$4 sm:$0xff]   ;;  %v1559_v11 = vld [vmem:[%s2317_s1 + $0x150] ss:$8 sps:$4 sm:$0xff]  }
   0x5   :  { %1049 = vmatprep.subr.bf16.mxu1 %v1550_v5  ;;  %v1560_v12 = vld [vmem:[%s2317_s1 + $0x44] ss:$8 sps:$4 sm:$0xff]   ;;  %v1564_v14 = vld [vmem:[%s2317_s1 + $0x40] ss:$8 sps:$4 sm:$0xff]   ;;  %v1566_v16 = vld [vmem:[%s2317_s1 + $0x34] ss:$8 sps:$4 sm:$0xff]  }
   0x6   :  { %v1562_v13 = vld [vmem:[%s2317_s1 + $0x144] ss:$8 sps:$4 sm:$0xff]   ;;  %v1565_v15 = vld [vmem:[%s2317_s1 + $0x140] ss:$8 sps:$4 sm:$0xff]   ;;  %v1568_v17 = vld [vmem:[%s2317_s1 + $0x134] ss:$8 sps:$4 sm:$0xff]  }
   0x7   :  { %997 = vmatpush1.bf16.msra.mxu0 %v1552_v6  ;;  %v1570_v18 = vld [vmem:[%s2317_s1 + $0x30] ss:$8 sps:$4 sm:$0xff]   ;;  %v1572_v20 = vld [vmem:[%s2317_s1 + $0x24] ss:$8 sps:$4 sm:$0xff]   ;;  %v1576_v22 = vld [vmem:[%s2317_s1 + $0x20] ss:$8 sps:$4 sm:$0xff]  }
   0x8   :  { %1050 = vmatpush1.bf16.msra.mxu1 %v1553_v7  ;;  %998 = vmatprep.subr.bf16.mxu0 %v1554_v8  ;;  %v1571_v19 = vld [vmem:[%s2317_s1 + $0x130] ss:$8 sps:$4 sm:$0xff]   ;;  %v1574_v21 = vld [vmem:[%s2317_s1 + $0x124] ss:$8 sps:$4 sm:$0xff]   ;;  %v1577_v23 = vld [vmem:[%s2317_s1 + $0x120] ss:$8 sps:$4 sm:$0xff]  }
   0x9   :  { %1051 = vmatprep.subr.bf16.mxu1 %v1556_v9  ;;  %v1578_v24 = vld [vmem:[%s2317_s1 + $0x14] ss:$8 sps:$4 sm:$0xff]   ;;  %v1582_v26 = vld [vmem:[%s2317_s1 + $0x10] ss:$8 sps:$4 sm:$0xff]   ;;  %v1584_v28 = vld [vmem:[%s2317_s1 + $0x4] ss:$8 sps:$4 sm:$0xff]  }
   0xa   :  { %v1580_v25 = vld [vmem:[%s2317_s1 + $0x114] ss:$8 sps:$4 sm:$0xff]   ;;  %v1583_v27 = vld [vmem:[%s2317_s1 + $0x110] ss:$8 sps:$4 sm:$0xff]   ;;  %v1586_v29 = vld [vmem:[%s2317_s1 + $0x104] ss:$8 sps:$4 sm:$0xff]  }
   0xb   :  { %999 = vmatpush1.bf16.msra.mxu0 %v1558_v10  ;;  %v1588_v30 = vld [vmem:[%s2317_s1] ss:$8 sps:$4 sm:$0xff]   ;;  %v1590_v32 = vld [vmem:[%s2317_s1 + $0xf4] ss:$8 sps:$4 sm:$0xff]   ;;  %v1594_v34 = vld [vmem:[%s2317_s1 + $0xf0] ss:$8 sps:$4 sm:$0xff]  }
   0xc   :  { %1052 = vmatpush1.bf16.msra.mxu1 %v1559_v11  ;;  %1000 = vmatprep.subr.bf16.mxu0 %v1560_v12  ;;  %v1589_v31 = vld [vmem:[%s2317_s1 + $0x100] ss:$8 sps:$4 sm:$0xff]   ;;  %v1592_v33 = vld [vmem:[%s2317_s1 + $0x1f4] ss:$8 sps:$4 sm:$0xff]   ;;  %v1595_v35 = vld [vmem:[%s2317_s1 + $0x1f0] ss:$8 sps:$4 sm:$0xff]  }
   0xd   :  { %1053 = vmatprep.subr.bf16.mxu1 %v1562_v13  ;;  %v1596_v36 = vld [vmem:[%s2317_s1 + $0xe4] ss:$8 sps:$4 sm:$0xff]   ;;  %v1600_v38 = vld [vmem:[%s2317_s1 + $0xe0] ss:$8 sps:$4 sm:$0xff]   ;;  %v1602_v40 = vld [vmem:[%s2317_s1 + $0xd4] ss:$8 sps:$4 sm:$0xff]  }
   0xe   :  { %v1598_v37 = vld [vmem:[%s2317_s1 + $0x1e4] ss:$8 sps:$4 sm:$0xff]   ;;  %v1601_v39 = vld [vmem:[%s2317_s1 + $0x1e0] ss:$8 sps:$4 sm:$0xff]   ;;  %v1604_v41 = vld [vmem:[%s2317_s1 + $0x1d4] ss:$8 sps:$4 sm:$0xff]  }
   0xf   :  { %1001 = vmatpush1.bf16.msra.mxu0 %v1564_v14  ;;  %v1606_v42 = vld [vmem:[%s2317_s1 + $0xd0] ss:$8 sps:$4 sm:$0xff]   ;;  %v1608_v44 = vld [vmem:[%s2317_s1 + $0xc4] ss:$8 sps:$4 sm:$0xff]   ;;  %v1612_v46 = vld [vmem:[%s2317_s1 + $0xc0] ss:$8 sps:$4 sm:$0xff]  }
  0x10   :  { %1054 = vmatpush1.bf16.msra.mxu1 %v1565_v15  ;;  %1002 = vmatprep.subr.bf16.mxu0 %v1566_v16  ;;  %v1607_v43 = vld [vmem:[%s2317_s1 + $0x1d0] ss:$8 sps:$4 sm:$0xff]   ;;  %v1610_v45 = vld [vmem:[%s2317_s1 + $0x1c4] ss:$8 sps:$4 sm:$0xff]   ;;  %v1613_v47 = vld [vmem:[%s2317_s1 + $0x1c0] ss:$8 sps:$4 sm:$0xff]  }
  0x11   :  { %1055 = vmatprep.subr.bf16.mxu1 %v1568_v17  ;;  %v1614_v48 = vld [vmem:[%s2317_s1 + $0xb4] ss:$8 sps:$4 sm:$0xff]   ;;  %v1640_v49 = vld [vmem:[%s2318_s0 + $0x4] ss:$36 sps:$4 sm:$0xff]   ;;  %v1643_v51 = vld [vmem:[%s2318_s0 + $0xc] ss:$36 sps:$4 sm:$0xff]  }
  0x12   :  { %v1616_v50 = vld [vmem:[%s2317_s1 + $0x1b4] ss:$8 sps:$4 sm:$0xff]   ;;  %1026 = vmatprep.mubr.bf16.mxu0 %v1640_v49  ;;  %v1618_v52 = vld [vmem:[%s2317_s1 + $0xb0] ss:$8 sps:$4 sm:$0xff]   ;;  %1079 = vmatprep.mubr.bf16.mxu1 %v1643_v51  ;;  %v1620_v54 = vld [vmem:[%s2317_s1 + $0xa4] ss:$8 sps:$4 sm:$0xff]  }
  0x13   :  { %1003 = vmatpush1.bf16.msra.mxu0 %v1570_v18  ;;  %v1619_v53 = vld [vmem:[%s2317_s1 + $0x1b0] ss:$8 sps:$4 sm:$0xff]   ;;  %v1622_v55 = vld [vmem:[%s2317_s1 + $0x1a4] ss:$8 sps:$4 sm:$0xff]   ;;  %v1624_v56 = vld [vmem:[%s2317_s1 + $0xa0] ss:$8 sps:$4 sm:$0xff]  }
  0x14   :  { %1056 = vmatpush1.bf16.msra.mxu1 %v1571_v19  ;;  %1004 = vmatprep.subr.bf16.mxu0 %v1572_v20  ;;  %v1625_v57 = vld [vmem:[%s2317_s1 + $0x1a0] ss:$8 sps:$4 sm:$0xff]   ;;  %v1626_v58 = vld [vmem:[%s2317_s1 + $0x94] ss:$8 sps:$4 sm:$0xff]   ;;  %v1630_v60 = vld [vmem:[%s2317_s1 + $0x90] ss:$8 sps:$4 sm:$0xff]  }
  0x15   :  { %1057 = vmatprep.subr.bf16.mxu1 %v1574_v21  ;;  %v1628_v59 = vld [vmem:[%s2317_s1 + $0x194] ss:$8 sps:$4 sm:$0xff]   ;;  %v1631_v61 = vld [vmem:[%s2317_s1 + $0x190] ss:$8 sps:$4 sm:$0xff]   ;;  %v1632_v62 = vld [vmem:[%s2317_s1 + $0x84] ss:$8 sps:$4 sm:$0xff]  }
  0x16   :  { %v1634_v63 = vld [vmem:[%s2317_s1 + $0x184] ss:$8 sps:$4 sm:$0xff]   ;;  %v1636_v0 = vld [vmem:[%s2317_s1 + $0x80] ss:$8 sps:$4 sm:$0xff]   ;;  %v1646_v2 = vld [vmem:[%s2317_s1 + $0x274] ss:$8 sps:$4 sm:$0xff]  }
  0x17   :  { %1005 = vmatpush1.bf16.msra.mxu0 %v1576_v22  ;;  %v1637_v1 = vld [vmem:[%s2317_s1 + $0x180] ss:$8 sps:$4 sm:$0xff]   ;;  %v1649_v3 = vld [vmem:[%s2317_s1 + $0x374] ss:$8 sps:$4 sm:$0xff]   ;;  %v1644_v6 = vld [vmem:[%s2317_s1 + $0x270] ss:$8 sps:$4 sm:$0xff]  }
  0x18   :  { %1058 = vmatpush1.bf16.msra.mxu1 %v1577_v23  ;;  %1006 = vmatprep.subr.bf16.mxu0 %v1578_v24  ;;  %v1638_v4 = vld [vmem:[%s2318_s0] ss:$36 sps:$4 sm:$0xff]   ;;  %v1641_v5 = vld [vmem:[%s2318_s0 + $0x8] ss:$36 sps:$4 sm:$0xff]   ;;  %v1647_v7 = vld [vmem:[%s2317_s1 + $0x370] ss:$8 sps:$4 sm:$0xff]  }
  0x19   :  { %1059 = vmatprep.subr.bf16.mxu1 %v1580_v25  ;;  %v1652_v8 = vld [vmem:[%s2317_s1 + $0x264] ss:$8 sps:$4 sm:$0xff]   ;;  %v1650_v10 = vld [vmem:[%s2317_s1 + $0x260] ss:$8 sps:$4 sm:$0xff]   ;;  %v1658_v12 = vld [vmem:[%s2317_s1 + $0x254] ss:$8 sps:$4 sm:$0xff]  }
  0x1a   :  { %v1655_v9 = vld [vmem:[%s2317_s1 + $0x364] ss:$8 sps:$4 sm:$0xff]   ;;  %v1653_v11 = vld [vmem:[%s2317_s1 + $0x360] ss:$8 sps:$4 sm:$0xff]   ;;  %v1661_v13 = vld [vmem:[%s2317_s1 + $0x354] ss:$8 sps:$4 sm:$0xff]  }
  0x1b   :  { %1007 = vmatpush1.bf16.msra.mxu0 %v1582_v26  ;;  %v1656_v14 = vld [vmem:[%s2317_s1 + $0x250] ss:$8 sps:$4 sm:$0xff]   ;;  %v1664_v16 = vld [vmem:[%s2317_s1 + $0x244] ss:$8 sps:$4 sm:$0xff]   ;;  %v1662_v18 = vld [vmem:[%s2317_s1 + $0x240] ss:$8 sps:$4 sm:$0xff]  }
  0x1c   :  { %1060 = vmatpush1.bf16.msra.mxu1 %v1583_v27  ;;  %1008 = vmatprep.subr.bf16.mxu0 %v1584_v28  ;;  %v1659_v15 = vld [vmem:[%s2317_s1 + $0x350] ss:$8 sps:$4 sm:$0xff]   ;;  %v1667_v17 = vld [vmem:[%s2317_s1 + $0x344] ss:$8 sps:$4 sm:$0xff]   ;;  %v1665_v19 = vld [vmem:[%s2317_s1 + $0x340] ss:$8 sps:$4 sm:$0xff]  }
  0x1d   :  { %1061 = vmatprep.subr.bf16.mxu1 %v1586_v29  ;;  %v1670_v20 = vld [vmem:[%s2317_s1 + $0x234] ss:$8 sps:$4 sm:$0xff]   ;;  %v1668_v22 = vld [vmem:[%s2317_s1 + $0x230] ss:$8 sps:$4 sm:$0xff]   ;;  %v1676_v24 = vld [vmem:[%s2317_s1 + $0x224] ss:$8 sps:$4 sm:$0xff]  }
  0x1e   :  { %v1673_v21 = vld [vmem:[%s2317_s1 + $0x334] ss:$8 sps:$4 sm:$0xff]   ;;  %v1671_v23 = vld [vmem:[%s2317_s1 + $0x330] ss:$8 sps:$4 sm:$0xff]   ;;  %v1679_v25 = vld [vmem:[%s2317_s1 + $0x324] ss:$8 sps:$4 sm:$0xff]  }
  0x1f   :  { %1009 = vmatpush1.bf16.msra.mxu0 %v1588_v30  ;;  %v1722_v26 = vld [vmem:[%s2318_s0 + $0x4c] ss:$36 sps:$4 sm:$0xff]   ;;  %v1724_v27 = vld [vmem:[%s2318_s0 + $0x54] ss:$36 sps:$4 sm:$0xff]   ;;  %v1674_v30 = vld [vmem:[%s2317_s1 + $0x220] ss:$8 sps:$4 sm:$0xff]  }
  0x20   :  { %1062 = vmatpush1.bf16.msra.mxu1 %v1589_v31  ;;  %1010 = vmatprep.subr.bf16.mxu0 %v1590_v32  ;;  %v1726_v28 = vld [vmem:[%s2318_s0 + $0x48] ss:$36 sps:$4 sm:$0xff]   ;;  %v1727_v29 = vld [vmem:[%s2318_s0 + $0x50] ss:$36 sps:$4 sm:$0xff]  }
  0x21   :  { %1063 = vmatprep.subr.bf16.mxu1 %v1592_v33  ;;  %v1677_v31 = vld [vmem:[%s2317_s1 + $0x320] ss:$8 sps:$4 sm:$0xff]   ;;  %v1682_v32 = vld [vmem:[%s2317_s1 + $0x214] ss:$8 sps:$4 sm:$0xff]  }
  0x22   :  { %v1685_v33 = vld [vmem:[%s2317_s1 + $0x314] ss:$8 sps:$4 sm:$0xff]   ;;  %v1701_v49 = vld [vmem:[%s2317_s1 + $0x3e0] ss:$8 sps:$4 sm:$0xff]  }
  0x23   :  { %1011 = vmatpush2.bf16.msra.mxu0 %v1594_v34  ;;  %v1680_v34 = vld [vmem:[%s2317_s1 + $0x210] ss:$8 sps:$4 sm:$0xff]   ;;  %v1709_v51 = vld [vmem:[%s2317_s1 + $0x3d4] ss:$8 sps:$4 sm:$0xff]  }
  0x24   :  { %1064 = vmatpush2.bf16.msra.mxu1 %v1595_v35  ;;  %1012 = vmatprep.subr.bf16.mxu0 %v1596_v36  ;;  %v1683_v35 = vld [vmem:[%s2317_s1 + $0x310] ss:$8 sps:$4 sm:$0xff]   ;;  %v1688_v36 = vld [vmem:[%s2317_s1 + $0x204] ss:$8 sps:$4 sm:$0xff]  }
  0x25   :  { %1065 = vmatprep.subr.bf16.mxu1 %v1598_v37  ;;  %v1691_v37 = vld [vmem:[%s2317_s1 + $0x304] ss:$8 sps:$4 sm:$0xff]  }
  0x27   :  { %1013 = vmatpush2.bf16.msra.mxu0 %v1600_v38  ;;  %v1686_v38 = vld [vmem:[%s2317_s1 + $0x200] ss:$8 sps:$4 sm:$0xff]  }
  0x28   :  { %1066 = vmatpush2.bf16.msra.mxu1 %v1601_v39  ;;  %1014 = vmatprep.subr.bf16.mxu0 %v1602_v40  ;;  %v1689_v39 = vld [vmem:[%s2317_s1 + $0x300] ss:$8 sps:$4 sm:$0xff]   ;;  %v1694_v40 = vld [vmem:[%s2317_s1 + $0x2f4] ss:$8 sps:$4 sm:$0xff]  }
  0x29   :  { %1067 = vmatprep.subr.bf16.mxu1 %v1604_v41  ;;  %v1748_v41 = vld [vmem:[%s2318_s0 + $0x14] ss:$36 sps:$4 sm:$0xff]  }
  0x2b   :  { %1015 = vmatpush2.bf16.msra.mxu0 %v1606_v42  ;;  %v1697_v42 = vld [vmem:[%s2317_s1 + $0x3f4] ss:$8 sps:$4 sm:$0xff]  }
  0x2c   :  { %1068 = vmatpush2.bf16.msra.mxu1 %v1607_v43  ;;  %1016 = vmatprep.subr.bf16.mxu0 %v1608_v44  ;;  %v1751_v43 = vld [vmem:[%s2318_s0 + $0x1c] ss:$36 sps:$4 sm:$0xff]   ;;  %v1692_v44 = vld [vmem:[%s2317_s1 + $0x2f0] ss:$8 sps:$4 sm:$0xff]  }
  0x2d   :  { %1069 = vmatprep.subr.bf16.mxu1 %v1610_v45  ;;  %v1695_v45 = vld [vmem:[%s2317_s1 + $0x3f0] ss:$8 sps:$4 sm:$0xff]  }
  0x2f   :  { %1017 = vmatpush2.bf16.msra.mxu0 %v1612_v46  ;;  %v1700_v46 = vld [vmem:[%s2317_s1 + $0x2e4] ss:$8 sps:$4 sm:$0xff]  }
  0x30   :  { %1070 = vmatpush2.bf16.msra.mxu1 %v1613_v47  ;;  %1018 = vmatprep.subr.bf16.mxu0 %v1614_v48  ;;  %v1703_v47 = vld [vmem:[%s2317_s1 + $0x3e4] ss:$8 sps:$4 sm:$0xff]   ;;  %v1698_v48 = vld [vmem:[%s2317_s1 + $0x2e0] ss:$8 sps:$4 sm:$0xff]  }
  0x31   :  { %1071 = vmatprep.subr.bf16.mxu1 %v1616_v50  ;;  %v1706_v50 = vld [vmem:[%s2317_s1 + $0x2d4] ss:$8 sps:$4 sm:$0xff]  }
  0x33   :  { %1019 = vmatpush2.bf16.msra.mxu0 %v1618_v52  ;;  %v1704_v52 = vld [vmem:[%s2317_s1 + $0x2d0] ss:$8 sps:$4 sm:$0xff]  }
  0x34   :  { %1072 = vmatpush2.bf16.msra.mxu1 %v1619_v53  ;;  %1020 = vmatprep.subr.bf16.mxu0 %v1620_v54  ;;  %v1707_v53 = vld [vmem:[%s2317_s1 + $0x3d0] ss:$8 sps:$4 sm:$0xff]   ;;  %v1712_v54 = vld [vmem:[%s2317_s1 + $0x2c4] ss:$8 sps:$4 sm:$0xff]  }
  0x35   :  { %1073 = vmatprep.subr.bf16.mxu1 %v1622_v55  ;;  %v1715_v55 = vld [vmem:[%s2317_s1 + $0x3c4] ss:$8 sps:$4 sm:$0xff]  }
  0x37   :  { %1021 = vmatpush2.bf16.msra.mxu0 %v1624_v56  ;;  %v1710_v56 = vld [vmem:[%s2317_s1 + $0x2c0] ss:$8 sps:$4 sm:$0xff]  }
  0x38   :  { %1074 = vmatpush2.bf16.msra.mxu1 %v1625_v57  ;;  %1022 = vmatprep.subr.bf16.mxu0 %v1626_v58  ;;  %v1713_v57 = vld [vmem:[%s2317_s1 + $0x3c0] ss:$8 sps:$4 sm:$0xff]   ;;  %v1718_v58 = vld [vmem:[%s2317_s1 + $0x2b4] ss:$8 sps:$4 sm:$0xff]  }
  0x39   :  { %1075 = vmatprep.subr.bf16.mxu1 %v1628_v59  ;;  %v1721_v59 = vld [vmem:[%s2317_s1 + $0x3b4] ss:$8 sps:$4 sm:$0xff]  }
  0x3b   :  { %1023 = vmatpush2.bf16.msra.mxu0 %v1630_v60  ;;  %v1716_v60 = vld [vmem:[%s2317_s1 + $0x2b0] ss:$8 sps:$4 sm:$0xff]  }
  0x3c   :  { %1076 = vmatpush2.bf16.msra.mxu1 %v1631_v61  ;;  %1024 = vmatprep.subr.bf16.mxu0 %v1632_v62  ;;  %v1719_v61 = vld [vmem:[%s2317_s1 + $0x3b0] ss:$8 sps:$4 sm:$0xff]   ;;  %v1730_v62 = vld [vmem:[%s2317_s1 + $0x2a4] ss:$8 sps:$4 sm:$0xff]  }
  0x3d   :  { %1077 = vmatprep.subr.bf16.mxu1 %v1634_v63  ;;  %v1733_v63 = vld [vmem:[%s2317_s1 + $0x3a4] ss:$8 sps:$4 sm:$0xff]  }
  0x3f   :  { %1025 = vmatpush2.bf16.msra.mxu0 %v1636_v0  ;;  %v1728_v0 = vld [vmem:[%s2317_s1 + $0x2a0] ss:$8 sps:$4 sm:$0xff]  }
  0x40   :  { %1078 = vmatpush2.bf16.msra.mxu1 %v1637_v1  ;;  %1100 = vmatprep.subr.bf16.mxu0 %v1646_v2  ;;  %v1731_v1 = vld [vmem:[%s2317_s1 + $0x3a0] ss:$8 sps:$4 sm:$0xff]   ;;  %v1736_v2 = vld [vmem:[%s2317_s1 + $0x294] ss:$8 sps:$4 sm:$0xff]  }
  0x41   :  { %1153 = vmatprep.subr.bf16.mxu1 %v1649_v3  ;;  %v1739_v3 = vld [vmem:[%s2317_s1 + $0x394] ss:$8 sps:$4 sm:$0xff]  }
  0x42   :  { %1027 = vmatmul.mubr.bf16.vlgmr.msra.gmra.mxu0 %v1638_v4  ;;  %v1734_v4 = vld [vmem:[%s2317_s1 + $0x290] ss:$8 sps:$4 sm:$0xff]  }
  0x43   :  { %1080 = vmatmul.mubr.bf16.vlgmr.msra.gmra.mxu1 %v1641_v5  ;;  %1101 = vmatpush1.bf16.msra.mxu0 %v1644_v6  ;;  %v1737_v5 = vld [vmem:[%s2317_s1 + $0x390] ss:$8 sps:$4 sm:$0xff]   ;;  %v1742_v6 = vld [vmem:[%s2317_s1 + $0x284] ss:$8 sps:$4 sm:$0xff]  }
  0x44   :  { %1154 = vmatpush1.bf16.msra.mxu1 %v1647_v7  ;;  %1102 = vmatprep.subr.bf16.mxu0 %v1652_v8  ;;  %v1745_v7 = vld [vmem:[%s2317_s1 + $0x384] ss:$8 sps:$4 sm:$0xff]   ;;  %v1740_v8 = vld [vmem:[%s2317_s1 + $0x280] ss:$8 sps:$4 sm:$0xff]  }
  0x45   :  { %1155 = vmatprep.subr.bf16.mxu1 %v1655_v9  ;;  %1036 = vmatprep.mubr.bf16.mxu0 %v1722_v26  ;;  %v1743_v9 = vld [vmem:[%s2317_s1 + $0x380] ss:$8 sps:$4 sm:$0xff]   ;;  %v1770_v26 = vld [vmem:[%s2317_s1 + $0x430] ss:$8 sps:$4 sm:$0xff]  }
  0x46   :  { %1089 = vmatprep.mubr.bf16.mxu1 %v1724_v27  ;;  %v1775_v27 = vld [vmem:[%s2317_s1 + $0x424] ss:$8 sps:$4 sm:$0xff]  }
  0x47   :  { %1103 = vmatpush1.bf16.msra.mxu0 %v1650_v10  ;;  %v1754_v10 = vld [vmem:[%s2317_s1 + $0x474] ss:$8 sps:$4 sm:$0xff]  }
  0x48   :  { %1156 = vmatpush1.bf16.msra.mxu1 %v1653_v11  ;;  %1104 = vmatprep.subr.bf16.mxu0 %v1658_v12  ;;  %v1746_v11 = vld [vmem:[%s2318_s0 + $0x10] ss:$36 sps:$4 sm:$0xff]   ;;  %v1749_v12 = vld [vmem:[%s2318_s0 + $0x18] ss:$36 sps:$4 sm:$0xff]  }
  0x49   :  { %1157 = vmatprep.subr.bf16.mxu1 %v1661_v13  ;;  %v1752_v13 = vld [vmem:[%s2317_s1 + $0x470] ss:$8 sps:$4 sm:$0xff]  }
  0x4a   :  { %1037 = vmatmul.mubr.bf16.gmra.mxu0 %v1726_v28  ;;  %v1773_v28 = vld [vmem:[%s2317_s1 + $0x420] ss:$8 sps:$4 sm:$0xff]  }
  0x4b   :  { %1105 = vmatpush1.bf16.msra.mxu0 %v1656_v14  ;;  %1090 = vmatmul.mubr.bf16.gmra.mxu1 %v1727_v29  ;;  %v1757_v14 = vld [vmem:[%s2317_s1 + $0x464] ss:$8 sps:$4 sm:$0xff]   ;;  %v1778_v29 = vld [vmem:[%s2317_s1 + $0x414] ss:$8 sps:$4 sm:$0xff]  }
  0x4c   :  { %1158 = vmatpush1.bf16.msra.mxu1 %v1659_v15  ;;  %1106 = vmatprep.subr.bf16.mxu0 %v1664_v16  ;;  %v1758_v15 = vld [vmem:[%s2318_s0 + $0x5c] ss:$36 sps:$4 sm:$0xff]   ;;  %v1764_v16 = vld [vmem:[%s2318_s0 + $0x64] ss:$36 sps:$4 sm:$0xff]  }
  0x4d   :  { %1159 = vmatprep.subr.bf16.mxu1 %v1667_v17  ;;  %1132 = vmatprep.mubr.bf16.mxu0 %v1748_v41  ;;  %v1755_v17 = vld [vmem:[%s2317_s1 + $0x460] ss:$8 sps:$4 sm:$0xff]  }
  0x4e   :  { %1185 = vmatprep.mubr.bf16.mxu1 %v1751_v43 }
  0x4f   :  { %1107 = vmatpush1.bf16.msra.mxu0 %v1662_v18  ;;  %v1763_v18 = vld [vmem:[%s2317_s1 + $0x454] ss:$8 sps:$4 sm:$0xff]  }
  0x50   :  { %1160 = vmatpush1.bf16.msra.mxu1 %v1665_v19  ;;  %1108 = vmatprep.subr.bf16.mxu0 %v1670_v20  ;;  %v1760_v19 = vld [vmem:[%s2318_s0 + $0x58] ss:$36 sps:$4 sm:$0xff]   ;;  %v1766_v20 = vld [vmem:[%s2318_s0 + $0x60] ss:$36 sps:$4 sm:$0xff]  }
  0x51   :  { %1161 = vmatprep.subr.bf16.mxu1 %v1673_v21  ;;  %v1761_v21 = vld [vmem:[%s2317_s1 + $0x450] ss:$8 sps:$4 sm:$0xff]  }
  0x53   :  { %1109 = vmatpush1.bf16.msra.mxu0 %v1668_v22  ;;  %v1769_v22 = vld [vmem:[%s2317_s1 + $0x444] ss:$8 sps:$4 sm:$0xff]  }
  0x54   :  { %1162 = vmatpush1.bf16.msra.mxu1 %v1671_v23  ;;  %1110 = vmatprep.subr.bf16.mxu0 %v1676_v24  ;;  %v1767_v23 = vld [vmem:[%s2317_s1 + $0x440] ss:$8 sps:$4 sm:$0xff]   ;;  %v1772_v24 = vld [vmem:[%s2317_s1 + $0x434] ss:$8 sps:$4 sm:$0xff]  }
  0x55   :  { %1163 = vmatprep.subr.bf16.mxu1 %v1679_v25  ;;  %v1784_v25 = vmov 0  }
  0x57   :  { %1111 = vmatpush1.bf16.msra.mxu0 %v1674_v30  ;;  %v1776_v30 = vld [vmem:[%s2317_s1 + $0x410] ss:$8 sps:$4 sm:$0xff]  }
  0x58   :  { %1164 = vmatpush1.bf16.msra.mxu1 %v1677_v31  ;;  %1112 = vmatprep.subr.bf16.mxu0 %v1682_v32  ;;  %v1781_v31 = vld [vmem:[%s2317_s1 + $0x404] ss:$8 sps:$4 sm:$0xff]   ;;  %v1779_v32 = vld [vmem:[%s2317_s1 + $0x400] ss:$8 sps:$4 sm:$0xff]  }
  0x59   :  { %1165 = vmatprep.subr.bf16.mxu1 %v1685_v33  ;;  %v1782_v33 = vld [vmem:[%s2318_s0 + $0x20] ss:$36 sps:$4 sm:$0xff]  }
  0x5b   :  { %1113 = vmatpush1.bf16.msra.mxu0 %v1680_v34  ;;  %v1783_v34 = vld [vmem:[%s2318_s0 + $0x68] ss:$36 sps:$4 sm:$0xff]  }
  0x5c   :  { %1166 = vmatpush1.bf16.msra.mxu1 %v1683_v35  ;;  %1114 = vmatprep.subr.bf16.mxu0 %v1688_v36 }
  0x5d   :  { %1167 = vmatprep.subr.bf16.mxu1 %v1691_v37 }
  0x5f   :  { %1115 = vmatpush1.bf16.msra.mxu0 %v1686_v38 }
  0x60   :  { %1168 = vmatpush1.bf16.msra.mxu1 %v1689_v39  ;;  %1116 = vmatprep.subr.bf16.mxu0 %v1694_v40 }
  0x61   :  { %1169 = vmatprep.subr.bf16.mxu1 %v1697_v42 }
  0x63   :  { %1117 = vmatpush2.bf16.msra.mxu0 %v1692_v44 }
  0x64   :  { %1170 = vmatpush2.bf16.msra.mxu1 %v1695_v45  ;;  %1118 = vmatprep.subr.bf16.mxu0 %v1700_v46 }
  0x65   :  { %1171 = vmatprep.subr.bf16.mxu1 %v1703_v47 }
  0x67   :  { %1119 = vmatpush2.bf16.msra.mxu0 %v1698_v48 }
  0x68   :  { %1172 = vmatpush2.bf16.msra.mxu1 %v1701_v49  ;;  %1120 = vmatprep.subr.bf16.mxu0 %v1706_v50 }
  0x69   :  { %1173 = vmatprep.subr.bf16.mxu1 %v1709_v51 }
  0x6b   :  { %1121 = vmatpush2.bf16.msra.mxu0 %v1704_v52 }
  0x6c   :  { %1174 = vmatpush2.bf16.msra.mxu1 %v1707_v53  ;;  %1122 = vmatprep.subr.bf16.mxu0 %v1712_v54 }
  0x6d   :  { %1175 = vmatprep.subr.bf16.mxu1 %v1715_v55 }
  0x6f   :  { %1123 = vmatpush2.bf16.msra.mxu0 %v1710_v56 }
  0x70   :  { %1176 = vmatpush2.bf16.msra.mxu1 %v1713_v57  ;;  %1124 = vmatprep.subr.bf16.mxu0 %v1718_v58 }
  0x71   :  { %1177 = vmatprep.subr.bf16.mxu1 %v1721_v59 }
  0x73   :  { %1125 = vmatpush2.bf16.msra.mxu0 %v1716_v60 }
  0x74   :  { %1178 = vmatpush2.bf16.msra.mxu1 %v1719_v61  ;;  %1126 = vmatprep.subr.bf16.mxu0 %v1730_v62  ;;  %v1261_v61 = vlaneseq }
  0x75   :  { %1179 = vmatprep.subr.bf16.mxu1 %v1733_v63 }
  0x77   :  { %1127 = vmatpush2.bf16.msra.mxu0 %v1728_v0  ;;  %v1262_v0 = vshrl.u32 %v1261_v61, 7 }
  0x78   :  { %1180 = vmatpush2.bf16.msra.mxu1 %v1731_v1  ;;  %1128 = vmatprep.subr.bf16.mxu0 %v1736_v2 }
  0x79   :  { %1181 = vmatprep.subr.bf16.mxu1 %v1739_v3 }
  0x7b   :  { %1129 = vmatpush2.bf16.msra.mxu0 %v1734_v4 }
  0x7c   :  { %1182 = vmatpush2.bf16.msra.mxu1 %v1737_v5  ;;  %1130 = vmatprep.subr.bf16.mxu0 %v1742_v6  ;;  %v1263_v5 = vsub.s32 0, %v1262_v0  ;;  %v1267_v6 = vsub.s32 1, %v1262_v0 }
  0x7d   :  { %1183 = vmatprep.subr.bf16.mxu1 %v1745_v7 }
  0x7f   :  { %1131 = vmatpush2.bf16.msra.mxu0 %v1740_v8 }
  0x80   :  { %1184 = vmatpush2.bf16.msra.mxu1 %v1743_v9  ;;  %1206 = vmatprep.subr.bf16.mxu0 %v1754_v10 }
  0x81   :  { %1525 = vmatprep.subr.bf16.mxu1 %v1754_v10 }
  0x82   :  { %1133 = vmatmul.mubr.bf16.vlgmr.msra.gmra.mxu0 %v1746_v11  ;;  %v1259_v11 = vld [vmem:[%s2319_s2] sm:$0x3] }
  0x83   :  { %1186 = vmatmul.mubr.bf16.vlgmr.msra.gmra.mxu1 %v1749_v12  ;;  %1207 = vmatpush1.bf16.msra.mxu0 %v1752_v13  ;;  %v1279_v12 = vld [vmem:[%s2320_s3] sm:$0x3] }
  0x84   :  { %1533 = vmatpush1.bf16.msra.mxu1 %v1752_v13  ;;  %1208 = vmatprep.subr.bf16.mxu0 %v1757_v14 }
  0x85   :  { %1526 = vmatprep.subr.bf16.mxu1 %v1757_v14  ;;  %1142 = vmatprep.mubr.bf16.mxu0 %v1758_v15 }
  0x86   :  { %1195 = vmatprep.mubr.bf16.mxu1 %v1764_v16 }
  0x87   :  { %1209 = vmatpush1.bf16.msra.mxu0 %v1755_v17 }
  0x88   :  { %1534 = vmatpush1.bf16.msra.mxu1 %v1755_v17  ;;  %1210 = vmatprep.subr.bf16.mxu0 %v1763_v18 }
  0x89   :  { %1527 = vmatprep.subr.bf16.mxu1 %v1763_v18 }
  0x8a   :  { %1143 = vmatmul.mubr.bf16.gmra.mxu0 %v1760_v19  ;;  %v1264_v19 = vrot.slane %v1259_v11, %v1263_v5 }
  0x8b   :  { %1196 = vmatmul.mubr.bf16.gmra.mxu1 %v1766_v20  ;;  %1211 = vmatpush1.bf16.msra.mxu0 %v1761_v21 }
  0x8c   :  { %1535 = vmatpush1.bf16.msra.mxu1 %v1761_v21  ;;  %1212 = vmatprep.subr.bf16.mxu0 %v1769_v22 }
  0x8d   :  { %1528 = vmatprep.subr.bf16.mxu1 %v1769_v22  ;;  %1238 = vmatprep.mubr.bf16.mxu0 %v1784_v25  ;;  %v1284_v22 = vrot.slane %v1279_v12, %v1263_v5 }
  0x8e   :  { %1248 = vmatprep.mubr.bf16.mxu1 %v1784_v25 }
  0x8f   :  { %1213 = vmatpush1.bf16.msra.mxu0 %v1767_v23 }
  0x90   :  { %1536 = vmatpush1.bf16.msra.mxu1 %v1767_v23  ;;  %1214 = vmatprep.subr.bf16.mxu0 %v1772_v24  ;;  %v1268_v23 = vrot.slane %v1259_v11, %v1267_v6 }
  0x91   :  { %1529 = vmatprep.subr.bf16.mxu1 %v1772_v24 }
  0x93   :  { %1215 = vmatpush1.bf16.msra.mxu0 %v1770_v26 }
  0x94   :  { %1537 = vmatpush1.bf16.msra.mxu1 %v1770_v26  ;;  %1216 = vmatprep.subr.bf16.mxu0 %v1775_v27 }
  0x95   :  { %1530 = vmatprep.subr.bf16.mxu1 %v1775_v27 }
  0x97   :  { %1217 = vmatpush1.bf16.msra.mxu0 %v1773_v28 }
  0x98   :  { %1538 = vmatpush1.bf16.msra.mxu1 %v1773_v28  ;;  %1218 = vmatprep.subr.bf16.mxu0 %v1778_v29 }
  0x99   :  { %1531 = vmatprep.subr.bf16.mxu1 %v1778_v29 }
  0x9b   :  { %1219 = vmatpush1.bf16.msra.mxu0 %v1776_v30 }
  0x9c   :  { %1539 = vmatpush1.bf16.msra.mxu1 %v1776_v30  ;;  %1220 = vmatprep.subr.bf16.mxu0 %v1781_v31 }
  0x9d   :  { %1532 = vmatprep.subr.bf16.mxu1 %v1781_v31 }
  0x9f   :  { %1221 = vmatpush1.bf16.msra.mxu0 %v1779_v32 }
  0xa0   :  { %1540 = vmatpush1.bf16.msra.mxu1 %v1779_v32 }
  0xa2   :  { %1239 = vmatmul.mubr.bf16.vlgmr.msra.gmra.mxu0 %v1782_v33 }
  0xa3   :  { %1249 = vmatmul.mubr.bf16.vlgmr.msra.gmra.mxu1 %v1783_v34 }
 0x102   :  { %v1028_v35 = vpop.f32.mrf.mxu0 }
 0x103   :  { %v1081_v36 = vpop.f32.mrf.mxu1 }
 0x104   :  { %v1030_v37 = vpop.f32.mrf.mxu0  ;;  %v1082_v1 = vadd.f32 %v1081_v36, %v1028_v35 }
 0x105   :  { %v1083_v38 = vpop.f32.mrf.mxu1 }
 0x106   :  { %v1032_v39 = vpop.f32.mrf.mxu0  ;;  %v1084_v7 = vadd.f32 %v1083_v38, %v1030_v37 }
 0x107   :  { %v1085_v40 = vpop.f32.mrf.mxu1 }
 0x108   :  { %v1034_v41 = vpop.f32.mrf.mxu0  ;;  %v1086_v15 = vadd.f32 %v1085_v40, %v1032_v39 }
 0x109   :  { %v1087_v42 = vpop.f32.mrf.mxu1 }
 0x10a   :  { %v1038_v43 = vpop.f32.mrf.mxu0  ;;  %v1088_v24 = vadd.f32 %v1087_v42, %v1034_v41  ;;  %v1288_v41 = vrot.slane %v1279_v12, %v1267_v6 }
 0x10b   :  { %v1091_v44 = vpop.f32.mrf.mxu1 }
 0x10c   :  { %v1040_v45 = vpop.f32.mrf.mxu0  ;;  %v1092_v2 = vadd.f32 %v1091_v44, %v1038_v43 }
 0x10d   :  { %v1093_v46 = vpop.f32.mrf.mxu1 }
 0x10e   :  { %v1042_v47 = vpop.f32.mrf.mxu0  ;;  %v1094_v8 = vadd.f32 %v1093_v46, %v1040_v45 }
 0x10f   :  { %v1095_v48 = vpop.f32.mrf.mxu1 }
 0x110   :  { %v1044_v49 = vpop.f32.mrf.mxu0  ;;  %v1096_v16 = vadd.f32 %v1095_v48, %v1042_v47 }
 0x111   :  { %v1097_v50 = vpop.f32.mrf.mxu1 }
 0x112   :  { %v1098_v25 = vadd.f32 %v1097_v50, %v1044_v49 }
 0x142   :  { %v1134_v51 = vpop.f32.mrf.mxu0 }
 0x143   :  { %v1187_v52 = vpop.f32.mrf.mxu1  ;;  %v1135_v9 = vadd.f32 %v1134_v51, %v1082_v1 }
 0x144   :  { %v1136_v53 = vpop.f32.mrf.mxu0 }
 0x145   :  { %v1189_v54 = vpop.f32.mrf.mxu1  ;;  %v1137_v13 = vadd.f32 %v1136_v53, %v1084_v7  ;;  %v1188_v20 = vadd.f32 %v1187_v52, %v1135_v9 }
 0x146   :  { %v1138_v55 = vpop.f32.mrf.mxu0 }
 0x147   :  { %v1191_v56 = vpop.f32.mrf.mxu1  ;;  %v1139_v26 = vadd.f32 %v1138_v55, %v1086_v15  ;;  %v1190_v30 = vadd.f32 %v1189_v54, %v1137_v13 }
 0x148   :  { %v1140_v57 = vpop.f32.mrf.mxu0 }
 0x149   :  { %v2296_v58 = vpop.f32.mrf.mxu1  ;;  %v1141_v34 = vadd.f32 %v1140_v57, %v1088_v24  ;;  %v1192_v44 = vadd.f32 %v1191_v56, %v1139_v26 }
 0x14a   :  { %v1144_v59 = vpop.f32.mrf.mxu0 }
 0x14b   :  { %v1197_v60 = vpop.f32.mrf.mxu1  ;;  %v1145_v10 = vadd.f32 %v1144_v59, %v1092_v2  ;;  %v1194_v55 = vadd.f32 %v2296_v58, %v1141_v34 }
 0x14c   :  { %v1146_v62 = vpop.f32.mrf.mxu0 }
 0x14d   :  { %v1199_v63 = vpop.f32.mrf.mxu1  ;;  %v1147_v14 = vadd.f32 %v1146_v62, %v1094_v8  ;;  %v1198_v21 = vadd.f32 %v1197_v60, %v1145_v10 }
 0x14e   :  { %v1148_v3 = vpop.f32.mrf.mxu0 }
 0x14f   :  { %v1201_v4 = vpop.f32.mrf.mxu1  ;;  %v1149_v27 = vadd.f32 %v1148_v3, %v1096_v16  ;;  %v1200_v31 = vadd.f32 %v1199_v63, %v1147_v14 }
 0x150   :  { %v1150_v17 = vpop.f32.mrf.mxu0 }
 0x151   :  { %v1203_v18 = vpop.f32.mrf.mxu1  ;;  %v1151_v35 = vadd.f32 %v1150_v17, %v1098_v25  ;;  %v1202_v45 = vadd.f32 %v1201_v4, %v1149_v27 }
 0x153   :  { %v1204_v57 = vadd.f32 %v1203_v18, %v1151_v35 }
 0x162   :  { %v1240_v28 = vpop.f32.mrf.mxu0 }
 0x163   :  { %v1250_v29 = vpop.f32.mrf.mxu1  ;;  %v1241_v32 = vadd.f32 %v1240_v28, %v1188_v20 }
 0x164   :  { %v1251_v33 = vadd.f32 %v1250_v29, %v1198_v21  ;;  %v1242_v36 = vpop.f32.mrf.mxu0 }
 0x165   :  { %v1252_v37 = vpop.f32.mrf.mxu1  ;;  %v1271_v38 = vmul.f32 %v1264_v19, %v1241_v32  ;;  %v1243_v40 = vadd.f32 %v1242_v36, %v1190_v30 }
 0x166   :  { %v1275_v39 = vmul.f32 %v1264_v19, %v1251_v33  ;;  %v1253_v43 = vadd.f32 %v1252_v37, %v1200_v31  ;;  %v1244_v42 = vpop.f32.mrf.mxu0 }
 0x167   :  { %v1254_v46 = vpop.f32.mrf.mxu1  ;;  %v1291_v47 = vadd.f32 %v1284_v22, %v1271_v38  ;;  %v1272_v49 = vmul.f32 %v1268_v23, %v1243_v40  ;;  %v1245_v51 = vadd.f32 %v1244_v42, %v1192_v44 }
 0x168   :  { %v1295_v48 = vadd.f32 %v1284_v22, %v1275_v39  ;;  %v1276_v50 = vmul.f32 %v1268_v23, %v1253_v43  ;;  %v1255_v52 = vadd.f32 %v1254_v46, %v1202_v45  ;;  %v1246_v53 = vpop.f32.mrf.mxu0 }
 0x169   :  { %v1256_v54 = vpop.f32.mrf.mxu1  ;;  %v1307_v59 = vmul.f32 0.2, %v1291_v47  ;;  %v1292_v61 = vadd.f32 %v1288_v41, %v1272_v49  ;;  %v1273_v56 = vmul.f32 %v1264_v19, %v1245_v51  ;;  %vm1299_vm0 = vcmp.ge.f32.partialorder %v1291_v47, 0.0 }
 0x16a   :  { %v1311_v60 = vmul.f32 0.2, %v1295_v48  ;;  %v1296_v62 = vadd.f32 %v1288_v41, %v1276_v50  ;;  %v1277_v63 = vmul.f32 %v1264_v19, %v1255_v52  ;;  %vm1303_vm1 = vcmp.ge.f32.partialorder %v1295_v48, 0.0 }
 0x16b   :  { %v1247_v0 = vadd.f32 %v1246_v53, %v1194_v55  ;;  %v1257_v1 = vadd.f32 %v1256_v54, %v1204_v57  ;;  %vm1300_vm2 = vcmp.ge.f32.partialorder %v1292_v61, 0.0  ;;  %v1308_v2 = vmul.f32 0.2, %v1292_v61 }
 0x16c   :  { %vm1304_vm3 = vcmp.ge.f32.partialorder %v1296_v62, 0.0  ;;  %v1312_v3 = vmul.f32 0.2, %v1296_v62  ;;  %v1293_v4 = vadd.f32 %v1284_v22, %v1273_v56  ;;  %v1297_v5 = vadd.f32 %v1284_v22, %v1277_v63 }
 0x16d   :  { %v1274_v6 = vmul.f32 %v1268_v23, %v1247_v0  ;;  %v1278_v7 = vmul.f32 %v1268_v23, %v1257_v1  ;;  %v1315_v58 = vsel %vm1299_vm0, %v1291_v47, %v1307_v59  ;;  %v1319_v8 = vsel %vm1303_vm1, %v1295_v48, %v1311_v60 }
 0x16e   :  { %v1316_v9 = vsel %vm1300_vm2, %v1292_v61, %v1308_v2  ;;  %v1320_v10 = vsel %vm1304_vm3, %v1296_v62, %v1312_v3  ;;  %v1309_v13 = vmul.f32 0.2, %v1293_v4  ;;  %vm1301_vm4 = vcmp.ge.f32.partialorder %v1293_v4, 0.0 }
 0x16f   :  { %v1521_v11 = vpack.c.bf16 %v1316_v9, %v1315_v58  ;;  %v1523_v12 = vpack.c.bf16 %v1320_v10, %v1319_v8  ;;  %v1294_v14 = vadd.f32 %v1288_v41, %v1274_v6  ;;  %v1298_v15 = vadd.f32 %v1288_v41, %v1278_v7 }
 0x170   :  { %v1313_v16 = vmul.f32 0.2, %v1297_v5  ;;  %vm1305_vm5 = vcmp.ge.f32.partialorder %v1297_v5, 0.0  ;;  %v1317_v19 = vsel %vm1301_vm4, %v1293_v4, %v1309_v13 }
 0x171   :  { %1347 = vst [vmem:[%s2321_s4] sm:$0xff] %v1521_v11  ;;  %1349 = vst [vmem:[%s2321_s4 + $0x10] sm:$0xff] %v1523_v12  ;;  %vm1302_vm6 = vcmp.ge.f32.partialorder %v1294_v14, 0.0  ;;  %v1310_v17 = vmul.f32 0.2, %v1294_v14  ;;  %vm1306_vm7 = vcmp.ge.f32.partialorder %v1298_v15, 0.0 }
 0x172   :  { %v1314_v18 = vmul.f32 0.2, %v1298_v15  ;;  %v1321_v21 = vsel %vm1305_vm5, %v1297_v5, %v1313_v16 }
 0x173   :  { %v1318_v20 = vsel %vm1302_vm6, %v1294_v14, %v1310_v17 }
 0x174   :  { %v1522_v22 = vpack.c.bf16 %v1318_v20, %v1317_v19  ;;  %v1322_v23 = vsel %vm1306_vm7, %v1298_v15, %v1314_v18 }
 0x175   :  { %v1524_v24 = vpack.c.bf16 %v1322_v23, %v1321_v21 }
 0x176   :  { %1348 = vst [vmem:[%s2321_s4 + $0x8] sm:$0xff] %v1522_v22 }
 0x177   :  { %1350 = vst [vmem:[%s2321_s4 + $0x18] sm:$0xff] %v1524_v24 }

// kernel: discriminator_forward.12
= control target key start
LH: loop header
LB: loop body
LE: loop exit
PB: predicated region body
PF: predicated region fallthrough
CT: control target
= control target key end

     0   :  { %s8682_s1 = inlined_call_operand.vmem [shape: bf16[2304,512], index: 1, kind: input, shape index: {}]   ;;  %s8683_s0 = inlined_call_operand.vmem [shape: bf16[32,2304], index: 0, kind: input, shape index: {}]   ;;  %s8684_s2 = inlined_call_operand.vmem [shape: f32[1,512], index: 2, kind: input, shape index: {}]   ;;  %s8685_s3 = inlined_call_operand.vmem [shape: f32[1,512], index: 3, kind: input, shape index: {}]   ;;  %s8686_s4 = inlined_call_operand.vmem [shape: bf16[32,512], index: 4, kind: output, shape index: {}]  }
   0x1   :  { %v5455_v0 = vld [vmem:[%s8682_s1 + $0xe4] ss:$16 sps:$4 sm:$0xff]   ;;  %v5459_v2 = vld [vmem:[%s8682_s1 + $0xe0] ss:$16 sps:$4 sm:$0xff]  }
   0x2   :  { %v5457_v1 = vld [vmem:[%s8682_s1 + $0x2e4] ss:$16 sps:$4 sm:$0xff]   ;;  %3689 = vmatprep.subr.bf16.mxu0 %v5455_v0  ;;  %v5460_v3 = vld [vmem:[%s8682_s1 + $0x2e0] ss:$16 sps:$4 sm:$0xff]  }
   0x3   :  { %3742 = vmatprep.subr.bf16.mxu1 %v5457_v1  ;;  %v5461_v4 = vld [vmem:[%s8682_s1 + $0xc4] ss:$16 sps:$4 sm:$0xff]   ;;  %3690 = vmatpush1.bf16.msra.mxu0 %v5459_v2  ;;  %v5465_v6 = vld [vmem:[%s8682_s1 + $0xc0] ss:$16 sps:$4 sm:$0xff]  }
   0x4   :  { %3743 = vmatpush1.bf16.msra.mxu1 %v5460_v3  ;;  %v5463_v5 = vld [vmem:[%s8682_s1 + $0x2c4] ss:$16 sps:$4 sm:$0xff]   ;;  %3691 = vmatprep.subr.bf16.mxu0 %v5461_v4  ;;  %v5466_v7 = vld [vmem:[%s8682_s1 + $0x2c0] ss:$16 sps:$4 sm:$0xff]  }
   0x5   :  { %3744 = vmatprep.subr.bf16.mxu1 %v5463_v5  ;;  %v5467_v8 = vld [vmem:[%s8682_s1 + $0xa4] ss:$16 sps:$4 sm:$0xff]   ;;  %v5471_v10 = vld [vmem:[%s8682_s1 + $0xa0] ss:$16 sps:$4 sm:$0xff]  }
   0x6   :  { %v5469_v9 = vld [vmem:[%s8682_s1 + $0x2a4] ss:$16 sps:$4 sm:$0xff]   ;;  %v5472_v11 = vld [vmem:[%s8682_s1 + $0x2a0] ss:$16 sps:$4 sm:$0xff]  }
   0x7   :  { %3692 = vmatpush1.bf16.msra.mxu0 %v5465_v6  ;;  %v5473_v12 = vld [vmem:[%s8682_s1 + $0x84] ss:$16 sps:$4 sm:$0xff]   ;;  %v5477_v14 = vld [vmem:[%s8682_s1 + $0x80] ss:$16 sps:$4 sm:$0xff]  }
   0x8   :  { %3745 = vmatpush1.bf16.msra.mxu1 %v5466_v7  ;;  %3693 = vmatprep.subr.bf16.mxu0 %v5467_v8  ;;  %v5475_v13 = vld [vmem:[%s8682_s1 + $0x284] ss:$16 sps:$4 sm:$0xff]   ;;  %v5478_v15 = vld [vmem:[%s8682_s1 + $0x280] ss:$16 sps:$4 sm:$0xff]  }
   0x9   :  { %3746 = vmatprep.subr.bf16.mxu1 %v5469_v9  ;;  %v5479_v16 = vld [vmem:[%s8682_s1 + $0x64] ss:$16 sps:$4 sm:$0xff]   ;;  %v5483_v18 = vld [vmem:[%s8682_s1 + $0x60] ss:$16 sps:$4 sm:$0xff]  }
   0xa   :  { %v5481_v17 = vld [vmem:[%s8682_s1 + $0x264] ss:$16 sps:$4 sm:$0xff]   ;;  %v5484_v19 = vld [vmem:[%s8682_s1 + $0x260] ss:$16 sps:$4 sm:$0xff]  }
   0xb   :  { %3694 = vmatpush1.bf16.msra.mxu0 %v5471_v10  ;;  %v5485_v20 = vld [vmem:[%s8682_s1 + $0x44] ss:$16 sps:$4 sm:$0xff]   ;;  %v5489_v22 = vld [vmem:[%s8682_s1 + $0x40] ss:$16 sps:$4 sm:$0xff]  }
   0xc   :  { %3747 = vmatpush1.bf16.msra.mxu1 %v5472_v11  ;;  %3695 = vmatprep.subr.bf16.mxu0 %v5473_v12  ;;  %v5487_v21 = vld [vmem:[%s8682_s1 + $0x244] ss:$16 sps:$4 sm:$0xff]   ;;  %v5490_v23 = vld [vmem:[%s8682_s1 + $0x240] ss:$16 sps:$4 sm:$0xff]  }
   0xd   :  { %3748 = vmatprep.subr.bf16.mxu1 %v5475_v13  ;;  %v5491_v24 = vld [vmem:[%s8682_s1 + $0x24] ss:$16 sps:$4 sm:$0xff]   ;;  %v5495_v26 = vld [vmem:[%s8682_s1 + $0x20] ss:$16 sps:$4 sm:$0xff]  }
   0xe   :  { %v5493_v25 = vld [vmem:[%s8682_s1 + $0x224] ss:$16 sps:$4 sm:$0xff]   ;;  %v5496_v27 = vld [vmem:[%s8682_s1 + $0x220] ss:$16 sps:$4 sm:$0xff]  }
   0xf   :  { %3696 = vmatpush1.bf16.msra.mxu0 %v5477_v14  ;;  %v5497_v28 = vld [vmem:[%s8682_s1 + $0x4] ss:$16 sps:$4 sm:$0xff]   ;;  %v5501_v30 = vld [vmem:[%s8682_s1] ss:$16 sps:$4 sm:$0xff]  }
  0x10   :  { %3749 = vmatpush1.bf16.msra.mxu1 %v5478_v15  ;;  %3697 = vmatprep.subr.bf16.mxu0 %v5479_v16  ;;  %v5499_v29 = vld [vmem:[%s8682_s1 + $0x204] ss:$16 sps:$4 sm:$0xff]   ;;  %v5502_v31 = vld [vmem:[%s8682_s1 + $0x200] ss:$16 sps:$4 sm:$0xff]  }
  0x11   :  { %3750 = vmatprep.subr.bf16.mxu1 %v5481_v17  ;;  %v5503_v32 = vld [vmem:[%s8682_s1 + $0x1e4] ss:$16 sps:$4 sm:$0xff]   ;;  %v5507_v34 = vld [vmem:[%s8682_s1 + $0x1e0] ss:$16 sps:$4 sm:$0xff]  }
  0x12   :  { %v5505_v33 = vld [vmem:[%s8682_s1 + $0x3e4] ss:$16 sps:$4 sm:$0xff]   ;;  %v5508_v35 = vld [vmem:[%s8682_s1 + $0x3e0] ss:$16 sps:$4 sm:$0xff]  }
  0x13   :  { %3698 = vmatpush1.bf16.msra.mxu0 %v5483_v18  ;;  %v5509_v36 = vld [vmem:[%s8682_s1 + $0x1c4] ss:$16 sps:$4 sm:$0xff]   ;;  %v5513_v38 = vld [vmem:[%s8682_s1 + $0x1c0] ss:$16 sps:$4 sm:$0xff]  }
  0x14   :  { %3751 = vmatpush1.bf16.msra.mxu1 %v5484_v19  ;;  %3699 = vmatprep.subr.bf16.mxu0 %v5485_v20  ;;  %v5511_v37 = vld [vmem:[%s8682_s1 + $0x3c4] ss:$16 sps:$4 sm:$0xff]   ;;  %v5514_v39 = vld [vmem:[%s8682_s1 + $0x3c0] ss:$16 sps:$4 sm:$0xff]  }
  0x15   :  { %3752 = vmatprep.subr.bf16.mxu1 %v5487_v21  ;;  %v5515_v40 = vld [vmem:[%s8682_s1 + $0x1a4] ss:$16 sps:$4 sm:$0xff]   ;;  %v5519_v42 = vld [vmem:[%s8682_s1 + $0x1a0] ss:$16 sps:$4 sm:$0xff]  }
  0x16   :  { %v5517_v41 = vld [vmem:[%s8682_s1 + $0x3a4] ss:$16 sps:$4 sm:$0xff]   ;;  %v5520_v43 = vld [vmem:[%s8682_s1 + $0x3a0] ss:$16 sps:$4 sm:$0xff]  }
  0x17   :  { %3700 = vmatpush1.bf16.msra.mxu0 %v5489_v22  ;;  %v5521_v44 = vld [vmem:[%s8682_s1 + $0x184] ss:$16 sps:$4 sm:$0xff]   ;;  %v5525_v46 = vld [vmem:[%s8682_s1 + $0x180] ss:$16 sps:$4 sm:$0xff]  }
  0x18   :  { %3753 = vmatpush1.bf16.msra.mxu1 %v5490_v23  ;;  %3701 = vmatprep.subr.bf16.mxu0 %v5491_v24  ;;  %v5523_v45 = vld [vmem:[%s8682_s1 + $0x384] ss:$16 sps:$4 sm:$0xff]   ;;  %v5526_v47 = vld [vmem:[%s8682_s1 + $0x380] ss:$16 sps:$4 sm:$0xff]  }
  0x19   :  { %3754 = vmatprep.subr.bf16.mxu1 %v5493_v25  ;;  %v5527_v48 = vld [vmem:[%s8682_s1 + $0x164] ss:$16 sps:$4 sm:$0xff]   ;;  %v5531_v52 = vld [vmem:[%s8682_s1 + $0x160] ss:$16 sps:$4 sm:$0xff]  }
  0x1a   :  { %v5553_v49 = vld [vmem:[%s8683_s0 + $0x4] ss:$72 sps:$4 sm:$0xff]   ;;  %v5532_v53 = vld [vmem:[%s8682_s1 + $0x360] ss:$16 sps:$4 sm:$0xff]  }
  0x1b   :  { %3702 = vmatpush1.bf16.msra.mxu0 %v5495_v26  ;;  %v5529_v50 = vld [vmem:[%s8682_s1 + $0x364] ss:$16 sps:$4 sm:$0xff]   ;;  %3721 = vmatprep.mubr.bf16.mxu0 %v5553_v49  ;;  %v5537_v56 = vld [vmem:[%s8682_s1 + $0x140] ss:$16 sps:$4 sm:$0xff]  }
  0x1c   :  { %3755 = vmatpush1.bf16.msra.mxu1 %v5496_v27  ;;  %3703 = vmatprep.subr.bf16.mxu0 %v5497_v28  ;;  %v5556_v51 = vld [vmem:[%s8683_s0 + $0xc] ss:$72 sps:$4 sm:$0xff]   ;;  %v5538_v57 = vld [vmem:[%s8682_s1 + $0x340] ss:$16 sps:$4 sm:$0xff]   ;;  %v5637_v27 = vld [vmem:[%s8683_s0 + $0x9c] ss:$72 sps:$4 sm:$0xff]  }
  0x1d   :  { %3756 = vmatprep.subr.bf16.mxu1 %v5499_v29  ;;  %3774 = vmatprep.mubr.bf16.mxu1 %v5556_v51  ;;  %v5533_v54 = vld [vmem:[%s8682_s1 + $0x144] ss:$16 sps:$4 sm:$0xff]   ;;  %v5543_v60 = vld [vmem:[%s8682_s1 + $0x120] ss:$16 sps:$4 sm:$0xff]  }
  0x1e   :  { %v5535_v55 = vld [vmem:[%s8682_s1 + $0x344] ss:$16 sps:$4 sm:$0xff]   ;;  %v5544_v61 = vld [vmem:[%s8682_s1 + $0x320] ss:$16 sps:$4 sm:$0xff]  }
  0x1f   :  { %3704 = vmatpush1.bf16.msra.mxu0 %v5501_v30  ;;  %v5539_v58 = vld [vmem:[%s8682_s1 + $0x124] ss:$16 sps:$4 sm:$0xff]   ;;  %v5549_v0 = vld [vmem:[%s8682_s1 + $0x100] ss:$16 sps:$4 sm:$0xff]  }
  0x20   :  { %3757 = vmatpush1.bf16.msra.mxu1 %v5502_v31  ;;  %3705 = vmatprep.subr.bf16.mxu0 %v5503_v32  ;;  %v5541_v59 = vld [vmem:[%s8682_s1 + $0x324] ss:$16 sps:$4 sm:$0xff]   ;;  %v5550_v1 = vld [vmem:[%s8682_s1 + $0x300] ss:$16 sps:$4 sm:$0xff]  }
  0x21   :  { %3758 = vmatprep.subr.bf16.mxu1 %v5505_v33  ;;  %v5545_v62 = vld [vmem:[%s8682_s1 + $0x104] ss:$16 sps:$4 sm:$0xff]   ;;  %v5551_v4 = vld [vmem:[%s8683_s0] ss:$72 sps:$4 sm:$0xff]   ;;  %v5639_v28 = vld [vmem:[%s8683_s0 + $0x90] ss:$72 sps:$4 sm:$0xff]  }
  0x22   :  { %v5547_v63 = vld [vmem:[%s8682_s1 + $0x304] ss:$16 sps:$4 sm:$0xff]   ;;  %v5554_v5 = vld [vmem:[%s8683_s0 + $0x8] ss:$72 sps:$4 sm:$0xff]   ;;  %v5640_v29 = vld [vmem:[%s8683_s0 + $0x98] ss:$72 sps:$4 sm:$0xff]  }
  0x23   :  { %3706 = vmatpush2.bf16.msra.mxu0 %v5507_v34  ;;  %v5559_v2 = vld [vmem:[%s8682_s1 + $0x4e4] ss:$16 sps:$4 sm:$0xff]   ;;  %v5557_v6 = vld [vmem:[%s8682_s1 + $0x4e0] ss:$16 sps:$4 sm:$0xff]  }
  0x24   :  { %3759 = vmatpush2.bf16.msra.mxu1 %v5508_v35  ;;  %3707 = vmatprep.subr.bf16.mxu0 %v5509_v36  ;;  %v5562_v3 = vld [vmem:[%s8682_s1 + $0x6e4] ss:$16 sps:$4 sm:$0xff]   ;;  %v5560_v7 = vld [vmem:[%s8682_s1 + $0x6e0] ss:$16 sps:$4 sm:$0xff]  }
  0x25   :  { %3760 = vmatprep.subr.bf16.mxu1 %v5511_v37  ;;  %v5565_v8 = vld [vmem:[%s8682_s1 + $0x4c4] ss:$16 sps:$4 sm:$0xff]   ;;  %v5563_v10 = vld [vmem:[%s8682_s1 + $0x4c0] ss:$16 sps:$4 sm:$0xff]  }
  0x26   :  { %v5568_v9 = vld [vmem:[%s8682_s1 + $0x6c4] ss:$16 sps:$4 sm:$0xff]   ;;  %v5566_v11 = vld [vmem:[%s8682_s1 + $0x6c0] ss:$16 sps:$4 sm:$0xff]  }
  0x27   :  { %3708 = vmatpush2.bf16.msra.mxu0 %v5513_v38  ;;  %v5571_v12 = vld [vmem:[%s8682_s1 + $0x4a4] ss:$16 sps:$4 sm:$0xff]   ;;  %v5569_v14 = vld [vmem:[%s8682_s1 + $0x4a0] ss:$16 sps:$4 sm:$0xff]  }
  0x28   :  { %3761 = vmatpush2.bf16.msra.mxu1 %v5514_v39  ;;  %3709 = vmatprep.subr.bf16.mxu0 %v5515_v40  ;;  %v5574_v13 = vld [vmem:[%s8682_s1 + $0x6a4] ss:$16 sps:$4 sm:$0xff]   ;;  %v5572_v15 = vld [vmem:[%s8682_s1 + $0x6a0] ss:$16 sps:$4 sm:$0xff]  }
  0x29   :  { %3762 = vmatprep.subr.bf16.mxu1 %v5517_v41  ;;  %v5577_v16 = vld [vmem:[%s8682_s1 + $0x484] ss:$16 sps:$4 sm:$0xff]   ;;  %v5575_v18 = vld [vmem:[%s8682_s1 + $0x480] ss:$16 sps:$4 sm:$0xff]  }
  0x2a   :  { %v5580_v17 = vld [vmem:[%s8682_s1 + $0x684] ss:$16 sps:$4 sm:$0xff]   ;;  %v5578_v19 = vld [vmem:[%s8682_s1 + $0x680] ss:$16 sps:$4 sm:$0xff]  }
  0x2b   :  { %3710 = vmatpush2.bf16.msra.mxu0 %v5519_v42  ;;  %v5583_v20 = vld [vmem:[%s8682_s1 + $0x464] ss:$16 sps:$4 sm:$0xff]   ;;  %v5581_v22 = vld [vmem:[%s8682_s1 + $0x460] ss:$16 sps:$4 sm:$0xff]  }
  0x2c   :  { %3763 = vmatpush2.bf16.msra.mxu1 %v5520_v43  ;;  %3711 = vmatprep.subr.bf16.mxu0 %v5521_v44  ;;  %v5586_v21 = vld [vmem:[%s8682_s1 + $0x664] ss:$16 sps:$4 sm:$0xff]   ;;  %v5584_v23 = vld [vmem:[%s8682_s1 + $0x660] ss:$16 sps:$4 sm:$0xff]  }
  0x2d   :  { %3764 = vmatprep.subr.bf16.mxu1 %v5523_v45  ;;  %v5589_v24 = vld [vmem:[%s8682_s1 + $0x444] ss:$16 sps:$4 sm:$0xff]   ;;  %v5587_v30 = vld [vmem:[%s8682_s1 + $0x440] ss:$16 sps:$4 sm:$0xff]  }
  0x2e   :  { %v5592_v25 = vld [vmem:[%s8682_s1 + $0x644] ss:$16 sps:$4 sm:$0xff]   ;;  %v5590_v31 = vld [vmem:[%s8682_s1 + $0x640] ss:$16 sps:$4 sm:$0xff]  }
  0x2f   :  { %3712 = vmatpush2.bf16.msra.mxu0 %v5525_v46  ;;  %v5635_v26 = vld [vmem:[%s8683_s0 + $0x94] ss:$72 sps:$4 sm:$0xff]   ;;  %v5593_v34 = vld [vmem:[%s8682_s1 + $0x420] ss:$16 sps:$4 sm:$0xff]  }
  0x30   :  { %3765 = vmatpush2.bf16.msra.mxu1 %v5526_v47  ;;  %3713 = vmatprep.subr.bf16.mxu0 %v5527_v48  ;;  %v5595_v32 = vld [vmem:[%s8682_s1 + $0x424] ss:$16 sps:$4 sm:$0xff]   ;;  %v5596_v35 = vld [vmem:[%s8682_s1 + $0x620] ss:$16 sps:$4 sm:$0xff]  }
  0x31   :  { %3766 = vmatprep.subr.bf16.mxu1 %v5529_v50  ;;  %v5598_v33 = vld [vmem:[%s8682_s1 + $0x624] ss:$16 sps:$4 sm:$0xff]   ;;  %v5599_v38 = vld [vmem:[%s8682_s1 + $0x400] ss:$16 sps:$4 sm:$0xff]  }
  0x32   :  { %v5601_v36 = vld [vmem:[%s8682_s1 + $0x404] ss:$16 sps:$4 sm:$0xff]   ;;  %v5602_v39 = vld [vmem:[%s8682_s1 + $0x600] ss:$16 sps:$4 sm:$0xff]  }
  0x33   :  { %3714 = vmatpush2.bf16.msra.mxu0 %v5531_v52  ;;  %v5604_v37 = vld [vmem:[%s8682_s1 + $0x604] ss:$16 sps:$4 sm:$0xff]   ;;  %v5605_v44 = vld [vmem:[%s8682_s1 + $0x5e0] ss:$16 sps:$4 sm:$0xff]  }
  0x34   :  { %3767 = vmatpush2.bf16.msra.mxu1 %v5532_v53  ;;  %3715 = vmatprep.subr.bf16.mxu0 %v5533_v54  ;;  %v5607_v40 = vld [vmem:[%s8682_s1 + $0x5e4] ss:$16 sps:$4 sm:$0xff]   ;;  %v5608_v45 = vld [vmem:[%s8682_s1 + $0x7e0] ss:$16 sps:$4 sm:$0xff]  }
  0x35   :  { %3768 = vmatprep.subr.bf16.mxu1 %v5535_v55  ;;  %v5661_v41 = vld [vmem:[%s8683_s0 + $0x14] ss:$72 sps:$4 sm:$0xff]   ;;  %v5611_v48 = vld [vmem:[%s8682_s1 + $0x5c0] ss:$16 sps:$4 sm:$0xff]  }
  0x36   :  { %v5610_v42 = vld [vmem:[%s8682_s1 + $0x7e4] ss:$16 sps:$4 sm:$0xff]   ;;  %v5614_v49 = vld [vmem:[%s8682_s1 + $0x7c0] ss:$16 sps:$4 sm:$0xff]  }
  0x37   :  { %3716 = vmatpush2.bf16.msra.mxu0 %v5537_v56  ;;  %v5664_v43 = vld [vmem:[%s8683_s0 + $0x1c] ss:$72 sps:$4 sm:$0xff]   ;;  %v5617_v52 = vld [vmem:[%s8682_s1 + $0x5a0] ss:$16 sps:$4 sm:$0xff]  }
  0x38   :  { %3769 = vmatpush2.bf16.msra.mxu1 %v5538_v57  ;;  %3717 = vmatprep.subr.bf16.mxu0 %v5539_v58  ;;  %v5613_v46 = vld [vmem:[%s8682_s1 + $0x5c4] ss:$16 sps:$4 sm:$0xff]   ;;  %v5620_v53 = vld [vmem:[%s8682_s1 + $0x7a0] ss:$16 sps:$4 sm:$0xff]  }
  0x39   :  { %3770 = vmatprep.subr.bf16.mxu1 %v5541_v59  ;;  %v5616_v47 = vld [vmem:[%s8682_s1 + $0x7c4] ss:$16 sps:$4 sm:$0xff]   ;;  %v5623_v56 = vld [vmem:[%s8682_s1 + $0x580] ss:$16 sps:$4 sm:$0xff]  }
  0x3a   :  { %v5619_v50 = vld [vmem:[%s8682_s1 + $0x5a4] ss:$16 sps:$4 sm:$0xff]   ;;  %v5626_v57 = vld [vmem:[%s8682_s1 + $0x780] ss:$16 sps:$4 sm:$0xff]  }
  0x3b   :  { %3718 = vmatpush2.bf16.msra.mxu0 %v5543_v60  ;;  %v5622_v51 = vld [vmem:[%s8682_s1 + $0x7a4] ss:$16 sps:$4 sm:$0xff]   ;;  %v5629_v60 = vld [vmem:[%s8682_s1 + $0x560] ss:$16 sps:$4 sm:$0xff]  }
  0x3c   :  { %3771 = vmatpush2.bf16.msra.mxu1 %v5544_v61  ;;  %3719 = vmatprep.subr.bf16.mxu0 %v5545_v62  ;;  %v5625_v54 = vld [vmem:[%s8682_s1 + $0x584] ss:$16 sps:$4 sm:$0xff]   ;;  %v5632_v61 = vld [vmem:[%s8682_s1 + $0x760] ss:$16 sps:$4 sm:$0xff]  }
  0x3d   :  { %3772 = vmatprep.subr.bf16.mxu1 %v5547_v63  ;;  %v5628_v55 = vld [vmem:[%s8682_s1 + $0x784] ss:$16 sps:$4 sm:$0xff]  }
  0x3e   :  { %v5631_v58 = vld [vmem:[%s8682_s1 + $0x564] ss:$16 sps:$4 sm:$0xff]  }
  0x3f   :  { %3720 = vmatpush2.bf16.msra.mxu0 %v5549_v0  ;;  %v5634_v59 = vld [vmem:[%s8682_s1 + $0x764] ss:$16 sps:$4 sm:$0xff]   ;;  %v5641_v0 = vld [vmem:[%s8682_s1 + $0x540] ss:$16 sps:$4 sm:$0xff]  }
  0x40   :  { %3773 = vmatpush2.bf16.msra.mxu1 %v5550_v1  ;;  %3795 = vmatprep.subr.bf16.mxu0 %v5559_v2  ;;  %v5643_v62 = vld [vmem:[%s8682_s1 + $0x544] ss:$16 sps:$4 sm:$0xff]   ;;  %v5644_v1 = vld [vmem:[%s8682_s1 + $0x740] ss:$16 sps:$4 sm:$0xff]  }
  0x41   :  { %3848 = vmatprep.subr.bf16.mxu1 %v5562_v3  ;;  %v5646_v63 = vld [vmem:[%s8682_s1 + $0x744] ss:$16 sps:$4 sm:$0xff]  }
  0x42   :  { %3722 = vmatmul.mubr.bf16.vlgmr.msra.gmra.mxu0 %v5551_v4  ;;  %v5649_v2 = vld [vmem:[%s8682_s1 + $0x524] ss:$16 sps:$4 sm:$0xff]   ;;  %v5647_v4 = vld [vmem:[%s8682_s1 + $0x520] ss:$16 sps:$4 sm:$0xff]  }
  0x43   :  { %3775 = vmatmul.mubr.bf16.vlgmr.msra.gmra.mxu1 %v5554_v5  ;;  %3796 = vmatpush1.bf16.msra.mxu0 %v5557_v6  ;;  %v5652_v3 = vld [vmem:[%s8682_s1 + $0x724] ss:$16 sps:$4 sm:$0xff]   ;;  %v5650_v5 = vld [vmem:[%s8682_s1 + $0x720] ss:$16 sps:$4 sm:$0xff]  }
  0x44   :  { %3849 = vmatpush1.bf16.msra.mxu1 %v5560_v7  ;;  %3797 = vmatprep.subr.bf16.mxu0 %v5565_v8  ;;  %v5655_v6 = vld [vmem:[%s8682_s1 + $0x504] ss:$16 sps:$4 sm:$0xff]   ;;  %v5653_v8 = vld [vmem:[%s8682_s1 + $0x500] ss:$16 sps:$4 sm:$0xff]  }
  0x45   :  { %3850 = vmatprep.subr.bf16.mxu1 %v5568_v9  ;;  %3731 = vmatprep.mubr.bf16.mxu0 %v5635_v26  ;;  %v5658_v7 = vld [vmem:[%s8682_s1 + $0x704] ss:$16 sps:$4 sm:$0xff]   ;;  %v5656_v9 = vld [vmem:[%s8682_s1 + $0x700] ss:$16 sps:$4 sm:$0xff]  }
  0x46   :  { %3784 = vmatprep.mubr.bf16.mxu1 %v5637_v27  ;;  %v5683_v26 = vld [vmem:[%s8682_s1 + $0xaa0] ss:$16 sps:$4 sm:$0xff]  }
  0x47   :  { %3798 = vmatpush1.bf16.msra.mxu0 %v5563_v10  ;;  %v5667_v10 = vld [vmem:[%s8682_s1 + $0x8e4] ss:$16 sps:$4 sm:$0xff]   ;;  %v5688_v27 = vld [vmem:[%s8683_s0 + $0xa8] ss:$72 sps:$4 sm:$0xff]  }
  0x48   :  { %3851 = vmatpush1.bf16.msra.mxu1 %v5566_v11  ;;  %3799 = vmatprep.subr.bf16.mxu0 %v5571_v12  ;;  %v5670_v11 = vld [vmem:[%s8682_s1 + $0xae4] ss:$16 sps:$4 sm:$0xff]   ;;  %v5659_v12 = vld [vmem:[%s8683_s0 + $0x10] ss:$72 sps:$4 sm:$0xff]  }
  0x49   :  { %3852 = vmatprep.subr.bf16.mxu1 %v5574_v13  ;;  %v5662_v13 = vld [vmem:[%s8683_s0 + $0x18] ss:$72 sps:$4 sm:$0xff]  }
  0x4a   :  { %3732 = vmatmul.mubr.bf16.gmra.mxu0 %v5639_v28  ;;  %v5691_v28 = vld [vmem:[%s8682_s1 + $0x884] ss:$16 sps:$4 sm:$0xff]  }
  0x4b   :  { %3800 = vmatpush1.bf16.msra.mxu0 %v5569_v14  ;;  %3785 = vmatmul.mubr.bf16.gmra.mxu1 %v5640_v29  ;;  %v5665_v14 = vld [vmem:[%s8682_s1 + $0x8e0] ss:$16 sps:$4 sm:$0xff]   ;;  %v5694_v29 = vld [vmem:[%s8682_s1 + $0xa84] ss:$16 sps:$4 sm:$0xff]  }
  0x4c   :  { %3853 = vmatpush1.bf16.msra.mxu1 %v5572_v15  ;;  %3801 = vmatprep.subr.bf16.mxu0 %v5577_v16  ;;  %v5668_v15 = vld [vmem:[%s8682_s1 + $0xae0] ss:$16 sps:$4 sm:$0xff]   ;;  %v5673_v16 = vld [vmem:[%s8682_s1 + $0x8c4] ss:$16 sps:$4 sm:$0xff]  }
  0x4d   :  { %3854 = vmatprep.subr.bf16.mxu1 %v5580_v17  ;;  %3827 = vmatprep.mubr.bf16.mxu0 %v5661_v41  ;;  %v5676_v17 = vld [vmem:[%s8682_s1 + $0xac4] ss:$16 sps:$4 sm:$0xff]   ;;  %v5704_v41 = vld [vmem:[%s8682_s1 + $0xa40] ss:$16 sps:$4 sm:$0xff]  }
  0x4e   :  { %3880 = vmatprep.mubr.bf16.mxu1 %v5664_v43  ;;  %v5712_v43 = vld [vmem:[%s8682_s1 + $0xa24] ss:$16 sps:$4 sm:$0xff]  }
  0x4f   :  { %3802 = vmatpush1.bf16.msra.mxu0 %v5575_v18  ;;  %v5677_v18 = vld [vmem:[%s8683_s0 + $0xa4] ss:$72 sps:$4 sm:$0xff]  }
  0x50   :  { %3855 = vmatpush1.bf16.msra.mxu1 %v5578_v19  ;;  %3803 = vmatprep.subr.bf16.mxu0 %v5583_v20  ;;  %v5686_v19 = vld [vmem:[%s8683_s0 + $0xac] ss:$72 sps:$4 sm:$0xff]   ;;  %v5671_v20 = vld [vmem:[%s8682_s1 + $0x8c0] ss:$16 sps:$4 sm:$0xff]  }
  0x51   :  { %3856 = vmatprep.subr.bf16.mxu1 %v5586_v21  ;;  %v5674_v21 = vld [vmem:[%s8682_s1 + $0xac0] ss:$16 sps:$4 sm:$0xff]  }
  0x53   :  { %3804 = vmatpush1.bf16.msra.mxu0 %v5581_v22  ;;  %v5682_v22 = vld [vmem:[%s8682_s1 + $0x8a4] ss:$16 sps:$4 sm:$0xff]  }
  0x54   :  { %3857 = vmatpush1.bf16.msra.mxu1 %v5584_v23  ;;  %3805 = vmatprep.subr.bf16.mxu0 %v5589_v24  ;;  %v5685_v23 = vld [vmem:[%s8682_s1 + $0xaa4] ss:$16 sps:$4 sm:$0xff]   ;;  %v5679_v24 = vld [vmem:[%s8683_s0 + $0xa0] ss:$72 sps:$4 sm:$0xff]  }
  0x55   :  { %3858 = vmatprep.subr.bf16.mxu1 %v5592_v25  ;;  %v5680_v25 = vld [vmem:[%s8682_s1 + $0x8a0] ss:$16 sps:$4 sm:$0xff]  }
  0x57   :  { %3806 = vmatpush1.bf16.msra.mxu0 %v5587_v30  ;;  %v5689_v30 = vld [vmem:[%s8682_s1 + $0x880] ss:$16 sps:$4 sm:$0xff]  }
  0x58   :  { %3859 = vmatpush1.bf16.msra.mxu1 %v5590_v31  ;;  %3807 = vmatprep.subr.bf16.mxu0 %v5595_v32  ;;  %v5692_v31 = vld [vmem:[%s8682_s1 + $0xa80] ss:$16 sps:$4 sm:$0xff]   ;;  %v5697_v32 = vld [vmem:[%s8682_s1 + $0x864] ss:$16 sps:$4 sm:$0xff]  }
  0x59   :  { %3860 = vmatprep.subr.bf16.mxu1 %v5598_v33  ;;  %v5769_v33 = vld [vmem:[%s8683_s0 + $0x24] ss:$72 sps:$4 sm:$0xff]  }
  0x5b   :  { %3808 = vmatpush1.bf16.msra.mxu0 %v5593_v34  ;;  %v5700_v34 = vld [vmem:[%s8682_s1 + $0xa64] ss:$16 sps:$4 sm:$0xff]  }
  0x5c   :  { %3861 = vmatpush1.bf16.msra.mxu1 %v5596_v35  ;;  %3809 = vmatprep.subr.bf16.mxu0 %v5601_v36  ;;  %v5772_v35 = vld [vmem:[%s8683_s0 + $0x2c] ss:$72 sps:$4 sm:$0xff]   ;;  %v5695_v36 = vld [vmem:[%s8682_s1 + $0x860] ss:$16 sps:$4 sm:$0xff]  }
  0x5d   :  { %3862 = vmatprep.subr.bf16.mxu1 %v5604_v37  ;;  %v5698_v37 = vld [vmem:[%s8682_s1 + $0xa60] ss:$16 sps:$4 sm:$0xff]  }
  0x5f   :  { %3810 = vmatpush1.bf16.msra.mxu0 %v5599_v38  ;;  %v5703_v38 = vld [vmem:[%s8682_s1 + $0x844] ss:$16 sps:$4 sm:$0xff]  }
  0x60   :  { %3863 = vmatpush1.bf16.msra.mxu1 %v5602_v39  ;;  %3811 = vmatprep.subr.bf16.mxu0 %v5607_v40  ;;  %v5706_v39 = vld [vmem:[%s8682_s1 + $0xa44] ss:$16 sps:$4 sm:$0xff]   ;;  %v5701_v40 = vld [vmem:[%s8682_s1 + $0x840] ss:$16 sps:$4 sm:$0xff]  }
  0x61   :  { %3864 = vmatprep.subr.bf16.mxu1 %v5610_v42  ;;  %v5709_v42 = vld [vmem:[%s8682_s1 + $0x824] ss:$16 sps:$4 sm:$0xff]  }
  0x63   :  { %3812 = vmatpush2.bf16.msra.mxu0 %v5605_v44  ;;  %v5707_v44 = vld [vmem:[%s8682_s1 + $0x820] ss:$16 sps:$4 sm:$0xff]  }
  0x64   :  { %3865 = vmatpush2.bf16.msra.mxu1 %v5608_v45  ;;  %3813 = vmatprep.subr.bf16.mxu0 %v5613_v46  ;;  %v5710_v45 = vld [vmem:[%s8682_s1 + $0xa20] ss:$16 sps:$4 sm:$0xff]   ;;  %v5715_v46 = vld [vmem:[%s8682_s1 + $0x804] ss:$16 sps:$4 sm:$0xff]  }
  0x65   :  { %3866 = vmatprep.subr.bf16.mxu1 %v5616_v47  ;;  %v5718_v47 = vld [vmem:[%s8682_s1 + $0xa04] ss:$16 sps:$4 sm:$0xff]  }
  0x67   :  { %3814 = vmatpush2.bf16.msra.mxu0 %v5611_v48  ;;  %v5713_v48 = vld [vmem:[%s8682_s1 + $0x800] ss:$16 sps:$4 sm:$0xff]  }
  0x68   :  { %3867 = vmatpush2.bf16.msra.mxu1 %v5614_v49  ;;  %3815 = vmatprep.subr.bf16.mxu0 %v5619_v50  ;;  %v5716_v49 = vld [vmem:[%s8682_s1 + $0xa00] ss:$16 sps:$4 sm:$0xff]   ;;  %v5721_v50 = vld [vmem:[%s8682_s1 + $0x9e4] ss:$16 sps:$4 sm:$0xff]  }
  0x69   :  { %3868 = vmatprep.subr.bf16.mxu1 %v5622_v51  ;;  %v5724_v51 = vld [vmem:[%s8682_s1 + $0xbe4] ss:$16 sps:$4 sm:$0xff]  }
  0x6b   :  { %3816 = vmatpush2.bf16.msra.mxu0 %v5617_v52  ;;  %v5719_v52 = vld [vmem:[%s8682_s1 + $0x9e0] ss:$16 sps:$4 sm:$0xff]  }
  0x6c   :  { %3869 = vmatpush2.bf16.msra.mxu1 %v5620_v53  ;;  %3817 = vmatprep.subr.bf16.mxu0 %v5625_v54  ;;  %v5722_v53 = vld [vmem:[%s8682_s1 + $0xbe0] ss:$16 sps:$4 sm:$0xff]   ;;  %v5727_v54 = vld [vmem:[%s8682_s1 + $0x9c4] ss:$16 sps:$4 sm:$0xff]  }
  0x6d   :  { %3870 = vmatprep.subr.bf16.mxu1 %v5628_v55  ;;  %v5730_v55 = vld [vmem:[%s8682_s1 + $0xbc4] ss:$16 sps:$4 sm:$0xff]  }
  0x6f   :  { %3818 = vmatpush2.bf16.msra.mxu0 %v5623_v56  ;;  %v5725_v56 = vld [vmem:[%s8682_s1 + $0x9c0] ss:$16 sps:$4 sm:$0xff]  }
  0x70   :  { %3871 = vmatpush2.bf16.msra.mxu1 %v5626_v57  ;;  %3819 = vmatprep.subr.bf16.mxu0 %v5631_v58  ;;  %v5728_v57 = vld [vmem:[%s8682_s1 + $0xbc0] ss:$16 sps:$4 sm:$0xff]   ;;  %v5733_v58 = vld [vmem:[%s8682_s1 + $0x9a4] ss:$16 sps:$4 sm:$0xff]  }
  0x71   :  { %3872 = vmatprep.subr.bf16.mxu1 %v5634_v59  ;;  %v5736_v59 = vld [vmem:[%s8682_s1 + $0xba4] ss:$16 sps:$4 sm:$0xff]  }
  0x73   :  { %3820 = vmatpush2.bf16.msra.mxu0 %v5629_v60  ;;  %v5731_v60 = vld [vmem:[%s8682_s1 + $0x9a0] ss:$16 sps:$4 sm:$0xff]  }
  0x74   :  { %3873 = vmatpush2.bf16.msra.mxu1 %v5632_v61  ;;  %3821 = vmatprep.subr.bf16.mxu0 %v5643_v62  ;;  %v5734_v61 = vld [vmem:[%s8682_s1 + $0xba0] ss:$16 sps:$4 sm:$0xff]   ;;  %v5739_v62 = vld [vmem:[%s8682_s1 + $0x984] ss:$16 sps:$4 sm:$0xff]  }
  0x75   :  { %3874 = vmatprep.subr.bf16.mxu1 %v5646_v63  ;;  %v5742_v63 = vld [vmem:[%s8682_s1 + $0xb84] ss:$16 sps:$4 sm:$0xff]  }
  0x77   :  { %3822 = vmatpush2.bf16.msra.mxu0 %v5641_v0  ;;  %v5737_v0 = vld [vmem:[%s8682_s1 + $0x980] ss:$16 sps:$4 sm:$0xff]  }
  0x78   :  { %3875 = vmatpush2.bf16.msra.mxu1 %v5644_v1  ;;  %3823 = vmatprep.subr.bf16.mxu0 %v5649_v2  ;;  %v5740_v1 = vld [vmem:[%s8682_s1 + $0xb80] ss:$16 sps:$4 sm:$0xff]   ;;  %v5745_v2 = vld [vmem:[%s8682_s1 + $0x964] ss:$16 sps:$4 sm:$0xff]  }
  0x79   :  { %3876 = vmatprep.subr.bf16.mxu1 %v5652_v3  ;;  %v5748_v3 = vld [vmem:[%s8682_s1 + $0xb64] ss:$16 sps:$4 sm:$0xff]  }
  0x7b   :  { %3824 = vmatpush2.bf16.msra.mxu0 %v5647_v4  ;;  %v5743_v4 = vld [vmem:[%s8682_s1 + $0x960] ss:$16 sps:$4 sm:$0xff]  }
  0x7c   :  { %3877 = vmatpush2.bf16.msra.mxu1 %v5650_v5  ;;  %3825 = vmatprep.subr.bf16.mxu0 %v5655_v6  ;;  %v5746_v5 = vld [vmem:[%s8682_s1 + $0xb60] ss:$16 sps:$4 sm:$0xff]   ;;  %v5751_v6 = vld [vmem:[%s8682_s1 + $0x944] ss:$16 sps:$4 sm:$0xff]  }
  0x7d   :  { %3878 = vmatprep.subr.bf16.mxu1 %v5658_v7  ;;  %v5754_v7 = vld [vmem:[%s8682_s1 + $0xb44] ss:$16 sps:$4 sm:$0xff]  }
  0x7f   :  { %3826 = vmatpush2.bf16.msra.mxu0 %v5653_v8  ;;  %v5749_v8 = vld [vmem:[%s8682_s1 + $0x940] ss:$16 sps:$4 sm:$0xff]  }
  0x80   :  { %3879 = vmatpush2.bf16.msra.mxu1 %v5656_v9  ;;  %3901 = vmatprep.subr.bf16.mxu0 %v5667_v10  ;;  %v5752_v9 = vld [vmem:[%s8682_s1 + $0xb40] ss:$16 sps:$4 sm:$0xff]   ;;  %v5757_v10 = vld [vmem:[%s8682_s1 + $0x924] ss:$16 sps:$4 sm:$0xff]  }
  0x81   :  { %3954 = vmatprep.subr.bf16.mxu1 %v5670_v11  ;;  %v5760_v11 = vld [vmem:[%s8682_s1 + $0xb24] ss:$16 sps:$4 sm:$0xff]  }
  0x82   :  { %3828 = vmatmul.mubr.bf16.vlgmr.msra.gmra.mxu0 %v5659_v12  ;;  %v5755_v12 = vld [vmem:[%s8682_s1 + $0x920] ss:$16 sps:$4 sm:$0xff]  }
  0x83   :  { %3881 = vmatmul.mubr.bf16.vlgmr.msra.gmra.mxu1 %v5662_v13  ;;  %3902 = vmatpush1.bf16.msra.mxu0 %v5665_v14  ;;  %v5758_v13 = vld [vmem:[%s8682_s1 + $0xb20] ss:$16 sps:$4 sm:$0xff]   ;;  %v5763_v14 = vld [vmem:[%s8682_s1 + $0x904] ss:$16 sps:$4 sm:$0xff]  }
  0x84   :  { %3955 = vmatpush1.bf16.msra.mxu1 %v5668_v15  ;;  %3903 = vmatprep.subr.bf16.mxu0 %v5673_v16  ;;  %v5766_v15 = vld [vmem:[%s8682_s1 + $0xb04] ss:$16 sps:$4 sm:$0xff]   ;;  %v5761_v16 = vld [vmem:[%s8682_s1 + $0x900] ss:$16 sps:$4 sm:$0xff]  }
  0x85   :  { %3956 = vmatprep.subr.bf16.mxu1 %v5676_v17  ;;  %3837 = vmatprep.mubr.bf16.mxu0 %v5677_v18  ;;  %v5764_v17 = vld [vmem:[%s8682_s1 + $0xb00] ss:$16 sps:$4 sm:$0xff]   ;;  %v5775_v18 = vld [vmem:[%s8682_s1 + $0xce4] ss:$16 sps:$4 sm:$0xff]  }
  0x86   :  { %3890 = vmatprep.mubr.bf16.mxu1 %v5686_v19  ;;  %v5778_v19 = vld [vmem:[%s8682_s1 + $0xee4] ss:$16 sps:$4 sm:$0xff]  }
  0x87   :  { %3904 = vmatpush1.bf16.msra.mxu0 %v5671_v20  ;;  %v5767_v20 = vld [vmem:[%s8683_s0 + $0x20] ss:$72 sps:$4 sm:$0xff]  }
  0x88   :  { %3957 = vmatpush1.bf16.msra.mxu1 %v5674_v21  ;;  %3905 = vmatprep.subr.bf16.mxu0 %v5682_v22  ;;  %v5770_v21 = vld [vmem:[%s8683_s0 + $0x28] ss:$72 sps:$4 sm:$0xff]  }
  0x89   :  { %3958 = vmatprep.subr.bf16.mxu1 %v5685_v23  ;;  %v5773_v22 = vld [vmem:[%s8682_s1 + $0xce0] ss:$16 sps:$4 sm:$0xff]  }
  0x8a   :  { %3838 = vmatmul.mubr.bf16.gmra.mxu0 %v5679_v24  ;;  %v5776_v23 = vld [vmem:[%s8682_s1 + $0xee0] ss:$16 sps:$4 sm:$0xff]   ;;  %v5781_v24 = vld [vmem:[%s8682_s1 + $0xcc4] ss:$16 sps:$4 sm:$0xff]  }
  0x8b   :  { %3891 = vmatmul.mubr.bf16.gmra.mxu1 %v5688_v27  ;;  %3906 = vmatpush1.bf16.msra.mxu0 %v5680_v25  ;;  %v5784_v25 = vld [vmem:[%s8682_s1 + $0xec4] ss:$16 sps:$4 sm:$0xff]  }
  0x8c   :  { %3959 = vmatpush1.bf16.msra.mxu1 %v5683_v26  ;;  %3907 = vmatprep.subr.bf16.mxu0 %v5691_v28  ;;  %v5785_v26 = vld [vmem:[%s8683_s0 + $0xb4] ss:$72 sps:$4 sm:$0xff]   ;;  %v5779_v28 = vld [vmem:[%s8682_s1 + $0xcc0] ss:$16 sps:$4 sm:$0xff]  }
  0x8d   :  { %3960 = vmatprep.subr.bf16.mxu1 %v5694_v29  ;;  %3933 = vmatprep.mubr.bf16.mxu0 %v5769_v33  ;;  %v5794_v27 = vld [vmem:[%s8683_s0 + $0xbc] ss:$72 sps:$4 sm:$0xff]   ;;  %v5782_v29 = vld [vmem:[%s8682_s1 + $0xec0] ss:$16 sps:$4 sm:$0xff]  }
  0x8e   :  { %3986 = vmatprep.mubr.bf16.mxu1 %v5772_v35  ;;  %v5788_v33 = vld [vmem:[%s8682_s1 + $0xca0] ss:$16 sps:$4 sm:$0xff]  }
  0x8f   :  { %3908 = vmatpush1.bf16.msra.mxu0 %v5689_v30  ;;  %v5790_v30 = vld [vmem:[%s8682_s1 + $0xca4] ss:$16 sps:$4 sm:$0xff]   ;;  %v5796_v35 = vld [vmem:[%s8683_s0 + $0xb8] ss:$72 sps:$4 sm:$0xff]  }
  0x90   :  { %3961 = vmatpush1.bf16.msra.mxu1 %v5692_v31  ;;  %3909 = vmatprep.subr.bf16.mxu0 %v5697_v32  ;;  %v5793_v31 = vld [vmem:[%s8682_s1 + $0xea4] ss:$16 sps:$4 sm:$0xff]   ;;  %v5787_v32 = vld [vmem:[%s8683_s0 + $0xb0] ss:$72 sps:$4 sm:$0xff]  }
  0x91   :  { %3962 = vmatprep.subr.bf16.mxu1 %v5700_v34  ;;  %v5791_v34 = vld [vmem:[%s8682_s1 + $0xea0] ss:$16 sps:$4 sm:$0xff]  }
  0x93   :  { %3910 = vmatpush1.bf16.msra.mxu0 %v5695_v36  ;;  %v5799_v36 = vld [vmem:[%s8682_s1 + $0xc84] ss:$16 sps:$4 sm:$0xff]  }
  0x94   :  { %3963 = vmatpush1.bf16.msra.mxu1 %v5698_v37  ;;  %3911 = vmatprep.subr.bf16.mxu0 %v5703_v38  ;;  %v5802_v37 = vld [vmem:[%s8682_s1 + $0xe84] ss:$16 sps:$4 sm:$0xff]  }
  0x95   :  { %3964 = vmatprep.subr.bf16.mxu1 %v5706_v39  ;;  %v5877_v38 = vld [vmem:[%s8683_s0 + $0x34] ss:$72 sps:$4 sm:$0xff]  }
  0x96   :  { %v5880_v39 = vld [vmem:[%s8683_s0 + $0x3c] ss:$72 sps:$4 sm:$0xff]  }
  0x97   :  { %3912 = vmatpush1.bf16.msra.mxu0 %v5701_v40  ;;  %v5797_v40 = vld [vmem:[%s8682_s1 + $0xc80] ss:$16 sps:$4 sm:$0xff]  }
  0x98   :  { %3965 = vmatpush1.bf16.msra.mxu1 %v5704_v41  ;;  %3913 = vmatprep.subr.bf16.mxu0 %v5709_v42  ;;  %v5800_v41 = vld [vmem:[%s8682_s1 + $0xe80] ss:$16 sps:$4 sm:$0xff]   ;;  %v5805_v42 = vld [vmem:[%s8682_s1 + $0xc64] ss:$16 sps:$4 sm:$0xff]  }
  0x99   :  { %3966 = vmatprep.subr.bf16.mxu1 %v5712_v43  ;;  %v5808_v43 = vld [vmem:[%s8682_s1 + $0xe64] ss:$16 sps:$4 sm:$0xff]  }
  0x9b   :  { %3914 = vmatpush1.bf16.msra.mxu0 %v5707_v44  ;;  %v5803_v44 = vld [vmem:[%s8682_s1 + $0xc60] ss:$16 sps:$4 sm:$0xff]  }
  0x9c   :  { %3967 = vmatpush1.bf16.msra.mxu1 %v5710_v45  ;;  %3915 = vmatprep.subr.bf16.mxu0 %v5715_v46  ;;  %v5806_v45 = vld [vmem:[%s8682_s1 + $0xe60] ss:$16 sps:$4 sm:$0xff]   ;;  %v5811_v46 = vld [vmem:[%s8682_s1 + $0xc44] ss:$16 sps:$4 sm:$0xff]  }
  0x9d   :  { %3968 = vmatprep.subr.bf16.mxu1 %v5718_v47  ;;  %v5814_v47 = vld [vmem:[%s8682_s1 + $0xe44] ss:$16 sps:$4 sm:$0xff]  }
  0x9f   :  { %3916 = vmatpush1.bf16.msra.mxu0 %v5713_v48  ;;  %v5809_v48 = vld [vmem:[%s8682_s1 + $0xc40] ss:$16 sps:$4 sm:$0xff]  }
  0xa0   :  { %3969 = vmatpush1.bf16.msra.mxu1 %v5716_v49  ;;  %3917 = vmatprep.subr.bf16.mxu0 %v5721_v50  ;;  %v5812_v49 = vld [vmem:[%s8682_s1 + $0xe40] ss:$16 sps:$4 sm:$0xff]   ;;  %v5817_v50 = vld [vmem:[%s8682_s1 + $0xc24] ss:$16 sps:$4 sm:$0xff]  }
  0xa1   :  { %3970 = vmatprep.subr.bf16.mxu1 %v5724_v51  ;;  %v5820_v51 = vld [vmem:[%s8682_s1 + $0xe24] ss:$16 sps:$4 sm:$0xff]  }
  0xa3   :  { %3918 = vmatpush2.bf16.msra.mxu0 %v5719_v52  ;;  %v5815_v52 = vld [vmem:[%s8682_s1 + $0xc20] ss:$16 sps:$4 sm:$0xff]  }
  0xa4   :  { %3971 = vmatpush2.bf16.msra.mxu1 %v5722_v53  ;;  %3919 = vmatprep.subr.bf16.mxu0 %v5727_v54  ;;  %v5818_v53 = vld [vmem:[%s8682_s1 + $0xe20] ss:$16 sps:$4 sm:$0xff]   ;;  %v5823_v54 = vld [vmem:[%s8682_s1 + $0xc04] ss:$16 sps:$4 sm:$0xff]  }
  0xa5   :  { %3972 = vmatprep.subr.bf16.mxu1 %v5730_v55  ;;  %v5826_v55 = vld [vmem:[%s8682_s1 + $0xe04] ss:$16 sps:$4 sm:$0xff]  }
  0xa7   :  { %3920 = vmatpush2.bf16.msra.mxu0 %v5725_v56  ;;  %v5821_v56 = vld [vmem:[%s8682_s1 + $0xc00] ss:$16 sps:$4 sm:$0xff]  }
  0xa8   :  { %3973 = vmatpush2.bf16.msra.mxu1 %v5728_v57  ;;  %3921 = vmatprep.subr.bf16.mxu0 %v5733_v58  ;;  %v5824_v57 = vld [vmem:[%s8682_s1 + $0xe00] ss:$16 sps:$4 sm:$0xff]   ;;  %v5829_v58 = vld [vmem:[%s8682_s1 + $0xde4] ss:$16 sps:$4 sm:$0xff]  }
  0xa9   :  { %3974 = vmatprep.subr.bf16.mxu1 %v5736_v59  ;;  %v5832_v59 = vld [vmem:[%s8682_s1 + $0xfe4] ss:$16 sps:$4 sm:$0xff]  }
  0xab   :  { %3922 = vmatpush2.bf16.msra.mxu0 %v5731_v60  ;;  %v5827_v60 = vld [vmem:[%s8682_s1 + $0xde0] ss:$16 sps:$4 sm:$0xff]  }
  0xac   :  { %3975 = vmatpush2.bf16.msra.mxu1 %v5734_v61  ;;  %3923 = vmatprep.subr.bf16.mxu0 %v5739_v62  ;;  %v5830_v61 = vld [vmem:[%s8682_s1 + $0xfe0] ss:$16 sps:$4 sm:$0xff]   ;;  %v5835_v62 = vld [vmem:[%s8682_s1 + $0xdc4] ss:$16 sps:$4 sm:$0xff]  }
  0xad   :  { %3976 = vmatprep.subr.bf16.mxu1 %v5742_v63  ;;  %v5838_v63 = vld [vmem:[%s8682_s1 + $0xfc4] ss:$16 sps:$4 sm:$0xff]  }
  0xaf   :  { %3924 = vmatpush2.bf16.msra.mxu0 %v5737_v0  ;;  %v5833_v0 = vld [vmem:[%s8682_s1 + $0xdc0] ss:$16 sps:$4 sm:$0xff]  }
  0xb0   :  { %3977 = vmatpush2.bf16.msra.mxu1 %v5740_v1  ;;  %3925 = vmatprep.subr.bf16.mxu0 %v5745_v2  ;;  %v5836_v1 = vld [vmem:[%s8682_s1 + $0xfc0] ss:$16 sps:$4 sm:$0xff]   ;;  %v5841_v2 = vld [vmem:[%s8682_s1 + $0xda4] ss:$16 sps:$4 sm:$0xff]  }
  0xb1   :  { %3978 = vmatprep.subr.bf16.mxu1 %v5748_v3  ;;  %v5844_v3 = vld [vmem:[%s8682_s1 + $0xfa4] ss:$16 sps:$4 sm:$0xff]  }
  0xb3   :  { %3926 = vmatpush2.bf16.msra.mxu0 %v5743_v4  ;;  %v5839_v4 = vld [vmem:[%s8682_s1 + $0xda0] ss:$16 sps:$4 sm:$0xff]  }
  0xb4   :  { %3979 = vmatpush2.bf16.msra.mxu1 %v5746_v5  ;;  %3927 = vmatprep.subr.bf16.mxu0 %v5751_v6  ;;  %v5842_v5 = vld [vmem:[%s8682_s1 + $0xfa0] ss:$16 sps:$4 sm:$0xff]   ;;  %v5847_v6 = vld [vmem:[%s8682_s1 + $0xd84] ss:$16 sps:$4 sm:$0xff]  }
  0xb5   :  { %3980 = vmatprep.subr.bf16.mxu1 %v5754_v7  ;;  %v5850_v7 = vld [vmem:[%s8682_s1 + $0xf84] ss:$16 sps:$4 sm:$0xff]  }
  0xb7   :  { %3928 = vmatpush2.bf16.msra.mxu0 %v5749_v8  ;;  %v5845_v8 = vld [vmem:[%s8682_s1 + $0xd80] ss:$16 sps:$4 sm:$0xff]  }
  0xb8   :  { %3981 = vmatpush2.bf16.msra.mxu1 %v5752_v9  ;;  %3929 = vmatprep.subr.bf16.mxu0 %v5757_v10  ;;  %v5848_v9 = vld [vmem:[%s8682_s1 + $0xf80] ss:$16 sps:$4 sm:$0xff]   ;;  %v5853_v10 = vld [vmem:[%s8682_s1 + $0xd64] ss:$16 sps:$4 sm:$0xff]  }
  0xb9   :  { %3982 = vmatprep.subr.bf16.mxu1 %v5760_v11  ;;  %v5856_v11 = vld [vmem:[%s8682_s1 + $0xf64] ss:$16 sps:$4 sm:$0xff]  }
  0xbb   :  { %3930 = vmatpush2.bf16.msra.mxu0 %v5755_v12  ;;  %v5851_v12 = vld [vmem:[%s8682_s1 + $0xd60] ss:$16 sps:$4 sm:$0xff]  }
  0xbc   :  { %3983 = vmatpush2.bf16.msra.mxu1 %v5758_v13  ;;  %3931 = vmatprep.subr.bf16.mxu0 %v5763_v14  ;;  %v5854_v13 = vld [vmem:[%s8682_s1 + $0xf60] ss:$16 sps:$4 sm:$0xff]   ;;  %v5859_v14 = vld [vmem:[%s8682_s1 + $0xd44] ss:$16 sps:$4 sm:$0xff]  }
  0xbd   :  { %3984 = vmatprep.subr.bf16.mxu1 %v5766_v15  ;;  %v5862_v15 = vld [vmem:[%s8682_s1 + $0xf44] ss:$16 sps:$4 sm:$0xff]  }
  0xbf   :  { %3932 = vmatpush2.bf16.msra.mxu0 %v5761_v16  ;;  %v5857_v16 = vld [vmem:[%s8682_s1 + $0xd40] ss:$16 sps:$4 sm:$0xff]  }
  0xc0   :  { %3985 = vmatpush2.bf16.msra.mxu1 %v5764_v17  ;;  %4007 = vmatprep.subr.bf16.mxu0 %v5775_v18  ;;  %v5860_v17 = vld [vmem:[%s8682_s1 + $0xf40] ss:$16 sps:$4 sm:$0xff]   ;;  %v5865_v18 = vld [vmem:[%s8682_s1 + $0xd24] ss:$16 sps:$4 sm:$0xff]  }
  0xc1   :  { %4060 = vmatprep.subr.bf16.mxu1 %v5778_v19  ;;  %v5868_v19 = vld [vmem:[%s8682_s1 + $0xf24] ss:$16 sps:$4 sm:$0xff]  }
  0xc2   :  { %3934 = vmatmul.mubr.bf16.vlgmr.msra.gmra.mxu0 %v5767_v20  ;;  %v5863_v20 = vld [vmem:[%s8682_s1 + $0xd20] ss:$16 sps:$4 sm:$0xff]  }
  0xc3   :  { %3987 = vmatmul.mubr.bf16.vlgmr.msra.gmra.mxu1 %v5770_v21  ;;  %4008 = vmatpush1.bf16.msra.mxu0 %v5773_v22  ;;  %v5866_v21 = vld [vmem:[%s8682_s1 + $0xf20] ss:$16 sps:$4 sm:$0xff]   ;;  %v5871_v22 = vld [vmem:[%s8682_s1 + $0xd04] ss:$16 sps:$4 sm:$0xff]  }
  0xc4   :  { %4061 = vmatpush1.bf16.msra.mxu1 %v5776_v23  ;;  %4009 = vmatprep.subr.bf16.mxu0 %v5781_v24  ;;  %v5874_v23 = vld [vmem:[%s8682_s1 + $0xf04] ss:$16 sps:$4 sm:$0xff]   ;;  %v5869_v24 = vld [vmem:[%s8682_s1 + $0xd00] ss:$16 sps:$4 sm:$0xff]  }
  0xc5   :  { %4062 = vmatprep.subr.bf16.mxu1 %v5784_v25  ;;  %3943 = vmatprep.mubr.bf16.mxu0 %v5785_v26  ;;  %v5872_v25 = vld [vmem:[%s8682_s1 + $0xf00] ss:$16 sps:$4 sm:$0xff]   ;;  %v5883_v26 = vld [vmem:[%s8682_s1 + $0x10e4] ss:$16 sps:$4 sm:$0xff]  }
  0xc6   :  { %3996 = vmatprep.mubr.bf16.mxu1 %v5794_v27  ;;  %v5886_v27 = vld [vmem:[%s8682_s1 + $0xec] ss:$16 sps:$4 sm:$0xff]  }
  0xc7   :  { %4010 = vmatpush1.bf16.msra.mxu0 %v5779_v28  ;;  %v5875_v28 = vld [vmem:[%s8683_s0 + $0x30] ss:$72 sps:$4 sm:$0xff]  }
  0xc8   :  { %4063 = vmatpush1.bf16.msra.mxu1 %v5782_v29  ;;  %4011 = vmatprep.subr.bf16.mxu0 %v5790_v30  ;;  %v5878_v29 = vld [vmem:[%s8683_s0 + $0x38] ss:$72 sps:$4 sm:$0xff]  }
  0xc9   :  { %4064 = vmatprep.subr.bf16.mxu1 %v5793_v31  ;;  %v5881_v30 = vld [vmem:[%s8682_s1 + $0x10e0] ss:$16 sps:$4 sm:$0xff]   ;;  %v5884_v31 = vld [vmem:[%s8682_s1 + $0xe8] ss:$16 sps:$4 sm:$0xff]  }
  0xca   :  { %3944 = vmatmul.mubr.bf16.gmra.mxu0 %v5787_v32  ;;  %v5889_v32 = vld [vmem:[%s8682_s1 + $0x10c4] ss:$16 sps:$4 sm:$0xff]  }
  0xcb   :  { %3997 = vmatmul.mubr.bf16.gmra.mxu1 %v5796_v35  ;;  %4012 = vmatpush1.bf16.msra.mxu0 %v5788_v33  ;;  %v5892_v33 = vld [vmem:[%s8682_s1 + $0xcc] ss:$16 sps:$4 sm:$0xff]  }
  0xcc   :  { %4065 = vmatpush1.bf16.msra.mxu1 %v5791_v34  ;;  %4013 = vmatprep.subr.bf16.mxu0 %v5799_v36  ;;  %v5893_v34 = vld [vmem:[%s8683_s0 + $0xc4] ss:$72 sps:$4 sm:$0xff]   ;;  %v5887_v36 = vld [vmem:[%s8682_s1 + $0x10c0] ss:$16 sps:$4 sm:$0xff]  }
  0xcd   :  { %4066 = vmatprep.subr.bf16.mxu1 %v5802_v37  ;;  %4039 = vmatprep.mubr.bf16.mxu0 %v5877_v38  ;;  %v5902_v35 = vld [vmem:[%s8683_s0 + $0xcc] ss:$72 sps:$4 sm:$0xff]   ;;  %v5890_v37 = vld [vmem:[%s8682_s1 + $0xc8] ss:$16 sps:$4 sm:$0xff]  }
  0xce   :  { %4092 = vmatprep.mubr.bf16.mxu1 %v5880_v39  ;;  %v5898_v38 = vld [vmem:[%s8682_s1 + $0x10a4] ss:$16 sps:$4 sm:$0xff]   ;;  %v5901_v39 = vld [vmem:[%s8682_s1 + $0xac] ss:$16 sps:$4 sm:$0xff]  }
  0xcf   :  { %4014 = vmatpush1.bf16.msra.mxu0 %v5797_v40  ;;  %v5895_v40 = vld [vmem:[%s8683_s0 + $0xc0] ss:$72 sps:$4 sm:$0xff]  }
  0xd0   :  { %4067 = vmatpush1.bf16.msra.mxu1 %v5800_v41  ;;  %4015 = vmatprep.subr.bf16.mxu0 %v5805_v42  ;;  %v5896_v41 = vld [vmem:[%s8682_s1 + $0x10a0] ss:$16 sps:$4 sm:$0xff]   ;;  %v5899_v42 = vld [vmem:[%s8682_s1 + $0xa8] ss:$16 sps:$4 sm:$0xff]  }
  0xd1   :  { %4068 = vmatprep.subr.bf16.mxu1 %v5808_v43  ;;  %v5904_v43 = vld [vmem:[%s8683_s0 + $0xc8] ss:$72 sps:$4 sm:$0xff]  }
  0xd3   :  { %4016 = vmatpush1.bf16.msra.mxu0 %v5803_v44  ;;  %v5907_v44 = vld [vmem:[%s8682_s1 + $0x1084] ss:$16 sps:$4 sm:$0xff]  }
  0xd4   :  { %4069 = vmatpush1.bf16.msra.mxu1 %v5806_v45  ;;  %4017 = vmatprep.subr.bf16.mxu0 %v5811_v46  ;;  %v5910_v45 = vld [vmem:[%s8682_s1 + $0x8c] ss:$16 sps:$4 sm:$0xff]  }
  0xd5   :  { %4070 = vmatprep.subr.bf16.mxu1 %v5814_v47  ;;  %v5985_v46 = vld [vmem:[%s8683_s0 + $0x44] ss:$72 sps:$4 sm:$0xff]   ;;  %v5905_v47 = vld [vmem:[%s8682_s1 + $0x1080] ss:$16 sps:$4 sm:$0xff]  }
  0xd7   :  { %4018 = vmatpush1.bf16.msra.mxu0 %v5809_v48  ;;  %v5908_v48 = vld [vmem:[%s8682_s1 + $0x88] ss:$16 sps:$4 sm:$0xff]  }
  0xd8   :  { %4071 = vmatpush1.bf16.msra.mxu1 %v5812_v49  ;;  %4019 = vmatprep.subr.bf16.mxu0 %v5817_v50  ;;  %v5913_v49 = vld [vmem:[%s8682_s1 + $0x1064] ss:$16 sps:$4 sm:$0xff]   ;;  %v5916_v50 = vld [vmem:[%s8682_s1 + $0x6c] ss:$16 sps:$4 sm:$0xff]  }
  0xd9   :  { %4072 = vmatprep.subr.bf16.mxu1 %v5820_v51  ;;  %v6373_v51 = vld [vmem:[%s8683_s0 + $0x4] ss:$72 sps:$4 sm:$0xff]  }
  0xdb   :  { %4020 = vmatpush1.bf16.msra.mxu0 %v5815_v52  ;;  %v5911_v52 = vld [vmem:[%s8682_s1 + $0x1060] ss:$16 sps:$4 sm:$0xff]  }
  0xdc   :  { %4073 = vmatpush1.bf16.msra.mxu1 %v5818_v53  ;;  %4021 = vmatprep.subr.bf16.mxu0 %v5823_v54  ;;  %v5914_v53 = vld [vmem:[%s8682_s1 + $0x68] ss:$16 sps:$4 sm:$0xff]   ;;  %v5919_v54 = vld [vmem:[%s8682_s1 + $0x1044] ss:$16 sps:$4 sm:$0xff]  }
  0xdd   :  { %4074 = vmatprep.subr.bf16.mxu1 %v5826_v55  ;;  %v5922_v55 = vld [vmem:[%s8682_s1 + $0x4c] ss:$16 sps:$4 sm:$0xff]  }
  0xdf   :  { %4022 = vmatpush1.bf16.msra.mxu0 %v5821_v56  ;;  %v5917_v56 = vld [vmem:[%s8682_s1 + $0x1040] ss:$16 sps:$4 sm:$0xff]  }
  0xe0   :  { %4075 = vmatpush1.bf16.msra.mxu1 %v5824_v57  ;;  %4023 = vmatprep.subr.bf16.mxu0 %v5829_v58  ;;  %v5920_v57 = vld [vmem:[%s8682_s1 + $0x48] ss:$16 sps:$4 sm:$0xff]   ;;  %v5925_v58 = vld [vmem:[%s8682_s1 + $0x1024] ss:$16 sps:$4 sm:$0xff]  }
  0xe1   :  { %4076 = vmatprep.subr.bf16.mxu1 %v5832_v59  ;;  %v5928_v59 = vld [vmem:[%s8682_s1 + $0x2c] ss:$16 sps:$4 sm:$0xff]  }
  0xe3   :  { %4024 = vmatpush2.bf16.msra.mxu0 %v5827_v60  ;;  %v5923_v60 = vld [vmem:[%s8682_s1 + $0x1020] ss:$16 sps:$4 sm:$0xff]  }
  0xe4   :  { %4077 = vmatpush2.bf16.msra.mxu1 %v5830_v61  ;;  %4025 = vmatprep.subr.bf16.mxu0 %v5835_v62  ;;  %v5926_v61 = vld [vmem:[%s8682_s1 + $0x28] ss:$16 sps:$4 sm:$0xff]   ;;  %v5931_v62 = vld [vmem:[%s8682_s1 + $0x1004] ss:$16 sps:$4 sm:$0xff]  }
  0xe5   :  { %4078 = vmatprep.subr.bf16.mxu1 %v5838_v63  ;;  %v5934_v63 = vld [vmem:[%s8682_s1 + $0xc] ss:$16 sps:$4 sm:$0xff]  }
  0xe7   :  { %4026 = vmatpush2.bf16.msra.mxu0 %v5833_v0  ;;  %v5929_v0 = vld [vmem:[%s8682_s1 + $0x1000] ss:$16 sps:$4 sm:$0xff]  }
  0xe8   :  { %4079 = vmatpush2.bf16.msra.mxu1 %v5836_v1  ;;  %4027 = vmatprep.subr.bf16.mxu0 %v5841_v2  ;;  %v5932_v1 = vld [vmem:[%s8682_s1 + $0x8] ss:$16 sps:$4 sm:$0xff]   ;;  %v5937_v2 = vld [vmem:[%s8682_s1 + $0x11e4] ss:$16 sps:$4 sm:$0xff]  }
  0xe9   :  { %4080 = vmatprep.subr.bf16.mxu1 %v5844_v3  ;;  %v5940_v3 = vld [vmem:[%s8682_s1 + $0x1ec] ss:$16 sps:$4 sm:$0xff]  }
  0xeb   :  { %4028 = vmatpush2.bf16.msra.mxu0 %v5839_v4  ;;  %v5935_v4 = vld [vmem:[%s8682_s1 + $0x11e0] ss:$16 sps:$4 sm:$0xff]  }
  0xec   :  { %4081 = vmatpush2.bf16.msra.mxu1 %v5842_v5  ;;  %4029 = vmatprep.subr.bf16.mxu0 %v5847_v6  ;;  %v5938_v5 = vld [vmem:[%s8682_s1 + $0x1e8] ss:$16 sps:$4 sm:$0xff]   ;;  %v5943_v6 = vld [vmem:[%s8682_s1 + $0x11c4] ss:$16 sps:$4 sm:$0xff]  }
  0xed   :  { %4082 = vmatprep.subr.bf16.mxu1 %v5850_v7  ;;  %v5946_v7 = vld [vmem:[%s8682_s1 + $0x1cc] ss:$16 sps:$4 sm:$0xff]  }
  0xef   :  { %4030 = vmatpush2.bf16.msra.mxu0 %v5845_v8  ;;  %v5941_v8 = vld [vmem:[%s8682_s1 + $0x11c0] ss:$16 sps:$4 sm:$0xff]  }
  0xf0   :  { %4083 = vmatpush2.bf16.msra.mxu1 %v5848_v9  ;;  %4031 = vmatprep.subr.bf16.mxu0 %v5853_v10  ;;  %v5944_v9 = vld [vmem:[%s8682_s1 + $0x1c8] ss:$16 sps:$4 sm:$0xff]   ;;  %v5949_v10 = vld [vmem:[%s8682_s1 + $0x11a4] ss:$16 sps:$4 sm:$0xff]  }
  0xf1   :  { %4084 = vmatprep.subr.bf16.mxu1 %v5856_v11  ;;  %v5952_v11 = vld [vmem:[%s8682_s1 + $0x1ac] ss:$16 sps:$4 sm:$0xff]  }
  0xf3   :  { %4032 = vmatpush2.bf16.msra.mxu0 %v5851_v12  ;;  %v5947_v12 = vld [vmem:[%s8682_s1 + $0x11a0] ss:$16 sps:$4 sm:$0xff]  }
  0xf4   :  { %4085 = vmatpush2.bf16.msra.mxu1 %v5854_v13  ;;  %4033 = vmatprep.subr.bf16.mxu0 %v5859_v14  ;;  %v5950_v13 = vld [vmem:[%s8682_s1 + $0x1a8] ss:$16 sps:$4 sm:$0xff]   ;;  %v5955_v14 = vld [vmem:[%s8682_s1 + $0x1184] ss:$16 sps:$4 sm:$0xff]  }
  0xf5   :  { %4086 = vmatprep.subr.bf16.mxu1 %v5862_v15  ;;  %v5958_v15 = vld [vmem:[%s8682_s1 + $0x18c] ss:$16 sps:$4 sm:$0xff]  }
  0xf7   :  { %4034 = vmatpush2.bf16.msra.mxu0 %v5857_v16  ;;  %v5953_v16 = vld [vmem:[%s8682_s1 + $0x1180] ss:$16 sps:$4 sm:$0xff]  }
  0xf8   :  { %4087 = vmatpush2.bf16.msra.mxu1 %v5860_v17  ;;  %4035 = vmatprep.subr.bf16.mxu0 %v5865_v18  ;;  %v5956_v17 = vld [vmem:[%s8682_s1 + $0x188] ss:$16 sps:$4 sm:$0xff]   ;;  %v5961_v18 = vld [vmem:[%s8682_s1 + $0x1164] ss:$16 sps:$4 sm:$0xff]  }
  0xf9   :  { %4088 = vmatprep.subr.bf16.mxu1 %v5868_v19  ;;  %v5964_v19 = vld [vmem:[%s8682_s1 + $0x16c] ss:$16 sps:$4 sm:$0xff]  }
  0xfb   :  { %4036 = vmatpush2.bf16.msra.mxu0 %v5863_v20  ;;  %v5959_v20 = vld [vmem:[%s8682_s1 + $0x1160] ss:$16 sps:$4 sm:$0xff]  }
  0xfc   :  { %4089 = vmatpush2.bf16.msra.mxu1 %v5866_v21  ;;  %4037 = vmatprep.subr.bf16.mxu0 %v5871_v22  ;;  %v5962_v21 = vld [vmem:[%s8682_s1 + $0x168] ss:$16 sps:$4 sm:$0xff]   ;;  %v5967_v22 = vld [vmem:[%s8682_s1 + $0x1144] ss:$16 sps:$4 sm:$0xff]  }
  0xfd   :  { %4090 = vmatprep.subr.bf16.mxu1 %v5874_v23  ;;  %v5970_v23 = vld [vmem:[%s8682_s1 + $0x14c] ss:$16 sps:$4 sm:$0xff]  }
  0xff   :  { %4038 = vmatpush2.bf16.msra.mxu0 %v5869_v24  ;;  %v5965_v24 = vld [vmem:[%s8682_s1 + $0x1140] ss:$16 sps:$4 sm:$0xff]  }
 0x100   :  { %4091 = vmatpush2.bf16.msra.mxu1 %v5872_v25  ;;  %4113 = vmatprep.subr.bf16.mxu0 %v5883_v26  ;;  %v5968_v25 = vld [vmem:[%s8682_s1 + $0x148] ss:$16 sps:$4 sm:$0xff]   ;;  %v5973_v26 = vld [vmem:[%s8682_s1 + $0x1124] ss:$16 sps:$4 sm:$0xff]  }
 0x101   :  { %4166 = vmatprep.subr.bf16.mxu1 %v5886_v27  ;;  %v5976_v27 = vld [vmem:[%s8682_s1 + $0x12c] ss:$16 sps:$4 sm:$0xff]  }
 0x102   :  { %4040 = vmatmul.mubr.bf16.vlgmr.msra.gmra.mxu0 %v5875_v28  ;;  %v5971_v28 = vld [vmem:[%s8682_s1 + $0x1120] ss:$16 sps:$4 sm:$0xff]  }
 0x103   :  { %4093 = vmatmul.mubr.bf16.vlgmr.msra.gmra.mxu1 %v5878_v29  ;;  %4114 = vmatpush1.bf16.msra.mxu0 %v5881_v30  ;;  %v5974_v29 = vld [vmem:[%s8682_s1 + $0x128] ss:$16 sps:$4 sm:$0xff]   ;;  %v5979_v30 = vld [vmem:[%s8682_s1 + $0x1104] ss:$16 sps:$4 sm:$0xff]  }
 0x104   :  { %4167 = vmatpush1.bf16.msra.mxu1 %v5884_v31  ;;  %4115 = vmatprep.subr.bf16.mxu0 %v5889_v32  ;;  %v5982_v31 = vld [vmem:[%s8682_s1 + $0x10c] ss:$16 sps:$4 sm:$0xff]   ;;  %v5977_v32 = vld [vmem:[%s8682_s1 + $0x1100] ss:$16 sps:$4 sm:$0xff]  }
 0x105   :  { %4168 = vmatprep.subr.bf16.mxu1 %v5892_v33  ;;  %4049 = vmatprep.mubr.bf16.mxu0 %v5893_v34  ;;  %v5980_v33 = vld [vmem:[%s8682_s1 + $0x108] ss:$16 sps:$4 sm:$0xff]   ;;  %v5988_v34 = vld [vmem:[%s8682_s1 + $0x2ec] ss:$16 sps:$4 sm:$0xff]  }
 0x106   :  { %4102 = vmatprep.mubr.bf16.mxu1 %v5902_v35  ;;  %v5991_v35 = vld [vmem:[%s8682_s1 + $0x4ec] ss:$16 sps:$4 sm:$0xff]  }
 0x107   :  { %4116 = vmatpush1.bf16.msra.mxu0 %v5887_v36  ;;  %v5983_v36 = vld [vmem:[%s8683_s0 + $0x40] ss:$72 sps:$4 sm:$0xff]  }
 0x108   :  { %4169 = vmatpush1.bf16.msra.mxu1 %v5890_v37  ;;  %4117 = vmatprep.subr.bf16.mxu0 %v5898_v38  ;;  %v5986_v37 = vld [vmem:[%s8682_s1 + $0x2e8] ss:$16 sps:$4 sm:$0xff]  }
 0x109   :  { %4170 = vmatprep.subr.bf16.mxu1 %v5901_v39  ;;  %v5989_v38 = vld [vmem:[%s8682_s1 + $0x4e8] ss:$16 sps:$4 sm:$0xff]   ;;  %v5994_v39 = vld [vmem:[%s8682_s1 + $0x2cc] ss:$16 sps:$4 sm:$0xff]  }
 0x10a   :  { %4050 = vmatmul.mubr.bf16.gmra.mxu0 %v5895_v40  ;;  %v5997_v40 = vld [vmem:[%s8682_s1 + $0x4cc] ss:$16 sps:$4 sm:$0xff]  }
 0x10b   :  { %4103 = vmatmul.mubr.bf16.gmra.mxu1 %v5904_v43  ;;  %4118 = vmatpush1.bf16.msra.mxu0 %v5896_v41  ;;  %v5998_v41 = vld [vmem:[%s8683_s0 + $0xd4] ss:$72 sps:$4 sm:$0xff]   ;;  %v5992_v43 = vld [vmem:[%s8682_s1 + $0x2c8] ss:$16 sps:$4 sm:$0xff]  }
 0x10c   :  { %4171 = vmatpush1.bf16.msra.mxu1 %v5899_v42  ;;  %4119 = vmatprep.subr.bf16.mxu0 %v5907_v44  ;;  %v6374_v42 = vld [vmem:[%s8683_s0] ss:$72 sps:$4 sm:$0xff]  }
 0x10d   :  { %4172 = vmatprep.subr.bf16.mxu1 %v5910_v45  ;;  %4145 = vmatprep.mubr.bf16.mxu0 %v5985_v46  ;;  %v5995_v44 = vld [vmem:[%s8682_s1 + $0x4c8] ss:$16 sps:$4 sm:$0xff]   ;;  %v6003_v45 = vld [vmem:[%s8682_s1 + $0x2ac] ss:$16 sps:$4 sm:$0xff]  }
 0x10e   :  { %4198 = vmatprep.mubr.bf16.mxu1 %v6373_v51  ;;  %v6006_v46 = vld [vmem:[%s8682_s1 + $0x4ac] ss:$16 sps:$4 sm:$0xff]  }
 0x10f   :  { %4120 = vmatpush1.bf16.msra.mxu0 %v5905_v47  ;;  %v6000_v47 = vld [vmem:[%s8683_s0 + $0xd0] ss:$72 sps:$4 sm:$0xff]   ;;  %v6009_v51 = vld [vmem:[%s8682_s1 + $0x28c] ss:$16 sps:$4 sm:$0xff]  }
 0x110   :  { %4173 = vmatpush1.bf16.msra.mxu1 %v5908_v48  ;;  %4121 = vmatprep.subr.bf16.mxu0 %v5913_v49  ;;  %v6375_v48 = vld [vmem:[%s8683_s0 + $0x94] ss:$72 sps:$4 sm:$0xff]   ;;  %v6001_v49 = vld [vmem:[%s8682_s1 + $0x2a8] ss:$16 sps:$4 sm:$0xff]  }
 0x111   :  { %4174 = vmatprep.subr.bf16.mxu1 %v5916_v50  ;;  %v6004_v50 = vld [vmem:[%s8682_s1 + $0x4a8] ss:$16 sps:$4 sm:$0xff]  }
 0x113   :  { %4122 = vmatpush1.bf16.msra.mxu0 %v5911_v52  ;;  %v6012_v52 = vld [vmem:[%s8682_s1 + $0x48c] ss:$16 sps:$4 sm:$0xff]  }
 0x114   :  { %4175 = vmatpush1.bf16.msra.mxu1 %v5914_v53  ;;  %4123 = vmatprep.subr.bf16.mxu0 %v5919_v54  ;;  %v6007_v53 = vld [vmem:[%s8682_s1 + $0x288] ss:$16 sps:$4 sm:$0xff]  }
 0x115   :  { %4176 = vmatprep.subr.bf16.mxu1 %v5922_v55  ;;  %v6010_v54 = vld [vmem:[%s8682_s1 + $0x488] ss:$16 sps:$4 sm:$0xff]  }
 0x116   :  { %v6376_v55 = vld [vmem:[%s8683_s0 + $0x90] ss:$72 sps:$4 sm:$0xff]  }
 0x117   :  { %4124 = vmatpush1.bf16.msra.mxu0 %v5917_v56  ;;  %v6015_v56 = vld [vmem:[%s8682_s1 + $0x26c] ss:$16 sps:$4 sm:$0xff]  }
 0x118   :  { %4177 = vmatpush1.bf16.msra.mxu1 %v5920_v57  ;;  %4125 = vmatprep.subr.bf16.mxu0 %v5925_v58  ;;  %v6018_v57 = vld [vmem:[%s8682_s1 + $0x46c] ss:$16 sps:$4 sm:$0xff]   ;;  %v6013_v58 = vld [vmem:[%s8682_s1 + $0x268] ss:$16 sps:$4 sm:$0xff]  }
 0x119   :  { %4178 = vmatprep.subr.bf16.mxu1 %v5928_v59  ;;  %v6016_v59 = vld [vmem:[%s8682_s1 + $0x468] ss:$16 sps:$4 sm:$0xff]  }
 0x11b   :  { %4126 = vmatpush1.bf16.msra.mxu0 %v5923_v60  ;;  %v6377_v60 = vld [vmem:[%s8683_s0 + $0xc] ss:$72 sps:$4 sm:$0xff]  }
 0x11c   :  { %4179 = vmatpush1.bf16.msra.mxu1 %v5926_v61  ;;  %4127 = vmatprep.subr.bf16.mxu0 %v5931_v62  ;;  %v6378_v61 = vld [vmem:[%s8683_s0 + $0x14] ss:$72 sps:$4 sm:$0xff]  }
 0x11d   :  { %4180 = vmatprep.subr.bf16.mxu1 %v5934_v63  ;;  %v6021_v62 = vld [vmem:[%s8682_s1 + $0x24c] ss:$16 sps:$4 sm:$0xff]  }
 0x11e   :  { %v6024_v63 = vld [vmem:[%s8682_s1 + $0x44c] ss:$16 sps:$4 sm:$0xff]  }
 0x11f   :  { %4128 = vmatpush1.bf16.msra.mxu0 %v5929_v0  ;;  %v6019_v0 = vld [vmem:[%s8682_s1 + $0x248] ss:$16 sps:$4 sm:$0xff]  }
 0x120   :  { %4181 = vmatpush1.bf16.msra.mxu1 %v5932_v1  ;;  %4129 = vmatprep.subr.bf16.mxu0 %v5937_v2  ;;  %v6022_v1 = vld [vmem:[%s8682_s1 + $0x448] ss:$16 sps:$4 sm:$0xff]   ;;  %v6027_v2 = vld [vmem:[%s8682_s1 + $0x22c] ss:$16 sps:$4 sm:$0xff]  }
 0x121   :  { %4182 = vmatprep.subr.bf16.mxu1 %v5940_v3  ;;  %v6030_v3 = vld [vmem:[%s8682_s1 + $0x42c] ss:$16 sps:$4 sm:$0xff]  }
 0x123   :  { %4130 = vmatpush2.bf16.msra.mxu0 %v5935_v4  ;;  %v6025_v4 = vld [vmem:[%s8682_s1 + $0x228] ss:$16 sps:$4 sm:$0xff]  }
 0x124   :  { %4183 = vmatpush2.bf16.msra.mxu1 %v5938_v5  ;;  %4131 = vmatprep.subr.bf16.mxu0 %v5943_v6  ;;  %v6028_v5 = vld [vmem:[%s8682_s1 + $0x428] ss:$16 sps:$4 sm:$0xff]   ;;  %v6033_v6 = vld [vmem:[%s8682_s1 + $0x20c] ss:$16 sps:$4 sm:$0xff]  }
 0x125   :  { %4184 = vmatprep.subr.bf16.mxu1 %v5946_v7  ;;  %v6036_v7 = vld [vmem:[%s8682_s1 + $0x40c] ss:$16 sps:$4 sm:$0xff]  }
 0x127   :  { %4132 = vmatpush2.bf16.msra.mxu0 %v5941_v8  ;;  %v6031_v8 = vld [vmem:[%s8682_s1 + $0x208] ss:$16 sps:$4 sm:$0xff]  }
 0x128   :  { %4185 = vmatpush2.bf16.msra.mxu1 %v5944_v9  ;;  %4133 = vmatprep.subr.bf16.mxu0 %v5949_v10  ;;  %v6034_v9 = vld [vmem:[%s8682_s1 + $0x408] ss:$16 sps:$4 sm:$0xff]   ;;  %v6039_v10 = vld [vmem:[%s8682_s1 + $0x3ec] ss:$16 sps:$4 sm:$0xff]  }
 0x129   :  { %4186 = vmatprep.subr.bf16.mxu1 %v5952_v11  ;;  %v6042_v11 = vld [vmem:[%s8682_s1 + $0x5ec] ss:$16 sps:$4 sm:$0xff]  }
 0x12b   :  { %4134 = vmatpush2.bf16.msra.mxu0 %v5947_v12  ;;  %v6037_v12 = vld [vmem:[%s8682_s1 + $0x3e8] ss:$16 sps:$4 sm:$0xff]  }
 0x12c   :  { %4187 = vmatpush2.bf16.msra.mxu1 %v5950_v13  ;;  %4135 = vmatprep.subr.bf16.mxu0 %v5955_v14  ;;  %v6040_v13 = vld [vmem:[%s8682_s1 + $0x5e8] ss:$16 sps:$4 sm:$0xff]   ;;  %v6045_v14 = vld [vmem:[%s8682_s1 + $0x3cc] ss:$16 sps:$4 sm:$0xff]  }
 0x12d   :  { %4188 = vmatprep.subr.bf16.mxu1 %v5958_v15  ;;  %v6048_v15 = vld [vmem:[%s8682_s1 + $0x5cc] ss:$16 sps:$4 sm:$0xff]  }
 0x12f   :  { %4136 = vmatpush2.bf16.msra.mxu0 %v5953_v16  ;;  %v6043_v16 = vld [vmem:[%s8682_s1 + $0x3c8] ss:$16 sps:$4 sm:$0xff]  }
 0x130   :  { %4189 = vmatpush2.bf16.msra.mxu1 %v5956_v17  ;;  %4137 = vmatprep.subr.bf16.mxu0 %v5961_v18  ;;  %v6046_v17 = vld [vmem:[%s8682_s1 + $0x5c8] ss:$16 sps:$4 sm:$0xff]   ;;  %v6051_v18 = vld [vmem:[%s8682_s1 + $0x3ac] ss:$16 sps:$4 sm:$0xff]  }
 0x131   :  { %4190 = vmatprep.subr.bf16.mxu1 %v5964_v19  ;;  %v6054_v19 = vld [vmem:[%s8682_s1 + $0x5ac] ss:$16 sps:$4 sm:$0xff]  }
 0x133   :  { %4138 = vmatpush2.bf16.msra.mxu0 %v5959_v20  ;;  %v6049_v20 = vld [vmem:[%s8682_s1 + $0x3a8] ss:$16 sps:$4 sm:$0xff]  }
 0x134   :  { %4191 = vmatpush2.bf16.msra.mxu1 %v5962_v21  ;;  %4139 = vmatprep.subr.bf16.mxu0 %v5967_v22  ;;  %v6052_v21 = vld [vmem:[%s8682_s1 + $0x5a8] ss:$16 sps:$4 sm:$0xff]   ;;  %v6057_v22 = vld [vmem:[%s8682_s1 + $0x38c] ss:$16 sps:$4 sm:$0xff]  }
 0x135   :  { %4192 = vmatprep.subr.bf16.mxu1 %v5970_v23  ;;  %v6060_v23 = vld [vmem:[%s8682_s1 + $0x58c] ss:$16 sps:$4 sm:$0xff]  }
 0x137   :  { %4140 = vmatpush2.bf16.msra.mxu0 %v5965_v24  ;;  %v6055_v24 = vld [vmem:[%s8682_s1 + $0x388] ss:$16 sps:$4 sm:$0xff]  }
 0x138   :  { %4193 = vmatpush2.bf16.msra.mxu1 %v5968_v25  ;;  %4141 = vmatprep.subr.bf16.mxu0 %v5973_v26  ;;  %v6058_v25 = vld [vmem:[%s8682_s1 + $0x588] ss:$16 sps:$4 sm:$0xff]   ;;  %v6063_v26 = vld [vmem:[%s8682_s1 + $0x36c] ss:$16 sps:$4 sm:$0xff]  }
 0x139   :  { %4194 = vmatprep.subr.bf16.mxu1 %v5976_v27  ;;  %v6066_v27 = vld [vmem:[%s8682_s1 + $0x56c] ss:$16 sps:$4 sm:$0xff]  }
 0x13b   :  { %4142 = vmatpush2.bf16.msra.mxu0 %v5971_v28  ;;  %v6061_v28 = vld [vmem:[%s8682_s1 + $0x368] ss:$16 sps:$4 sm:$0xff]  }
 0x13c   :  { %4195 = vmatpush2.bf16.msra.mxu1 %v5974_v29  ;;  %4143 = vmatprep.subr.bf16.mxu0 %v5979_v30  ;;  %v6064_v29 = vld [vmem:[%s8682_s1 + $0x568] ss:$16 sps:$4 sm:$0xff]   ;;  %v6069_v30 = vld [vmem:[%s8682_s1 + $0x34c] ss:$16 sps:$4 sm:$0xff]  }
 0x13d   :  { %4196 = vmatprep.subr.bf16.mxu1 %v5982_v31  ;;  %v6072_v31 = vld [vmem:[%s8682_s1 + $0x54c] ss:$16 sps:$4 sm:$0xff]  }
 0x13f   :  { %4144 = vmatpush2.bf16.msra.mxu0 %v5977_v32  ;;  %v6067_v32 = vld [vmem:[%s8682_s1 + $0x348] ss:$16 sps:$4 sm:$0xff]  }
 0x140   :  { %4197 = vmatpush2.bf16.msra.mxu1 %v5980_v33  ;;  %4219 = vmatprep.subr.bf16.mxu0 %v5988_v34  ;;  %v6070_v33 = vld [vmem:[%s8682_s1 + $0x548] ss:$16 sps:$4 sm:$0xff]   ;;  %v6075_v34 = vld [vmem:[%s8682_s1 + $0x32c] ss:$16 sps:$4 sm:$0xff]  }
 0x141   :  { %4272 = vmatprep.subr.bf16.mxu1 %v5991_v35  ;;  %v6078_v35 = vld [vmem:[%s8682_s1 + $0x52c] ss:$16 sps:$4 sm:$0xff]  }
 0x142   :  { %4146 = vmatmul.mubr.bf16.vlgmr.msra.gmra.mxu0 %v5983_v36  ;;  %v6073_v36 = vld [vmem:[%s8682_s1 + $0x328] ss:$16 sps:$4 sm:$0xff]  }
 0x143   :  { %4199 = vmatmul.mubr.bf16.vlgmr.msra.gmra.mxu1 %v6374_v42  ;;  %4220 = vmatpush1.bf16.msra.mxu0 %v5986_v37  ;;  %v6076_v37 = vld [vmem:[%s8682_s1 + $0x528] ss:$16 sps:$4 sm:$0xff]   ;;  %v6087_v42 = vld [vmem:[%s8682_s1 + $0x6ec] ss:$16 sps:$4 sm:$0xff]  }
 0x144   :  { %4273 = vmatpush1.bf16.msra.mxu1 %v5989_v38  ;;  %4221 = vmatprep.subr.bf16.mxu0 %v5994_v39  ;;  %v6081_v38 = vld [vmem:[%s8682_s1 + $0x30c] ss:$16 sps:$4 sm:$0xff]  }
 0x145   :  { %4274 = vmatprep.subr.bf16.mxu1 %v5997_v40  ;;  %4155 = vmatprep.mubr.bf16.mxu0 %v5998_v41  ;;  %v6084_v39 = vld [vmem:[%s8682_s1 + $0x50c] ss:$16 sps:$4 sm:$0xff]   ;;  %v6079_v40 = vld [vmem:[%s8682_s1 + $0x308] ss:$16 sps:$4 sm:$0xff]  }
 0x146   :  { %4208 = vmatprep.mubr.bf16.mxu1 %v6375_v48  ;;  %v6082_v41 = vld [vmem:[%s8682_s1 + $0x508] ss:$16 sps:$4 sm:$0xff]  }
 0x147   :  { %4222 = vmatpush1.bf16.msra.mxu0 %v5992_v43  ;;  %v6090_v43 = vld [vmem:[%s8682_s1 + $0x8ec] ss:$16 sps:$4 sm:$0xff]   ;;  %v6379_v48 = vld [vmem:[%s8683_s0 + $0x8] ss:$72 sps:$4 sm:$0xff]  }
 0x148   :  { %4275 = vmatpush1.bf16.msra.mxu1 %v5995_v44  ;;  %4223 = vmatprep.subr.bf16.mxu0 %v6003_v45  ;;  %v6085_v44 = vld [vmem:[%s8682_s1 + $0x6e8] ss:$16 sps:$4 sm:$0xff]  }
 0x149   :  { %4276 = vmatprep.subr.bf16.mxu1 %v6006_v46  ;;  %v6088_v45 = vld [vmem:[%s8682_s1 + $0x8e8] ss:$16 sps:$4 sm:$0xff]   ;;  %v6093_v46 = vld [vmem:[%s8682_s1 + $0x6cc] ss:$16 sps:$4 sm:$0xff]  }
 0x14a   :  { %4156 = vmatmul.mubr.bf16.gmra.mxu0 %v6000_v47  ;;  %v6096_v47 = vld [vmem:[%s8682_s1 + $0x8cc] ss:$16 sps:$4 sm:$0xff]  }
 0x14b   :  { %4209 = vmatmul.mubr.bf16.gmra.mxu1 %v6376_v55  ;;  %4224 = vmatpush1.bf16.msra.mxu0 %v6001_v49  ;;  %v6380_v49 = vld [vmem:[%s8683_s0 + $0x10] ss:$72 sps:$4 sm:$0xff]   ;;  %v6382_v55 = vld [vmem:[%s8683_s0 + $0xa4] ss:$72 sps:$4 sm:$0xff]  }
 0x14c   :  { %4277 = vmatpush1.bf16.msra.mxu1 %v6004_v50  ;;  %4225 = vmatprep.subr.bf16.mxu0 %v6009_v51  ;;  %v6091_v50 = vld [vmem:[%s8682_s1 + $0x6c8] ss:$16 sps:$4 sm:$0xff]  }
 0x14d   :  { %4278 = vmatprep.subr.bf16.mxu1 %v6012_v52  ;;  %4251 = vmatprep.mubr.bf16.mxu0 %v6377_v60  ;;  %v6094_v51 = vld [vmem:[%s8682_s1 + $0x8c8] ss:$16 sps:$4 sm:$0xff]   ;;  %v6099_v52 = vld [vmem:[%s8682_s1 + $0x6ac] ss:$16 sps:$4 sm:$0xff]  }
 0x14e   :  { %4304 = vmatprep.mubr.bf16.mxu1 %v6378_v61  ;;  %v6383_v60 = vld [vmem:[%s8683_s0 + $0x98] ss:$72 sps:$4 sm:$0xff]  }
 0x14f   :  { %4226 = vmatpush1.bf16.msra.mxu0 %v6007_v53  ;;  %v6102_v53 = vld [vmem:[%s8682_s1 + $0x8ac] ss:$16 sps:$4 sm:$0xff]   ;;  %v6384_v61 = vld [vmem:[%s8683_s0 + $0xa0] ss:$72 sps:$4 sm:$0xff]  }
 0x150   :  { %4279 = vmatpush1.bf16.msra.mxu1 %v6010_v54  ;;  %4227 = vmatprep.subr.bf16.mxu0 %v6015_v56  ;;  %v6381_v54 = vld [vmem:[%s8683_s0 + $0x9c] ss:$72 sps:$4 sm:$0xff]   ;;  %v6097_v56 = vld [vmem:[%s8682_s1 + $0x6a8] ss:$16 sps:$4 sm:$0xff]  }
 0x151   :  { %4280 = vmatprep.subr.bf16.mxu1 %v6018_v57  ;;  %v6100_v57 = vld [vmem:[%s8682_s1 + $0x8a8] ss:$16 sps:$4 sm:$0xff]  }
 0x153   :  { %4228 = vmatpush1.bf16.msra.mxu0 %v6013_v58  ;;  %v6105_v58 = vld [vmem:[%s8682_s1 + $0x68c] ss:$16 sps:$4 sm:$0xff]  }
 0x154   :  { %4281 = vmatpush1.bf16.msra.mxu1 %v6016_v59  ;;  %4229 = vmatprep.subr.bf16.mxu0 %v6021_v62  ;;  %v6108_v59 = vld [vmem:[%s8682_s1 + $0x88c] ss:$16 sps:$4 sm:$0xff]   ;;  %v6103_v62 = vld [vmem:[%s8682_s1 + $0x688] ss:$16 sps:$4 sm:$0xff]  }
 0x155   :  { %4282 = vmatprep.subr.bf16.mxu1 %v6024_v63  ;;  %v6106_v63 = vld [vmem:[%s8682_s1 + $0x888] ss:$16 sps:$4 sm:$0xff]  }
 0x157   :  { %4230 = vmatpush1.bf16.msra.mxu0 %v6019_v0  ;;  %v7778_v0 = vpop.f32.mrf.mxu0 }
 0x158   :  { %4283 = vmatpush1.bf16.msra.mxu1 %v6022_v1  ;;  %4231 = vmatprep.subr.bf16.mxu0 %v6027_v2  ;;  %v6111_v1 = vld [vmem:[%s8682_s1 + $0x66c] ss:$16 sps:$4 sm:$0xff]  }
 0x159   :  { %4284 = vmatprep.subr.bf16.mxu1 %v6030_v3  ;;  %v6114_v2 = vld [vmem:[%s8682_s1 + $0x86c] ss:$16 sps:$4 sm:$0xff]  }
 0x15a   :  { %v6385_v3 = vld [vmem:[%s8683_s0 + $0x1c] ss:$72 sps:$4 sm:$0xff]  }
 0x15b   :  { %4232 = vmatpush1.bf16.msra.mxu0 %v6025_v4  ;;  %v6386_v4 = vld [vmem:[%s8683_s0 + $0x24] ss:$72 sps:$4 sm:$0xff]  }
 0x15c   :  { %4285 = vmatpush1.bf16.msra.mxu1 %v6028_v5  ;;  %4233 = vmatprep.subr.bf16.mxu0 %v6033_v6  ;;  %v6109_v5 = vld [vmem:[%s8682_s1 + $0x668] ss:$16 sps:$4 sm:$0xff]  }
 0x15d   :  { %4286 = vmatprep.subr.bf16.mxu1 %v6036_v7  ;;  %v6112_v6 = vld [vmem:[%s8682_s1 + $0x868] ss:$16 sps:$4 sm:$0xff]   ;;  %v7798_v7 = vpop.f32.mrf.mxu0 }
 0x15f   :  { %4234 = vmatpush1.bf16.msra.mxu0 %v6031_v8  ;;  %v6117_v8 = vld [vmem:[%s8682_s1 + $0x64c] ss:$16 sps:$4 sm:$0xff]  }
 0x160   :  { %4287 = vmatpush1.bf16.msra.mxu1 %v6034_v9  ;;  %4235 = vmatprep.subr.bf16.mxu0 %v6039_v10  ;;  %v6120_v9 = vld [vmem:[%s8682_s1 + $0x84c] ss:$16 sps:$4 sm:$0xff]   ;;  %v6115_v10 = vld [vmem:[%s8682_s1 + $0x648] ss:$16 sps:$4 sm:$0xff]  }
 0x161   :  { %4288 = vmatprep.subr.bf16.mxu1 %v6042_v11  ;;  %v6118_v11 = vld [vmem:[%s8682_s1 + $0x848] ss:$16 sps:$4 sm:$0xff]  }
 0x163   :  { %4236 = vmatpush2.bf16.msra.mxu0 %v6037_v12  ;;  %v7812_v12 = vpop.f32.mrf.mxu0 }
 0x164   :  { %4289 = vmatpush2.bf16.msra.mxu1 %v6040_v13  ;;  %4237 = vmatprep.subr.bf16.mxu0 %v6045_v14  ;;  %v6123_v13 = vld [vmem:[%s8682_s1 + $0x62c] ss:$16 sps:$4 sm:$0xff]  }
 0x165   :  { %4290 = vmatprep.subr.bf16.mxu1 %v6048_v15  ;;  %v6126_v14 = vld [vmem:[%s8682_s1 + $0x82c] ss:$16 sps:$4 sm:$0xff]   ;;  %v6121_v15 = vld [vmem:[%s8682_s1 + $0x628] ss:$16 sps:$4 sm:$0xff]  }
 0x167   :  { %4238 = vmatpush2.bf16.msra.mxu0 %v6043_v16  ;;  %v6124_v16 = vld [vmem:[%s8682_s1 + $0x828] ss:$16 sps:$4 sm:$0xff]  }
 0x168   :  { %4291 = vmatpush2.bf16.msra.mxu1 %v6046_v17  ;;  %4239 = vmatprep.subr.bf16.mxu0 %v6051_v18  ;;  %v7826_v17 = vpop.f32.mrf.mxu0  ;;  %v6129_v18 = vld [vmem:[%s8682_s1 + $0x60c] ss:$16 sps:$4 sm:$0xff]  }
 0x169   :  { %4292 = vmatprep.subr.bf16.mxu1 %v6054_v19  ;;  %v6132_v19 = vld [vmem:[%s8682_s1 + $0x80c] ss:$16 sps:$4 sm:$0xff]  }
 0x16b   :  { %4240 = vmatpush2.bf16.msra.mxu0 %v6049_v20  ;;  %v7834_v20 = vpop.f32.mrf.mxu0 }
 0x16c   :  { %4293 = vmatpush2.bf16.msra.mxu1 %v6052_v21  ;;  %4241 = vmatprep.subr.bf16.mxu0 %v6057_v22  ;;  %v6127_v21 = vld [vmem:[%s8682_s1 + $0x608] ss:$16 sps:$4 sm:$0xff]  }
 0x16d   :  { %4294 = vmatprep.subr.bf16.mxu1 %v6060_v23  ;;  %v6130_v22 = vld [vmem:[%s8682_s1 + $0x808] ss:$16 sps:$4 sm:$0xff]   ;;  %v6135_v23 = vld [vmem:[%s8682_s1 + $0x7ec] ss:$16 sps:$4 sm:$0xff]  }
 0x16f   :  { %4242 = vmatpush2.bf16.msra.mxu0 %v6055_v24  ;;  %v6138_v24 = vld [vmem:[%s8682_s1 + $0x9ec] ss:$16 sps:$4 sm:$0xff]  }
 0x170   :  { %4295 = vmatpush2.bf16.msra.mxu1 %v6058_v25  ;;  %4243 = vmatprep.subr.bf16.mxu0 %v6063_v26  ;;  %v7848_v25 = vpop.f32.mrf.mxu1  ;;  %v7850_v26 = vpop.f32.mrf.mxu0 }
 0x171   :  { %4296 = vmatprep.subr.bf16.mxu1 %v6066_v27  ;;  %v6133_v27 = vld [vmem:[%s8682_s1 + $0x7e8] ss:$16 sps:$4 sm:$0xff]  }
 0x173   :  { %4244 = vmatpush2.bf16.msra.mxu0 %v6061_v28  ;;  %v6136_v28 = vld [vmem:[%s8682_s1 + $0x9e8] ss:$16 sps:$4 sm:$0xff]  }
 0x174   :  { %4297 = vmatpush2.bf16.msra.mxu1 %v6064_v29  ;;  %4245 = vmatprep.subr.bf16.mxu0 %v6069_v30  ;;  %v6141_v29 = vld [vmem:[%s8682_s1 + $0x7cc] ss:$16 sps:$4 sm:$0xff]  }
 0x175   :  { %4298 = vmatprep.subr.bf16.mxu1 %v6072_v31  ;;  %v6144_v30 = vld [vmem:[%s8682_s1 + $0x9cc] ss:$16 sps:$4 sm:$0xff]   ;;  %v7864_v31 = vpop.f32.mrf.mxu1 }
 0x177   :  { %4246 = vmatpush2.bf16.msra.mxu0 %v6067_v32  ;;  %v7866_v32 = vpop.f32.mrf.mxu0 }
 0x178   :  { %4299 = vmatpush2.bf16.msra.mxu1 %v6070_v33  ;;  %4247 = vmatprep.subr.bf16.mxu0 %v6075_v34  ;;  %v6139_v33 = vld [vmem:[%s8682_s1 + $0x7c8] ss:$16 sps:$4 sm:$0xff]  }
 0x179   :  { %4300 = vmatprep.subr.bf16.mxu1 %v6078_v35  ;;  %v6142_v34 = vld [vmem:[%s8682_s1 + $0x9c8] ss:$16 sps:$4 sm:$0xff]   ;;  %v6147_v35 = vld [vmem:[%s8682_s1 + $0x7ac] ss:$16 sps:$4 sm:$0xff]  }
 0x17b   :  { %4248 = vmatpush2.bf16.msra.mxu0 %v6073_v36  ;;  %v6150_v36 = vld [vmem:[%s8682_s1 + $0x9ac] ss:$16 sps:$4 sm:$0xff]  }
 0x17c   :  { %4301 = vmatpush2.bf16.msra.mxu1 %v6076_v37  ;;  %4249 = vmatprep.subr.bf16.mxu0 %v6081_v38  ;;  %v7880_v37 = vpop.f32.mrf.mxu1  ;;  %v7882_v38 = vpop.f32.mrf.mxu0 }
 0x17d   :  { %4302 = vmatprep.subr.bf16.mxu1 %v6084_v39  ;;  %v6145_v39 = vld [vmem:[%s8682_s1 + $0x7a8] ss:$16 sps:$4 sm:$0xff]  }
 0x17f   :  { %4250 = vmatpush2.bf16.msra.mxu0 %v6079_v40  ;;  %v6148_v40 = vld [vmem:[%s8682_s1 + $0x9a8] ss:$16 sps:$4 sm:$0xff]  }
 0x180   :  { %4303 = vmatpush2.bf16.msra.mxu1 %v6082_v41  ;;  %4325 = vmatprep.subr.bf16.mxu0 %v6087_v42  ;;  %v7890_v41 = vpop.f32.mrf.mxu0  ;;  %v6153_v42 = vld [vmem:[%s8682_s1 + $0x78c] ss:$16 sps:$4 sm:$0xff]  }
 0x181   :  { %4378 = vmatprep.subr.bf16.mxu1 %v6090_v43  ;;  %v6156_v43 = vld [vmem:[%s8682_s1 + $0x98c] ss:$16 sps:$4 sm:$0xff]  }
 0x182   :  { %4252 = vmatmul.mubr.bf16.vlgmr.msra.gmra.mxu0 %v6379_v48  ;;  %v7908_v48 = vpop.f32.mrf.mxu0 }
 0x183   :  { %4305 = vmatmul.mubr.bf16.vlgmr.msra.gmra.mxu1 %v6380_v49  ;;  %4326 = vmatpush1.bf16.msra.mxu0 %v6085_v44  ;;  %v7898_v44 = vpop.f32.mrf.mxu1  ;;  %v6159_v49 = vld [vmem:[%s8682_s1 + $0x76c] ss:$16 sps:$4 sm:$0xff]  }
 0x184   :  { %4379 = vmatpush1.bf16.msra.mxu1 %v6088_v45  ;;  %4327 = vmatprep.subr.bf16.mxu0 %v6093_v46  ;;  %v6151_v45 = vld [vmem:[%s8682_s1 + $0x788] ss:$16 sps:$4 sm:$0xff]  }
 0x185   :  { %4380 = vmatprep.subr.bf16.mxu1 %v6096_v47  ;;  %4261 = vmatprep.mubr.bf16.mxu0 %v6381_v54  ;;  %v6154_v46 = vld [vmem:[%s8682_s1 + $0x988] ss:$16 sps:$4 sm:$0xff]   ;;  %v7906_v47 = vpop.f32.mrf.mxu1  ;;  %v7924_v54 = vpop.f32.mrf.mxu0 }
 0x186   :  { %4314 = vmatprep.mubr.bf16.mxu1 %v6382_v55  ;;  %v6165_v55 = vld [vmem:[%s8682_s1 + $0x74c] ss:$16 sps:$4 sm:$0xff]  }
 0x187   :  { %4328 = vmatpush1.bf16.msra.mxu0 %v6091_v50  ;;  %v6162_v50 = vld [vmem:[%s8682_s1 + $0x96c] ss:$16 sps:$4 sm:$0xff]  }
 0x188   :  { %4381 = vmatpush1.bf16.msra.mxu1 %v6094_v51  ;;  %4329 = vmatprep.subr.bf16.mxu0 %v6099_v52  ;;  %v6157_v51 = vld [vmem:[%s8682_s1 + $0x768] ss:$16 sps:$4 sm:$0xff]  }
 0x189   :  { %4382 = vmatprep.subr.bf16.mxu1 %v6102_v53  ;;  %v6160_v52 = vld [vmem:[%s8682_s1 + $0x968] ss:$16 sps:$4 sm:$0xff]   ;;  %v7922_v53 = vpop.f32.mrf.mxu1 }
 0x18a   :  { %4262 = vmatmul.mubr.bf16.gmra.mxu0 %v6383_v60  ;;  %v7940_v60 = vpop.f32.mrf.mxu0 }
 0x18b   :  { %4315 = vmatmul.mubr.bf16.gmra.mxu1 %v6384_v61  ;;  %4330 = vmatpush1.bf16.msra.mxu0 %v6097_v56  ;;  %v6168_v56 = vld [vmem:[%s8682_s1 + $0x94c] ss:$16 sps:$4 sm:$0xff]  }
 0x18c   :  { %4383 = vmatpush1.bf16.msra.mxu1 %v6100_v57  ;;  %4331 = vmatprep.subr.bf16.mxu0 %v6105_v58  ;;  %v6163_v57 = vld [vmem:[%s8682_s1 + $0x748] ss:$16 sps:$4 sm:$0xff]   ;;  %v6171_v61 = vld [vmem:[%s8682_s1 + $0x72c] ss:$16 sps:$4 sm:$0xff]  }
 0x18d   :  { %4384 = vmatprep.subr.bf16.mxu1 %v6108_v59  ;;  %4357 = vmatprep.mubr.bf16.mxu0 %v6385_v3  ;;  %v6166_v58 = vld [vmem:[%s8682_s1 + $0x948] ss:$16 sps:$4 sm:$0xff]   ;;  %v7938_v59 = vpop.f32.mrf.mxu1  ;;  %v7956_v3 = vpop.f32.mrf.mxu0 }
 0x18e   :  { %4410 = vmatprep.mubr.bf16.mxu1 %v6386_v4  ;;  %v6177_v4 = vld [vmem:[%s8682_s1 + $0x70c] ss:$16 sps:$4 sm:$0xff]  }
 0x18f   :  { %4332 = vmatpush1.bf16.msra.mxu0 %v6103_v62  ;;  %v6174_v62 = vld [vmem:[%s8682_s1 + $0x92c] ss:$16 sps:$4 sm:$0xff]  }
 0x190   :  { %4385 = vmatpush1.bf16.msra.mxu1 %v6106_v63  ;;  %4333 = vmatprep.subr.bf16.mxu0 %v6111_v1  ;;  %v6169_v63 = vld [vmem:[%s8682_s1 + $0x728] ss:$16 sps:$4 sm:$0xff]  }
 0x191   :  { %4386 = vmatprep.subr.bf16.mxu1 %v6114_v2  ;;  %v6172_v1 = vld [vmem:[%s8682_s1 + $0x928] ss:$16 sps:$4 sm:$0xff]   ;;  %v7954_v2 = vpop.f32.mrf.mxu1 }
 0x193   :  { %4334 = vmatpush1.bf16.msra.mxu0 %v6109_v5  ;;  %v6180_v5 = vld [vmem:[%s8682_s1 + $0x90c] ss:$16 sps:$4 sm:$0xff]  }
 0x194   :  { %4387 = vmatpush1.bf16.msra.mxu1 %v6112_v6  ;;  %4335 = vmatprep.subr.bf16.mxu0 %v6117_v8  ;;  %v7964_v6 = vpop.f32.mrf.mxu1  ;;  %v6175_v8 = vld [vmem:[%s8682_s1 + $0x708] ss:$16 sps:$4 sm:$0xff]  }
 0x195   :  { %4388 = vmatprep.subr.bf16.mxu1 %v6120_v9  ;;  %v6178_v9 = vld [vmem:[%s8682_s1 + $0x908] ss:$16 sps:$4 sm:$0xff]  }
 0x197   :  { %4336 = vmatpush1.bf16.msra.mxu0 %v6115_v10  ;;  %v7972_v10 = vpop.f32.mrf.mxu0 }
 0x198   :  { %4389 = vmatpush1.bf16.msra.mxu1 %v6118_v11  ;;  %4337 = vmatprep.subr.bf16.mxu0 %v6123_v13  ;;  %v6183_v11 = vld [vmem:[%s8682_s1 + $0xaec] ss:$16 sps:$4 sm:$0xff]  }
 0x199   :  { %4390 = vmatprep.subr.bf16.mxu1 %v6126_v14  ;;  %v6186_v13 = vld [vmem:[%s8682_s1 + $0xcec] ss:$16 sps:$4 sm:$0xff]   ;;  %v7980_v14 = vpop.f32.mrf.mxu1 }
 0x19b   :  { %4338 = vmatpush1.bf16.msra.mxu0 %v6121_v15  ;;  %v6181_v15 = vld [vmem:[%s8682_s1 + $0xae8] ss:$16 sps:$4 sm:$0xff]  }
 0x19c   :  { %4391 = vmatpush1.bf16.msra.mxu1 %v6124_v16  ;;  %4339 = vmatprep.subr.bf16.mxu0 %v6129_v18  ;;  %v6184_v16 = vld [vmem:[%s8682_s1 + $0xce8] ss:$16 sps:$4 sm:$0xff]   ;;  %v7988_v18 = vpop.f32.mrf.mxu0 }
 0x19d   :  { %4392 = vmatprep.subr.bf16.mxu1 %v6132_v19  ;;  %v6189_v19 = vld [vmem:[%s8682_s1 + $0xacc] ss:$16 sps:$4 sm:$0xff]  }
 0x19f   :  { %4340 = vmatpush1.bf16.msra.mxu0 %v6127_v21  ;;  %v6192_v21 = vld [vmem:[%s8682_s1 + $0xccc] ss:$16 sps:$4 sm:$0xff]  }
 0x1a0   :  { %4393 = vmatpush1.bf16.msra.mxu1 %v6130_v22  ;;  %4341 = vmatprep.subr.bf16.mxu0 %v6135_v23  ;;  %v7996_v22 = vpop.f32.mrf.mxu1  ;;  %v6387_v23 = vld [vmem:[%s8683_s0 + $0x18] ss:$72 sps:$4 sm:$0xff]  }
 0x1a1   :  { %4394 = vmatprep.subr.bf16.mxu1 %v6138_v24  ;;  %v6388_v24 = vld [vmem:[%s8683_s0 + $0x20] ss:$72 sps:$4 sm:$0xff]  }
 0x1a3   :  { %4342 = vmatpush2.bf16.msra.mxu0 %v6133_v27  ;;  %v6187_v27 = vld [vmem:[%s8682_s1 + $0xac8] ss:$16 sps:$4 sm:$0xff]  }
 0x1a4   :  { %4395 = vmatpush2.bf16.msra.mxu1 %v6136_v28  ;;  %4343 = vmatprep.subr.bf16.mxu0 %v6141_v29  ;;  %v6190_v28 = vld [vmem:[%s8682_s1 + $0xcc8] ss:$16 sps:$4 sm:$0xff]   ;;  %v8010_v29 = vpop.f32.mrf.mxu0 }
 0x1a5   :  { %4396 = vmatprep.subr.bf16.mxu1 %v6144_v30  ;;  %v6195_v30 = vld [vmem:[%s8682_s1 + $0xaac] ss:$16 sps:$4 sm:$0xff]  }
 0x1a7   :  { %4344 = vmatpush2.bf16.msra.mxu0 %v6139_v33  ;;  %v6198_v33 = vld [vmem:[%s8682_s1 + $0xcac] ss:$16 sps:$4 sm:$0xff]  }
 0x1a8   :  { %4397 = vmatpush2.bf16.msra.mxu1 %v6142_v34  ;;  %4345 = vmatprep.subr.bf16.mxu0 %v6147_v35  ;;  %v6389_v34 = vld [vmem:[%s8683_s0 + $0xac] ss:$72 sps:$4 sm:$0xff]  }
 0x1a9   :  { %4398 = vmatprep.subr.bf16.mxu1 %v6150_v36  ;;  %v6390_v35 = vld [vmem:[%s8683_s0 + $0xb4] ss:$72 sps:$4 sm:$0xff]   ;;  %v8024_v36 = vpop.f32.mrf.mxu1 }
 0x1ab   :  { %4346 = vmatpush2.bf16.msra.mxu0 %v6145_v39  ;;  %v8026_v39 = vpop.f32.mrf.mxu0 }
 0x1ac   :  { %4399 = vmatpush2.bf16.msra.mxu1 %v6148_v40  ;;  %4347 = vmatprep.subr.bf16.mxu0 %v6153_v42  ;;  %v6193_v40 = vld [vmem:[%s8682_s1 + $0xaa8] ss:$16 sps:$4 sm:$0xff]  }
 0x1ad   :  { %4400 = vmatprep.subr.bf16.mxu1 %v6156_v43  ;;  %v6196_v42 = vld [vmem:[%s8682_s1 + $0xca8] ss:$16 sps:$4 sm:$0xff]   ;;  %v8034_v43 = vpop.f32.mrf.mxu1 }
 0x1af   :  { %4348 = vmatpush2.bf16.msra.mxu0 %v6151_v45  ;;  %v6201_v45 = vld [vmem:[%s8682_s1 + $0xa8c] ss:$16 sps:$4 sm:$0xff]  }
 0x1b0   :  { %4401 = vmatpush2.bf16.msra.mxu1 %v6154_v46  ;;  %4349 = vmatprep.subr.bf16.mxu0 %v6159_v49  ;;  %v6204_v46 = vld [vmem:[%s8682_s1 + $0xc8c] ss:$16 sps:$4 sm:$0xff]   ;;  %v8042_v49 = vpop.f32.mrf.mxu0 }
 0x1b1   :  { %4402 = vmatprep.subr.bf16.mxu1 %v6162_v50  ;;  %v6391_v50 = vld [vmem:[%s8683_s0 + $0xa8] ss:$72 sps:$4 sm:$0xff]  }
 0x1b3   :  { %4350 = vmatpush2.bf16.msra.mxu0 %v6157_v51  ;;  %v6392_v51 = vld [vmem:[%s8683_s0 + $0xb0] ss:$72 sps:$4 sm:$0xff]  }
 0x1b4   :  { %4403 = vmatpush2.bf16.msra.mxu1 %v6160_v52  ;;  %4351 = vmatprep.subr.bf16.mxu0 %v6165_v55  ;;  %v6199_v52 = vld [vmem:[%s8682_s1 + $0xa88] ss:$16 sps:$4 sm:$0xff]  }
 0x1b5   :  { %4404 = vmatprep.subr.bf16.mxu1 %v6168_v56  ;;  %v6202_v55 = vld [vmem:[%s8682_s1 + $0xc88] ss:$16 sps:$4 sm:$0xff]   ;;  %v8056_v56 = vpop.f32.mrf.mxu1 }
 0x1b7   :  { %4352 = vmatpush2.bf16.msra.mxu0 %v6163_v57  ;;  %v6207_v57 = vld [vmem:[%s8682_s1 + $0xa6c] ss:$16 sps:$4 sm:$0xff]  }
 0x1b8   :  { %4405 = vmatpush2.bf16.msra.mxu1 %v6166_v58  ;;  %4353 = vmatprep.subr.bf16.mxu0 %v6171_v61  ;;  %v6210_v58 = vld [vmem:[%s8682_s1 + $0xc6c] ss:$16 sps:$4 sm:$0xff]  }
 0x1b9   :  { %4406 = vmatprep.subr.bf16.mxu1 %v6174_v62  ;;  %v6393_v61 = vld [vmem:[%s8683_s0 + $0x2c] ss:$72 sps:$4 sm:$0xff]  }
 0x1ba   :  { %v6394_v62 = vld [vmem:[%s8683_s0 + $0x34] ss:$72 sps:$4 sm:$0xff]  }
 0x1bb   :  { %4354 = vmatpush2.bf16.msra.mxu0 %v6169_v63  ;;  %v8070_v63 = vpop.f32.mrf.mxu0 }
 0x1bc   :  { %4407 = vmatpush2.bf16.msra.mxu1 %v6172_v1  ;;  %4355 = vmatprep.subr.bf16.mxu0 %v6177_v4  ;;  %v6205_v1 = vld [vmem:[%s8682_s1 + $0xa68] ss:$16 sps:$4 sm:$0xff]  }
 0x1bd   :  { %4408 = vmatprep.subr.bf16.mxu1 %v6180_v5  ;;  %v6208_v4 = vld [vmem:[%s8682_s1 + $0xc68] ss:$16 sps:$4 sm:$0xff]   ;;  %v8078_v5 = vpop.f32.mrf.mxu1 }
 0x1bf   :  { %4356 = vmatpush2.bf16.msra.mxu0 %v6175_v8  ;;  %v6213_v8 = vld [vmem:[%s8682_s1 + $0xa4c] ss:$16 sps:$4 sm:$0xff]  }
 0x1c0   :  { %4409 = vmatpush2.bf16.msra.mxu1 %v6178_v9  ;;  %4431 = vmatprep.subr.bf16.mxu0 %v6183_v11  ;;  %v6216_v9 = vld [vmem:[%s8682_s1 + $0xc4c] ss:$16 sps:$4 sm:$0xff]   ;;  %v8086_v11 = vpop.f32.mrf.mxu0 }
 0x1c1   :  { %4484 = vmatprep.subr.bf16.mxu1 %v6186_v13  ;;  %v6211_v13 = vld [vmem:[%s8682_s1 + $0xa48] ss:$16 sps:$4 sm:$0xff]  }
 0x1c2   :  { %4358 = vmatmul.mubr.bf16.vlgmr.msra.gmra.mxu0 %v6387_v23 }
 0x1c3   :  { %4411 = vmatmul.mubr.bf16.vlgmr.msra.gmra.mxu1 %v6388_v24  ;;  %4432 = vmatpush1.bf16.msra.mxu0 %v6181_v15  ;;  %v6214_v15 = vld [vmem:[%s8682_s1 + $0xc48] ss:$16 sps:$4 sm:$0xff]   ;;  %v8104_v24 = vpop.f32.mrf.mxu0 }
 0x1c4   :  { %4485 = vmatpush1.bf16.msra.mxu1 %v6184_v16  ;;  %4433 = vmatprep.subr.bf16.mxu0 %v6189_v19  ;;  %v8094_v16 = vpop.f32.mrf.mxu1  ;;  %v6219_v19 = vld [vmem:[%s8682_s1 + $0xa2c] ss:$16 sps:$4 sm:$0xff]  }
 0x1c5   :  { %4486 = vmatprep.subr.bf16.mxu1 %v6192_v21  ;;  %4367 = vmatprep.mubr.bf16.mxu0 %v6389_v34  ;;  %v6222_v21 = vld [vmem:[%s8682_s1 + $0xc2c] ss:$16 sps:$4 sm:$0xff]  }
 0x1c6   :  { %4420 = vmatprep.mubr.bf16.mxu1 %v6390_v35  ;;  %v8102_v23 = vpop.f32.mrf.mxu1  ;;  %v8120_v35 = vpop.f32.mrf.mxu0 }
 0x1c7   :  { %4434 = vmatpush1.bf16.msra.mxu0 %v6187_v27  ;;  %v6217_v27 = vld [vmem:[%s8682_s1 + $0xa28] ss:$16 sps:$4 sm:$0xff]  }
 0x1c8   :  { %4487 = vmatpush1.bf16.msra.mxu1 %v6190_v28  ;;  %4435 = vmatprep.subr.bf16.mxu0 %v6195_v30  ;;  %v6220_v28 = vld [vmem:[%s8682_s1 + $0xc28] ss:$16 sps:$4 sm:$0xff]   ;;  %v6225_v30 = vld [vmem:[%s8682_s1 + $0xa0c] ss:$16 sps:$4 sm:$0xff]   ;;  %v8118_v34 = vpop.f32.mrf.mxu1 }
 0x1c9   :  { %4488 = vmatprep.subr.bf16.mxu1 %v6198_v33  ;;  %v6228_v33 = vld [vmem:[%s8682_s1 + $0xc0c] ss:$16 sps:$4 sm:$0xff]  }
 0x1ca   :  { %4368 = vmatmul.mubr.bf16.gmra.mxu0 %v6391_v50  ;;  %v8134_v50 = vpop.f32.mrf.mxu1 }
 0x1cb   :  { %4421 = vmatmul.mubr.bf16.gmra.mxu1 %v6392_v51  ;;  %4436 = vmatpush1.bf16.msra.mxu0 %v6193_v40  ;;  %v6223_v40 = vld [vmem:[%s8682_s1 + $0xa08] ss:$16 sps:$4 sm:$0xff]   ;;  %v8136_v51 = vpop.f32.mrf.mxu0 }
 0x1cc   :  { %4489 = vmatpush1.bf16.msra.mxu1 %v6196_v42  ;;  %4437 = vmatprep.subr.bf16.mxu0 %v6201_v45  ;;  %v6226_v42 = vld [vmem:[%s8682_s1 + $0xc08] ss:$16 sps:$4 sm:$0xff]   ;;  %v6231_v45 = vld [vmem:[%s8682_s1 + $0xbec] ss:$16 sps:$4 sm:$0xff]  }
 0x1cd   :  { %4490 = vmatprep.subr.bf16.mxu1 %v6204_v46  ;;  %4463 = vmatprep.mubr.bf16.mxu0 %v6393_v61  ;;  %v6234_v46 = vld [vmem:[%s8682_s1 + $0xdec] ss:$16 sps:$4 sm:$0xff]   ;;  %v8150_v61 = vpop.f32.mrf.mxu1 }
 0x1ce   :  { %4516 = vmatprep.mubr.bf16.mxu1 %v6394_v62  ;;  %v8152_v62 = vpop.f32.mrf.mxu0 }
 0x1cf   :  { %4438 = vmatpush1.bf16.msra.mxu0 %v6199_v52  ;;  %v6229_v52 = vld [vmem:[%s8682_s1 + $0xbe8] ss:$16 sps:$4 sm:$0xff]  }
 0x1d0   :  { %4491 = vmatpush1.bf16.msra.mxu1 %v6202_v55  ;;  %4439 = vmatprep.subr.bf16.mxu0 %v6207_v57  ;;  %v6232_v55 = vld [vmem:[%s8682_s1 + $0xde8] ss:$16 sps:$4 sm:$0xff]   ;;  %v6237_v57 = vld [vmem:[%s8682_s1 + $0xbcc] ss:$16 sps:$4 sm:$0xff]  }
 0x1d1   :  { %4492 = vmatprep.subr.bf16.mxu1 %v6210_v58  ;;  %v6240_v58 = vld [vmem:[%s8682_s1 + $0xdcc] ss:$16 sps:$4 sm:$0xff]  }
 0x1d3   :  { %4440 = vmatpush1.bf16.msra.mxu0 %v6205_v1  ;;  %v6235_v1 = vld [vmem:[%s8682_s1 + $0xbc8] ss:$16 sps:$4 sm:$0xff]  }
 0x1d4   :  { %4493 = vmatpush1.bf16.msra.mxu1 %v6208_v4  ;;  %4441 = vmatprep.subr.bf16.mxu0 %v6213_v8  ;;  %v6238_v4 = vld [vmem:[%s8682_s1 + $0xdc8] ss:$16 sps:$4 sm:$0xff]   ;;  %v8160_v8 = vpop.f32.mrf.mxu1 }
 0x1d5   :  { %4494 = vmatprep.subr.bf16.mxu1 %v6216_v9  ;;  %v8162_v9 = vpop.f32.mrf.mxu0 }
 0x1d7   :  { %4442 = vmatpush1.bf16.msra.mxu0 %v6211_v13  ;;  %v6243_v13 = vld [vmem:[%s8682_s1 + $0xbac] ss:$16 sps:$4 sm:$0xff]  }
 0x1d8   :  { %4495 = vmatpush1.bf16.msra.mxu1 %v6214_v15  ;;  %4443 = vmatprep.subr.bf16.mxu0 %v6219_v19  ;;  %v6246_v15 = vld [vmem:[%s8682_s1 + $0xdac] ss:$16 sps:$4 sm:$0xff]   ;;  %v6241_v19 = vld [vmem:[%s8682_s1 + $0xba8] ss:$16 sps:$4 sm:$0xff]  }
 0x1d9   :  { %4496 = vmatprep.subr.bf16.mxu1 %v6222_v21  ;;  %v6244_v21 = vld [vmem:[%s8682_s1 + $0xda8] ss:$16 sps:$4 sm:$0xff]  }
 0x1db   :  { %4444 = vmatpush1.bf16.msra.mxu0 %v6217_v27  ;;  %v8176_v27 = vpop.f32.mrf.mxu1 }
 0x1dc   :  { %4497 = vmatpush1.bf16.msra.mxu1 %v6220_v28  ;;  %4445 = vmatprep.subr.bf16.mxu0 %v6225_v30  ;;  %v8178_v28 = vpop.f32.mrf.mxu0  ;;  %v6249_v30 = vld [vmem:[%s8682_s1 + $0xb8c] ss:$16 sps:$4 sm:$0xff]  }
 0x1dd   :  { %4498 = vmatprep.subr.bf16.mxu1 %v6228_v33  ;;  %v6252_v33 = vld [vmem:[%s8682_s1 + $0xd8c] ss:$16 sps:$4 sm:$0xff]  }
 0x1df   :  { %4446 = vmatpush1.bf16.msra.mxu0 %v6223_v40  ;;  %v6247_v40 = vld [vmem:[%s8682_s1 + $0xb88] ss:$16 sps:$4 sm:$0xff]  }
 0x1e0   :  { %4499 = vmatpush1.bf16.msra.mxu1 %v6226_v42  ;;  %4447 = vmatprep.subr.bf16.mxu0 %v6231_v45  ;;  %v6250_v42 = vld [vmem:[%s8682_s1 + $0xd88] ss:$16 sps:$4 sm:$0xff]   ;;  %v8192_v45 = vpop.f32.mrf.mxu1 }
 0x1e1   :  { %4500 = vmatprep.subr.bf16.mxu1 %v6234_v46  ;;  %v8194_v46 = vpop.f32.mrf.mxu0 }
 0x1e3   :  { %4448 = vmatpush2.bf16.msra.mxu0 %v6229_v52  ;;  %v6255_v52 = vld [vmem:[%s8682_s1 + $0xb6c] ss:$16 sps:$4 sm:$0xff]  }
 0x1e4   :  { %4501 = vmatpush2.bf16.msra.mxu1 %v6232_v55  ;;  %4449 = vmatprep.subr.bf16.mxu0 %v6237_v57  ;;  %v6258_v55 = vld [vmem:[%s8682_s1 + $0xd6c] ss:$16 sps:$4 sm:$0xff]   ;;  %v3777_v57 = vadd.f32 %v7848_v25, %v7778_v0 }
 0x1e5   :  { %4502 = vmatprep.subr.bf16.mxu1 %v6240_v58  ;;  %v6253_v58 = vld [vmem:[%s8682_s1 + $0xb68] ss:$16 sps:$4 sm:$0xff]   ;;  %v6261_v0 = vld [vmem:[%s8682_s1 + $0xb4c] ss:$16 sps:$4 sm:$0xff]  }
 0x1e6   :  { %v6264_v25 = vld [vmem:[%s8682_s1 + $0xd4c] ss:$16 sps:$4 sm:$0xff]  }
 0x1e7   :  { %4450 = vmatpush2.bf16.msra.mxu0 %v6235_v1  ;;  %v6256_v1 = vld [vmem:[%s8682_s1 + $0xd68] ss:$16 sps:$4 sm:$0xff]  }
 0x1e8   :  { %4503 = vmatpush2.bf16.msra.mxu1 %v6238_v4  ;;  %4451 = vmatprep.subr.bf16.mxu0 %v6243_v13  ;;  %v8210_v4 = vpop.f32.mrf.mxu1  ;;  %v8212_v13 = vpop.f32.mrf.mxu0 }
 0x1e9   :  { %4504 = vmatprep.subr.bf16.mxu1 %v6246_v15  ;;  %v3779_v15 = vadd.f32 %v7864_v31, %v7798_v7  ;;  %v6270_v31 = vld [vmem:[%s8682_s1 + $0xd2c] ss:$16 sps:$4 sm:$0xff]  }
 0x1ea   :  { %v8234_v7 = vpop.f32.mrf.mxu0 }
 0x1eb   :  { %4452 = vmatpush2.bf16.msra.mxu0 %v6241_v19  ;;  %v3830_v19 = vadd.f32 %v7890_v41, %v3777_v57  ;;  %v3787_v57 = vadd.f32 %v7906_v47, %v7834_v20  ;;  %v3791_v20 = vadd.f32 %v7938_v59, %v7866_v32  ;;  %v3793_v59 = vadd.f32 %v7954_v2, %v7882_v38  ;;  %v6274_v38 = vld [vmem:[%s8682_s1 + $0xd08] ss:$16 sps:$4 sm:$0xff]  }
 0x1ec   :  { %4505 = vmatpush2.bf16.msra.mxu1 %v6244_v21  ;;  %4453 = vmatprep.subr.bf16.mxu0 %v6249_v30  ;;  %v8223_v21 = vpop.f32.mrf.mxu1  ;;  %v3781_v30 = vadd.f32 %v7880_v37, %v7812_v12  ;;  %v6267_v12 = vld [vmem:[%s8682_s1 + $0xb2c] ss:$16 sps:$4 sm:$0xff]   ;;  %v4645_v37 = vlaneseq  ;;  %v8263_v47 = vpop.f32.mrf.mxu0 }
 0x1ed   :  { %4506 = vmatprep.subr.bf16.mxu1 %v6252_v33  ;;  %v3832_v33 = vadd.f32 %v7908_v48, %v3779_v15  ;;  %v3883_v41 = vadd.f32 %v7964_v6, %v3830_v19  ;;  %v6265_v6 = vld [vmem:[%s8682_s1 + $0xb28] ss:$16 sps:$4 sm:$0xff]   ;;  %v3840_v32 = vadd.f32 %v7956_v3, %v3787_v57  ;;  %v6288_v57 = vld [vmem:[%s8682_s1 + $0x10cc] ss:$16 sps:$4 sm:$0xff]  }
 0x1ee   :  { %v3834_v48 = vadd.f32 %v7924_v54, %v3781_v30  ;;  %v6268_v54 = vld [vmem:[%s8682_s1 + $0xd28] ss:$16 sps:$4 sm:$0xff]  }
 0x1ef   :  { %4454 = vmatpush2.bf16.msra.mxu0 %v6247_v40  ;;  %v6259_v40 = vld [vmem:[%s8682_s1 + $0xb48] ss:$16 sps:$4 sm:$0xff]  }
 0x1f0   :  { %4507 = vmatpush2.bf16.msra.mxu1 %v6250_v42  ;;  %4455 = vmatprep.subr.bf16.mxu0 %v6255_v52  ;;  %v6262_v42 = vld [vmem:[%s8682_s1 + $0xd48] ss:$16 sps:$4 sm:$0xff]   ;;  %v3783_v52 = vadd.f32 %v7898_v44, %v7826_v17  ;;  %v3789_v17 = vadd.f32 %v7922_v53, %v7850_v26  ;;  %v3887_v26 = vadd.f32 %v7996_v22, %v3834_v48 }
 0x1f1   :  { %4508 = vmatprep.subr.bf16.mxu1 %v6258_v55  ;;  %v8246_v55 = vpop.f32.mrf.mxu1  ;;  %v6271_v3 = vld [vmem:[%s8682_s1 + $0xb08] ss:$16 sps:$4 sm:$0xff]  }
 0x1f2   :  { %v3836_v44 = vadd.f32 %v7940_v60, %v3783_v52  ;;  %v3842_v60 = vadd.f32 %v7972_v10, %v3789_v17  ;;  %v3940_v30 = vadd.f32 %v8070_v63, %v3887_v26  ;;  %v3846_v10 = vadd.f32 %v8010_v29, %v3793_v59  ;;  %v6282_v63 = vld [vmem:[%s8682_s1 + $0x10ec] ss:$16 sps:$4 sm:$0xff]  }
 0x1f3   :  { %4456 = vmatpush2.bf16.msra.mxu0 %v6253_v58  ;;  %v3885_v58 = vadd.f32 %v7980_v14, %v3832_v33  ;;  %v6273_v14 = vld [vmem:[%s8682_s1 + $0xb0c] ss:$16 sps:$4 sm:$0xff]   ;;  %v8280_v15 = vpop.f32.mrf.mxu1  ;;  %v8307_v33 = vld [vmem:[%s8684_s2] sm:$0xf] }
 0x1f4   :  { %4509 = vmatpush2.bf16.msra.mxu1 %v6256_v1  ;;  %4457 = vmatprep.subr.bf16.mxu0 %v6261_v0  ;;  %v3936_v1 = vadd.f32 %v8026_v39, %v3883_v41  ;;  %v6276_v39 = vld [vmem:[%s8682_s1 + $0xd0c] ss:$16 sps:$4 sm:$0xff]   ;;  %v8271_v0 = vshrl.u32 %v4645_v37, 7  ;;  %v3889_v2 = vadd.f32 %v8024_v36, %v3836_v44 }
 0x1f5   :  { %4510 = vmatprep.subr.bf16.mxu1 %v6264_v25  ;;  %v3938_v53 = vadd.f32 %v8042_v49, %v3885_v58  ;;  %v3844_v25 = vadd.f32 %v7988_v18, %v3791_v20  ;;  %v8292_v18 = vpop.f32.mrf.mxu0  ;;  %v6279_v49 = vld [vmem:[%s8682_s1 + $0xeec] ss:$16 sps:$4 sm:$0xff]   ;;  %v8313_v37 = vpop.f32.mrf.mxu1  ;;  %v6395_v20 = vld [vmem:[%s8683_s0 + $0x28] ss:$72 sps:$4 sm:$0xff]  }
 0x1f6   :  { %v3989_v19 = vadd.f32 %v8102_v23, %v3936_v1  ;;  %v4647_v22 = vsub.s32 0, %v8271_v0  ;;  %v3893_v23 = vadd.f32 %v8034_v43, %v3840_v32  ;;  %v8318_v43 = vld [vmem:[%s8685_s3] sm:$0xf] }
 0x1f7   :  { %4458 = vmatpush2.bf16.msra.mxu0 %v6259_v40  ;;  %v3991_v36 = vadd.f32 %v8118_v34, %v3938_v53  ;;  %v4651_v40 = vsub.s32 1, %v8271_v0  ;;  %8689 = vst [vmem:[#allocation2_spill] sm:$0xff] %v8318_v43  ;;  %v3993_v34 = vadd.f32 %v8134_v50, %v3940_v30  ;;  %v8331_v52 = vpop.f32.mrf.mxu1  ;;  %v8333_v50 = vpop.f32.mrf.mxu0 }
 0x1f8   :  { %4511 = vmatpush2.bf16.msra.mxu1 %v6262_v42  ;;  %4459 = vmatprep.subr.bf16.mxu0 %v6267_v12  ;;  %v4042_v29 = vadd.f32 %v8162_v9, %v3989_v19  ;;  %v3895_v42 = vadd.f32 %v8056_v56, %v3842_v60  ;;  %v3897_v12 = vadd.f32 %v8078_v5, %v3844_v25  ;;  %v6277_v56 = vld [vmem:[%s8682_s1 + $0xee8] ss:$16 sps:$4 sm:$0xff]   ;;  %v6294_v60 = vld [vmem:[%s8682_s1 + $0x10ac] ss:$16 sps:$4 sm:$0xff]  }
 0x1f9   :  { %4512 = vmatprep.subr.bf16.mxu1 %v6270_v31  ;;  %v3942_v31 = vadd.f32 %v8086_v11, %v3889_v2  ;;  %v3946_v9 = vadd.f32 %v8104_v24, %v3893_v23  ;;  %v4044_v41 = vadd.f32 %v8178_v28, %v3991_v36  ;;  %v6280_v5 = vld [vmem:[%s8682_s1 + $0x10e8] ss:$16 sps:$4 sm:$0xff]   ;;  %v3899_v11 = vadd.f32 %v8094_v16, %v3846_v10  ;;  %v6285_v28 = vld [vmem:[%s8682_s1 + $0xecc] ss:$16 sps:$4 sm:$0xff]  }
 0x1fa   :  { %v3948_v48 = vadd.f32 %v8120_v35, %v3895_v42  ;;  %v8336_v24 = vrot.slane %v8307_v33, %v4647_v22  ;;  %v4095_v16 = vadd.f32 %v8223_v21, %v4042_v29  ;;  %v4046_v35 = vadd.f32 %v8194_v46, %v3993_v34  ;;  %v6396_v46 = vld [vmem:[%s8683_s0 + $0x30] ss:$72 sps:$4 sm:$0xff]   ;;  %v6297_v36 = vld [vmem:[%s8682_s1 + $0xe8c] ss:$16 sps:$4 sm:$0xff]  }
 0x1fb   :  { %4460 = vmatpush2.bf16.msra.mxu0 %v6265_v6  ;;  %v8347_v58 = vrot.slane %v8318_v43, %v4647_v22  ;;  %v8350_v1 = vrot.slane %v8307_v33, %v4651_v40  ;;  %v3995_v6 = vadd.f32 %v8150_v61, %v3942_v31  ;;  %v8361_v21 = vrot.slane %v8318_v43, %v4651_v40  ;;  %v6300_v29 = vld [vmem:[%s8682_s1 + $0x108c] ss:$16 sps:$4 sm:$0xff]  }
 0x1fc   :  { %4513 = vmatpush2.bf16.msra.mxu1 %v6268_v54  ;;  %4461 = vmatprep.subr.bf16.mxu0 %v6273_v14  ;;  %v3950_v54 = vadd.f32 %v8136_v51, %v3897_v12  ;;  %v3999_v44 = vadd.f32 %v8160_v8, %v3946_v9  ;;  %v4097_v61 = vadd.f32 %v8246_v55, %v4044_v41  ;;  %v6283_v51 = vld [vmem:[%s8682_s1 + $0xec8] ss:$16 sps:$4 sm:$0xff]   ;;  %v4106_v8 = vpop.f32.mrf.mxu1  ;;  %v6291_v55 = vld [vmem:[%s8682_s1 + $0xeac] ss:$16 sps:$4 sm:$0xff]  }
 0x1fd   :  { %4514 = vmatprep.subr.bf16.mxu1 %v6276_v39  ;;  %v6286_v39 = vld [vmem:[%s8682_s1 + $0x10c8] ss:$16 sps:$4 sm:$0xff]   ;;  %v4001_v26 = vadd.f32 %v8176_v27, %v3948_v48  ;;  %v3952_v32 = vadd.f32 %v8152_v62, %v3899_v11  ;;  %v4048_v53 = vadd.f32 %v8212_v13, %v3995_v6  ;;  %v4099_v25 = vadd.f32 %v8280_v15, %v4046_v35  ;;  %v6397_v62 = vld [vmem:[%s8683_s0 + $0xbc] ss:$72 sps:$4 sm:$0xff]  }
 0x1fe   :  { %v6398_v13 = vld [vmem:[%s8683_s0 + $0xc4] ss:$72 sps:$4 sm:$0xff]   ;;  %v4003_v30 = vadd.f32 %v8192_v45, %v3950_v54  ;;  %v6292_v45 = vld [vmem:[%s8682_s1 + $0x10a8] ss:$16 sps:$4 sm:$0xff]  }
 0x1ff   :  { %4462 = vmatpush2.bf16.msra.mxu0 %v6271_v3  ;;  %v4052_v3 = vadd.f32 %v8234_v7, %v3999_v44  ;;  %v4101_v7 = vadd.f32 %v8313_v37, %v4048_v53  ;;  %v4005_v40 = vadd.f32 %v8210_v4, %v3952_v32  ;;  %v6399_v41 = vld [vmem:[%s8683_s0 + $0xb8] ss:$72 sps:$4 sm:$0xff]   ;;  %v6306_v54 = vld [vmem:[%s8682_s1 + $0x106c] ss:$16 sps:$4 sm:$0xff]  }
 0x200   :  { %4515 = vmatpush2.bf16.msra.mxu1 %v6274_v38  ;;  %4537 = vmatprep.subr.bf16.mxu0 %v6279_v49  ;;  %v4054_v38 = vadd.f32 %v8263_v47, %v4001_v26  ;;  %v6289_v49 = vld [vmem:[%s8682_s1 + $0xea8] ss:$16 sps:$4 sm:$0xff]   ;;  %v4056_v47 = vadd.f32 %v8292_v18, %v4003_v30  ;;  %v6401_v44 = vld [vmem:[%s8683_s0 + $0x3c] ss:$72 sps:$4 sm:$0xff]  }
 0x201   :  { %4590 = vmatprep.subr.bf16.mxu1 %v6282_v63  ;;  %v4108_v63 = vpop.f32.mrf.mxu1  ;;  %v4105_v18 = vadd.f32 %v8331_v52, %v4052_v3  ;;  %v6400_v4 = vld [vmem:[%s8683_s0 + $0xc0] ss:$72 sps:$4 sm:$0xff]  }
 0x202   :  { %v4147_v17 = vpop.f32.mrf.mxu0  ;;  %4464 = vmatmul.mubr.bf16.vlgmr.msra.gmra.mxu0 %v6395_v20  ;;  %v4107_v37 = vadd.f32 %v4106_v8, %v4054_v38  ;;  %v6298_v52 = vld [vmem:[%s8682_s1 + $0x1088] ss:$16 sps:$4 sm:$0xff]  }
 0x203   :  { %4517 = vmatmul.mubr.bf16.vlgmr.msra.gmra.mxu1 %v6396_v46  ;;  %v4148_v14 = vadd.f32 %v4147_v17, %v4095_v16  ;;  %4538 = vmatpush1.bf16.msra.mxu0 %v6277_v56  ;;  %v6295_v56 = vld [vmem:[%s8682_s1 + $0xe88] ss:$16 sps:$4 sm:$0xff]  }
 0x204   :  { %4591 = vmatpush1.bf16.msra.mxu1 %v6280_v5  ;;  %v4149_v59 = vpop.f32.mrf.mxu0  ;;  %4539 = vmatprep.subr.bf16.mxu0 %v6285_v28  ;;  %v4058_v5 = vadd.f32 %v8333_v50, %v4005_v40  ;;  %v4109_v28 = vadd.f32 %v4108_v63, %v4056_v47  ;;  %v6303_v50 = vld [vmem:[%s8682_s1 + $0xe6c] ss:$16 sps:$4 sm:$0xff]   ;;  %v6301_v53 = vld [vmem:[%s8682_s1 + $0xe68] ss:$16 sps:$4 sm:$0xff]  }
 0x205   :  { %4592 = vmatprep.subr.bf16.mxu1 %v6288_v57  ;;  %v4665_v27 = vmul.f32 %v8336_v24, %v4148_v14  ;;  %v4150_v19 = vadd.f32 %v4149_v59, %v4097_v61  ;;  %4473 = vmatprep.mubr.bf16.mxu0 %v6397_v62  ;;  %v4110_v57 = vpop.f32.mrf.mxu1  ;;  %v6402_v61 = vld [vmem:[%s8683_s0 + $0x44] ss:$72 sps:$4 sm:$0xff]  }
 0x206   :  { %4526 = vmatprep.mubr.bf16.mxu1 %v6398_v13  ;;  %v4151_v15 = vpop.f32.mrf.mxu0  ;;  %v4111_v8 = vadd.f32 %v4110_v57, %v4058_v5  ;;  %v6312_v13 = vld [vmem:[%s8682_s1 + $0x104c] ss:$16 sps:$4 sm:$0xff]   ;;  %v6331_v57 = vld [vmem:[%s8682_s1 + $0xfc8] ss:$16 sps:$4 sm:$0xff]  }
 0x207   :  { %v4703_v2 = vadd.f32 %v8347_v58, %v4665_v27  ;;  %v4666_v10 = vmul.f32 %v8350_v1, %v4150_v19  ;;  %v4152_v22 = vadd.f32 %v4151_v15, %v4099_v25  ;;  %4540 = vmatpush1.bf16.msra.mxu0 %v6283_v51  ;;  %v6309_v25 = vld [vmem:[%s8682_s1 + $0xe4c] ss:$16 sps:$4 sm:$0xff]  }
 0x208   :  { %4593 = vmatpush1.bf16.msra.mxu1 %v6286_v39  ;;  %v4153_v23 = vpop.f32.mrf.mxu0  ;;  %4541 = vmatprep.subr.bf16.mxu0 %v6291_v55  ;;  %v6315_v63 = vld [vmem:[%s8682_s1 + $0xe2c] ss:$16 sps:$4 sm:$0xff]  }
 0x209   :  { %4594 = vmatprep.subr.bf16.mxu1 %v6294_v60  ;;  %v4735_v42 = vmul.f32 0.2, %v4703_v2  ;;  %v4704_v12 = vadd.f32 %v8361_v21, %v4666_v10  ;;  %v4669_v31 = vmul.f32 %v8336_v24, %v4152_v22  ;;  %vm4719_vm0 = vcmp.ge.f32.partialorder %v4703_v2, 0.0  ;;  %v6304_v60 = vld [vmem:[%s8682_s1 + $0x1068] ss:$16 sps:$4 sm:$0xff]  }
 0x20a   :  { %v4154_v34 = vadd.f32 %v4153_v23, %v4101_v7  ;;  %v4157_v9 = vpop.f32.mrf.mxu0  ;;  %4474 = vmatmul.mubr.bf16.gmra.mxu0 %v6399_v41  ;;  %v6307_v22 = vld [vmem:[%s8682_s1 + $0xe48] ss:$16 sps:$4 sm:$0xff]   ;;  %v6318_v23 = vld [vmem:[%s8682_s1 + $0x102c] ss:$16 sps:$4 sm:$0xff]  }
 0x20b   :  { %4527 = vmatmul.mubr.bf16.gmra.mxu1 %v6400_v4  ;;  %vm4720_vm1 = vcmp.ge.f32.partialorder %v4704_v12, 0.0  ;;  %v4736_v11 = vmul.f32 0.2, %v4704_v12  ;;  %v4707_v48 = vadd.f32 %v8347_v58, %v4669_v31  ;;  %4542 = vmatpush1.bf16.msra.mxu0 %v6289_v49  ;;  %v4158_v35 = vadd.f32 %v4157_v9, %v4105_v18  ;;  %v6321_v31 = vld [vmem:[%s8682_s1 + $0xe0c] ss:$16 sps:$4 sm:$0xff]  }
 0x20c   :  { %4595 = vmatpush1.bf16.msra.mxu1 %v6292_v45  ;;  %v4670_v16 = vmul.f32 %v8350_v1, %v4154_v34  ;;  %v4159_v6 = vpop.f32.mrf.mxu0  ;;  %4543 = vmatprep.subr.bf16.mxu0 %v6297_v36  ;;  %v4751_v17 = vsel %vm4719_vm0, %v4703_v2, %v4735_v42  ;;  %v6313_v42 = vld [vmem:[%s8682_s1 + $0xe28] ss:$16 sps:$4 sm:$0xff]   ;;  %v6324_v18 = vld [vmem:[%s8682_s1 + $0x100c] ss:$16 sps:$4 sm:$0xff]  }
 0x20d   :  { %4596 = vmatprep.subr.bf16.mxu1 %v6300_v29  ;;  %v4752_v20 = vsel %vm4720_vm1, %v4704_v12, %v4736_v11  ;;  %v4160_v46 = vadd.f32 %v4159_v6, %v4107_v37  ;;  %4569 = vmatprep.mubr.bf16.mxu0 %v6401_v44  ;;  %v4739_v51 = vmul.f32 0.2, %v4707_v48  ;;  %v4673_v26 = vmul.f32 %v8336_v24, %v4158_v35  ;;  %v6316_v12 = vld [vmem:[%s8682_s1 + $0x1028] ss:$16 sps:$4 sm:$0xff]   ;;  %v6330_v5 = vld [vmem:[%s8682_s1 + $0x11ec] ss:$16 sps:$4 sm:$0xff]  }
 0x20e   :  { %4622 = vmatprep.mubr.bf16.mxu1 %v6402_v61  ;;  %v5447_v14 = vpack.c.bf16 %v4752_v20, %v4751_v17  ;;  %v4708_v39 = vadd.f32 %v8361_v21, %v4670_v16  ;;  %v4161_v32 = vpop.f32.mrf.mxu0  ;;  %vm4723_vm2 = vcmp.ge.f32.partialorder %v4707_v48, 0.0  ;;  %v6319_v41 = vld [vmem:[%s8682_s1 + $0xe08] ss:$16 sps:$4 sm:$0xff]   ;;  %v6339_v35 = vld [vmem:[%s8682_s1 + $0xfac] ss:$16 sps:$4 sm:$0xff]  }
 0x20f   :  { %v4674_v59 = vmul.f32 %v8350_v1, %v4160_v46  ;;  %v4162_v55 = vadd.f32 %v4161_v32, %v4109_v28  ;;  %4544 = vmatpush1.bf16.msra.mxu0 %v6295_v56  ;;  %v4711_v19 = vadd.f32 %v8347_v58, %v4673_v26  ;;  %v4755_v15 = vsel %vm4723_vm2, %v4707_v48, %v4739_v51  ;;  %v6322_v4 = vld [vmem:[%s8682_s1 + $0x1008] ss:$16 sps:$4 sm:$0xff]   ;;  %v6327_v56 = vld [vmem:[%s8682_s1 + $0xfec] ss:$16 sps:$4 sm:$0xff]  }
 0x210   :  { %4597 = vmatpush1.bf16.msra.mxu1 %v6298_v52  ;;  %4815 = vst [vmem:[%s8686_s4] sm:$0xff] %v5447_v14  ;;  %vm4724_vm3 = vcmp.ge.f32.partialorder %v4708_v39, 0.0  ;;  %v4740_v27 = vmul.f32 0.2, %v4708_v39  ;;  %v4163_v62 = vpop.f32.mrf.mxu0  ;;  %4545 = vmatprep.subr.bf16.mxu0 %v6303_v50  ;;  %v6325_v11 = vld [vmem:[%s8682_s1 + $0xfe8] ss:$16 sps:$4 sm:$0xff]  }
 0x211   :  { %4598 = vmatprep.subr.bf16.mxu1 %v6306_v54  ;;  %v4712_v30 = vadd.f32 %v8361_v21, %v4674_v59  ;;  %v4677_v3 = vmul.f32 %v8336_v24, %v4162_v55  ;;  %v4164_v38 = vadd.f32 %v4163_v62, %v4111_v8  ;;  %vm4727_vm4 = vcmp.ge.f32.partialorder %v4711_v19, 0.0  ;;  %v6310_v24 = vld [vmem:[%s8682_s1 + $0x1048] ss:$16 sps:$4 sm:$0xff]   ;;  %v6333_v52 = vld [vmem:[%s8682_s1 + $0xfcc] ss:$16 sps:$4 sm:$0xff]  }
 0x212   :  { %v4756_v2 = vsel %vm4724_vm3, %v4708_v39, %v4740_v27  ;;  %v4743_v10 = vmul.f32 0.2, %v4711_v19  ;;  %v6328_v48 = vld [vmem:[%s8682_s1 + $0x11e8] ss:$16 sps:$4 sm:$0xff]   ;;  %v6336_v28 = vld [vmem:[%s8682_s1 + $0x11cc] ss:$16 sps:$4 sm:$0xff]  }
 0x213   :  { %v5449_v49 = vpack.c.bf16 %v4756_v2, %v4755_v15  ;;  %vm4728_vm5 = vcmp.ge.f32.partialorder %v4712_v30, 0.0  ;;  %v4744_v45 = vmul.f32 0.2, %v4712_v30  ;;  %v4715_v7 = vadd.f32 %v8347_v58, %v4677_v3  ;;  %4546 = vmatpush1.bf16.msra.mxu0 %v6301_v53  ;;  %v6334_v16 = vld [vmem:[%s8682_s1 + $0x11c8] ss:$16 sps:$4 sm:$0xff]  }
 0x214   :  { %4599 = vmatpush1.bf16.msra.mxu1 %v6304_v60  ;;  %v4678_v47 = vmul.f32 %v8350_v1, %v4164_v38  ;;  %4547 = vmatprep.subr.bf16.mxu0 %v6309_v25  ;;  %v4759_v58 = vsel %vm4727_vm4, %v4711_v19, %v4743_v10  ;;  %v6342_v6 = vld [vmem:[%s8682_s1 + $0x11ac] ss:$16 sps:$4 sm:$0xff]   ;;  %v6337_v50 = vld [vmem:[%s8682_s1 + $0xfa8] ss:$16 sps:$4 sm:$0xff]  }
 0x215   :  { %4600 = vmatprep.subr.bf16.mxu1 %v6312_v13  ;;  %4817 = vst [vmem:[%s8686_s4 + $0x10] sm:$0xff] %v5449_v49  ;;  %v4760_v36 = vsel %vm4728_vm5, %v4712_v30, %v4744_v45  ;;  %v4747_v40 = vmul.f32 0.2, %v4715_v7  ;;  %vm4731_vm6 = vcmp.ge.f32.partialorder %v4715_v7, 0.0  ;;  %v6340_v54 = vld [vmem:[%s8682_s1 + $0x11a8] ss:$16 sps:$4 sm:$0xff]  }
 0x216   :  { %v5451_v29 = vpack.c.bf16 %v4760_v36, %v4759_v58  ;;  %v4716_v1 = vadd.f32 %v8361_v21, %v4678_v47  ;;  %v6345_v17 = vld [vmem:[%s8682_s1 + $0xf8c] ss:$16 sps:$4 sm:$0xff]   ;;  %v6343_v46 = vld [vmem:[%s8682_s1 + $0xf88] ss:$16 sps:$4 sm:$0xff]  }
 0x217   :  { %4548 = vmatpush1.bf16.msra.mxu0 %v6307_v22  ;;  %v4763_v37 = vsel %vm4731_vm6, %v4715_v7, %v4747_v40  ;;  %v6348_v20 = vld [vmem:[%s8682_s1 + $0x118c] ss:$16 sps:$4 sm:$0xff]   ;;  %v6346_v44 = vld [vmem:[%s8682_s1 + $0x1188] ss:$16 sps:$4 sm:$0xff]   ;;  %v4200_v22 = vpop.f32.mrf.mxu1 }
 0x218   :  { %4601 = vmatpush1.bf16.msra.mxu1 %v6310_v24  ;;  %4819 = vst [vmem:[%s8686_s4 + $0x20] sm:$0xff] %v5451_v29  ;;  %vm4732_vm7 = vcmp.ge.f32.partialorder %v4716_v1, 0.0  ;;  %v4748_v21 = vmul.f32 0.2, %v4716_v1  ;;  %4549 = vmatprep.subr.bf16.mxu0 %v6315_v63  ;;  %v6351_v61 = vld [vmem:[%s8682_s1 + $0xf6c] ss:$16 sps:$4 sm:$0xff]  }
 0x219   :  { %4602 = vmatprep.subr.bf16.mxu1 %v6318_v23  ;;  %v6354_v14 = vld [vmem:[%s8682_s1 + $0x116c] ss:$16 sps:$4 sm:$0xff]   ;;  %v6349_v51 = vld [vmem:[%s8682_s1 + $0xf68] ss:$16 sps:$4 sm:$0xff]   ;;  %v4202_v49 = vpop.f32.mrf.mxu1 }
 0x21a   :  { %v4764_v34 = vsel %vm4732_vm7, %v4716_v1, %v4748_v21  ;;  %v6352_v39 = vld [vmem:[%s8682_s1 + $0x1168] ss:$16 sps:$4 sm:$0xff]   ;;  %v6357_v26 = vld [vmem:[%s8682_s1 + $0xf4c] ss:$16 sps:$4 sm:$0xff]  }
 0x21b   :  { %v5453_v9 = vpack.c.bf16 %v4764_v34, %v4763_v37  ;;  %4550 = vmatpush1.bf16.msra.mxu0 %v6313_v42  ;;  %v6360_v32 = vld [vmem:[%s8682_s1 + $0x114c] ss:$16 sps:$4 sm:$0xff]   ;;  %v6355_v53 = vld [vmem:[%s8682_s1 + $0xf48] ss:$16 sps:$4 sm:$0xff]   ;;  %v4204_v45 = vpop.f32.mrf.mxu1 }
 0x21c   :  { %4603 = vmatpush1.bf16.msra.mxu1 %v6316_v12  ;;  %4551 = vmatprep.subr.bf16.mxu0 %v6321_v31  ;;  %v6358_v8 = vld [vmem:[%s8682_s1 + $0x1148] ss:$16 sps:$4 sm:$0xff]   ;;  %v6363_v59 = vld [vmem:[%s8682_s1 + $0xf2c] ss:$16 sps:$4 sm:$0xff]  }
 0x21d   :  { %4604 = vmatprep.subr.bf16.mxu1 %v6324_v18  ;;  %4821 = vst [vmem:[%s8686_s4 + $0x30] sm:$0xff] %v5453_v9  ;;  %v6366_v55 = vld [vmem:[%s8682_s1 + $0x112c] ss:$16 sps:$4 sm:$0xff]   ;;  %v6361_v60 = vld [vmem:[%s8682_s1 + $0xf28] ss:$16 sps:$4 sm:$0xff]   ;;  %v4206_v7 = vpop.f32.mrf.mxu1 }
 0x21e   :  { %v6364_v25 = vld [vmem:[%s8682_s1 + $0x1128] ss:$16 sps:$4 sm:$0xff]   ;;  %v6369_v27 = vld [vmem:[%s8682_s1 + $0xf0c] ss:$16 sps:$4 sm:$0xff]  }
 0x21f   :  { %4552 = vmatpush1.bf16.msra.mxu0 %v6319_v41  ;;  %v6372_v19 = vld [vmem:[%s8682_s1 + $0x110c] ss:$16 sps:$4 sm:$0xff]   ;;  %v6367_v62 = vld [vmem:[%s8682_s1 + $0xf08] ss:$16 sps:$4 sm:$0xff]   ;;  %v4210_v24 = vpop.f32.mrf.mxu1 }
 0x220   :  { %4605 = vmatpush1.bf16.msra.mxu1 %v6322_v4  ;;  %4553 = vmatprep.subr.bf16.mxu0 %v6327_v56  ;;  %v6370_v13 = vld [vmem:[%s8682_s1 + $0x1108] ss:$16 sps:$4 sm:$0xff]   ;;  %v6405_v38 = vld [vmem:[%s8683_s0 + $0xcc] ss:$72 sps:$4 sm:$0xff]  }
 0x221   :  { %4606 = vmatprep.subr.bf16.mxu1 %v6330_v5  ;;  %v6403_v30 = vld [vmem:[%s8683_s0 + $0x38] ss:$72 sps:$4 sm:$0xff]   ;;  %v6406_v15 = vld [vmem:[%s8683_s0 + $0xd4] ss:$72 sps:$4 sm:$0xff]   ;;  %v6407_v2 = vld [vmem:[%s8683_s0 + $0xc8] ss:$72 sps:$4 sm:$0xff]   ;;  %v4212_v47 = vpop.f32.mrf.mxu1 }
 0x222   :  { %v6404_v3 = vld [vmem:[%s8683_s0 + $0x40] ss:$72 sps:$4 sm:$0xff]   ;;  %v6408_v10 = vld [vmem:[%s8683_s0 + $0xd0] ss:$72 sps:$4 sm:$0xff]  }
 0x223   :  { %4554 = vmatpush2.bf16.msra.mxu0 %v6325_v11  ;;  %v4214_v63 = vpop.f32.mrf.mxu1 }
 0x224   :  { %4607 = vmatpush2.bf16.msra.mxu1 %v6328_v48  ;;  %4555 = vmatprep.subr.bf16.mxu0 %v6333_v52 }
 0x225   :  { %4608 = vmatprep.subr.bf16.mxu1 %v6336_v28  ;;  %v8619_v58 = vpop.f32.mrf.mxu1 }
 0x227   :  { %4556 = vmatpush2.bf16.msra.mxu0 %v6331_v57 }
 0x228   :  { %4609 = vmatpush2.bf16.msra.mxu1 %v6334_v16  ;;  %4557 = vmatprep.subr.bf16.mxu0 %v6339_v35 }
 0x229   :  { %4610 = vmatprep.subr.bf16.mxu1 %v6342_v6 }
 0x22b   :  { %4558 = vmatpush2.bf16.msra.mxu0 %v6337_v50 }
 0x22c   :  { %4611 = vmatpush2.bf16.msra.mxu1 %v6340_v54  ;;  %4559 = vmatprep.subr.bf16.mxu0 %v6345_v17 }
 0x22d   :  { %4612 = vmatprep.subr.bf16.mxu1 %v6348_v20 }
 0x22f   :  { %4560 = vmatpush2.bf16.msra.mxu0 %v6343_v46 }
 0x230   :  { %4613 = vmatpush2.bf16.msra.mxu1 %v6346_v44  ;;  %4561 = vmatprep.subr.bf16.mxu0 %v6351_v61 }
 0x231   :  { %4614 = vmatprep.subr.bf16.mxu1 %v6354_v14 }
 0x233   :  { %4562 = vmatpush2.bf16.msra.mxu0 %v6349_v51 }
 0x234   :  { %4615 = vmatpush2.bf16.msra.mxu1 %v6352_v39  ;;  %4563 = vmatprep.subr.bf16.mxu0 %v6357_v26 }
 0x235   :  { %4616 = vmatprep.subr.bf16.mxu1 %v6360_v32 }
 0x237   :  { %4564 = vmatpush2.bf16.msra.mxu0 %v6355_v53 }
 0x238   :  { %4617 = vmatpush2.bf16.msra.mxu1 %v6358_v8  ;;  %4565 = vmatprep.subr.bf16.mxu0 %v6363_v59 }
 0x239   :  { %4618 = vmatprep.subr.bf16.mxu1 %v6366_v55 }
 0x23b   :  { %4566 = vmatpush2.bf16.msra.mxu0 %v6361_v60 }
 0x23c   :  { %4619 = vmatpush2.bf16.msra.mxu1 %v6364_v25  ;;  %4567 = vmatprep.subr.bf16.mxu0 %v6369_v27 }
 0x23d   :  { %4620 = vmatprep.subr.bf16.mxu1 %v6372_v19 }
 0x23f   :  { %4568 = vmatpush2.bf16.msra.mxu0 %v6367_v62 }
 0x240   :  { %4621 = vmatpush2.bf16.msra.mxu1 %v6370_v13 }
 0x242   :  { %4570 = vmatmul.mubr.bf16.vlgmr.msra.gmra.mxu0 %v6403_v30  ;;  %v4253_v23 = vpop.f32.mrf.mxu0 }
 0x243   :  { %4623 = vmatmul.mubr.bf16.vlgmr.msra.gmra.mxu1 %v6404_v3  ;;  %4579 = vmatprep.mubr.bf16.mxu0 %v6405_v38  ;;  %v4306_v29 = vpop.f32.mrf.mxu1  ;;  %v4254_v59 = vadd.f32 %v4253_v23, %v4200_v22 }
 0x244   :  { %4632 = vmatprep.mubr.bf16.mxu1 %v6406_v15  ;;  %v4255_v36 = vpop.f32.mrf.mxu0 }
 0x245   :  { %v4308_v1 = vpop.f32.mrf.mxu1  ;;  %v4256_v60 = vadd.f32 %v4255_v36, %v4202_v49  ;;  %v4307_v19 = vadd.f32 %v4306_v29, %v4254_v59 }
 0x246   :  { %v4257_v40 = vpop.f32.mrf.mxu0 }
 0x247   :  { %v4310_v12 = vpop.f32.mrf.mxu1  ;;  %v4258_v62 = vadd.f32 %v4257_v40, %v4204_v45  ;;  %v4309_v13 = vadd.f32 %v4308_v1, %v4256_v60 }
 0x248   :  { %v4259_v42 = vpop.f32.mrf.mxu0 }
 0x249   :  { %v4312_v21 = vpop.f32.mrf.mxu1  ;;  %v4260_v30 = vadd.f32 %v4259_v42, %v4206_v7 }
 0x24a   :  { %4580 = vmatmul.mubr.bf16.gmra.mxu0 %v6407_v2  ;;  %v4263_v31 = vpop.f32.mrf.mxu0  ;;  %v4311_v2 = vadd.f32 %v4310_v12, %v4258_v62  ;;  %v4655_v12 = vsub.s32 2, %v8271_v0 }
 0x24b   :  { %4633 = vmatmul.mubr.bf16.gmra.mxu1 %v6408_v10  ;;  %v4316_v37 = vpop.f32.mrf.mxu1 }
 0x24c   :  { %v4265_v18 = vpop.f32.mrf.mxu0 }
 0x24d   :  { %v4318_v9 = vpop.f32.mrf.mxu1  ;;  %v4266_v22 = vadd.f32 %v4265_v18, %v4212_v47 }
 0x24e   :  { %v4267_v34 = vpop.f32.mrf.mxu0 }
 0x24f   :  { %v4320_v4 = vpop.f32.mrf.mxu1  ;;  %v4268_v23 = vadd.f32 %v4267_v34, %v4214_v63  ;;  %v4659_v34 = vsub.s32 3, %v8271_v0 }
 0x250   :  { %v4269_v41 = vpop.f32.mrf.mxu0 }
 0x251   :  { %v4322_v5 = vpop.f32.mrf.mxu1  ;;  %v4270_v7 = vadd.f32 %v4269_v41, %v8619_v58 }
 0x282   :  { %v4359_v56 = vpop.f32.mrf.mxu0 }
 0x283   :  { %v4412_v11 = vpop.f32.mrf.mxu1  ;;  %v4360_v3 = vadd.f32 %v4359_v56, %v4307_v19  ;;  %v4319_v56 = vadd.f32 %v4318_v9, %v4266_v22 }
 0x284   :  { %v4361_v48 = vpop.f32.mrf.mxu0 }
 0x285   :  { %v4414_v52 = vpop.f32.mrf.mxu1  ;;  %v4362_v10 = vadd.f32 %v4361_v48, %v4309_v13  ;;  %v4323_v48 = vadd.f32 %v4322_v5, %v4270_v7 }
 0x286   :  { %v4363_v28 = vpop.f32.mrf.mxu0 }
 0x287   :  { %v4416_v57 = vpop.f32.mrf.mxu1  ;;  %v4364_v43 = vadd.f32 %v4363_v28, %v4311_v2 }
 0x288   :  { %v4365_v16 = vpop.f32.mrf.mxu0 }
 0x289   :  { %v4418_v35 = vpop.f32.mrf.mxu1  ;;  %v4417_v1 = vadd.f32 %v4416_v57, %v4364_v43  ;;  %v8637_v57 = vrot.slane %v8307_v33, %v4655_v12 }
 0x28a   :  { %v4369_v6 = vpop.f32.mrf.mxu0 }
 0x28b   :  { %v4422_v50 = vpop.f32.mrf.mxu1 }
 0x28c   :  { %v4371_v54 = vpop.f32.mrf.mxu0 }
 0x28d   :  { %v8621_v17 = vpop.f32.mrf.mxu1 }
 0x28e   :  { %8690 = vst [vmem:[#allocation3_spill] sm:$0xff] %v8621_v17  ;;  %v4373_v20 = vpop.f32.mrf.mxu0  ;;  %v4413_v17 = vadd.f32 %v4412_v11, %v4360_v3 }
 0x28f   :  { %v8623_v46 = vpop.f32.mrf.mxu1 }
 0x290   :  { %8691 = vst [vmem:[#allocation4_spill] sm:$0xff] %v8623_v46  ;;  %v4375_v44 = vpop.f32.mrf.mxu0  ;;  %v4313_v46 = vadd.f32 %v4312_v21, %v4260_v30 }
 0x291   :  { %v8625_v61 = vpop.f32.mrf.mxu1 }
 0x292   :  { %8692 = vst [vmem:[#allocation5_spill] sm:$0xff] %v8625_v61  ;;  %v4264_v61 = vadd.f32 %v4263_v31, %v4210_v24  ;;  %v4366_v29 = vadd.f32 %v4365_v16, %v4313_v46  ;;  %v4321_v24 = vadd.f32 %v4320_v4, %v4268_v23  ;;  %v4376_v4 = vadd.f32 %v4375_v44, %v4323_v48 }
 0x294   :  { %v4317_v40 = vadd.f32 %v4316_v37, %v4264_v61  ;;  %v4419_v47 = vadd.f32 %v4418_v35, %v4366_v29  ;;  %v4374_v28 = vadd.f32 %v4373_v20, %v4321_v24 }
 0x295   :  { %v8695_v20 = vld [vmem:[#allocation3_spill] sm:$0xff] }
 0x296   :  { %v4370_v31 = vadd.f32 %v4369_v6, %v4317_v40  ;;  %v8694_v6 = vld [vmem:[#allocation2_spill] sm:$0xff] }
 0x298   :  { %v4423_v9 = vadd.f32 %v4422_v50, %v4370_v31 }
 0x2c2   :  { %v4465_v14 = vpop.f32.mrf.mxu0 }
 0x2c3   :  { %v4518_v51 = vpop.f32.mrf.mxu1  ;;  %v4466_v45 = vadd.f32 %v4465_v14, %v4413_v17  ;;  %v8640_v17 = vrot.slane %v8694_v6, %v4655_v12 }
 0x2c4   :  { %v4467_v39 = vpop.f32.mrf.mxu0 }
 0x2c5   :  { %v4520_v26 = vpop.f32.mrf.mxu1  ;;  %v4519_v63 = vadd.f32 %v4518_v51, %v4466_v45  ;;  %v8696_v51 = vld [vmem:[#allocation4_spill] sm:$0xff] }
 0x2c6   :  { %v4469_v32 = vpop.f32.mrf.mxu0 }
 0x2c7   :  { %v4522_v53 = vpop.f32.mrf.mxu1  ;;  %v4470_v18 = vadd.f32 %v4469_v32, %v4417_v1  ;;  %v8648_v32 = vrot.slane %v8694_v6, %v4659_v34 }
 0x2c8   :  { %v4471_v8 = vpop.f32.mrf.mxu0 }
 0x2c9   :  { %v4524_v55 = vpop.f32.mrf.mxu1  ;;  %v4472_v43 = vadd.f32 %v4471_v8, %v4419_v47  ;;  %v4523_v61 = vadd.f32 %v4522_v53, %v4470_v18 }
 0x2ca   :  { %v4475_v25 = vpop.f32.mrf.mxu0 }
 0x2cb   :  { %v8627_v27 = vpop.f32.mrf.mxu1  ;;  %v4525_v8 = vadd.f32 %v4524_v55, %v4472_v43 }
 0x2cc   :  { %8693 = vst [vmem:[#allocation6_spill] sm:$0xff] %v8627_v27  ;;  %v4477_v38 = vpop.f32.mrf.mxu0  ;;  %v4415_v27 = vadd.f32 %v4414_v52, %v4362_v10  ;;  %v4372_v52 = vadd.f32 %v4371_v54, %v4319_v56  ;;  %v8643_v54 = vrot.slane %v8307_v33, %v4659_v34 }
 0x2cd   :  { %v8629_v15 = vpop.f32.mrf.mxu1 }
 0x2ce   :  { %v4479_v49 = vpop.f32.mrf.mxu0  ;;  %v4468_v42 = vadd.f32 %v4467_v39, %v4415_v27  ;;  %v4425_v14 = vadd.f32 %v8695_v20, %v4372_v52  ;;  %v4427_v39 = vadd.f32 %v8696_v51, %v4374_v28  ;;  %v8697_v27 = vld [vmem:[#allocation5_spill] sm:$0xff] }
 0x2cf   :  { %v8631_v36 = vpop.f32.mrf.mxu1  ;;  %v4429_v19 = vadd.f32 %v8697_v27, %v4376_v4 }
 0x2d0   :  { %v4481_v21 = vpop.f32.mrf.mxu0  ;;  %v4521_v58 = vadd.f32 %v4520_v26, %v4468_v42  ;;  %v4476_v26 = vadd.f32 %v4475_v25, %v4423_v9  ;;  %v4478_v62 = vadd.f32 %v4477_v38, %v4425_v14  ;;  %v4480_v33 = vadd.f32 %v4479_v49, %v4427_v39 }
 0x2d1   :  { %v4534_v11 = vpop.f32.mrf.mxu1  ;;  %v4482_v29 = vadd.f32 %v4481_v21, %v4429_v19 }
 0x2d2   :  { %v4531_v38 = vadd.f32 %v8629_v15, %v4478_v62  ;;  %v4533_v24 = vadd.f32 %v8631_v36, %v4480_v33 }
 0x2d3   :  { %v8698_v22 = vld [vmem:[#allocation6_spill] sm:$0xff]  ;;  %v4535_v47 = vadd.f32 %v4534_v11, %v4482_v29 }
 0x2d4   :  { %v4529_v23 = vadd.f32 %v8698_v22, %v4476_v26 }
 0x302   :  { %v4571_v37 = vpop.f32.mrf.mxu0 }
 0x303   :  { %v4624_v16 = vpop.f32.mrf.mxu1  ;;  %v4572_v41 = vadd.f32 %v4571_v37, %v4519_v63 }
 0x304   :  { %v4573_v35 = vpop.f32.mrf.mxu0 }
 0x305   :  { %v4626_v46 = vpop.f32.mrf.mxu1  ;;  %v4625_v0 = vadd.f32 %v4624_v16, %v4572_v41  ;;  %v4574_v5 = vadd.f32 %v4573_v35, %v4521_v58 }
 0x306   :  { %v4575_v50 = vpop.f32.mrf.mxu0 }
 0x307   :  { %v4628_v44 = vpop.f32.mrf.mxu1  ;;  %v4667_v59 = vmul.f32 %v8637_v57, %v4625_v0  ;;  %v4627_v60 = vadd.f32 %v4626_v46, %v4574_v5  ;;  %v4576_v53 = vadd.f32 %v4575_v50, %v4523_v61 }
 0x308   :  { %v4577_v13 = vpop.f32.mrf.mxu0 }
 0x309   :  { %v4630_v30 = vpop.f32.mrf.mxu1  ;;  %v4705_v3 = vadd.f32 %v8640_v17, %v4667_v59  ;;  %v4668_v25 = vmul.f32 %v8643_v54, %v4627_v60  ;;  %v4629_v2 = vadd.f32 %v4628_v44, %v4576_v53  ;;  %v4578_v10 = vadd.f32 %v4577_v13, %v4525_v8 }
 0x30a   :  { %v4581_v55 = vpop.f32.mrf.mxu0 }
 0x30b   :  { %v4634_v45 = vpop.f32.mrf.mxu1  ;;  %v4737_v40 = vmul.f32 0.2, %v4705_v3  ;;  %v4706_v7 = vadd.f32 %v8648_v32, %v4668_v25  ;;  %v4671_v1 = vmul.f32 %v8637_v57, %v4629_v2  ;;  %vm4721_vm8 = vcmp.ge.f32.partialorder %v4705_v3, 0.0 }
 0x30c   :  { %v4631_v49 = vadd.f32 %v4630_v30, %v4578_v10  ;;  %v4582_v42 = vadd.f32 %v4581_v55, %v4529_v23  ;;  %v4583_v12 = vpop.f32.mrf.mxu0 }
 0x30d   :  { %v4636_v56 = vpop.f32.mrf.mxu1  ;;  %vm4722_vm9 = vcmp.ge.f32.partialorder %v4706_v7, 0.0  ;;  %v4738_v31 = vmul.f32 0.2, %v4706_v7  ;;  %v4709_v21 = vadd.f32 %v8640_v17, %v4671_v1  ;;  %v4584_v34 = vadd.f32 %v4583_v12, %v4531_v38 }
 0x30e   :  { %v4672_v63 = vmul.f32 %v8643_v54, %v4631_v49  ;;  %v4635_v18 = vadd.f32 %v4634_v45, %v4582_v42  ;;  %v4585_v48 = vpop.f32.mrf.mxu0  ;;  %v4753_v28 = vsel %vm4721_vm8, %v4705_v3, %v4737_v40 }
 0x30f   :  { %v4638_v52 = vpop.f32.mrf.mxu1  ;;  %v4754_v15 = vsel %vm4722_vm9, %v4706_v7, %v4738_v31  ;;  %v4741_v37 = vmul.f32 0.2, %v4709_v21  ;;  %v4586_v16 = vadd.f32 %v4585_v48, %v4533_v24  ;;  %v4637_v41 = vadd.f32 %v4636_v56, %v4584_v34 }
 0x310   :  { %v5448_v58 = vpack.c.bf16 %v4754_v15, %v4753_v28  ;;  %v4710_v43 = vadd.f32 %v8648_v32, %v4672_v63  ;;  %v4675_v36 = vmul.f32 %v8637_v57, %v4635_v18  ;;  %v4587_v9 = vpop.f32.mrf.mxu0  ;;  %vm4725_vm10 = vcmp.ge.f32.partialorder %v4709_v21, 0.0 }
 0x311   :  { %v4639_v4 = vadd.f32 %v4638_v52, %v4586_v16  ;;  %v4588_v11 = vadd.f32 %v4587_v9, %v4535_v47  ;;  %v4676_v46 = vmul.f32 %v8643_v54, %v4637_v41  ;;  %v4640_v61 = vpop.f32.mrf.mxu1  ;;  %v4757_v20 = vsel %vm4725_vm10, %v4709_v21, %v4741_v37 }
 0x312   :  { %4816 = vst [vmem:[%s8686_s4 + $0x8] sm:$0xff] %v5448_v58  ;;  %vm4726_vm11 = vcmp.ge.f32.partialorder %v4710_v43, 0.0  ;;  %v4742_v6 = vmul.f32 0.2, %v4710_v43  ;;  %v4713_v35 = vadd.f32 %v8640_v17, %v4675_v36 }
 0x313   :  { %v4679_v0 = vmul.f32 %v8637_v57, %v4639_v4  ;;  %v4641_v5 = vadd.f32 %v4640_v61, %v4588_v11  ;;  %v4714_v39 = vadd.f32 %v8648_v32, %v4676_v46 }
 0x314   :  { %v4758_v14 = vsel %vm4726_vm11, %v4710_v43, %v4742_v6  ;;  %v4745_v51 = vmul.f32 0.2, %v4713_v35  ;;  %vm4729_vm12 = vcmp.ge.f32.partialorder %v4713_v35, 0.0 }
 0x315   :  { %v5450_v26 = vpack.c.bf16 %v4758_v14, %v4757_v20  ;;  %v4717_v50 = vadd.f32 %v8640_v17, %v4679_v0  ;;  %v4680_v44 = vmul.f32 %v8643_v54, %v4641_v5  ;;  %vm4730_vm13 = vcmp.ge.f32.partialorder %v4714_v39, 0.0 }
 0x316   :  { %v4746_v8 = vmul.f32 0.2, %v4714_v39  ;;  %v4761_v60 = vsel %vm4729_vm12, %v4713_v35, %v4745_v51 }
 0x317   :  { %4818 = vst [vmem:[%s8686_s4 + $0x18] sm:$0xff] %v5450_v26  ;;  %v4749_v59 = vmul.f32 0.2, %v4717_v50  ;;  %v4718_v57 = vadd.f32 %v8648_v32, %v4680_v44  ;;  %vm4733_vm14 = vcmp.ge.f32.partialorder %v4717_v50, 0.0 }
 0x318   :  { %v4762_v53 = vsel %vm4730_vm13, %v4714_v39, %v4746_v8 }
 0x319   :  { %v5452_v27 = vpack.c.bf16 %v4762_v53, %v4761_v60  ;;  %vm4734_vm15 = vcmp.ge.f32.partialorder %v4718_v57, 0.0  ;;  %v4750_v19 = vmul.f32 0.2, %v4718_v57  ;;  %v4765_v17 = vsel %vm4733_vm14, %v4717_v50, %v4749_v59 }
 0x31b   :  { %4820 = vst [vmem:[%s8686_s4 + $0x28] sm:$0xff] %v5452_v27  ;;  %v4766_v54 = vsel %vm4734_vm15, %v4718_v57, %v4750_v19 }
 0x31c   :  { %v5454_v62 = vpack.c.bf16 %v4766_v54, %v4765_v17 }
 0x31e   :  { %4822 = vst [vmem:[%s8686_s4 + $0x38] sm:$0xff] %v5454_v62 }

// kernel: discriminator_forward.13
= control target key start
LH: loop header
LB: loop body
LE: loop exit
PB: predicated region body
PF: predicated region fallthrough
CT: control target
= control target key end

     0   :  { %v1069_v28 = vlaneseq  ;;  %v7697_v36 = vmov 1966171168   ;;  %s9411_s0 = inlined_call_operand.vmem [shape: bf16[2,8192], index: 0, kind: input, shape index: {}]   ;;  %s9412_s1 = inlined_call_operand.vmem [shape: bf16[8192,128], index: 1, kind: input, shape index: {}]   ;;  %s9413_s2 = inlined_call_operand.vmem [shape: f32[1,128], index: 2, kind: input, shape index: {}]   ;;  %s9414_s3 = inlined_call_operand.vmem [shape: f32[2,1], index: 3, kind: output, shape index: {0}]   ;;  %s9415_s4 = inlined_call_operand.hbm [shape: f32[2,10], index: 4, kind: output, shape index: {1}]  }
   0x1   :  { %v7143_v0 = vld [vmem:[%s9412_s1 + $0x78] sm:$0xff]   ;;  %v7147_v4 = vld [vmem:[%s9412_s1 + $0x70] sm:$0xff]   ;;  %v7151_v8 = vld [vmem:[%s9412_s1 + $0x68] sm:$0xff]   ;;  %v1067_v37 = vunpack.c.l.s4 %v7697_v36 }
   0x2   :  { %v7144_v1 = vld [vmem:[%s9412_s1 + $0xf8] sm:$0xff]   ;;  %6436 = vmatprep.subr.bf16.mxu0 %v7143_v0  ;;  %v7148_v5 = vld [vmem:[%s9412_s1 + $0xf0] sm:$0xff]   ;;  %v7152_v9 = vld [vmem:[%s9412_s1 + $0xe8] sm:$0xff]   ;;  %v1070_v33 = vshrl.u32 %v1069_v28, 7 }
   0x3   :  { %v7145_v2 = vld [vmem:[%s9412_s1 + $0x38] sm:$0xff]   ;;  %6458 = vmatprep.subr.bf16.mxu1 %v7144_v1  ;;  %v7149_v6 = vld [vmem:[%s9412_s1 + $0x30] sm:$0xff]   ;;  %v7153_v10 = vld [vmem:[%s9412_s1 + $0x28] sm:$0xff]   ;;  %v1068_v40 = vunpack.c.0.s8 %v1067_v37 }
   0x4   :  { %v7146_v3 = vld [vmem:[%s9412_s1 + $0xb8] sm:$0xff]   ;;  %6437 = vmatpush3.bf16.msra.mxu0 %v7145_v2  ;;  %v7150_v7 = vld [vmem:[%s9412_s1 + $0xb0] sm:$0xff]   ;;  %v7154_v11 = vld [vmem:[%s9412_s1 + $0xa8] sm:$0xff]  }
   0x5   :  { %6459 = vmatpush3.bf16.msra.mxu1 %v7146_v3  ;;  %6438 = vmatprep.subr.bf16.mxu0 %v7147_v4  ;;  %v7155_v12 = vld [vmem:[%s9412_s1 + $0x60] sm:$0xff]   ;;  %v7159_v16 = vld [vmem:[%s9412_s1 + $0x58] sm:$0xff]   ;;  %v7163_v20 = vld [vmem:[%s9412_s1 + $0x50] sm:$0xff]   ;;  %v7830_v41 = vsub.s32 %v1068_v40, %v1070_v33 }
   0x6   :  { %6460 = vmatprep.subr.bf16.mxu1 %v7148_v5  ;;  %v7156_v13 = vld [vmem:[%s9412_s1 + $0xe0] sm:$0xff]   ;;  %v7160_v17 = vld [vmem:[%s9412_s1 + $0xd8] sm:$0xff]   ;;  %v7164_v21 = vld [vmem:[%s9412_s1 + $0xd0] sm:$0xff]  }
   0x7   :  { %v7157_v14 = vld [vmem:[%s9412_s1 + $0x20] sm:$0xff]   ;;  %v7161_v18 = vld [vmem:[%s9412_s1 + $0x18] sm:$0xff]   ;;  %v7165_v22 = vld [vmem:[%s9412_s1 + $0x10] sm:$0xff]  }
   0x8   :  { %6439 = vmatpush3.bf16.msra.mxu0 %v7149_v6  ;;  %v7158_v15 = vld [vmem:[%s9412_s1 + $0xa0] sm:$0xff]   ;;  %v7162_v19 = vld [vmem:[%s9412_s1 + $0x98] sm:$0xff]   ;;  %v7166_v23 = vld [vmem:[%s9412_s1 + $0x90] sm:$0xff]  }
   0x9   :  { %6461 = vmatpush3.bf16.msra.mxu1 %v7150_v7  ;;  %6440 = vmatprep.subr.bf16.mxu0 %v7151_v8  ;;  %v7167_v24 = vld [vmem:[%s9412_s1 + $0x48] sm:$0xff]   ;;  %v7171_v29 = vld [vmem:[%s9412_s1 + $0x40] sm:$0xff]   ;;  %v7176_v35 = vld [vmem:[%s9412_s1 + $0x178] sm:$0xff]  }
   0xa   :  { %6462 = vmatprep.subr.bf16.mxu1 %v7152_v9  ;;  %v7168_v25 = vld [vmem:[%s9412_s1 + $0xc8] sm:$0xff]   ;;  %v7172_v30 = vld [vmem:[%s9412_s1 + $0xc0] sm:$0xff]   ;;  %v7177_v38 = vld [vmem:[%s9412_s1 + $0x1f8] sm:$0xff]  }
   0xb   :  { %v7169_v26 = vld [vmem:[%s9412_s1 + $0x8] sm:$0xff]   ;;  %v7173_v31 = vld [vmem:[%s9412_s1] sm:$0xff]   ;;  %v7178_v47 = vld [vmem:[%s9412_s1 + $0x138] sm:$0xff]  }
   0xc   :  { %6441 = vmatpush3.bf16.msra.mxu0 %v7153_v10  ;;  %v7170_v27 = vld [vmem:[%s9412_s1 + $0x88] sm:$0xff]   ;;  %v7174_v32 = vld [vmem:[%s9412_s1 + $0x80] sm:$0xff]   ;;  %v7179_v49 = vld [vmem:[%s9412_s1 + $0x1b8] sm:$0xff]  }
   0xd   :  { %6463 = vmatpush3.bf16.msra.mxu1 %v7154_v11  ;;  %6442 = vmatprep.subr.bf16.mxu0 %v7155_v12  ;;  %v18_v34 = vld [vmem:[%s9411_s0] sm:$0xff]  ;;  %v7180_v52 = vld [vmem:[%s9412_s1 + $0x170] sm:$0xff]   ;;  %v7184_v58 = vld [vmem:[%s9412_s1 + $0x168] sm:$0xff]  }
   0xe   :  { %6464 = vmatprep.subr.bf16.mxu1 %v7156_v13  ;;  %v1065_v39 = vcombine.high %v18_v34, %v18_v34  ;;  %v1072_v42 = vrot.slane %v18_v34, %v7830_v41  ;;  %v7181_v54 = vld [vmem:[%s9412_s1 + $0x1f0] sm:$0xff]   ;;  %v7185_v59 = vld [vmem:[%s9412_s1 + $0x1e8] sm:$0xff]   ;;  %v7188_v62 = vld [vmem:[%s9412_s1 + $0x160] sm:$0xff]  }
   0xf   :  { %v7182_v55 = vld [vmem:[%s9412_s1 + $0x130] sm:$0xff]   ;;  %v7186_v60 = vld [vmem:[%s9412_s1 + $0x128] sm:$0xff]   ;;  %v7189_v63 = vld [vmem:[%s9412_s1 + $0x1e0] sm:$0xff]  }
  0x10   :  { %6443 = vmatpush3.bf16.msra.mxu0 %v7157_v14  ;;  %v7834_v43 = vrot.slane %v1065_v39, %v7830_v41  ;;  %v1080_v44 = vcombine.high %v1072_v42, %v1072_v42  ;;  %v1088_v45 = vrot.slane %v1072_v42, %v7830_v41  ;;  %v7183_v57 = vld [vmem:[%s9412_s1 + $0x1b0] sm:$0xff]   ;;  %v7187_v61 = vld [vmem:[%s9412_s1 + $0x1a8] sm:$0xff]   ;;  %v7190_v0 = vld [vmem:[%s9412_s1 + $0x120] sm:$0xff]  }
  0x11   :  { %6465 = vmatpush3.bf16.msra.mxu1 %v7158_v15  ;;  %6444 = vmatprep.subr.bf16.mxu0 %v7159_v16  ;;  %v7191_v1 = vld [vmem:[%s9412_s1 + $0x1a0] sm:$0xff]   ;;  %v7192_v2 = vld [vmem:[%s9412_s1 + $0x158] sm:$0xff]   ;;  %v7196_v6 = vld [vmem:[%s9412_s1 + $0x150] sm:$0xff]  }
  0x12   :  { %6466 = vmatprep.subr.bf16.mxu1 %v7160_v17  ;;  %v1081_v46 = vcombine.high %v7834_v43, %v7834_v43  ;;  %v1102_v48 = vrot.slane %v1080_v44, %v7830_v41  ;;  %v1110_v51 = vcombine.high %v1088_v45, %v1088_v45  ;;  %v7193_v3 = vld [vmem:[%s9412_s1 + $0x1d8] sm:$0xff]   ;;  %v7197_v7 = vld [vmem:[%s9412_s1 + $0x1d0] sm:$0xff]   ;;  %v7200_v10 = vld [vmem:[%s9412_s1 + $0x148] sm:$0xff]  }
  0x13   :  { %v7194_v4 = vld [vmem:[%s9412_s1 + $0x118] sm:$0xff]   ;;  %v7198_v8 = vld [vmem:[%s9412_s1 + $0x110] sm:$0xff]   ;;  %v7201_v11 = vld [vmem:[%s9412_s1 + $0x1c8] sm:$0xff]  }
  0x14   :  { %6445 = vmatpush3.bf16.msra.mxu0 %v7161_v18  ;;  %v1109_v50 = vrot.slane %v1081_v46, %v7830_v41  ;;  %4625 = vmatprep.mubr.bf16.mxu0 %v1102_v48  ;;  %v1112_v53 = vcombine.high %v1102_v48, %v1102_v48  ;;  %v7195_v5 = vld [vmem:[%s9412_s1 + $0x198] sm:$0xff]   ;;  %v7199_v9 = vld [vmem:[%s9412_s1 + $0x190] sm:$0xff]   ;;  %v7202_v12 = vld [vmem:[%s9412_s1 + $0x108] sm:$0xff]   ;;  %v1095_v18 = vrot.slane %v7834_v43, %v7830_v41 }
  0x15   :  { %6467 = vmatpush3.bf16.msra.mxu1 %v7162_v19  ;;  %6446 = vmatprep.subr.bf16.mxu0 %v7163_v20  ;;  %v7203_v13 = vld [vmem:[%s9412_s1 + $0x188] sm:$0xff]   ;;  %v7204_v14 = vld [vmem:[%s9412_s1 + $0x140] sm:$0xff]   ;;  %v7208_v19 = vld [vmem:[%s9412_s1 + $0x278] sm:$0xff]  }
  0x16   :  { %6468 = vmatprep.subr.bf16.mxu1 %v7164_v21  ;;  %v1113_v56 = vcombine.high %v1109_v50, %v1109_v50  ;;  %4665 = vmatprep.mubr.bf16.mxu1 %v1112_v53  ;;  %v7205_v15 = vld [vmem:[%s9412_s1 + $0x1c0] sm:$0xff]   ;;  %v7209_v20 = vld [vmem:[%s9412_s1 + $0x2f8] sm:$0xff]   ;;  %v7216_v28 = vld [vmem:[%s9412_s1 + $0x268] sm:$0xff]  }
  0x17   :  { %v7206_v16 = vld [vmem:[%s9412_s1 + $0x100] sm:$0xff]   ;;  %v7210_v21 = vld [vmem:[%s9412_s1 + $0x238] sm:$0xff]   ;;  %v7228_v40 = vld [vmem:[%s9412_s1 + $0x250] sm:$0xff]  }
  0x18   :  { %6447 = vmatpush3.bf16.msra.mxu0 %v7165_v22  ;;  %v7207_v17 = vld [vmem:[%s9412_s1 + $0x180] sm:$0xff]   ;;  %v7211_v22 = vld [vmem:[%s9412_s1 + $0x2b8] sm:$0xff]   ;;  %v7229_v42 = vld [vmem:[%s9412_s1 + $0x2d0] sm:$0xff]  }
  0x19   :  { %6469 = vmatpush3.bf16.msra.mxu1 %v7166_v23  ;;  %6448 = vmatprep.subr.bf16.mxu0 %v7167_v24  ;;  %v1111_v23 = vcombine.high %v1095_v18, %v1095_v18  ;;  %v7212_v24 = vld [vmem:[%s9412_s1 + $0x270] sm:$0xff]   ;;  %v7221_v33 = vld [vmem:[%s9412_s1 + $0x2e0] sm:$0xff]   ;;  %v7224_v36 = vld [vmem:[%s9412_s1 + $0x258] sm:$0xff]  }
  0x1a   :  { %6470 = vmatprep.subr.bf16.mxu1 %v7168_v25  ;;  %v7213_v25 = vld [vmem:[%s9412_s1 + $0x2f0] sm:$0xff]   ;;  %v7222_v34 = vld [vmem:[%s9412_s1 + $0x220] sm:$0xff]   ;;  %v7225_v37 = vld [vmem:[%s9412_s1 + $0x2d8] sm:$0xff]  }
  0x1b   :  { %v7227_v39 = vld [vmem:[%s9412_s1 + $0x298] sm:$0xff]   ;;  %v7230_v43 = vld [vmem:[%s9412_s1 + $0x210] sm:$0xff]   ;;  %v19_v46 = vld [vmem:[%s9411_s0 + $0x8] sm:$0xff] }
  0x1c   :  { %6449 = vmatpush3.bf16.msra.mxu0 %v7169_v26  ;;  %v7214_v26 = vld [vmem:[%s9412_s1 + $0x230] sm:$0xff]   ;;  %v1121_v48 = vrot.slane %v19_v46, %v7830_v41 }
  0x1d   :  { %6471 = vmatpush3.bf16.msra.mxu1 %v7170_v27  ;;  %6450 = vmatprep.subr.bf16.mxu0 %v7171_v29  ;;  %v7215_v27 = vld [vmem:[%s9412_s1 + $0x2b0] sm:$0xff]   ;;  %v7217_v29 = vld [vmem:[%s9412_s1 + $0x2e8] sm:$0xff]  }
  0x1e   :  { %6472 = vmatprep.subr.bf16.mxu1 %v7172_v30  ;;  %v7218_v30 = vld [vmem:[%s9412_s1 + $0x228] sm:$0xff]   ;;  %v7231_v44 = vld [vmem:[%s9412_s1 + $0x290] sm:$0xff]  }
  0x20   :  { %6451 = vmatpush3.bf16.msra.mxu0 %v7173_v31  ;;  %v7219_v31 = vld [vmem:[%s9412_s1 + $0x2a8] sm:$0xff]  }
  0x21   :  { %6473 = vmatpush3.bf16.msra.mxu1 %v7174_v32  ;;  %6480 = vmatprep.subr.bf16.mxu0 %v7176_v35  ;;  %v7220_v32 = vld [vmem:[%s9412_s1 + $0x260] sm:$0xff]  }
  0x22   :  { %6502 = vmatprep.subr.bf16.mxu1 %v7177_v38  ;;  %v7223_v35 = vld [vmem:[%s9412_s1 + $0x2a0] sm:$0xff]   ;;  %v7226_v38 = vld [vmem:[%s9412_s1 + $0x218] sm:$0xff]  }
  0x23   :  { %4626 = vmatmul.mubr.bf16.vlgmr.msra.gmra.mxu0 %v1088_v45  ;;  %v7232_v45 = vld [vmem:[%s9412_s1 + $0x248] sm:$0xff]  }
  0x24   :  { %6481 = vmatpush3.bf16.msra.mxu0 %v7178_v47  ;;  %4666 = vmatmul.mubr.bf16.vlgmr.msra.gmra.mxu1 %v1110_v51  ;;  %v7233_v47 = vld [vmem:[%s9412_s1 + $0x2c8] sm:$0xff]  }
  0x25   :  { %6482 = vmatprep.subr.bf16.mxu0 %v7180_v52  ;;  %6503 = vmatpush3.bf16.msra.mxu1 %v7179_v49  ;;  %v1114_v49 = vcombine.high %v19_v46, %v19_v46  ;;  %v7235_v51 = vld [vmem:[%s9412_s1 + $0x288] sm:$0xff]   ;;  %v1129_v52 = vcombine.high %v1121_v48, %v1121_v48 }
  0x26   :  { %4705 = vmatprep.mubr.bf16.mxu0 %v1109_v50  ;;  %6504 = vmatprep.subr.bf16.mxu1 %v7181_v54  ;;  %v7234_v50 = vld [vmem:[%s9412_s1 + $0x208] sm:$0xff]   ;;  %v7236_v54 = vld [vmem:[%s9412_s1 + $0x240] sm:$0xff]  }
  0x27   :  { %4745 = vmatprep.mubr.bf16.mxu1 %v1113_v56  ;;  %v8022_v53 = vrot.slane %v1114_v49, %v7830_v41  ;;  %v1151_v56 = vrot.slane %v1129_v52, %v7830_v41  ;;  %v7283_v46 = vld [vmem:[%s9412_s1 + $0x428] sm:$0xff]   ;;  %v7286_v49 = vld [vmem:[%s9412_s1 + $0x4e0] sm:$0xff]   ;;  %v7289_v52 = vld [vmem:[%s9412_s1 + $0x458] sm:$0xff]  }
  0x28   :  { %6483 = vmatpush3.bf16.msra.mxu0 %v7182_v55  ;;  %v7237_v55 = vld [vmem:[%s9412_s1 + $0x2c0] sm:$0xff]  }
  0x29   :  { %6484 = vmatprep.subr.bf16.mxu0 %v7184_v58  ;;  %6505 = vmatpush3.bf16.msra.mxu1 %v7183_v57  ;;  %v1130_v57 = vcombine.high %v8022_v53, %v8022_v53  ;;  %v7238_v58 = vld [vmem:[%s9412_s1 + $0x200] sm:$0xff]  }
  0x2a   :  { %6506 = vmatprep.subr.bf16.mxu1 %v7185_v59  ;;  %v7239_v59 = vld [vmem:[%s9412_s1 + $0x280] sm:$0xff]  }
  0x2c   :  { %6485 = vmatpush3.bf16.msra.mxu0 %v7186_v60  ;;  %v1161_v60 = vcombine.high %v1151_v56, %v1151_v56 }
  0x2d   :  { %6486 = vmatprep.subr.bf16.mxu0 %v7188_v62  ;;  %6507 = vmatpush3.bf16.msra.mxu1 %v7187_v61  ;;  %v1137_v61 = vrot.slane %v1121_v48, %v7830_v41  ;;  %v7240_v62 = vld [vmem:[%s9412_s1 + $0x378] sm:$0xff]   ;;  %v7285_v48 = vld [vmem:[%s9412_s1 + $0x460] sm:$0xff]  }
  0x2e   :  { %6508 = vmatprep.subr.bf16.mxu1 %v7189_v63  ;;  %v7241_v63 = vld [vmem:[%s9412_s1 + $0x3f8] sm:$0xff]  }
  0x30   :  { %6487 = vmatpush3.bf16.msra.mxu0 %v7190_v0  ;;  %v1158_v0 = vrot.slane %v1130_v57, %v7830_v41  ;;  %v7294_v57 = vld [vmem:[%s9412_s1 + $0x4d0] sm:$0xff]  }
  0x31   :  { %6488 = vmatprep.subr.bf16.mxu0 %v7192_v2  ;;  %6509 = vmatpush3.bf16.msra.mxu1 %v7191_v1  ;;  %v7242_v1 = vld [vmem:[%s9412_s1 + $0x338] sm:$0xff]  }
  0x32   :  { %6510 = vmatprep.subr.bf16.mxu1 %v7193_v3  ;;  %v7243_v2 = vld [vmem:[%s9412_s1 + $0x3b8] sm:$0xff]   ;;  %v1159_v3 = vcombine.high %v1137_v61, %v1137_v61 }
  0x34   :  { %6489 = vmatpush3.bf16.msra.mxu0 %v7194_v4  ;;  %v7244_v4 = vld [vmem:[%s9412_s1 + $0x370] sm:$0xff]  }
  0x35   :  { %6490 = vmatprep.subr.bf16.mxu0 %v7196_v6  ;;  %6511 = vmatpush3.bf16.msra.mxu1 %v7195_v5  ;;  %v7245_v5 = vld [vmem:[%s9412_s1 + $0x3f0] sm:$0xff]   ;;  %v1162_v6 = vcombine.high %v1158_v0, %v1158_v0 }
  0x36   :  { %6512 = vmatprep.subr.bf16.mxu1 %v7197_v7  ;;  %v7246_v7 = vld [vmem:[%s9412_s1 + $0x330] sm:$0xff]  }
  0x38   :  { %6491 = vmatpush3.bf16.msra.mxu0 %v7198_v8  ;;  %v7247_v8 = vld [vmem:[%s9412_s1 + $0x3b0] sm:$0xff]  }
  0x39   :  { %6492 = vmatprep.subr.bf16.mxu0 %v7200_v10  ;;  %6513 = vmatpush3.bf16.msra.mxu1 %v7199_v9  ;;  %v7248_v9 = vld [vmem:[%s9412_s1 + $0x368] sm:$0xff]  }
  0x3a   :  { %6514 = vmatprep.subr.bf16.mxu1 %v7201_v11  ;;  %v7249_v10 = vld [vmem:[%s9412_s1 + $0x3e8] sm:$0xff]  }
  0x3b   :  { %v7250_v11 = vld [vmem:[%s9412_s1 + $0x328] sm:$0xff]  }
  0x3c   :  { %6493 = vmatpush3.bf16.msra.mxu0 %v7202_v12  ;;  %v7251_v12 = vld [vmem:[%s9412_s1 + $0x3a8] sm:$0xff]  }
  0x3d   :  { %6494 = vmatprep.subr.bf16.mxu0 %v7204_v14  ;;  %6515 = vmatpush3.bf16.msra.mxu1 %v7203_v13  ;;  %v7252_v13 = vld [vmem:[%s9412_s1 + $0x360] sm:$0xff]  }
  0x3e   :  { %6516 = vmatprep.subr.bf16.mxu1 %v7205_v15  ;;  %v7253_v14 = vld [vmem:[%s9412_s1 + $0x3e0] sm:$0xff]  }
  0x3f   :  { %v7254_v15 = vld [vmem:[%s9412_s1 + $0x320] sm:$0xff]  }
  0x40   :  { %6495 = vmatpush3.bf16.msra.mxu0 %v7206_v16  ;;  %v7255_v16 = vld [vmem:[%s9412_s1 + $0x3a0] sm:$0xff]  }
  0x41   :  { %6524 = vmatprep.subr.bf16.mxu0 %v7208_v19  ;;  %6517 = vmatpush3.bf16.msra.mxu1 %v7207_v17  ;;  %v7256_v17 = vld [vmem:[%s9412_s1 + $0x358] sm:$0xff]  }
  0x42   :  { %6546 = vmatprep.subr.bf16.mxu1 %v7209_v20  ;;  %v7258_v19 = vld [vmem:[%s9412_s1 + $0x318] sm:$0xff]  }
  0x43   :  { %4706 = vmatmul.mubr.bf16.vlgmr.msra.gmra.mxu0 %v1095_v18  ;;  %v7257_v18 = vld [vmem:[%s9412_s1 + $0x3d8] sm:$0xff]  }
  0x44   :  { %6525 = vmatpush3.bf16.msra.mxu0 %v7210_v21  ;;  %4746 = vmatmul.mubr.bf16.vlgmr.msra.gmra.mxu1 %v1111_v23  ;;  %v7259_v20 = vld [vmem:[%s9412_s1 + $0x398] sm:$0xff]   ;;  %v7260_v21 = vld [vmem:[%s9412_s1 + $0x350] sm:$0xff]  }
  0x45   :  { %6526 = vmatprep.subr.bf16.mxu0 %v7212_v24  ;;  %6547 = vmatpush3.bf16.msra.mxu1 %v7211_v22  ;;  %v7261_v22 = vld [vmem:[%s9412_s1 + $0x3d0] sm:$0xff]  }
  0x46   :  { %6548 = vmatprep.subr.bf16.mxu1 %v7213_v25  ;;  %4785 = vmatprep.mubr.bf16.mxu0 %v1151_v56  ;;  %v7262_v23 = vld [vmem:[%s9412_s1 + $0x310] sm:$0xff]   ;;  %v7264_v25 = vld [vmem:[%s9412_s1 + $0x348] sm:$0xff]  }
  0x47   :  { %4825 = vmatprep.mubr.bf16.mxu1 %v1161_v60  ;;  %v7263_v24 = vld [vmem:[%s9412_s1 + $0x390] sm:$0xff]   ;;  %v7297_v60 = vld [vmem:[%s9412_s1 + $0x448] sm:$0xff]  }
  0x48   :  { %6527 = vmatpush3.bf16.msra.mxu0 %v7214_v26  ;;  %v7265_v26 = vld [vmem:[%s9412_s1 + $0x3c8] sm:$0xff]   ;;  %v7293_v56 = vld [vmem:[%s9412_s1 + $0x450] sm:$0xff]  }
  0x49   :  { %6528 = vmatprep.subr.bf16.mxu0 %v7216_v28  ;;  %6549 = vmatpush3.bf16.msra.mxu1 %v7215_v27  ;;  %v7266_v27 = vld [vmem:[%s9412_s1 + $0x308] sm:$0xff]  }
  0x4a   :  { %6550 = vmatprep.subr.bf16.mxu1 %v7217_v29  ;;  %v7267_v28 = vld [vmem:[%s9412_s1 + $0x388] sm:$0xff]   ;;  %v7268_v29 = vld [vmem:[%s9412_s1 + $0x340] sm:$0xff]  }
  0x4c   :  { %6529 = vmatpush3.bf16.msra.mxu0 %v7218_v30  ;;  %v7269_v30 = vld [vmem:[%s9412_s1 + $0x3c0] sm:$0xff]  }
  0x4d   :  { %6530 = vmatprep.subr.bf16.mxu0 %v7220_v32  ;;  %6551 = vmatpush3.bf16.msra.mxu1 %v7219_v31  ;;  %v7270_v31 = vld [vmem:[%s9412_s1 + $0x300] sm:$0xff]  }
  0x4e   :  { %6552 = vmatprep.subr.bf16.mxu1 %v7221_v33  ;;  %v7271_v32 = vld [vmem:[%s9412_s1 + $0x380] sm:$0xff]   ;;  %v1144_v33 = vrot.slane %v8022_v53, %v7830_v41  ;;  %v7290_v53 = vld [vmem:[%s9412_s1 + $0x4d8] sm:$0xff]  }
  0x50   :  { %6531 = vmatpush3.bf16.msra.mxu0 %v7222_v34  ;;  %v7273_v34 = vld [vmem:[%s9412_s1 + $0x478] sm:$0xff]  }
  0x51   :  { %6532 = vmatprep.subr.bf16.mxu0 %v7224_v36  ;;  %6553 = vmatpush3.bf16.msra.mxu1 %v7223_v35  ;;  %v7274_v35 = vld [vmem:[%s9412_s1 + $0x4f8] sm:$0xff]  }
  0x52   :  { %6554 = vmatprep.subr.bf16.mxu1 %v7225_v37  ;;  %v7275_v36 = vld [vmem:[%s9412_s1 + $0x438] sm:$0xff]  }
  0x53   :  { %v7276_v37 = vld [vmem:[%s9412_s1 + $0x4b8] sm:$0xff]  }
  0x54   :  { %6533 = vmatpush3.bf16.msra.mxu0 %v7226_v38  ;;  %v1160_v38 = vcombine.high %v1144_v33, %v1144_v33 }
  0x55   :  { %6534 = vmatprep.subr.bf16.mxu0 %v7228_v40  ;;  %6555 = vmatpush3.bf16.msra.mxu1 %v7227_v39  ;;  %v7277_v39 = vld [vmem:[%s9412_s1 + $0x470] sm:$0xff]  }
  0x56   :  { %6556 = vmatprep.subr.bf16.mxu1 %v7229_v42  ;;  %v7278_v40 = vld [vmem:[%s9412_s1 + $0x4f0] sm:$0xff]  }
  0x57   :  { %v7279_v42 = vld [vmem:[%s9412_s1 + $0x430] sm:$0xff]  }
  0x58   :  { %6535 = vmatpush3.bf16.msra.mxu0 %v7230_v43  ;;  %v7280_v43 = vld [vmem:[%s9412_s1 + $0x4b0] sm:$0xff]  }
  0x59   :  { %6536 = vmatprep.subr.bf16.mxu0 %v7232_v45  ;;  %6557 = vmatpush3.bf16.msra.mxu1 %v7231_v44  ;;  %v7281_v44 = vld [vmem:[%s9412_s1 + $0x468] sm:$0xff]  }
  0x5a   :  { %6558 = vmatprep.subr.bf16.mxu1 %v7233_v47  ;;  %v7282_v45 = vld [vmem:[%s9412_s1 + $0x4e8] sm:$0xff]  }
  0x5b   :  { %v7284_v47 = vld [vmem:[%s9412_s1 + $0x4a8] sm:$0xff]  }
  0x5c   :  { %6537 = vmatpush3.bf16.msra.mxu0 %v7234_v50  ;;  %v7287_v50 = vld [vmem:[%s9412_s1 + $0x420] sm:$0xff]  }
  0x5d   :  { %6538 = vmatprep.subr.bf16.mxu0 %v7236_v54  ;;  %6559 = vmatpush3.bf16.msra.mxu1 %v7235_v51  ;;  %v7288_v51 = vld [vmem:[%s9412_s1 + $0x4a0] sm:$0xff]   ;;  %v7291_v54 = vld [vmem:[%s9412_s1 + $0x418] sm:$0xff]  }
  0x5e   :  { %6560 = vmatprep.subr.bf16.mxu1 %v7237_v55  ;;  %v7292_v55 = vld [vmem:[%s9412_s1 + $0x498] sm:$0xff]  }
  0x60   :  { %6539 = vmatpush3.bf16.msra.mxu0 %v7238_v58  ;;  %v7295_v58 = vld [vmem:[%s9412_s1 + $0x410] sm:$0xff]  }
  0x61   :  { %6568 = vmatprep.subr.bf16.mxu0 %v7240_v62  ;;  %6561 = vmatpush3.bf16.msra.mxu1 %v7239_v59  ;;  %v7296_v59 = vld [vmem:[%s9412_s1 + $0x490] sm:$0xff]   ;;  %v7298_v62 = vld [vmem:[%s9412_s1 + $0x4c8] sm:$0xff]  }
  0x62   :  { %6590 = vmatprep.subr.bf16.mxu1 %v7241_v63 }
  0x63   :  { %4786 = vmatmul.mubr.bf16.vlgmr.msra.gmra.mxu0 %v1137_v61  ;;  %v20_v61 = vld [vmem:[%s9411_s0 + $0x10] sm:$0xff] }
  0x64   :  { %6569 = vmatpush3.bf16.msra.mxu0 %v7242_v1  ;;  %4865 = vmatprep.mubr.bf16.mxu0 %v1158_v0  ;;  %v1170_v63 = vrot.slane %v20_v61, %v7830_v41  ;;  %v1163_v0 = vcombine.high %v20_v61, %v20_v61  ;;  %v7299_v1 = vld [vmem:[%s9412_s1 + $0x408] sm:$0xff]  }
  0x65   :  { %4826 = vmatmul.mubr.bf16.vlgmr.msra.gmra.mxu1 %v1159_v3  ;;  %6570 = vmatprep.subr.bf16.mxu0 %v7244_v4  ;;  %v7348_v61 = vld [vmem:[%s9412_s1 + $0x628] sm:$0xff]  }
  0x66   :  { %6591 = vmatpush3.bf16.msra.mxu1 %v7243_v2  ;;  %4905 = vmatprep.mubr.bf16.mxu1 %v1162_v6  ;;  %v7300_v2 = vld [vmem:[%s9412_s1 + $0x488] sm:$0xff]   ;;  %v1178_v3 = vcombine.high %v1170_v63, %v1170_v63  ;;  %v8228_v4 = vrot.slane %v1163_v0, %v7830_v41  ;;  %v7302_v6 = vld [vmem:[%s9412_s1 + $0x4c0] sm:$0xff]  }
  0x67   :  { %6592 = vmatprep.subr.bf16.mxu1 %v7245_v5  ;;  %v7301_v5 = vld [vmem:[%s9412_s1 + $0x440] sm:$0xff]  }
  0x68   :  { %6571 = vmatpush3.bf16.msra.mxu0 %v7246_v7  ;;  %v1200_v7 = vrot.slane %v1178_v3, %v7830_v41  ;;  %v7351_v0 = vld [vmem:[%s9412_s1 + $0x6e0] sm:$0xff]   ;;  %v7354_v3 = vld [vmem:[%s9412_s1 + $0x658] sm:$0xff]  }
  0x69   :  { %6572 = vmatprep.subr.bf16.mxu0 %v7248_v9  ;;  %v7303_v9 = vld [vmem:[%s9412_s1 + $0x400] sm:$0xff]  }
  0x6a   :  { %6593 = vmatpush3.bf16.msra.mxu1 %v7247_v8  ;;  %v1179_v8 = vcombine.high %v8228_v4, %v8228_v4 }
  0x6b   :  { %6594 = vmatprep.subr.bf16.mxu1 %v7249_v10  ;;  %v7304_v10 = vld [vmem:[%s9412_s1 + $0x480] sm:$0xff]  }
  0x6c   :  { %6573 = vmatpush3.bf16.msra.mxu0 %v7250_v11  ;;  %v1210_v11 = vcombine.high %v1200_v7, %v1200_v7 }
  0x6d   :  { %6574 = vmatprep.subr.bf16.mxu0 %v7252_v13  ;;  %v7305_v13 = vld [vmem:[%s9412_s1 + $0x578] sm:$0xff]  }
  0x6e   :  { %6595 = vmatpush3.bf16.msra.mxu1 %v7251_v12  ;;  %v1186_v12 = vrot.slane %v1170_v63, %v7830_v41  ;;  %v7350_v63 = vld [vmem:[%s9412_s1 + $0x660] sm:$0xff]  }
  0x6f   :  { %6596 = vmatprep.subr.bf16.mxu1 %v7253_v14  ;;  %v7306_v14 = vld [vmem:[%s9412_s1 + $0x5f8] sm:$0xff]  }
  0x70   :  { %6575 = vmatpush3.bf16.msra.mxu0 %v7254_v15  ;;  %v1207_v15 = vrot.slane %v1179_v8, %v7830_v41  ;;  %v7359_v8 = vld [vmem:[%s9412_s1 + $0x6d0] sm:$0xff]  }
  0x71   :  { %6576 = vmatprep.subr.bf16.mxu0 %v7256_v17  ;;  %v7308_v17 = vld [vmem:[%s9412_s1 + $0x5b8] sm:$0xff]  }
  0x72   :  { %6597 = vmatpush3.bf16.msra.mxu1 %v7255_v16  ;;  %v7307_v16 = vld [vmem:[%s9412_s1 + $0x538] sm:$0xff]  }
  0x73   :  { %6598 = vmatprep.subr.bf16.mxu1 %v7257_v18  ;;  %v1208_v18 = vcombine.high %v1186_v12, %v1186_v12 }
  0x74   :  { %6577 = vmatpush3.bf16.msra.mxu0 %v7258_v19  ;;  %v7309_v19 = vld [vmem:[%s9412_s1 + $0x570] sm:$0xff]  }
  0x75   :  { %6578 = vmatprep.subr.bf16.mxu0 %v7260_v21  ;;  %v1211_v21 = vcombine.high %v1207_v15, %v1207_v15 }
  0x76   :  { %6599 = vmatpush3.bf16.msra.mxu1 %v7259_v20  ;;  %v7310_v20 = vld [vmem:[%s9412_s1 + $0x5f0] sm:$0xff]  }
  0x77   :  { %6600 = vmatprep.subr.bf16.mxu1 %v7261_v22  ;;  %v7311_v22 = vld [vmem:[%s9412_s1 + $0x530] sm:$0xff]  }
  0x78   :  { %6579 = vmatpush3.bf16.msra.mxu0 %v7262_v23  ;;  %v7312_v23 = vld [vmem:[%s9412_s1 + $0x5b0] sm:$0xff]  }
  0x79   :  { %6580 = vmatprep.subr.bf16.mxu0 %v7264_v25  ;;  %v7314_v25 = vld [vmem:[%s9412_s1 + $0x5e8] sm:$0xff]  }
  0x7a   :  { %6601 = vmatpush3.bf16.msra.mxu1 %v7263_v24  ;;  %v7313_v24 = vld [vmem:[%s9412_s1 + $0x568] sm:$0xff]  }
  0x7b   :  { %6602 = vmatprep.subr.bf16.mxu1 %v7265_v26  ;;  %v7315_v26 = vld [vmem:[%s9412_s1 + $0x528] sm:$0xff]  }
  0x7c   :  { %6581 = vmatpush3.bf16.msra.mxu0 %v7266_v27  ;;  %v7316_v27 = vld [vmem:[%s9412_s1 + $0x5a8] sm:$0xff]  }
  0x7d   :  { %6582 = vmatprep.subr.bf16.mxu0 %v7268_v29  ;;  %v7318_v29 = vld [vmem:[%s9412_s1 + $0x5e0] sm:$0xff]  }
  0x7e   :  { %6603 = vmatpush3.bf16.msra.mxu1 %v7267_v28  ;;  %v7317_v28 = vld [vmem:[%s9412_s1 + $0x560] sm:$0xff]  }
  0x7f   :  { %6604 = vmatprep.subr.bf16.mxu1 %v7269_v30  ;;  %v7319_v30 = vld [vmem:[%s9412_s1 + $0x520] sm:$0xff]  }
  0x80   :  { %6583 = vmatpush3.bf16.msra.mxu0 %v7270_v31  ;;  %v7320_v31 = vld [vmem:[%s9412_s1 + $0x5a0] sm:$0xff]  }
  0x81   :  { %6612 = vmatprep.subr.bf16.mxu0 %v7273_v34  ;;  %v7323_v34 = vld [vmem:[%s9412_s1 + $0x518] sm:$0xff]  }
  0x82   :  { %6605 = vmatpush3.bf16.msra.mxu1 %v7271_v32  ;;  %v7321_v32 = vld [vmem:[%s9412_s1 + $0x558] sm:$0xff]  }
  0x83   :  { %4866 = vmatmul.mubr.bf16.vlgmr.msra.gmra.mxu0 %v1144_v33  ;;  %6634 = vmatprep.subr.bf16.mxu1 %v7274_v35  ;;  %v7322_v33 = vld [vmem:[%s9412_s1 + $0x5d8] sm:$0xff]  }
  0x84   :  { %6613 = vmatpush3.bf16.msra.mxu0 %v7275_v36  ;;  %4945 = vmatprep.mubr.bf16.mxu0 %v1200_v7  ;;  %v7324_v35 = vld [vmem:[%s9412_s1 + $0x598] sm:$0xff]   ;;  %v7325_v36 = vld [vmem:[%s9412_s1 + $0x550] sm:$0xff]  }
  0x85   :  { %4906 = vmatmul.mubr.bf16.vlgmr.msra.gmra.mxu1 %v1160_v38  ;;  %6614 = vmatprep.subr.bf16.mxu0 %v7277_v39  ;;  %v7327_v38 = vld [vmem:[%s9412_s1 + $0x510] sm:$0xff]  }
  0x86   :  { %6635 = vmatpush3.bf16.msra.mxu1 %v7276_v37  ;;  %4985 = vmatprep.mubr.bf16.mxu1 %v1210_v11  ;;  %v7326_v37 = vld [vmem:[%s9412_s1 + $0x5d0] sm:$0xff]   ;;  %v7362_v11 = vld [vmem:[%s9412_s1 + $0x648] sm:$0xff]  }
  0x87   :  { %6636 = vmatprep.subr.bf16.mxu1 %v7278_v40  ;;  %v7328_v39 = vld [vmem:[%s9412_s1 + $0x590] sm:$0xff]   ;;  %v7329_v40 = vld [vmem:[%s9412_s1 + $0x548] sm:$0xff]  }
  0x88   :  { %6615 = vmatpush3.bf16.msra.mxu0 %v7279_v42  ;;  %v7330_v42 = vld [vmem:[%s9412_s1 + $0x5c8] sm:$0xff]   ;;  %v7358_v7 = vld [vmem:[%s9412_s1 + $0x650] sm:$0xff]  }
  0x89   :  { %6616 = vmatprep.subr.bf16.mxu0 %v7281_v44  ;;  %v7332_v44 = vld [vmem:[%s9412_s1 + $0x588] sm:$0xff]  }
  0x8a   :  { %6637 = vmatpush3.bf16.msra.mxu1 %v7280_v43  ;;  %v7331_v43 = vld [vmem:[%s9412_s1 + $0x508] sm:$0xff]  }
  0x8b   :  { %6638 = vmatprep.subr.bf16.mxu1 %v7282_v45  ;;  %v7333_v45 = vld [vmem:[%s9412_s1 + $0x540] sm:$0xff]  }
  0x8c   :  { %6617 = vmatpush3.bf16.msra.mxu0 %v7283_v46  ;;  %v7334_v46 = vld [vmem:[%s9412_s1 + $0x5c0] sm:$0xff]  }
  0x8d   :  { %6618 = vmatprep.subr.bf16.mxu0 %v7285_v48  ;;  %v7336_v48 = vld [vmem:[%s9412_s1 + $0x580] sm:$0xff]  }
  0x8e   :  { %6639 = vmatpush3.bf16.msra.mxu1 %v7284_v47  ;;  %v7335_v47 = vld [vmem:[%s9412_s1 + $0x500] sm:$0xff]  }
  0x8f   :  { %6640 = vmatprep.subr.bf16.mxu1 %v7286_v49  ;;  %v1193_v49 = vrot.slane %v8228_v4, %v7830_v41  ;;  %v7355_v4 = vld [vmem:[%s9412_s1 + $0x6d8] sm:$0xff]  }
  0x90   :  { %6619 = vmatpush3.bf16.msra.mxu0 %v7287_v50  ;;  %v7338_v50 = vld [vmem:[%s9412_s1 + $0x678] sm:$0xff]  }
  0x91   :  { %6620 = vmatprep.subr.bf16.mxu0 %v7289_v52  ;;  %v7340_v52 = vld [vmem:[%s9412_s1 + $0x638] sm:$0xff]  }
  0x92   :  { %6641 = vmatpush3.bf16.msra.mxu1 %v7288_v51  ;;  %v7339_v51 = vld [vmem:[%s9412_s1 + $0x6f8] sm:$0xff]  }
  0x93   :  { %6642 = vmatprep.subr.bf16.mxu1 %v7290_v53  ;;  %v7341_v53 = vld [vmem:[%s9412_s1 + $0x6b8] sm:$0xff]  }
  0x94   :  { %6621 = vmatpush3.bf16.msra.mxu0 %v7291_v54  ;;  %v1209_v54 = vcombine.high %v1193_v49, %v1193_v49 }
  0x95   :  { %6622 = vmatprep.subr.bf16.mxu0 %v7293_v56  ;;  %v7343_v56 = vld [vmem:[%s9412_s1 + $0x6f0] sm:$0xff]  }
  0x96   :  { %6643 = vmatpush3.bf16.msra.mxu1 %v7292_v55  ;;  %v7342_v55 = vld [vmem:[%s9412_s1 + $0x670] sm:$0xff]  }
  0x97   :  { %6644 = vmatprep.subr.bf16.mxu1 %v7294_v57  ;;  %v7344_v57 = vld [vmem:[%s9412_s1 + $0x630] sm:$0xff]  }
  0x98   :  { %6623 = vmatpush3.bf16.msra.mxu0 %v7295_v58  ;;  %v7345_v58 = vld [vmem:[%s9412_s1 + $0x6b0] sm:$0xff]  }
  0x99   :  { %6624 = vmatprep.subr.bf16.mxu0 %v7297_v60  ;;  %v7347_v60 = vld [vmem:[%s9412_s1 + $0x6e8] sm:$0xff]  }
  0x9a   :  { %6645 = vmatpush3.bf16.msra.mxu1 %v7296_v59  ;;  %v7346_v59 = vld [vmem:[%s9412_s1 + $0x668] sm:$0xff]  }
  0x9b   :  { %6646 = vmatprep.subr.bf16.mxu1 %v7298_v62  ;;  %v7349_v62 = vld [vmem:[%s9412_s1 + $0x6a8] sm:$0xff]  }
  0x9c   :  { %6625 = vmatpush3.bf16.msra.mxu0 %v7299_v1  ;;  %v7352_v1 = vld [vmem:[%s9412_s1 + $0x620] sm:$0xff]  }
  0x9d   :  { %6626 = vmatprep.subr.bf16.mxu0 %v7301_v5  ;;  %v7356_v5 = vld [vmem:[%s9412_s1 + $0x618] sm:$0xff]  }
  0x9e   :  { %6647 = vmatpush3.bf16.msra.mxu1 %v7300_v2  ;;  %v7353_v2 = vld [vmem:[%s9412_s1 + $0x6a0] sm:$0xff]  }
  0x9f   :  { %6648 = vmatprep.subr.bf16.mxu1 %v7302_v6  ;;  %v7357_v6 = vld [vmem:[%s9412_s1 + $0x698] sm:$0xff]  }
  0xa0   :  { %6627 = vmatpush3.bf16.msra.mxu0 %v7303_v9  ;;  %v7360_v9 = vld [vmem:[%s9412_s1 + $0x610] sm:$0xff]  }
  0xa1   :  { %6656 = vmatprep.subr.bf16.mxu0 %v7305_v13  ;;  %v7363_v13 = vld [vmem:[%s9412_s1 + $0x6c8] sm:$0xff]  }
  0xa2   :  { %6649 = vmatpush3.bf16.msra.mxu1 %v7304_v10  ;;  %v7361_v10 = vld [vmem:[%s9412_s1 + $0x690] sm:$0xff]  }
  0xa3   :  { %4946 = vmatmul.mubr.bf16.vlgmr.msra.gmra.mxu0 %v1186_v12  ;;  %6678 = vmatprep.subr.bf16.mxu1 %v7306_v14  ;;  %v21_v12 = vld [vmem:[%s9411_s0 + $0x18] sm:$0xff] }
  0xa4   :  { %6657 = vmatpush3.bf16.msra.mxu0 %v7307_v16  ;;  %5025 = vmatprep.mubr.bf16.mxu0 %v1207_v15  ;;  %v1219_v14 = vrot.slane %v21_v12, %v7830_v41  ;;  %v1212_v15 = vcombine.high %v21_v12, %v21_v12  ;;  %v7364_v16 = vld [vmem:[%s9412_s1 + $0x608] sm:$0xff]   ;;  %v7401_v12 = vld [vmem:[%s9412_s1 + $0x780] sm:$0xff]  }
  0xa5   :  { %4986 = vmatmul.mubr.bf16.vlgmr.msra.gmra.mxu1 %v1208_v18  ;;  %6658 = vmatprep.subr.bf16.mxu0 %v7309_v19 }
  0xa6   :  { %6679 = vmatpush3.bf16.msra.mxu1 %v7308_v17  ;;  %5065 = vmatprep.mubr.bf16.mxu1 %v1211_v21  ;;  %v7366_v17 = vld [vmem:[%s9412_s1 + $0x640] sm:$0xff]   ;;  %v1227_v18 = vcombine.high %v1219_v14, %v1219_v14  ;;  %v8434_v19 = vrot.slane %v1212_v15, %v7830_v41  ;;  %v7404_v15 = vld [vmem:[%s9412_s1 + $0x8f8] sm:$0xff]  }
  0xa7   :  { %6680 = vmatprep.subr.bf16.mxu1 %v7310_v20  ;;  %v7365_v20 = vld [vmem:[%s9412_s1 + $0x688] sm:$0xff]   ;;  %v7367_v21 = vld [vmem:[%s9412_s1 + $0x6c0] sm:$0xff]  }
  0xa8   :  { %6659 = vmatpush3.bf16.msra.mxu0 %v7311_v22  ;;  %v7368_v22 = vld [vmem:[%s9412_s1 + $0x600] sm:$0xff]  }
  0xa9   :  { %6660 = vmatprep.subr.bf16.mxu0 %v7313_v24  ;;  %v1228_v24 = vcombine.high %v8434_v19, %v8434_v19 }
  0xaa   :  { %6681 = vmatpush3.bf16.msra.mxu1 %v7312_v23  ;;  %v1249_v23 = vrot.slane %v1227_v18, %v7830_v41 }
  0xab   :  { %6682 = vmatprep.subr.bf16.mxu1 %v7314_v25  ;;  %v7369_v25 = vld [vmem:[%s9412_s1 + $0x680] sm:$0xff]  }
  0xac   :  { %6661 = vmatpush3.bf16.msra.mxu0 %v7315_v26  ;;  %v1259_v26 = vcombine.high %v1249_v23, %v1249_v23 }
  0xad   :  { %6662 = vmatprep.subr.bf16.mxu0 %v7317_v28  ;;  %v7370_v28 = vld [vmem:[%s9412_s1 + $0x778] sm:$0xff]  }
  0xae   :  { %6683 = vmatpush3.bf16.msra.mxu1 %v7316_v27  ;;  %v1235_v27 = vrot.slane %v1219_v14, %v7830_v41  ;;  %v7403_v14 = vld [vmem:[%s9412_s1 + $0x878] sm:$0xff]  }
  0xaf   :  { %6684 = vmatprep.subr.bf16.mxu1 %v7318_v29  ;;  %v7371_v29 = vld [vmem:[%s9412_s1 + $0x7f8] sm:$0xff]  }
  0xb0   :  { %6663 = vmatpush3.bf16.msra.mxu0 %v7319_v30  ;;  %v1256_v30 = vrot.slane %v1228_v24, %v7830_v41 }
  0xb1   :  { %6664 = vmatprep.subr.bf16.mxu0 %v7321_v32  ;;  %v7373_v32 = vld [vmem:[%s9412_s1 + $0x7b8] sm:$0xff]  }
  0xb2   :  { %6685 = vmatpush3.bf16.msra.mxu1 %v7320_v31  ;;  %v7372_v31 = vld [vmem:[%s9412_s1 + $0x738] sm:$0xff]  }
  0xb3   :  { %6686 = vmatprep.subr.bf16.mxu1 %v7322_v33  ;;  %v1257_v33 = vcombine.high %v1235_v27, %v1235_v27 }
  0xb4   :  { %6665 = vmatpush3.bf16.msra.mxu0 %v7323_v34  ;;  %v7374_v34 = vld [vmem:[%s9412_s1 + $0x770] sm:$0xff]  }
  0xb5   :  { %6666 = vmatprep.subr.bf16.mxu0 %v7325_v36  ;;  %v1260_v36 = vcombine.high %v1256_v30, %v1256_v30 }
  0xb6   :  { %6687 = vmatpush3.bf16.msra.mxu1 %v7324_v35  ;;  %v7375_v35 = vld [vmem:[%s9412_s1 + $0x7f0] sm:$0xff]  }
  0xb7   :  { %6688 = vmatprep.subr.bf16.mxu1 %v7326_v37 }
  0xb8   :  { %6667 = vmatpush3.bf16.msra.mxu0 %v7327_v38  ;;  %v5923_v38 = vld [vmem:[%s9413_s2] ss:$0 sm:$0xff] }
  0xb9   :  { %6668 = vmatprep.subr.bf16.mxu0 %v7329_v40  ;;  %v7377_v40 = vld [vmem:[%s9412_s1 + $0x7b0] sm:$0xff]  }
  0xba   :  { %6689 = vmatpush3.bf16.msra.mxu1 %v7328_v39  ;;  %v7376_v39 = vld [vmem:[%s9412_s1 + $0x730] sm:$0xff]  }
  0xbb   :  { %6690 = vmatprep.subr.bf16.mxu1 %v7330_v42 }
  0xbc   :  { %6669 = vmatpush3.bf16.msra.mxu0 %v7331_v43 }
  0xbd   :  { %6670 = vmatprep.subr.bf16.mxu0 %v7333_v45 }
  0xbe   :  { %6691 = vmatpush3.bf16.msra.mxu1 %v7332_v44  ;;  %v7378_v44 = vld [vmem:[%s9412_s1 + $0x768] sm:$0xff]  }
  0xbf   :  { %6692 = vmatprep.subr.bf16.mxu1 %v7334_v46  ;;  %v7379_v46 = vld [vmem:[%s9412_s1 + $0x7e8] sm:$0xff]  }
  0xc0   :  { %6671 = vmatpush3.bf16.msra.mxu0 %v7335_v47 }
  0xc1   :  { %6700 = vmatprep.subr.bf16.mxu0 %v7338_v50 }
  0xc2   :  { %6693 = vmatpush3.bf16.msra.mxu1 %v7336_v48 }
  0xc3   :  { %5026 = vmatmul.mubr.bf16.vlgmr.msra.gmra.mxu0 %v1193_v49  ;;  %6722 = vmatprep.subr.bf16.mxu1 %v7339_v51  ;;  %v7380_v49 = vld [vmem:[%s9412_s1 + $0x728] sm:$0xff]  }
  0xc4   :  { %6701 = vmatpush3.bf16.msra.mxu0 %v7340_v52  ;;  %5105 = vmatprep.mubr.bf16.mxu0 %v1249_v23  ;;  %v7381_v52 = vld [vmem:[%s9412_s1 + $0x7a8] sm:$0xff]   ;;  %v7410_v23 = vld [vmem:[%s9412_s1 + $0x8b0] sm:$0xff]  }
  0xc5   :  { %5066 = vmatmul.mubr.bf16.vlgmr.msra.gmra.mxu1 %v1209_v54  ;;  %6702 = vmatprep.subr.bf16.mxu0 %v7342_v55  ;;  %v7382_v55 = vld [vmem:[%s9412_s1 + $0x760] sm:$0xff]  }
  0xc6   :  { %6723 = vmatpush3.bf16.msra.mxu1 %v7341_v53  ;;  %5145 = vmatprep.mubr.bf16.mxu1 %v1259_v26  ;;  %v7411_v26 = vld [vmem:[%s9412_s1 + $0x868] sm:$0xff]  }
  0xc7   :  { %6724 = vmatprep.subr.bf16.mxu1 %v7343_v56 }
  0xc8   :  { %6703 = vmatpush3.bf16.msra.mxu0 %v7344_v57  ;;  %v7383_v57 = vld [vmem:[%s9412_s1 + $0x7e0] sm:$0xff]  }
  0xc9   :  { %6704 = vmatprep.subr.bf16.mxu0 %v7346_v59  ;;  %v7384_v59 = vld [vmem:[%s9412_s1 + $0x720] sm:$0xff]  }
  0xca   :  { %6725 = vmatpush3.bf16.msra.mxu1 %v7345_v58 }
  0xcb   :  { %6726 = vmatprep.subr.bf16.mxu1 %v7347_v60  ;;  %v7385_v60 = vld [vmem:[%s9412_s1 + $0x7a0] sm:$0xff]  }
  0xcc   :  { %6705 = vmatpush3.bf16.msra.mxu0 %v7348_v61  ;;  %v7386_v61 = vld [vmem:[%s9412_s1 + $0x758] sm:$0xff]  }
  0xcd   :  { %6706 = vmatprep.subr.bf16.mxu0 %v7350_v63  ;;  %v7388_v63 = vld [vmem:[%s9412_s1 + $0x718] sm:$0xff]  }
  0xce   :  { %6727 = vmatpush3.bf16.msra.mxu1 %v7349_v62  ;;  %v7387_v62 = vld [vmem:[%s9412_s1 + $0x7d8] sm:$0xff]  }
  0xcf   :  { %6728 = vmatprep.subr.bf16.mxu1 %v7351_v0  ;;  %v7389_v0 = vld [vmem:[%s9412_s1 + $0x798] sm:$0xff]  }
  0xd0   :  { %6707 = vmatpush3.bf16.msra.mxu0 %v7352_v1  ;;  %v7390_v1 = vld [vmem:[%s9412_s1 + $0x750] sm:$0xff]  }
  0xd1   :  { %6708 = vmatprep.subr.bf16.mxu0 %v7354_v3  ;;  %v7392_v3 = vld [vmem:[%s9412_s1 + $0x710] sm:$0xff]  }
  0xd2   :  { %6729 = vmatpush3.bf16.msra.mxu1 %v7353_v2  ;;  %v7391_v2 = vld [vmem:[%s9412_s1 + $0x7d0] sm:$0xff]  }
  0xd3   :  { %6730 = vmatprep.subr.bf16.mxu1 %v7355_v4  ;;  %v7393_v4 = vld [vmem:[%s9412_s1 + $0x790] sm:$0xff]  }
  0xd4   :  { %6709 = vmatpush3.bf16.msra.mxu0 %v7356_v5  ;;  %v7394_v5 = vld [vmem:[%s9412_s1 + $0x748] sm:$0xff]  }
  0xd5   :  { %6710 = vmatprep.subr.bf16.mxu0 %v7358_v7  ;;  %v7396_v7 = vld [vmem:[%s9412_s1 + $0x708] sm:$0xff]  }
  0xd6   :  { %6731 = vmatpush3.bf16.msra.mxu1 %v7357_v6  ;;  %v7395_v6 = vld [vmem:[%s9412_s1 + $0x7c8] sm:$0xff]  }
  0xd7   :  { %6732 = vmatprep.subr.bf16.mxu1 %v7359_v8  ;;  %v7397_v8 = vld [vmem:[%s9412_s1 + $0x788] sm:$0xff]  }
  0xd8   :  { %6711 = vmatpush3.bf16.msra.mxu0 %v7360_v9  ;;  %v7398_v9 = vld [vmem:[%s9412_s1 + $0x740] sm:$0xff]  }
  0xd9   :  { %6712 = vmatprep.subr.bf16.mxu0 %v7362_v11  ;;  %v7400_v11 = vld [vmem:[%s9412_s1 + $0x700] sm:$0xff]  }
  0xda   :  { %6733 = vmatpush3.bf16.msra.mxu1 %v7361_v10  ;;  %v7399_v10 = vld [vmem:[%s9412_s1 + $0x7c0] sm:$0xff]  }
  0xdb   :  { %6734 = vmatprep.subr.bf16.mxu1 %v7363_v13  ;;  %v1242_v13 = vrot.slane %v8434_v19, %v7830_v41  ;;  %v7407_v19 = vld [vmem:[%s9412_s1 + $0x870] sm:$0xff]  }
  0xdc   :  { %6713 = vmatpush3.bf16.msra.mxu0 %v7364_v16  ;;  %v7405_v16 = vld [vmem:[%s9412_s1 + $0x838] sm:$0xff]  }
  0xdd   :  { %6714 = vmatprep.subr.bf16.mxu0 %v7366_v17  ;;  %v7406_v17 = vld [vmem:[%s9412_s1 + $0x8b8] sm:$0xff]   ;;  %v1258_v18 = vcombine.high %v1242_v13, %v1242_v13 }
  0xde   :  { %6735 = vmatpush3.bf16.msra.mxu1 %v7365_v20  ;;  %v7408_v20 = vld [vmem:[%s9412_s1 + $0x8f0] sm:$0xff]  }
  0xdf   :  { %6736 = vmatprep.subr.bf16.mxu1 %v7367_v21 }
  0xe0   :  { %6715 = vmatpush3.bf16.msra.mxu0 %v7368_v22  ;;  %v7409_v22 = vld [vmem:[%s9412_s1 + $0x830] sm:$0xff]  }
  0xe1   :  { %6744 = vmatprep.subr.bf16.mxu0 %v7370_v28  ;;  %v7412_v28 = vld [vmem:[%s9412_s1 + $0x8e8] sm:$0xff]  }
  0xe2   :  { %6737 = vmatpush3.bf16.msra.mxu1 %v7369_v25 }
  0xe3   :  { %v6452_v37 = vpop.f32.mrf.mxu0  ;;  %5106 = vmatmul.mubr.bf16.vlgmr.msra.gmra.mxu0 %v1235_v27  ;;  %6766 = vmatprep.subr.bf16.mxu1 %v7371_v29 }
  0xe4   :  { %6745 = vmatpush3.bf16.msra.mxu0 %v7372_v31  ;;  %5185 = vmatprep.mubr.bf16.mxu0 %v1256_v30  ;;  %v6474_v42 = vpop.f32.mrf.mxu1  ;;  %v7413_v31 = vld [vmem:[%s9412_s1 + $0x828] sm:$0xff]  }
  0xe5   :  { %5146 = vmatmul.mubr.bf16.vlgmr.msra.gmra.mxu1 %v1257_v33  ;;  %v6453_v43 = vpop.f32.mrf.mxu0  ;;  %6746 = vmatprep.subr.bf16.mxu0 %v7374_v34  ;;  %v7414_v34 = vld [vmem:[%s9412_s1 + $0x8a8] sm:$0xff]  }
  0xe6   :  { %6767 = vmatpush3.bf16.msra.mxu1 %v7373_v32  ;;  %v6454_v45 = vadd.f32 %v6453_v43, %v6452_v37  ;;  %5225 = vmatprep.mubr.bf16.mxu1 %v1260_v36  ;;  %v6475_v47 = vpop.f32.mrf.mxu1  ;;  %v7415_v37 = vld [vmem:[%s9412_s1 + $0x860] sm:$0xff]  }
  0xe7   :  { %v6455_v48 = vpop.f32.mrf.mxu0  ;;  %6768 = vmatprep.subr.bf16.mxu1 %v7375_v35  ;;  %v6476_v51 = vadd.f32 %v6475_v47, %v6474_v42  ;;  %v7417_v42 = vld [vmem:[%s9412_s1 + $0x820] sm:$0xff]   ;;  %v7422_v47 = vld [vmem:[%s9412_s1 + $0x898] sm:$0xff]  }
  0xe8   :  { %v4628_v50 = vadd.f32 %v6454_v45, %v5923_v38  ;;  %6747 = vmatpush3.bf16.msra.mxu0 %v7376_v39  ;;  %v6477_v53 = vpop.f32.mrf.mxu1  ;;  %v7416_v39 = vld [vmem:[%s9412_s1 + $0x8e0] sm:$0xff]   ;;  %v7420_v45 = vld [vmem:[%s9412_s1 + $0x8d8] sm:$0xff]   ;;  %v7423_v48 = vld [vmem:[%s9412_s1 + $0x850] sm:$0xff]  }
  0xe9   :  { %v6456_v54 = vpop.f32.mrf.mxu0  ;;  %6748 = vmatprep.subr.bf16.mxu0 %v7378_v44  ;;  %v7418_v43 = vld [vmem:[%s9412_s1 + $0x8a0] sm:$0xff]   ;;  %v7419_v44 = vld [vmem:[%s9412_s1 + $0x858] sm:$0xff]   ;;  %v7428_v53 = vld [vmem:[%s9412_s1 + $0x8c8] sm:$0xff]  }
  0xea   :  { %v8495_v56 = vadd.f32 %v6476_v51, %v4628_v50  ;;  %6769 = vmatpush3.bf16.msra.mxu1 %v7377_v40  ;;  %v6478_v58 = vpop.f32.mrf.mxu1  ;;  %v7425_v50 = vld [vmem:[%s9412_s1 + $0x810] sm:$0xff]   ;;  %v22_v54 = vld [vmem:[%s9411_s0 + $0x20] sm:$0xff] }
  0xeb   :  { %6770 = vmatprep.subr.bf16.mxu1 %v7379_v46  ;;  %v7421_v46 = vld [vmem:[%s9412_s1 + $0x818] sm:$0xff]   ;;  %v7426_v51 = vld [vmem:[%s9412_s1 + $0x890] sm:$0xff]   ;;  %v7430_v58 = vld [vmem:[%s9412_s1 + $0x888] sm:$0xff]  }
  0xec   :  { %6749 = vmatpush3.bf16.msra.mxu0 %v7380_v49  ;;  %v7424_v49 = vld [vmem:[%s9412_s1 + $0x8d0] sm:$0xff]  }
  0xed   :  { %6750 = vmatprep.subr.bf16.mxu0 %v7382_v55  ;;  %v7429_v55 = vld [vmem:[%s9412_s1 + $0x808] sm:$0xff]  }
  0xee   :  { %6771 = vmatpush3.bf16.msra.mxu1 %v7381_v52  ;;  %v7427_v52 = vld [vmem:[%s9412_s1 + $0x848] sm:$0xff]  }
  0xef   :  { %6772 = vmatprep.subr.bf16.mxu1 %v7383_v57  ;;  %v1261_v57 = vcombine.high %v22_v54, %v22_v54 }
  0xf0   :  { %6751 = vmatpush3.bf16.msra.mxu0 %v7384_v59  ;;  %v7431_v59 = vld [vmem:[%s9412_s1 + $0x840] sm:$0xff]  }
  0xf1   :  { %6752 = vmatprep.subr.bf16.mxu0 %v7386_v61  ;;  %v8651_v61 = vrot.slane %v1261_v57, %v7830_v41  ;;  %v7471_v57 = vld [vmem:[%s9412_s1 + $0xab8] sm:$0xff]  }
  0xf2   :  { %6773 = vmatpush3.bf16.msra.mxu1 %v7385_v60 }
  0xf3   :  { %6774 = vmatprep.subr.bf16.mxu1 %v7387_v62  ;;  %v7432_v62 = vld [vmem:[%s9412_s1 + $0x8c0] sm:$0xff]  }
  0xf4   :  { %6753 = vmatpush3.bf16.msra.mxu0 %v7388_v63  ;;  %v7433_v63 = vld [vmem:[%s9412_s1 + $0x800] sm:$0xff]  }
  0xf5   :  { %6754 = vmatprep.subr.bf16.mxu0 %v7390_v1  ;;  %v1277_v1 = vcombine.high %v8651_v61, %v8651_v61 }
  0xf6   :  { %6775 = vmatpush3.bf16.msra.mxu1 %v7389_v0 }
  0xf7   :  { %6776 = vmatprep.subr.bf16.mxu1 %v7391_v2  ;;  %v7434_v2 = vld [vmem:[%s9412_s1 + $0x880] sm:$0xff]  }
  0xf8   :  { %6755 = vmatpush3.bf16.msra.mxu0 %v7392_v3 }
  0xf9   :  { %6756 = vmatprep.subr.bf16.mxu0 %v7394_v5  ;;  %v7435_v5 = vld [vmem:[%s9412_s1 + $0x978] sm:$0xff]  }
  0xfa   :  { %6777 = vmatpush3.bf16.msra.mxu1 %v7393_v4 }
  0xfb   :  { %6778 = vmatprep.subr.bf16.mxu1 %v7395_v6  ;;  %v7436_v6 = vld [vmem:[%s9412_s1 + $0x9f8] sm:$0xff]  }
  0xfc   :  { %6757 = vmatpush3.bf16.msra.mxu0 %v7396_v7  ;;  %v1305_v7 = vrot.slane %v1277_v1, %v7830_v41 }
  0xfd   :  { %6758 = vmatprep.subr.bf16.mxu0 %v7398_v9  ;;  %v7438_v9 = vld [vmem:[%s9412_s1 + $0x9b8] sm:$0xff]  }
  0xfe   :  { %6779 = vmatpush3.bf16.msra.mxu1 %v7397_v8  ;;  %v7437_v8 = vld [vmem:[%s9412_s1 + $0x938] sm:$0xff]  }
  0xff   :  { %6780 = vmatprep.subr.bf16.mxu1 %v7399_v10 }
 0x100   :  { %6759 = vmatpush3.bf16.msra.mxu0 %v7400_v11  ;;  %v7439_v11 = vld [vmem:[%s9412_s1 + $0x970] sm:$0xff]  }
 0x101   :  { %6788 = vmatprep.subr.bf16.mxu0 %v7403_v14 }
 0x102   :  { %6781 = vmatpush3.bf16.msra.mxu1 %v7401_v12  ;;  %v7440_v12 = vld [vmem:[%s9412_s1 + $0x9f0] sm:$0xff]  }
 0x103   :  { %v6496_v21 = vpop.f32.mrf.mxu0  ;;  %5186 = vmatmul.mubr.bf16.vlgmr.msra.gmra.mxu0 %v1242_v13  ;;  %6810 = vmatprep.subr.bf16.mxu1 %v7404_v15  ;;  %v1309_v13 = vcombine.high %v1305_v7, %v1305_v7  ;;  %v7441_v15 = vld [vmem:[%s9412_s1 + $0x930] sm:$0xff]  }
 0x104   :  { %6789 = vmatpush3.bf16.msra.mxu0 %v7405_v16  ;;  %v6518_v24 = vpop.f32.mrf.mxu1  ;;  %v7442_v16 = vld [vmem:[%s9412_s1 + $0x9b0] sm:$0xff]  }
 0x105   :  { %5226 = vmatmul.mubr.bf16.vlgmr.msra.gmra.mxu1 %v1258_v18  ;;  %v6497_v25 = vpop.f32.mrf.mxu0  ;;  %6790 = vmatprep.subr.bf16.mxu0 %v7407_v19  ;;  %v7443_v19 = vld [vmem:[%s9412_s1 + $0x968] sm:$0xff]  }
 0x106   :  { %6811 = vmatpush3.bf16.msra.mxu1 %v7406_v17  ;;  %v6498_v27 = vadd.f32 %v6497_v25, %v6496_v21  ;;  %v6519_v29 = vpop.f32.mrf.mxu1  ;;  %v7444_v21 = vld [vmem:[%s9412_s1 + $0x9e8] sm:$0xff]  }
 0x107   :  { %v6499_v30 = vpop.f32.mrf.mxu0  ;;  %6812 = vmatprep.subr.bf16.mxu1 %v7408_v20  ;;  %v6520_v33 = vadd.f32 %v6519_v29, %v6518_v24  ;;  %v7445_v24 = vld [vmem:[%s9412_s1 + $0x928] sm:$0xff]  }
 0x108   :  { %v4708_v32 = vadd.f32 %v6498_v27, %v8495_v56  ;;  %6791 = vmatpush3.bf16.msra.mxu0 %v7409_v22  ;;  %v6521_v35 = vpop.f32.mrf.mxu1  ;;  %v1268_v56 = vrot.slane %v22_v54, %v7830_v41  ;;  %v7446_v27 = vld [vmem:[%s9412_s1 + $0x9a8] sm:$0xff]   ;;  %v7447_v30 = vld [vmem:[%s9412_s1 + $0x960] sm:$0xff]   ;;  %v7468_v54 = vld [vmem:[%s9412_s1 + $0xa78] sm:$0xff]  }
 0x109   :  { %v6500_v36 = vpop.f32.mrf.mxu0  ;;  %6792 = vmatprep.subr.bf16.mxu0 %v7411_v26  ;;  %v7450_v35 = vld [vmem:[%s9412_s1 + $0x9a0] sm:$0xff]  }
 0x10a   :  { %v8596_v38 = vadd.f32 %v6520_v33, %v4708_v32  ;;  %6813 = vmatpush3.bf16.msra.mxu1 %v7410_v23  ;;  %v6522_v40 = vpop.f32.mrf.mxu1  ;;  %v1276_v60 = vcombine.high %v1268_v56, %v1268_v56  ;;  %v1284_v4 = vrot.slane %v1268_v56, %v7830_v41  ;;  %v7448_v32 = vld [vmem:[%s9412_s1 + $0x9e0] sm:$0xff]   ;;  %v7451_v36 = vld [vmem:[%s9412_s1 + $0x958] sm:$0xff]  }
 0x10b   :  { %6814 = vmatprep.subr.bf16.mxu1 %v7412_v28  ;;  %v7455_v40 = vld [vmem:[%s9412_s1 + $0x950] sm:$0xff]   ;;  %v7470_v56 = vld [vmem:[%s9412_s1 + $0xa38] sm:$0xff]  }
 0x10c   :  { %6793 = vmatpush3.bf16.msra.mxu0 %v7413_v31  ;;  %v1298_v0 = vrot.slane %v1276_v60, %v7830_v41  ;;  %v1306_v10 = vcombine.high %v1284_v4, %v1284_v4  ;;  %v7473_v60 = vld [vmem:[%s9412_s1 + $0xaf0] sm:$0xff]  }
 0x10d   :  { %6794 = vmatprep.subr.bf16.mxu0 %v7415_v37  ;;  %v7452_v37 = vld [vmem:[%s9412_s1 + $0x9d8] sm:$0xff]  }
 0x10e   :  { %6815 = vmatpush3.bf16.msra.mxu1 %v7414_v34  ;;  %5265 = vmatprep.mubr.bf16.mxu0 %v1298_v0  ;;  %v1308_v3 = vcombine.high %v1298_v0, %v1298_v0  ;;  %v7449_v34 = vld [vmem:[%s9412_s1 + $0x920] sm:$0xff]  }
 0x10f   :  { %6816 = vmatprep.subr.bf16.mxu1 %v7416_v39  ;;  %v7454_v39 = vld [vmem:[%s9412_s1 + $0x998] sm:$0xff]  }
 0x110   :  { %6795 = vmatpush3.bf16.msra.mxu0 %v7417_v42  ;;  %5305 = vmatprep.mubr.bf16.mxu1 %v1308_v3  ;;  %v7456_v42 = vld [vmem:[%s9412_s1 + $0x9d0] sm:$0xff]  }
 0x111   :  { %6796 = vmatprep.subr.bf16.mxu0 %v7419_v44  ;;  %v7458_v44 = vld [vmem:[%s9412_s1 + $0x990] sm:$0xff]  }
 0x112   :  { %6817 = vmatpush3.bf16.msra.mxu1 %v7418_v43  ;;  %v7457_v43 = vld [vmem:[%s9412_s1 + $0x910] sm:$0xff]  }
 0x113   :  { %6818 = vmatprep.subr.bf16.mxu1 %v7420_v45  ;;  %v7459_v45 = vld [vmem:[%s9412_s1 + $0x948] sm:$0xff]  }
 0x114   :  { %6797 = vmatpush3.bf16.msra.mxu0 %v7421_v46  ;;  %v7460_v46 = vld [vmem:[%s9412_s1 + $0x9c8] sm:$0xff]  }
 0x115   :  { %6798 = vmatprep.subr.bf16.mxu0 %v7423_v48  ;;  %v7462_v48 = vld [vmem:[%s9412_s1 + $0x988] sm:$0xff]  }
 0x116   :  { %6819 = vmatpush3.bf16.msra.mxu1 %v7422_v47  ;;  %v7461_v47 = vld [vmem:[%s9412_s1 + $0x908] sm:$0xff]  }
 0x117   :  { %6820 = vmatprep.subr.bf16.mxu1 %v7424_v49  ;;  %v7463_v49 = vld [vmem:[%s9412_s1 + $0x940] sm:$0xff]  }
 0x118   :  { %6799 = vmatpush3.bf16.msra.mxu0 %v7425_v50  ;;  %v7464_v50 = vld [vmem:[%s9412_s1 + $0x9c0] sm:$0xff]  }
 0x119   :  { %6800 = vmatprep.subr.bf16.mxu0 %v7427_v52  ;;  %v7466_v52 = vld [vmem:[%s9412_s1 + $0x980] sm:$0xff]  }
 0x11a   :  { %6821 = vmatpush3.bf16.msra.mxu1 %v7426_v51  ;;  %v7465_v51 = vld [vmem:[%s9412_s1 + $0x900] sm:$0xff]  }
 0x11b   :  { %6822 = vmatprep.subr.bf16.mxu1 %v7428_v53  ;;  %v1291_v53 = vrot.slane %v8651_v61, %v7830_v41 }
 0x11c   :  { %6801 = vmatpush3.bf16.msra.mxu0 %v7429_v55  ;;  %v7469_v55 = vld [vmem:[%s9412_s1 + $0xaf8] sm:$0xff]  }
 0x11d   :  { %6802 = vmatprep.subr.bf16.mxu0 %v7431_v59  ;;  %v7472_v59 = vld [vmem:[%s9412_s1 + $0xa70] sm:$0xff]  }
 0x11e   :  { %6823 = vmatpush3.bf16.msra.mxu1 %v7430_v58  ;;  %v1307_v58 = vcombine.high %v1291_v53, %v1291_v53 }
 0x11f   :  { %6824 = vmatprep.subr.bf16.mxu1 %v7432_v62  ;;  %v7474_v62 = vld [vmem:[%s9412_s1 + $0xa30] sm:$0xff]  }
 0x120   :  { %6803 = vmatpush3.bf16.msra.mxu0 %v7433_v63  ;;  %v7475_v63 = vld [vmem:[%s9412_s1 + $0xab0] sm:$0xff]  }
 0x121   :  { %6832 = vmatprep.subr.bf16.mxu0 %v7435_v5 }
 0x122   :  { %6825 = vmatpush3.bf16.msra.mxu1 %v7434_v2  ;;  %v7476_v2 = vld [vmem:[%s9412_s1 + $0xa68] sm:$0xff]  }
 0x123   :  { %v6540_v14 = vpop.f32.mrf.mxu0  ;;  %5266 = vmatmul.mubr.bf16.vlgmr.msra.gmra.mxu0 %v1284_v4  ;;  %6854 = vmatprep.subr.bf16.mxu1 %v7436_v6  ;;  %v7477_v4 = vld [vmem:[%s9412_s1 + $0xae8] sm:$0xff]  }
 0x124   :  { %6833 = vmatpush3.bf16.msra.mxu0 %v7437_v8  ;;  %5345 = vmatprep.mubr.bf16.mxu0 %v1305_v7  ;;  %v7478_v7 = vld [vmem:[%s9412_s1 + $0xa28] sm:$0xff]  }
 0x125   :  { %v6562_v17 = vpop.f32.mrf.mxu1  ;;  %5306 = vmatmul.mubr.bf16.vlgmr.msra.gmra.mxu1 %v1306_v10  ;;  %v6541_v18 = vpop.f32.mrf.mxu0  ;;  %6834 = vmatprep.subr.bf16.mxu0 %v7439_v11  ;;  %v7479_v10 = vld [vmem:[%s9412_s1 + $0xaa8] sm:$0xff]  }
 0x126   :  { %6855 = vmatpush3.bf16.msra.mxu1 %v7438_v9  ;;  %v6542_v20 = vadd.f32 %v6541_v18, %v6540_v14  ;;  %5385 = vmatprep.mubr.bf16.mxu1 %v1309_v13  ;;  %v7480_v13 = vld [vmem:[%s9412_s1 + $0xa60] sm:$0xff]  }
 0x127   :  { %v6563_v22 = vpop.f32.mrf.mxu1  ;;  %v6543_v23 = vpop.f32.mrf.mxu0  ;;  %6856 = vmatprep.subr.bf16.mxu1 %v7440_v12  ;;  %v7483_v18 = vld [vmem:[%s9412_s1 + $0xaa0] sm:$0xff]  }
 0x128   :  { %v4788_v25 = vadd.f32 %v6542_v20, %v8596_v38  ;;  %v6564_v26 = vadd.f32 %v6563_v22, %v6562_v17  ;;  %6835 = vmatpush3.bf16.msra.mxu0 %v7441_v15  ;;  %v7453_v38 = vld [vmem:[%s9412_s1 + $0x918] sm:$0xff]   ;;  %v7481_v15 = vld [vmem:[%s9412_s1 + $0xae0] sm:$0xff]   ;;  %v7488_v23 = vld [vmem:[%s9412_s1 + $0xa50] sm:$0xff]  }
 0x129   :  { %v6565_v28 = vpop.f32.mrf.mxu1  ;;  %v6544_v29 = vpop.f32.mrf.mxu0  ;;  %6836 = vmatprep.subr.bf16.mxu0 %v7443_v19  ;;  %v7482_v17 = vld [vmem:[%s9412_s1 + $0xa20] sm:$0xff]   ;;  %v7484_v19 = vld [vmem:[%s9412_s1 + $0xa58] sm:$0xff]  }
 0x12a   :  { %v8707_v31 = vadd.f32 %v6564_v26, %v4788_v25  ;;  %6857 = vmatpush3.bf16.msra.mxu1 %v7442_v16  ;;  %v7485_v20 = vld [vmem:[%s9412_s1 + $0xad8] sm:$0xff]   ;;  %v7490_v25 = vld [vmem:[%s9412_s1 + $0xa10] sm:$0xff]   ;;  %v7493_v28 = vld [vmem:[%s9412_s1 + $0xac8] sm:$0xff]  }
 0x12b   :  { %v6566_v33 = vpop.f32.mrf.mxu1  ;;  %6858 = vmatprep.subr.bf16.mxu1 %v7444_v21  ;;  %v7486_v21 = vld [vmem:[%s9412_s1 + $0xa18] sm:$0xff]   ;;  %v7491_v26 = vld [vmem:[%s9412_s1 + $0xa90] sm:$0xff]   ;;  %v23_v29 = vld [vmem:[%s9411_s0 + $0x28] sm:$0xff] }
 0x12c   :  { %6837 = vmatpush3.bf16.msra.mxu0 %v7445_v24  ;;  %v7487_v22 = vld [vmem:[%s9412_s1 + $0xa98] sm:$0xff]   ;;  %v7489_v24 = vld [vmem:[%s9412_s1 + $0xad0] sm:$0xff]   ;;  %v7496_v33 = vld [vmem:[%s9412_s1 + $0xa40] sm:$0xff]  }
 0x12d   :  { %6838 = vmatprep.subr.bf16.mxu0 %v7447_v30  ;;  %v7494_v30 = vld [vmem:[%s9412_s1 + $0xa08] sm:$0xff]  }
 0x12e   :  { %6859 = vmatpush3.bf16.msra.mxu1 %v7446_v27  ;;  %v7492_v27 = vld [vmem:[%s9412_s1 + $0xa48] sm:$0xff]  }
 0x12f   :  { %6860 = vmatprep.subr.bf16.mxu1 %v7448_v32  ;;  %v1310_v32 = vcombine.high %v23_v29, %v23_v29 }
 0x130   :  { %6839 = vmatpush3.bf16.msra.mxu0 %v7449_v34  ;;  %v7495_v34 = vld [vmem:[%s9412_s1 + $0xa88] sm:$0xff]  }
 0x131   :  { %6840 = vmatprep.subr.bf16.mxu0 %v7451_v36  ;;  %v8863_v36 = vrot.slane %v1310_v32, %v7830_v41 }
 0x132   :  { %6861 = vmatpush3.bf16.msra.mxu1 %v7450_v35 }
 0x133   :  { %6862 = vmatprep.subr.bf16.mxu1 %v7452_v37  ;;  %v7497_v37 = vld [vmem:[%s9412_s1 + $0xac0] sm:$0xff]  }
 0x134   :  { %6841 = vmatpush3.bf16.msra.mxu0 %v7453_v38  ;;  %v7498_v38 = vld [vmem:[%s9412_s1 + $0xa00] sm:$0xff]  }
 0x135   :  { %6842 = vmatprep.subr.bf16.mxu0 %v7455_v40  ;;  %v1326_v40 = vcombine.high %v8863_v36, %v8863_v36 }
 0x136   :  { %6863 = vmatpush3.bf16.msra.mxu1 %v7454_v39 }
 0x137   :  { %6864 = vmatprep.subr.bf16.mxu1 %v7456_v42 }
 0x138   :  { %6843 = vmatpush3.bf16.msra.mxu0 %v7457_v43  ;;  %v7500_v43 = vld [vmem:[%s9412_s1 + $0xb78] sm:$0xff]  }
 0x139   :  { %6844 = vmatprep.subr.bf16.mxu0 %v7459_v45 }
 0x13a   :  { %6865 = vmatpush3.bf16.msra.mxu1 %v7458_v44  ;;  %v7499_v44 = vld [vmem:[%s9412_s1 + $0xa80] sm:$0xff]  }
 0x13b   :  { %6866 = vmatprep.subr.bf16.mxu1 %v7460_v46  ;;  %v1354_v46 = vrot.slane %v1326_v40, %v7830_v41  ;;  %v7541_v40 = vld [vmem:[%s9412_s1 + $0xc68] sm:$0xff]  }
 0x13c   :  { %6845 = vmatpush3.bf16.msra.mxu0 %v7461_v47  ;;  %v7501_v47 = vld [vmem:[%s9412_s1 + $0xbf8] sm:$0xff]  }
 0x13d   :  { %6846 = vmatprep.subr.bf16.mxu0 %v7463_v49 }
 0x13e   :  { %6867 = vmatpush3.bf16.msra.mxu1 %v7462_v48  ;;  %v7502_v48 = vld [vmem:[%s9412_s1 + $0xb38] sm:$0xff]  }
 0x13f   :  { %6868 = vmatprep.subr.bf16.mxu1 %v7464_v50  ;;  %v7504_v50 = vld [vmem:[%s9412_s1 + $0xb70] sm:$0xff]  }
 0x140   :  { %6847 = vmatpush3.bf16.msra.mxu0 %v7465_v51  ;;  %v7503_v51 = vld [vmem:[%s9412_s1 + $0xbb8] sm:$0xff]  }
 0x141   :  { %6876 = vmatprep.subr.bf16.mxu0 %v7468_v54  ;;  %v7505_v54 = vld [vmem:[%s9412_s1 + $0xbf0] sm:$0xff]  }
 0x142   :  { %6869 = vmatpush3.bf16.msra.mxu1 %v7466_v52  ;;  %v1358_v52 = vcombine.high %v1354_v46, %v1354_v46 }
 0x143   :  { %v6584_v61 = vpop.f32.mrf.mxu0  ;;  %5346 = vmatmul.mubr.bf16.vlgmr.msra.gmra.mxu0 %v1291_v53  ;;  %6898 = vmatprep.subr.bf16.mxu1 %v7469_v55  ;;  %v7506_v55 = vld [vmem:[%s9412_s1 + $0xb30] sm:$0xff]  }
 0x144   :  { %6877 = vmatpush3.bf16.msra.mxu0 %v7470_v56 }
 0x145   :  { %v6606_v0 = vpop.f32.mrf.mxu1  ;;  %5386 = vmatmul.mubr.bf16.vlgmr.msra.gmra.mxu1 %v1307_v58  ;;  %v6585_v1 = vpop.f32.mrf.mxu0  ;;  %6878 = vmatprep.subr.bf16.mxu0 %v7472_v59  ;;  %v7508_v58 = vld [vmem:[%s9412_s1 + $0xb68] sm:$0xff]  }
 0x146   :  { %6899 = vmatpush3.bf16.msra.mxu1 %v7471_v57  ;;  %v6586_v3 = vadd.f32 %v6585_v1, %v6584_v61 }
 0x147   :  { %v6607_v5 = vpop.f32.mrf.mxu1  ;;  %v6587_v6 = vpop.f32.mrf.mxu0  ;;  %6900 = vmatprep.subr.bf16.mxu1 %v7473_v60  ;;  %v7507_v60 = vld [vmem:[%s9412_s1 + $0xbb0] sm:$0xff]  }
 0x148   :  { %v4868_v8 = vadd.f32 %v6586_v3, %v8707_v31  ;;  %v6608_v9 = vadd.f32 %v6607_v5, %v6606_v0  ;;  %6879 = vmatpush3.bf16.msra.mxu0 %v7474_v62  ;;  %v1317_v31 = vrot.slane %v23_v29, %v7830_v41  ;;  %v7512_v5 = vld [vmem:[%s9412_s1 + $0xb60] sm:$0xff]  }
 0x149   :  { %v6609_v11 = vpop.f32.mrf.mxu1  ;;  %v6588_v12 = vpop.f32.mrf.mxu0  ;;  %6880 = vmatprep.subr.bf16.mxu0 %v7476_v2  ;;  %v7510_v2 = vld [vmem:[%s9412_s1 + $0xb28] sm:$0xff]   ;;  %v7531_v29 = vld [vmem:[%s9412_s1 + $0xb80] sm:$0xff]  }
 0x14a   :  { %v8808_v14 = vadd.f32 %v6608_v9, %v4868_v8  ;;  %6901 = vmatpush3.bf16.msra.mxu1 %v7475_v63  ;;  %v1325_v35 = vcombine.high %v1317_v31, %v1317_v31  ;;  %v1333_v42 = vrot.slane %v1317_v31, %v7830_v41  ;;  %v7509_v63 = vld [vmem:[%s9412_s1 + $0xbe8] sm:$0xff]   ;;  %v7513_v9 = vld [vmem:[%s9412_s1 + $0xbe0] sm:$0xff]   ;;  %v7516_v11 = vld [vmem:[%s9412_s1 + $0xb58] sm:$0xff]  }
 0x14b   :  { %v6610_v16 = vpop.f32.mrf.mxu1  ;;  %6902 = vmatprep.subr.bf16.mxu1 %v7477_v4  ;;  %v7515_v12 = vld [vmem:[%s9412_s1 + $0xba0] sm:$0xff]   ;;  %v7535_v31 = vld [vmem:[%s9412_s1 + $0xc38] sm:$0xff]  }
 0x14c   :  { %6881 = vmatpush3.bf16.msra.mxu0 %v7478_v7  ;;  %v1347_v39 = vrot.slane %v1325_v35, %v7830_v41  ;;  %v1355_v49 = vcombine.high %v1333_v42, %v1333_v42  ;;  %v7511_v7 = vld [vmem:[%s9412_s1 + $0xba8] sm:$0xff]   ;;  %v7519_v16 = vld [vmem:[%s9412_s1 + $0xb98] sm:$0xff]  }
 0x14d   :  { %6882 = vmatprep.subr.bf16.mxu0 %v7480_v13  ;;  %v7517_v13 = vld [vmem:[%s9412_s1 + $0xbd8] sm:$0xff]  }
 0x14e   :  { %6903 = vmatpush3.bf16.msra.mxu1 %v7479_v10  ;;  %5425 = vmatprep.mubr.bf16.mxu0 %v1347_v39  ;;  %v1357_v45 = vcombine.high %v1347_v39, %v1347_v39  ;;  %v7514_v10 = vld [vmem:[%s9412_s1 + $0xb20] sm:$0xff]  }
 0x14f   :  { %6904 = vmatprep.subr.bf16.mxu1 %v7481_v15  ;;  %v7520_v15 = vld [vmem:[%s9412_s1 + $0xb50] sm:$0xff]  }
 0x150   :  { %6883 = vmatpush3.bf16.msra.mxu0 %v7482_v17  ;;  %5465 = vmatprep.mubr.bf16.mxu1 %v1357_v45  ;;  %v7521_v17 = vld [vmem:[%s9412_s1 + $0xbd0] sm:$0xff]  }
 0x151   :  { %6884 = vmatprep.subr.bf16.mxu0 %v7484_v19  ;;  %v7524_v19 = vld [vmem:[%s9412_s1 + $0xb48] sm:$0xff]  }
 0x152   :  { %6905 = vmatpush3.bf16.msra.mxu1 %v7483_v18  ;;  %v7522_v18 = vld [vmem:[%s9412_s1 + $0xb10] sm:$0xff]  }
 0x153   :  { %6906 = vmatprep.subr.bf16.mxu1 %v7485_v20  ;;  %v7523_v20 = vld [vmem:[%s9412_s1 + $0xb90] sm:$0xff]  }
 0x154   :  { %6885 = vmatpush3.bf16.msra.mxu0 %v7486_v21  ;;  %v7525_v21 = vld [vmem:[%s9412_s1 + $0xbc8] sm:$0xff]  }
 0x155   :  { %6886 = vmatprep.subr.bf16.mxu0 %v7488_v23  ;;  %v7528_v23 = vld [vmem:[%s9412_s1 + $0xb40] sm:$0xff]  }
 0x156   :  { %6907 = vmatpush3.bf16.msra.mxu1 %v7487_v22  ;;  %v7526_v22 = vld [vmem:[%s9412_s1 + $0xb08] sm:$0xff]  }
 0x157   :  { %6908 = vmatprep.subr.bf16.mxu1 %v7489_v24  ;;  %v7527_v24 = vld [vmem:[%s9412_s1 + $0xb88] sm:$0xff]  }
 0x158   :  { %6887 = vmatpush3.bf16.msra.mxu0 %v7490_v25  ;;  %v7529_v25 = vld [vmem:[%s9412_s1 + $0xbc0] sm:$0xff]  }
 0x159   :  { %6888 = vmatprep.subr.bf16.mxu0 %v7492_v27  ;;  %v1340_v27 = vrot.slane %v8863_v36, %v7830_v41  ;;  %v7538_v36 = vld [vmem:[%s9412_s1 + $0xcf0] sm:$0xff]  }
 0x15a   :  { %6909 = vmatpush3.bf16.msra.mxu1 %v7491_v26  ;;  %v7530_v26 = vld [vmem:[%s9412_s1 + $0xb00] sm:$0xff]  }
 0x15b   :  { %6910 = vmatprep.subr.bf16.mxu1 %v7493_v28  ;;  %v7533_v28 = vld [vmem:[%s9412_s1 + $0xc78] sm:$0xff]   ;;  %v1356_v32 = vcombine.high %v1340_v27, %v1340_v27 }
 0x15c   :  { %6889 = vmatpush3.bf16.msra.mxu0 %v7494_v30  ;;  %v7534_v30 = vld [vmem:[%s9412_s1 + $0xcf8] sm:$0xff]  }
 0x15d   :  { %6890 = vmatprep.subr.bf16.mxu0 %v7496_v33  ;;  %v7537_v33 = vld [vmem:[%s9412_s1 + $0xc70] sm:$0xff]  }
 0x15e   :  { %6911 = vmatpush3.bf16.msra.mxu1 %v7495_v34  ;;  %v7536_v34 = vld [vmem:[%s9412_s1 + $0xcb8] sm:$0xff]  }
 0x15f   :  { %6912 = vmatprep.subr.bf16.mxu1 %v7497_v37  ;;  %v7539_v37 = vld [vmem:[%s9412_s1 + $0xc30] sm:$0xff]  }
 0x160   :  { %6891 = vmatpush3.bf16.msra.mxu0 %v7498_v38 }
 0x161   :  { %6920 = vmatprep.subr.bf16.mxu0 %v7500_v43  ;;  %v7540_v43 = vld [vmem:[%s9412_s1 + $0xcb0] sm:$0xff]  }
 0x162   :  { %6913 = vmatpush3.bf16.msra.mxu1 %v7499_v44 }
 0x163   :  { %v6628_v53 = vpop.f32.mrf.mxu0  ;;  %5426 = vmatmul.mubr.bf16.vlgmr.msra.gmra.mxu0 %v1333_v42  ;;  %6942 = vmatprep.subr.bf16.mxu1 %v7501_v47 }
 0x164   :  { %6921 = vmatpush3.bf16.msra.mxu0 %v7502_v48  ;;  %5505 = vmatprep.mubr.bf16.mxu0 %v1354_v46  ;;  %v7542_v46 = vld [vmem:[%s9412_s1 + $0xce8] sm:$0xff]  }
 0x165   :  { %v6650_v56 = vpop.f32.mrf.mxu1  ;;  %5466 = vmatmul.mubr.bf16.vlgmr.msra.gmra.mxu1 %v1355_v49  ;;  %v6629_v57 = vpop.f32.mrf.mxu0  ;;  %6922 = vmatprep.subr.bf16.mxu0 %v7504_v50  ;;  %v7543_v49 = vld [vmem:[%s9412_s1 + $0xc28] sm:$0xff]  }
 0x166   :  { %6943 = vmatpush3.bf16.msra.mxu1 %v7503_v51  ;;  %v6630_v59 = vadd.f32 %v6629_v57, %v6628_v53  ;;  %5545 = vmatprep.mubr.bf16.mxu1 %v1358_v52  ;;  %v7545_v52 = vld [vmem:[%s9412_s1 + $0xc60] sm:$0xff]  }
 0x167   :  { %v6651_v61 = vpop.f32.mrf.mxu1  ;;  %v6631_v62 = vpop.f32.mrf.mxu0  ;;  %6944 = vmatprep.subr.bf16.mxu1 %v7505_v54  ;;  %v7544_v54 = vld [vmem:[%s9412_s1 + $0xca8] sm:$0xff]   ;;  %v7547_v57 = vld [vmem:[%s9412_s1 + $0xc20] sm:$0xff]  }
 0x168   :  { %v4948_v0 = vadd.f32 %v6630_v59, %v8808_v14  ;;  %v6652_v1 = vadd.f32 %v6651_v61, %v6650_v56  ;;  %6923 = vmatpush3.bf16.msra.mxu0 %v7506_v55  ;;  %v7518_v14 = vld [vmem:[%s9412_s1 + $0xb18] sm:$0xff]   ;;  %v7546_v56 = vld [vmem:[%s9412_s1 + $0xce0] sm:$0xff]   ;;  %v7553_v62 = vld [vmem:[%s9412_s1 + $0xc50] sm:$0xff]  }
 0x169   :  { %v6653_v3 = vpop.f32.mrf.mxu1  ;;  %v6632_v4 = vpop.f32.mrf.mxu0  ;;  %6924 = vmatprep.subr.bf16.mxu0 %v7508_v58  ;;  %v7549_v58 = vld [vmem:[%s9412_s1 + $0xc58] sm:$0xff]   ;;  %v7548_v59 = vld [vmem:[%s9412_s1 + $0xca0] sm:$0xff]  }
 0x16a   :  { %v8916_v6 = vadd.f32 %v6652_v1, %v4948_v0  ;;  %6945 = vmatpush3.bf16.msra.mxu1 %v7507_v60  ;;  %v7550_v60 = vld [vmem:[%s9412_s1 + $0xcd8] sm:$0xff]   ;;  %v7554_v0 = vld [vmem:[%s9412_s1 + $0xcd0] sm:$0xff]   ;;  %v7558_v4 = vld [vmem:[%s9412_s1 + $0xcc8] sm:$0xff]  }
 0x16b   :  { %v6654_v8 = vpop.f32.mrf.mxu1  ;;  %6946 = vmatprep.subr.bf16.mxu1 %v7509_v63  ;;  %v7551_v61 = vld [vmem:[%s9412_s1 + $0xc18] sm:$0xff]   ;;  %v7555_v1 = vld [vmem:[%s9412_s1 + $0xc10] sm:$0xff]  }
 0x16c   :  { %6925 = vmatpush3.bf16.msra.mxu0 %v7510_v2  ;;  %v7552_v63 = vld [vmem:[%s9412_s1 + $0xc98] sm:$0xff]   ;;  %v7557_v2 = vld [vmem:[%s9412_s1 + $0xc48] sm:$0xff]   ;;  %v7556_v3 = vld [vmem:[%s9412_s1 + $0xc90] sm:$0xff]  }
 0x16d   :  { %6926 = vmatprep.subr.bf16.mxu0 %v7512_v5  ;;  %v24_v5 = vld [vmem:[%s9411_s0 + $0x30] sm:$0xff] }
 0x16e   :  { %6947 = vmatpush3.bf16.msra.mxu1 %v7511_v7  ;;  %v1366_v7 = vrot.slane %v24_v5, %v7830_v41  ;;  %v1359_v8 = vcombine.high %v24_v5, %v24_v5  ;;  %v7596_v5 = vld [vmem:[%s9412_s1 + $0xd80] sm:$0xff]  }
 0x16f   :  { %6948 = vmatprep.subr.bf16.mxu1 %v7513_v9  ;;  %v7561_v9 = vld [vmem:[%s9412_s1 + $0xc40] sm:$0xff]  }
 0x170   :  { %6927 = vmatpush3.bf16.msra.mxu0 %v7514_v10  ;;  %v7560_v10 = vld [vmem:[%s9412_s1 + $0xc88] sm:$0xff]  }
 0x171   :  { %6928 = vmatprep.subr.bf16.mxu0 %v7516_v11  ;;  %v1374_v11 = vcombine.high %v1366_v7, %v1366_v7 }
 0x172   :  { %6949 = vmatpush3.bf16.msra.mxu1 %v7515_v12  ;;  %v9075_v12 = vrot.slane %v1359_v8, %v7830_v41 }
 0x173   :  { %6950 = vmatprep.subr.bf16.mxu1 %v7517_v13  ;;  %v7562_v13 = vld [vmem:[%s9412_s1 + $0xcc0] sm:$0xff]  }
 0x174   :  { %6929 = vmatpush3.bf16.msra.mxu0 %v7518_v14  ;;  %v7563_v14 = vld [vmem:[%s9412_s1 + $0xc00] sm:$0xff]  }
 0x175   :  { %6930 = vmatprep.subr.bf16.mxu0 %v7520_v15  ;;  %v1396_v15 = vrot.slane %v1374_v11, %v7830_v41 }
 0x176   :  { %6951 = vmatpush3.bf16.msra.mxu1 %v7519_v16  ;;  %v1375_v16 = vcombine.high %v9075_v12, %v9075_v12 }
 0x177   :  { %6952 = vmatprep.subr.bf16.mxu1 %v7521_v17  ;;  %v1382_v17 = vrot.slane %v1366_v7, %v7830_v41  ;;  %v7600_v7 = vld [vmem:[%s9412_s1 + $0xe38] sm:$0xff]  }
 0x178   :  { %6931 = vmatpush3.bf16.msra.mxu0 %v7522_v18  ;;  %v7565_v18 = vld [vmem:[%s9412_s1 + $0xd78] sm:$0xff]  }
 0x179   :  { %6932 = vmatprep.subr.bf16.mxu0 %v7524_v19  ;;  %v7564_v19 = vld [vmem:[%s9412_s1 + $0xc80] sm:$0xff]  }
 0x17a   :  { %6953 = vmatpush3.bf16.msra.mxu1 %v7523_v20  ;;  %v1406_v20 = vcombine.high %v1396_v15, %v1396_v15 }
 0x17b   :  { %6954 = vmatprep.subr.bf16.mxu1 %v7525_v21  ;;  %v1403_v21 = vrot.slane %v1375_v16, %v7830_v41  ;;  %v7606_v16 = vld [vmem:[%s9412_s1 + $0xe68] sm:$0xff]  }
 0x17c   :  { %6933 = vmatpush3.bf16.msra.mxu0 %v7526_v22  ;;  %v7566_v22 = vld [vmem:[%s9412_s1 + $0xdf8] sm:$0xff]  }
 0x17d   :  { %6934 = vmatprep.subr.bf16.mxu0 %v7528_v23  ;;  %v7567_v23 = vld [vmem:[%s9412_s1 + $0xd38] sm:$0xff]  }
 0x17e   :  { %6955 = vmatpush3.bf16.msra.mxu1 %v7527_v24  ;;  %v1404_v24 = vcombine.high %v1382_v17, %v1382_v17 }
 0x17f   :  { %6956 = vmatprep.subr.bf16.mxu1 %v7529_v25  ;;  %v7569_v25 = vld [vmem:[%s9412_s1 + $0xd70] sm:$0xff]  }
 0x180   :  { %6935 = vmatpush3.bf16.msra.mxu0 %v7530_v26  ;;  %v7568_v26 = vld [vmem:[%s9412_s1 + $0xdb8] sm:$0xff]  }
 0x181   :  { %6964 = vmatprep.subr.bf16.mxu0 %v7533_v28 }
 0x182   :  { %6957 = vmatpush3.bf16.msra.mxu1 %v7531_v29  ;;  %v7570_v29 = vld [vmem:[%s9412_s1 + $0xdf0] sm:$0xff]  }
 0x183   :  { %v6672_v35 = vpop.f32.mrf.mxu0  ;;  %5506 = vmatmul.mubr.bf16.vlgmr.msra.gmra.mxu0 %v1340_v27  ;;  %6986 = vmatprep.subr.bf16.mxu1 %v7534_v30  ;;  %v1407_v27 = vcombine.high %v1403_v21, %v1403_v21  ;;  %v7571_v30 = vld [vmem:[%s9412_s1 + $0xd30] sm:$0xff]  }
 0x184   :  { %6965 = vmatpush3.bf16.msra.mxu0 %v7535_v31  ;;  %5585 = vmatprep.mubr.bf16.mxu0 %v1396_v15 }
 0x185   :  { %v6694_v38 = vpop.f32.mrf.mxu1  ;;  %5546 = vmatmul.mubr.bf16.vlgmr.msra.gmra.mxu1 %v1356_v32  ;;  %v6673_v39 = vpop.f32.mrf.mxu0  ;;  %6966 = vmatprep.subr.bf16.mxu0 %v7537_v33  ;;  %v7573_v33 = vld [vmem:[%s9412_s1 + $0xd68] sm:$0xff]  }
 0x186   :  { %6987 = vmatpush3.bf16.msra.mxu1 %v7536_v34  ;;  %v6674_v42 = vadd.f32 %v6673_v39, %v6672_v35  ;;  %5625 = vmatprep.mubr.bf16.mxu1 %v1406_v20  ;;  %v7572_v35 = vld [vmem:[%s9412_s1 + $0xdb0] sm:$0xff]  }
 0x187   :  { %v6695_v44 = vpop.f32.mrf.mxu1  ;;  %v6675_v45 = vpop.f32.mrf.mxu0  ;;  %6988 = vmatprep.subr.bf16.mxu1 %v7538_v36 }
 0x188   :  { %v5028_v47 = vadd.f32 %v6674_v42, %v8916_v6  ;;  %v6696_v48 = vadd.f32 %v6695_v44, %v6694_v38  ;;  %6967 = vmatpush3.bf16.msra.mxu0 %v7539_v37  ;;  %v7559_v6 = vld [vmem:[%s9412_s1 + $0xc08] sm:$0xff]   ;;  %v7577_v45 = vld [vmem:[%s9412_s1 + $0xd60] sm:$0xff]  }
 0x189   :  { %v6697_v50 = vpop.f32.mrf.mxu1  ;;  %v6676_v51 = vpop.f32.mrf.mxu0  ;;  %6968 = vmatprep.subr.bf16.mxu0 %v7541_v40  ;;  %v7574_v38 = vld [vmem:[%s9412_s1 + $0xde8] sm:$0xff]  }
 0x18a   :  { %v9017_v53 = vadd.f32 %v6696_v48, %v5028_v47  ;;  %6989 = vmatpush3.bf16.msra.mxu1 %v7540_v43  ;;  %v7575_v42 = vld [vmem:[%s9412_s1 + $0xd28] sm:$0xff]   ;;  %v7579_v50 = vld [vmem:[%s9412_s1 + $0xd20] sm:$0xff]   ;;  %v7581_v51 = vld [vmem:[%s9412_s1 + $0xd58] sm:$0xff]  }
 0x18b   :  { %v6698_v55 = vpop.f32.mrf.mxu1  ;;  %6990 = vmatprep.subr.bf16.mxu1 %v7542_v46  ;;  %v7576_v47 = vld [vmem:[%s9412_s1 + $0xda8] sm:$0xff]  }
 0x18c   :  { %6969 = vmatpush3.bf16.msra.mxu0 %v7543_v49  ;;  %v7578_v49 = vld [vmem:[%s9412_s1 + $0xde0] sm:$0xff]   ;;  %v7585_v55 = vld [vmem:[%s9412_s1 + $0xd50] sm:$0xff]  }
 0x18d   :  { %6970 = vmatprep.subr.bf16.mxu0 %v7545_v52  ;;  %v7580_v52 = vld [vmem:[%s9412_s1 + $0xda0] sm:$0xff]  }
 0x18e   :  { %6991 = vmatpush3.bf16.msra.mxu1 %v7544_v54  ;;  %v7583_v54 = vld [vmem:[%s9412_s1 + $0xd18] sm:$0xff]  }
 0x18f   :  { %6992 = vmatprep.subr.bf16.mxu1 %v7546_v56  ;;  %v7584_v56 = vld [vmem:[%s9412_s1 + $0xd98] sm:$0xff]  }
 0x190   :  { %6971 = vmatpush3.bf16.msra.mxu0 %v7547_v57  ;;  %v7586_v57 = vld [vmem:[%s9412_s1 + $0xdd0] sm:$0xff]  }
 0x191   :  { %6972 = vmatprep.subr.bf16.mxu0 %v7549_v58  ;;  %v7587_v58 = vld [vmem:[%s9412_s1 + $0xd10] sm:$0xff]  }
 0x192   :  { %6993 = vmatpush3.bf16.msra.mxu1 %v7548_v59  ;;  %v7589_v59 = vld [vmem:[%s9412_s1 + $0xd48] sm:$0xff]  }
 0x193   :  { %6994 = vmatprep.subr.bf16.mxu1 %v7550_v60  ;;  %v7588_v60 = vld [vmem:[%s9412_s1 + $0xd90] sm:$0xff]  }
 0x194   :  { %6973 = vmatpush3.bf16.msra.mxu0 %v7551_v61  ;;  %v7590_v61 = vld [vmem:[%s9412_s1 + $0xdc8] sm:$0xff]  }
 0x195   :  { %6974 = vmatprep.subr.bf16.mxu0 %v7553_v62  ;;  %v7591_v62 = vld [vmem:[%s9412_s1 + $0xd08] sm:$0xff]  }
 0x196   :  { %6995 = vmatpush3.bf16.msra.mxu1 %v7552_v63  ;;  %v7593_v63 = vld [vmem:[%s9412_s1 + $0xd40] sm:$0xff]  }
 0x197   :  { %6996 = vmatprep.subr.bf16.mxu1 %v7554_v0  ;;  %v7592_v0 = vld [vmem:[%s9412_s1 + $0xd88] sm:$0xff]  }
 0x198   :  { %6975 = vmatpush3.bf16.msra.mxu0 %v7555_v1  ;;  %v7594_v1 = vld [vmem:[%s9412_s1 + $0xdc0] sm:$0xff]  }
 0x199   :  { %6976 = vmatprep.subr.bf16.mxu0 %v7557_v2  ;;  %v7595_v2 = vld [vmem:[%s9412_s1 + $0xd00] sm:$0xff]  }
 0x19a   :  { %6997 = vmatpush3.bf16.msra.mxu1 %v7556_v3  ;;  %v1389_v3 = vrot.slane %v9075_v12, %v7830_v41  ;;  %v7603_v12 = vld [vmem:[%s9412_s1 + $0xef0] sm:$0xff]  }
 0x19b   :  { %6998 = vmatprep.subr.bf16.mxu1 %v7558_v4  ;;  %v7598_v4 = vld [vmem:[%s9412_s1 + $0xe78] sm:$0xff]  }
 0x19c   :  { %6977 = vmatpush3.bf16.msra.mxu0 %v7559_v6  ;;  %v7599_v6 = vld [vmem:[%s9412_s1 + $0xef8] sm:$0xff]   ;;  %v1405_v8 = vcombine.high %v1389_v3, %v1389_v3 }
 0x19d   :  { %6978 = vmatprep.subr.bf16.mxu0 %v7561_v9  ;;  %v7602_v9 = vld [vmem:[%s9412_s1 + $0xe70] sm:$0xff]  }
 0x19e   :  { %6999 = vmatpush3.bf16.msra.mxu1 %v7560_v10  ;;  %v7601_v10 = vld [vmem:[%s9412_s1 + $0xeb8] sm:$0xff]  }
 0x19f   :  { %7000 = vmatprep.subr.bf16.mxu1 %v7562_v13  ;;  %v7604_v13 = vld [vmem:[%s9412_s1 + $0xe30] sm:$0xff]  }
 0x1a0   :  { %6979 = vmatpush3.bf16.msra.mxu0 %v7563_v14 }
 0x1a1   :  { %7008 = vmatprep.subr.bf16.mxu0 %v7565_v18  ;;  %v7605_v18 = vld [vmem:[%s9412_s1 + $0xeb0] sm:$0xff]  }
 0x1a2   :  { %7001 = vmatpush3.bf16.msra.mxu1 %v7564_v19 }
 0x1a3   :  { %v6716_v28 = vpop.f32.mrf.mxu0  ;;  %5586 = vmatmul.mubr.bf16.vlgmr.msra.gmra.mxu0 %v1382_v17  ;;  %7030 = vmatprep.subr.bf16.mxu1 %v7566_v22 }
 0x1a4   :  { %7009 = vmatpush3.bf16.msra.mxu0 %v7567_v23  ;;  %5665 = vmatprep.mubr.bf16.mxu0 %v1403_v21  ;;  %v7607_v21 = vld [vmem:[%s9412_s1 + $0xee8] sm:$0xff]  }
 0x1a5   :  { %v6738_v31 = vpop.f32.mrf.mxu1  ;;  %5626 = vmatmul.mubr.bf16.vlgmr.msra.gmra.mxu1 %v1404_v24  ;;  %v6717_v32 = vpop.f32.mrf.mxu0  ;;  %7010 = vmatprep.subr.bf16.mxu0 %v7569_v25  ;;  %v7608_v24 = vld [vmem:[%s9412_s1 + $0xe28] sm:$0xff]  }
 0x1a6   :  { %7031 = vmatpush3.bf16.msra.mxu1 %v7568_v26  ;;  %v6718_v34 = vadd.f32 %v6717_v32, %v6716_v28  ;;  %5705 = vmatprep.mubr.bf16.mxu1 %v1407_v27  ;;  %v7610_v27 = vld [vmem:[%s9412_s1 + $0xe60] sm:$0xff]  }
 0x1a7   :  { %v6739_v36 = vpop.f32.mrf.mxu1  ;;  %v6719_v37 = vpop.f32.mrf.mxu0  ;;  %7032 = vmatprep.subr.bf16.mxu1 %v7570_v29  ;;  %v7609_v29 = vld [vmem:[%s9412_s1 + $0xea8] sm:$0xff]   ;;  %v7612_v32 = vld [vmem:[%s9412_s1 + $0xe20] sm:$0xff]  }
 0x1a8   :  { %v5108_v39 = vadd.f32 %v6718_v34, %v9017_v53  ;;  %v6740_v40 = vadd.f32 %v6739_v36, %v6738_v31  ;;  %7011 = vmatpush3.bf16.msra.mxu0 %v7571_v30  ;;  %v7582_v53 = vld [vmem:[%s9412_s1 + $0xdd8] sm:$0xff]   ;;  %v7611_v31 = vld [vmem:[%s9412_s1 + $0xee0] sm:$0xff]   ;;  %v7618_v37 = vld [vmem:[%s9412_s1 + $0xe50] sm:$0xff]  }
 0x1a9   :  { %v6741_v43 = vpop.f32.mrf.mxu1  ;;  %v6720_v44 = vpop.f32.mrf.mxu0  ;;  %7012 = vmatprep.subr.bf16.mxu0 %v7573_v33  ;;  %v7614_v33 = vld [vmem:[%s9412_s1 + $0xe58] sm:$0xff]   ;;  %v7613_v34 = vld [vmem:[%s9412_s1 + $0xea0] sm:$0xff]  }
 0x1aa   :  { %v9128_v46 = vadd.f32 %v6740_v40, %v5108_v39  ;;  %7033 = vmatpush3.bf16.msra.mxu1 %v7572_v35  ;;  %v7615_v35 = vld [vmem:[%s9412_s1 + $0xed8] sm:$0xff]   ;;  %v7619_v39 = vld [vmem:[%s9412_s1 + $0xed0] sm:$0xff]   ;;  %v7623_v44 = vld [vmem:[%s9412_s1 + $0xec8] sm:$0xff]  }
 0x1ab   :  { %v6742_v48 = vpop.f32.mrf.mxu1  ;;  %7034 = vmatprep.subr.bf16.mxu1 %v7574_v38  ;;  %v7616_v36 = vld [vmem:[%s9412_s1 + $0xe18] sm:$0xff]   ;;  %v7620_v40 = vld [vmem:[%s9412_s1 + $0xe10] sm:$0xff]  }
 0x1ac   :  { %7013 = vmatpush3.bf16.msra.mxu0 %v7575_v42  ;;  %v7617_v38 = vld [vmem:[%s9412_s1 + $0xe98] sm:$0xff]   ;;  %v7622_v42 = vld [vmem:[%s9412_s1 + $0xe48] sm:$0xff]   ;;  %v7621_v43 = vld [vmem:[%s9412_s1 + $0xe90] sm:$0xff]  }
 0x1ad   :  { %7014 = vmatprep.subr.bf16.mxu0 %v7577_v45  ;;  %v25_v45 = vld [vmem:[%s9411_s0 + $0x38] sm:$0xff] }
 0x1ae   :  { %7035 = vmatpush3.bf16.msra.mxu1 %v7576_v47  ;;  %v1415_v47 = vrot.slane %v25_v45, %v7830_v41  ;;  %v1408_v48 = vcombine.high %v25_v45, %v25_v45 }
 0x1af   :  { %7036 = vmatprep.subr.bf16.mxu1 %v7578_v49  ;;  %v7626_v49 = vld [vmem:[%s9412_s1 + $0xe40] sm:$0xff]  }
 0x1b0   :  { %7015 = vmatpush3.bf16.msra.mxu0 %v7579_v50  ;;  %v7625_v50 = vld [vmem:[%s9412_s1 + $0xe88] sm:$0xff]  }
 0x1b1   :  { %7016 = vmatprep.subr.bf16.mxu0 %v7581_v51  ;;  %v1423_v51 = vcombine.high %v1415_v47, %v1415_v47 }
 0x1b2   :  { %7037 = vmatpush3.bf16.msra.mxu1 %v7580_v52  ;;  %v9287_v52 = vrot.slane %v1408_v48, %v7830_v41 }
 0x1b3   :  { %7038 = vmatprep.subr.bf16.mxu1 %v7582_v53  ;;  %v7627_v53 = vld [vmem:[%s9412_s1 + $0xec0] sm:$0xff]  }
 0x1b4   :  { %7017 = vmatpush3.bf16.msra.mxu0 %v7583_v54  ;;  %v7628_v54 = vld [vmem:[%s9412_s1 + $0xe00] sm:$0xff]  }
 0x1b5   :  { %7018 = vmatprep.subr.bf16.mxu0 %v7585_v55  ;;  %v1445_v55 = vrot.slane %v1423_v51, %v7830_v41 }
 0x1b6   :  { %7039 = vmatpush3.bf16.msra.mxu1 %v7584_v56  ;;  %v1424_v56 = vcombine.high %v9287_v52, %v9287_v52 }
 0x1b7   :  { %7040 = vmatprep.subr.bf16.mxu1 %v7586_v57  ;;  %v1431_v57 = vrot.slane %v1415_v47, %v7830_v41 }
 0x1b8   :  { %7019 = vmatpush3.bf16.msra.mxu0 %v7587_v58  ;;  %v7630_v58 = vld [vmem:[%s9412_s1 + $0xf78] sm:$0xff]  }
 0x1b9   :  { %7020 = vmatprep.subr.bf16.mxu0 %v7589_v59  ;;  %v7629_v59 = vld [vmem:[%s9412_s1 + $0xe80] sm:$0xff]  }
 0x1ba   :  { %7041 = vmatpush3.bf16.msra.mxu1 %v7588_v60  ;;  %v1455_v60 = vcombine.high %v1445_v55, %v1445_v55 }
 0x1bb   :  { %7042 = vmatprep.subr.bf16.mxu1 %v7590_v61  ;;  %v1452_v61 = vrot.slane %v1424_v56, %v7830_v41 }
 0x1bc   :  { %7021 = vmatpush3.bf16.msra.mxu0 %v7591_v62  ;;  %v7631_v62 = vld [vmem:[%s9412_s1 + $0xff8] sm:$0xff]  }
 0x1bd   :  { %7022 = vmatprep.subr.bf16.mxu0 %v7593_v63  ;;  %v7632_v63 = vld [vmem:[%s9412_s1 + $0xf38] sm:$0xff]  }
 0x1be   :  { %7043 = vmatpush3.bf16.msra.mxu1 %v7592_v0  ;;  %v1453_v0 = vcombine.high %v1431_v57, %v1431_v57 }
 0x1bf   :  { %7044 = vmatprep.subr.bf16.mxu1 %v7594_v1  ;;  %v7634_v1 = vld [vmem:[%s9412_s1 + $0xf70] sm:$0xff]  }
 0x1c0   :  { %7023 = vmatpush3.bf16.msra.mxu0 %v7595_v2  ;;  %v7633_v2 = vld [vmem:[%s9412_s1 + $0xfb8] sm:$0xff]  }
 0x1c1   :  { %7052 = vmatprep.subr.bf16.mxu0 %v7598_v4 }
 0x1c2   :  { %7045 = vmatpush3.bf16.msra.mxu1 %v7596_v5  ;;  %v7635_v5 = vld [vmem:[%s9412_s1 + $0xff0] sm:$0xff]  }
 0x1c3   :  { %v6760_v11 = vpop.f32.mrf.mxu0  ;;  %5666 = vmatmul.mubr.bf16.vlgmr.msra.gmra.mxu0 %v1389_v3  ;;  %7074 = vmatprep.subr.bf16.mxu1 %v7599_v6  ;;  %v1456_v3 = vcombine.high %v1452_v61, %v1452_v61  ;;  %v7636_v6 = vld [vmem:[%s9412_s1 + $0xf30] sm:$0xff]  }
 0x1c4   :  { %7053 = vmatpush3.bf16.msra.mxu0 %v7600_v7  ;;  %5745 = vmatprep.mubr.bf16.mxu0 %v1445_v55 }
 0x1c5   :  { %v6782_v14 = vpop.f32.mrf.mxu1  ;;  %5706 = vmatmul.mubr.bf16.vlgmr.msra.gmra.mxu1 %v1405_v8  ;;  %v6761_v15 = vpop.f32.mrf.mxu0  ;;  %7054 = vmatprep.subr.bf16.mxu0 %v7602_v9  ;;  %v7638_v9 = vld [vmem:[%s9412_s1 + $0xf68] sm:$0xff]  }
 0x1c6   :  { %7075 = vmatpush3.bf16.msra.mxu1 %v7601_v10  ;;  %v6762_v17 = vadd.f32 %v6761_v15, %v6760_v11  ;;  %5785 = vmatprep.mubr.bf16.mxu1 %v1455_v60  ;;  %v7637_v11 = vld [vmem:[%s9412_s1 + $0xfb0] sm:$0xff]  }
 0x1c7   :  { %v6783_v19 = vpop.f32.mrf.mxu1  ;;  %v6763_v20 = vpop.f32.mrf.mxu0  ;;  %7076 = vmatprep.subr.bf16.mxu1 %v7603_v12 }
 0x1c8   :  { %v5188_v22 = vadd.f32 %v6762_v17, %v9128_v46  ;;  %v6784_v23 = vadd.f32 %v6783_v19, %v6782_v14  ;;  %7055 = vmatpush3.bf16.msra.mxu0 %v7604_v13  ;;  %v7624_v46 = vld [vmem:[%s9412_s1 + $0xe08] sm:$0xff]   ;;  %v7642_v20 = vld [vmem:[%s9412_s1 + $0xf60] sm:$0xff]  }
 0x1c9   :  { %v6785_v25 = vpop.f32.mrf.mxu1  ;;  %v6764_v26 = vpop.f32.mrf.mxu0  ;;  %7056 = vmatprep.subr.bf16.mxu0 %v7606_v16  ;;  %v7639_v14 = vld [vmem:[%s9412_s1 + $0xfe8] sm:$0xff]  }
 0x1ca   :  { %v9229_v28 = vadd.f32 %v6784_v23, %v5188_v22  ;;  %7077 = vmatpush3.bf16.msra.mxu1 %v7605_v18  ;;  %v7640_v17 = vld [vmem:[%s9412_s1 + $0xf28] sm:$0xff]   ;;  %v7644_v25 = vld [vmem:[%s9412_s1 + $0xf20] sm:$0xff]   ;;  %v7646_v26 = vld [vmem:[%s9412_s1 + $0xf58] sm:$0xff]  }
 0x1cb   :  { %v6786_v30 = vpop.f32.mrf.mxu1  ;;  %7078 = vmatprep.subr.bf16.mxu1 %v7607_v21  ;;  %v7641_v22 = vld [vmem:[%s9412_s1 + $0xfa8] sm:$0xff]  }
 0x1cc   :  { %7057 = vmatpush3.bf16.msra.mxu0 %v7608_v24  ;;  %v7643_v24 = vld [vmem:[%s9412_s1 + $0xfe0] sm:$0xff]   ;;  %v7650_v30 = vld [vmem:[%s9412_s1 + $0xf50] sm:$0xff]  }
 0x1cd   :  { %7058 = vmatprep.subr.bf16.mxu0 %v7610_v27  ;;  %v7645_v27 = vld [vmem:[%s9412_s1 + $0xfa0] sm:$0xff]  }
 0x1ce   :  { %7079 = vmatpush3.bf16.msra.mxu1 %v7609_v29  ;;  %v7648_v29 = vld [vmem:[%s9412_s1 + $0xf18] sm:$0xff]  }
 0x1cf   :  { %7080 = vmatprep.subr.bf16.mxu1 %v7611_v31  ;;  %v7649_v31 = vld [vmem:[%s9412_s1 + $0xf98] sm:$0xff]  }
 0x1d0   :  { %7059 = vmatpush3.bf16.msra.mxu0 %v7612_v32  ;;  %v7651_v32 = vld [vmem:[%s9412_s1 + $0xfd0] sm:$0xff]  }
 0x1d1   :  { %7060 = vmatprep.subr.bf16.mxu0 %v7614_v33  ;;  %v7652_v33 = vld [vmem:[%s9412_s1 + $0xf10] sm:$0xff]  }
 0x1d2   :  { %7081 = vmatpush3.bf16.msra.mxu1 %v7613_v34  ;;  %v7654_v34 = vld [vmem:[%s9412_s1 + $0xf48] sm:$0xff]  }
 0x1d3   :  { %7082 = vmatprep.subr.bf16.mxu1 %v7615_v35  ;;  %v7653_v35 = vld [vmem:[%s9412_s1 + $0xf90] sm:$0xff]  }
 0x1d4   :  { %7061 = vmatpush3.bf16.msra.mxu0 %v7616_v36  ;;  %v7655_v36 = vld [vmem:[%s9412_s1 + $0xfc8] sm:$0xff]  }
 0x1d5   :  { %7062 = vmatprep.subr.bf16.mxu0 %v7618_v37  ;;  %v7656_v37 = vld [vmem:[%s9412_s1 + $0xf08] sm:$0xff]  }
 0x1d6   :  { %7083 = vmatpush3.bf16.msra.mxu1 %v7617_v38 }
 0x1d7   :  { %7084 = vmatprep.subr.bf16.mxu1 %v7619_v39 }
 0x1d8   :  { %7063 = vmatpush3.bf16.msra.mxu0 %v7620_v40 }
 0x1d9   :  { %7064 = vmatprep.subr.bf16.mxu0 %v7622_v42 }
 0x1da   :  { %7085 = vmatpush3.bf16.msra.mxu1 %v7621_v43 }
 0x1db   :  { %7086 = vmatprep.subr.bf16.mxu1 %v7623_v44 }
 0x1dc   :  { %7065 = vmatpush3.bf16.msra.mxu0 %v7624_v46 }
 0x1dd   :  { %7066 = vmatprep.subr.bf16.mxu0 %v7626_v49 }
 0x1de   :  { %7087 = vmatpush3.bf16.msra.mxu1 %v7625_v50 }
 0x1df   :  { %7088 = vmatprep.subr.bf16.mxu1 %v7627_v53 }
 0x1e0   :  { %7067 = vmatpush3.bf16.msra.mxu0 %v7628_v54 }
 0x1e1   :  { %7096 = vmatprep.subr.bf16.mxu0 %v7630_v58 }
 0x1e2   :  { %7089 = vmatpush3.bf16.msra.mxu1 %v7629_v59 }
 0x1e3   :  { %v6804_v4 = vpop.f32.mrf.mxu0  ;;  %5746 = vmatmul.mubr.bf16.vlgmr.msra.gmra.mxu0 %v1431_v57  ;;  %7118 = vmatprep.subr.bf16.mxu1 %v7631_v62 }
 0x1e4   :  { %7097 = vmatpush3.bf16.msra.mxu0 %v7632_v63  ;;  %5825 = vmatprep.mubr.bf16.mxu0 %v1452_v61 }
 0x1e5   :  { %v6826_v7 = vpop.f32.mrf.mxu1  ;;  %5786 = vmatmul.mubr.bf16.vlgmr.msra.gmra.mxu1 %v1453_v0  ;;  %v6805_v8 = vpop.f32.mrf.mxu0  ;;  %7098 = vmatprep.subr.bf16.mxu0 %v7634_v1 }
 0x1e6   :  { %7119 = vmatpush3.bf16.msra.mxu1 %v7633_v2  ;;  %v6806_v10 = vadd.f32 %v6805_v8, %v6804_v4  ;;  %5865 = vmatprep.mubr.bf16.mxu1 %v1456_v3 }
 0x1e7   :  { %v6827_v12 = vpop.f32.mrf.mxu1  ;;  %v6807_v13 = vpop.f32.mrf.mxu0  ;;  %7120 = vmatprep.subr.bf16.mxu1 %v7635_v5 }
 0x1e8   :  { %v5268_v15 = vadd.f32 %v6806_v10, %v9229_v28  ;;  %v6828_v16 = vadd.f32 %v6827_v12, %v6826_v7  ;;  %7099 = vmatpush3.bf16.msra.mxu0 %v7636_v6  ;;  %v7647_v28 = vld [vmem:[%s9412_s1 + $0xfd8] sm:$0xff]  }
 0x1e9   :  { %v6829_v18 = vpop.f32.mrf.mxu1  ;;  %v6808_v19 = vpop.f32.mrf.mxu0  ;;  %7100 = vmatprep.subr.bf16.mxu0 %v7638_v9 }
 0x1ea   :  { %v5308_v21 = vadd.f32 %v6828_v16, %v5268_v15  ;;  %7121 = vmatpush3.bf16.msra.mxu1 %v7637_v11 }
 0x1eb   :  { %v6830_v23 = vpop.f32.mrf.mxu1  ;;  %7122 = vmatprep.subr.bf16.mxu1 %v7639_v14 }
 0x1ec   :  { %7101 = vmatpush3.bf16.msra.mxu0 %v7640_v17 }
 0x1ed   :  { %7102 = vmatprep.subr.bf16.mxu0 %v7642_v20 }
 0x1ee   :  { %7123 = vmatpush3.bf16.msra.mxu1 %v7641_v22 }
 0x1ef   :  { %7124 = vmatprep.subr.bf16.mxu1 %v7643_v24 }
 0x1f0   :  { %7103 = vmatpush3.bf16.msra.mxu0 %v7644_v25 }
 0x1f1   :  { %7104 = vmatprep.subr.bf16.mxu0 %v7646_v26 }
 0x1f2   :  { %7125 = vmatpush3.bf16.msra.mxu1 %v7645_v27 }
 0x1f3   :  { %7126 = vmatprep.subr.bf16.mxu1 %v7647_v28 }
 0x1f4   :  { %7105 = vmatpush3.bf16.msra.mxu0 %v7648_v29 }
 0x1f5   :  { %7106 = vmatprep.subr.bf16.mxu0 %v7650_v30 }
 0x1f6   :  { %7127 = vmatpush3.bf16.msra.mxu1 %v7649_v31 }
 0x1f7   :  { %7128 = vmatprep.subr.bf16.mxu1 %v7651_v32 }
 0x1f8   :  { %7107 = vmatpush3.bf16.msra.mxu0 %v7652_v33 }
 0x1f9   :  { %10 = vsyncpa [#allocation3], 0  ;;  %7108 = vmatprep.subr.bf16.mxu0 %v7654_v34  ;;  %v7658_v38 = vld [vmem:[%s9412_s1 + $0xf40] sm:$0xff]   ;;  %v7657_v39 = vld [vmem:[%s9412_s1 + $0xf88] sm:$0xff]   ;;  %v1438_v43 = vrot.slane %v9287_v52, %v7830_v41  ;;  %vm5892_vm0 = vcmask 74752   ;;  %vm5890_vm2 = vcmask 1024  }
 0x1fa   :  { %7129 = vmatpush3.bf16.msra.mxu1 %v7653_v35  ;;  %v7659_v40 = vld [vmem:[%s9412_s1 + $0xfc0] sm:$0xff]   ;;  %s7699_s21 = smov [#allocation2]  }
 0x1fb   :  { %7130 = vmatprep.subr.bf16.mxu1 %v7655_v36  ;;  %v7660_v42 = vld [vmem:[%s9412_s1 + $0xf00] sm:$0xff]   ;;  %v1454_v45 = vcombine.high %v1438_v43, %v1438_v43  ;;  %s5913_s22 = sshll.u32 %s7699_s21, 4  ;;  %s5914_s22 = int_to_ptr.vmem [resolvable:$true] %s5913_s22 }
 0x1fc   :  { %7109 = vmatpush3.bf16.msra.mxu0 %v7656_v37  ;;  %v7661_v44 = vld [vmem:[%s9412_s1 + $0xf80] sm:$0xff]   ;;  %s7698_s1 = smov 118   ;;  %s7675_s2 = scalar_lea.vmem %s5914_s22, 32 }
 0x1fd   :  { %7110 = vmatprep.subr.bf16.mxu0 %v7658_v38  ;;  %p7676_p0 = scmp.ne.s32.totalorder %s5914_s22, %s7675_s2  ;;  %p7680_p1 = scmp.lt.s32.totalorder %s5914_s22, %s5914_s22 }
 0x1fe   :  { %7131 = vmatpush3.bf16.msra.mxu1 %v7657_v39  ;;  %p7681_p2 = scmp.lt.s32.totalorder %s7675_s2, %s7675_s2 }
 0x1ff   :  { %7132 = vmatprep.subr.bf16.mxu1 %v7659_v40 }
 0x200   :  { %7111 = vmatpush3.bf16.msra.mxu0 %v7660_v42  ;;  %p7682_p3 = por %p7681_p2, %p7680_p1 }
 0x202   :  { %7133 = vmatpush3.bf16.msra.mxu1 %v7661_v44  ;;  %p7683_p4 = pnand %p7682_p3, %p7676_p0 }
 0x203   :  { %v6848_v46 = vpop.f32.mrf.mxu0  ;;  %5826 = vmatmul.mubr.bf16.vlgmr.msra.gmra.mxu0 %v1438_v43 }
 0x205   :  { %v6870_v47 = vpop.f32.mrf.mxu1  ;;  %5866 = vmatmul.mubr.bf16.vlgmr.msra.gmra.mxu1 %v1454_v45  ;;  %v6849_v48 = vpop.f32.mrf.mxu0 }
 0x206   :  { %v6850_v49 = vadd.f32 %v6849_v48, %v6848_v46 }
 0x207   :  { %v6871_v50 = vpop.f32.mrf.mxu1  ;;  %v6851_v51 = vpop.f32.mrf.mxu0 }
 0x208   :  { %v5348_v53 = vadd.f32 %v6850_v49, %v5308_v21  ;;  %v6872_v54 = vadd.f32 %v6871_v50, %v6870_v47 }
 0x209   :  { %v6873_v41 = vpop.f32.mrf.mxu1  ;;  %v6852_v52 = vpop.f32.mrf.mxu0 }
 0x20a   :  { %v5388_v55 = vadd.f32 %v6872_v54, %v5348_v53 }
 0x20b   :  { %v6874_v56 = vpop.f32.mrf.mxu1 }
 0x223   :  { %v6892_v57 = vpop.f32.mrf.mxu0 }
 0x225   :  { %v6914_v58 = vpop.f32.mrf.mxu1  ;;  %v6893_v59 = vpop.f32.mrf.mxu0 }
 0x226   :  { %v6894_v60 = vadd.f32 %v6893_v59, %v6892_v57 }
 0x227   :  { %v6915_v61 = vpop.f32.mrf.mxu1  ;;  %v6895_v62 = vpop.f32.mrf.mxu0 }
 0x228   :  { %v5428_v63 = vadd.f32 %v6894_v60, %v5388_v55  ;;  %v6916_v0 = vadd.f32 %v6915_v61, %v6914_v58 }
 0x229   :  { %v6917_v1 = vpop.f32.mrf.mxu1  ;;  %v6896_v2 = vpop.f32.mrf.mxu0 }
 0x22a   :  { %v5468_v3 = vadd.f32 %v6916_v0, %v5428_v63 }
 0x22b   :  { %v6918_v4 = vpop.f32.mrf.mxu1 }
 0x243   :  { %v6936_v5 = vpop.f32.mrf.mxu0 }
 0x245   :  { %v6958_v6 = vpop.f32.mrf.mxu1  ;;  %v6937_v7 = vpop.f32.mrf.mxu0 }
 0x246   :  { %v6938_v8 = vadd.f32 %v6937_v7, %v6936_v5 }
 0x247   :  { %v6959_v9 = vpop.f32.mrf.mxu1  ;;  %v6939_v10 = vpop.f32.mrf.mxu0 }
 0x248   :  { %v5508_v11 = vadd.f32 %v6938_v8, %v5468_v3  ;;  %v6960_v12 = vadd.f32 %v6959_v9, %v6958_v6 }
 0x249   :  { %v6961_v13 = vpop.f32.mrf.mxu1  ;;  %v6940_v14 = vpop.f32.mrf.mxu0 }
 0x24a   :  { %v5548_v15 = vadd.f32 %v6960_v12, %v5508_v11 }
 0x24b   :  { %v6962_v16 = vpop.f32.mrf.mxu1 }
 0x263   :  { %v6980_v17 = vpop.f32.mrf.mxu0 }
 0x265   :  { %v7002_v18 = vpop.f32.mrf.mxu1  ;;  %v6981_v19 = vpop.f32.mrf.mxu0 }
 0x266   :  { %v6982_v20 = vadd.f32 %v6981_v19, %v6980_v17 }
 0x267   :  { %v7003_v21 = vpop.f32.mrf.mxu1  ;;  %v6983_v22 = vpop.f32.mrf.mxu0 }
 0x268   :  { %v5588_v23 = vadd.f32 %v6982_v20, %v5548_v15  ;;  %v7004_v24 = vadd.f32 %v7003_v21, %v7002_v18 }
 0x269   :  { %v7005_v25 = vpop.f32.mrf.mxu1  ;;  %v6984_v26 = vpop.f32.mrf.mxu0 }
 0x26a   :  { %v5628_v27 = vadd.f32 %v7004_v24, %v5588_v23 }
 0x26b   :  { %v7006_v28 = vpop.f32.mrf.mxu1 }
 0x283   :  { %v7024_v29 = vpop.f32.mrf.mxu0 }
 0x285   :  { %v7046_v30 = vpop.f32.mrf.mxu1  ;;  %v7025_v31 = vpop.f32.mrf.mxu0 }
 0x286   :  { %v7026_v46 = vadd.f32 %v7025_v31, %v7024_v29 }
 0x287   :  { %v7047_v32 = vpop.f32.mrf.mxu1  ;;  %v7027_v33 = vpop.f32.mrf.mxu0 }
 0x288   :  { %v5668_v47 = vadd.f32 %v7026_v46, %v5628_v27  ;;  %v7048_v48 = vadd.f32 %v7047_v32, %v7046_v30 }
 0x289   :  { %v7049_v34 = vpop.f32.mrf.mxu1  ;;  %v7028_v35 = vpop.f32.mrf.mxu0 }
 0x28a   :  { %v5708_v50 = vadd.f32 %v7048_v48, %v5668_v47 }
 0x28b   :  { %v7050_v36 = vpop.f32.mrf.mxu1 }
 0x2a3   :  { %v7068_v37 = vpop.f32.mrf.mxu0 }
 0x2a5   :  { %v7090_v38 = vpop.f32.mrf.mxu1  ;;  %v7069_v39 = vpop.f32.mrf.mxu0 }
 0x2a6   :  { %v7070_v49 = vadd.f32 %v7069_v39, %v7068_v37 }
 0x2a7   :  { %v7091_v40 = vpop.f32.mrf.mxu1  ;;  %v7071_v42 = vpop.f32.mrf.mxu0 }
 0x2a8   :  { %v5748_v51 = vadd.f32 %v7070_v49, %v5708_v50  ;;  %v7092_v53 = vadd.f32 %v7091_v40, %v7090_v38 }
 0x2a9   :  { %v7093_v43 = vpop.f32.mrf.mxu1  ;;  %v7072_v44 = vpop.f32.mrf.mxu0 }
 0x2aa   :  { %v5788_v55 = vadd.f32 %v7092_v53, %v5748_v51 }
 0x2ab   :  { %v7094_v45 = vpop.f32.mrf.mxu1 }
 0x2c3   :  { %v7112_v54 = vpop.f32.mrf.mxu0 }
 0x2c5   :  { %v7134_v41 = vpop.f32.mrf.mxu1  ;;  %v7113_v52 = vpop.f32.mrf.mxu0 }
 0x2c6   :  { %v7114_v56 = vadd.f32 %v7113_v52, %v7112_v54 }
 0x2c7   :  { %v7135_v57 = vpop.f32.mrf.mxu1  ;;  %v7115_v58 = vpop.f32.mrf.mxu0 }
 0x2c8   :  { %v5828_v59 = vadd.f32 %v7114_v56, %v5788_v55  ;;  %v7136_v60 = vadd.f32 %v7135_v57, %v7134_v41 }
 0x2c9   :  { %v7137_v61 = vpop.f32.mrf.mxu1  ;;  %v7116_v62 = vpop.f32.mrf.mxu0 }
 0x2ca   :  { %v5868_v63 = vadd.f32 %v7136_v60, %v5828_v59 }
 0x2cb   :  { %v7138_v0 = vpop.f32.mrf.mxu1 }
 0x2cc   :  { %v5874_v1 = vsub.f32 0.0, %v5868_v63  ;;  %v5880_v2 = vmul.f32 1.442695, %v5868_v63  ;;  %v5893_v3 = vsel %vm5892_vm0, %v5868_v63, -inf  ;;  %vm5873_vm1 = vcmp.ge.f32.partialorder %v5868_v63, 0.0 }
 0x2cd   :  { %5894 = vmax.xlane.f32.xlu0 %v5893_v3 }
 0x2ce   :  { %v5875_v4 = vmul.f32 1.442695, %v5874_v1  ;;  %7663 = vpow2.f32 %v5880_v2 }
 0x2d0   :  { %7665 = vpow2.f32 %v5875_v4 }
 0x2db   :  { %v7664_v5 = vpop.eup %7663 }
 0x2dc   :  { %v5882_v6 = vadd.f32 1.0, %v7664_v5 }
 0x2dd   :  { %v7666_v7 = vpop.eup %7665 }
 0x2de   :  { %v5877_v8 = vadd.f32 1.0, %v7666_v7  ;;  %7667 = vrcp.f32 %v5882_v6 }
 0x2e0   :  { %7669 = vrcp.f32 %v5877_v8 }
 0x2eb   :  { %v7668_v9 = vpop.eup %7667 }
 0x2ec   :  { %v5884_v10 = vmul.f32 %v7668_v9, %v7664_v5 }
 0x2ed   :  { %v7670_v11 = vpop.eup %7669 }
 0x2ee   :  { %v5885_v12 = vsel %vm5873_vm1, %v7670_v11, %v5884_v10 }
 0x2ef   :  { %5887 = vrot.lane.b32.xlu1 %v5885_v12, %s7698_s1 }
 0x356   :  { %v5895_v13 = vpop.xlane.xlu0 %5894 }
 0x357   :  { %v5896_v14 = vsub.f32 %v5868_v63, %v5895_v13 }
 0x359   :  { %v5897_v15 = vmul.f32 1.442695, %v5896_v14 }
 0x35b   :  { %7671 = vpow2.f32 %v5897_v15 }
 0x361   :  { %v5888_v16 = vpop.permute.xlu1 %5887 }
 0x362   :  { %5891 = vst.msk [vmem:[%s9414_s3] sm:$0x3] %vm5890_vm2, %v5888_v16 }
 0x368   :  { %v7672_v17 = vpop.eup %7671 }
 0x369   :  { %v5899_v18 = vsel %vm5892_vm0, %v7672_v17, 0.0 }
 0x36a   :  { %5900 = vadd.xlane.f32.xlu0 %v5899_v18 }
 0x3f3   :  { %v5901_v19 = vpop.xlane.xlu0 %5900 }
 0x3f4   :  { %7673 = vrcp.f32 %v5901_v19 }
 0x401   :  { %v7674_v20 = vpop.eup %7673 }
 0x402   :  { %v5903_v21 = vmul.f32 %v7674_v20, %v7672_v17 }
 0x404   :  { %5904 = vst.msk [vmem:[#allocation2] sm:$0x3] %vm5892_vm0, %v5903_v21 }
 0x405   :  { %7686 = shalt.err (!%p7683_p4)
}
 0x406   :  { %5916 = dma.vmem_to_hbm [thread:$0]  %s5914_s22, 32, %s9415_s4, [#allocation3]  }
 0x407   :  { %7695 = dma.done.wait [#allocation3], 32  }
 0x408   :  { %7696 = vsyncadd [#allocation3], 4294967264 }
 0x409   :  { %5922 = vsyncpa [#allocation3], 1 }

</bundles_post_ra>
